<compile_context>
chip_gen: v6e
topology: v6e:2x2x1
jax: 0.10.0
libtpu: 0.0.40
codegen_flags: <defaults>
</compile_context>

<pallas_src>
import functools

import jax
import jax.numpy as jnp
from jax.experimental import pallas as pl
from jax.experimental.pallas import tpu as pltpu


# ----------------------------------------------------------------------------
# Helpers
# ----------------------------------------------------------------------------
def _round_up(x, m):
    return ((x + m - 1) // m) * m


def _largest_divisor_tile(dim, cap, step):
    """dim is a multiple of `step`; largest multiple of `step` dividing dim, <= max(cap, step)."""
    t = min(dim, max(cap, step))
    t -= t % step
    while dim % t:
        t -= step
    return t


def _pick_tk(kp, tm, tn, budget_bytes):
    """Largest multiple of 128 dividing kp whose double-buffered bf16 tiles fit the budget."""
    for tk in range(kp, 127, -128):
        if kp % tk:
            continue
        tile_bytes = (2 * 2 * (tm * tk + tk * tn)   # double-buffered bf16 A/W tiles
                      + 3 * 4 * tm * tn             # f32 accumulator + double-buffered out
                      + 4 * 4 * tn)                 # scale/shift blocks
        if tile_bytes <= budget_bytes:
            return tk
    return 128


# ----------------------------------------------------------------------------
# Fused matmul + batchnorm(scale/shift) + optional relu kernels
# ----------------------------------------------------------------------------
def _linear_bn_kernel_fullk(a_ref, w_ref, s_ref, t_ref, o_ref, *, relu):
    # Whole K dimension in one block -> single MXU shot, no accumulator.
    y = jnp.dot(a_ref[...], w_ref[...], preferred_element_type=jnp.float32)
    y = y * s_ref[...] + t_ref[...]
    if relu:
        y = jnp.maximum(y, 0.0)
    o_ref[...] = y.astype(o_ref.dtype)


def _linear_bn_kernel_acc(a_ref, w_ref, s_ref, t_ref, o_ref, acc_ref, *, relu):
    # Fallback: K tiled on grid axis 2 with an f32 VMEM accumulator.
    @pl.when(pl.program_id(2) == 0)
    def _init():
        acc_ref[...] = jnp.zeros_like(acc_ref)

    acc_ref[...] += jnp.dot(a_ref[...], w_ref[...],
                            preferred_element_type=jnp.float32)

    @pl.when(pl.program_id(2) == pl.num_programs(2) - 1)
    def _finalize():
        y = acc_ref[...] * s_ref[...] + t_ref[...]
        if relu:
            y = jnp.maximum(y, 0.0)
        o_ref[...] = y.astype(o_ref.dtype)


def fused_linear_bn(a_p, w_p, s_p, t_p, *, relu, out_dtype):
    """out_p = maybe_relu((a_p @ w_p) * s_p + t_p), all operands pre-padded.

    a_p: (Mp, Kp) bf16; w_p: (Kp, Np) bf16 (pre-binarized +/-1, transposed);
    s_p/t_p: (1, Np) f32.  Returns the padded (Mp, Np) result in `out_dtype`.
    """
    Mp, Kp = a_p.shape
    Kp2, Np = w_p.shape
    assert Kp == Kp2 and Mp % 16 == 0 and Kp % 128 == 0 and Np % 128 == 0

    tm = _largest_divisor_tile(Mp, 256, 16)
    tn = _largest_divisor_tile(Np, 512, 128)
    # Keep >= 2 parallel tiles for megacore (v7x) whenever the width allows it.
    if (Mp // tm) * (Np // tn) < 2 and tn >= 256:
        tn //= 2
    tk = _pick_tk(Kp, tm, tn, budget_bytes=24 * 1024 * 1024)

    if tk == Kp:
        # Full-K: 2-D parallel grid, no reduction axis, no accumulator scratch.
        kernel = functools.partial(_linear_bn_kernel_fullk, relu=relu)
        return pl.pallas_call(
            kernel,
            out_shape=jax.ShapeDtypeStruct((Mp, Np), out_dtype),
            grid_spec=pltpu.PrefetchScalarGridSpec(
                num_scalar_prefetch=0,
                grid=(Mp // tm, Np // tn),
                in_specs=[
                    pl.BlockSpec((tm, Kp), lambda i, j: (i, 0)),
                    pl.BlockSpec((Kp, tn), lambda i, j: (0, j)),
                    pl.BlockSpec((1, tn), lambda i, j: (0, j)),
                    pl.BlockSpec((1, tn), lambda i, j: (0, j)),
                ],
                out_specs=pl.BlockSpec((tm, tn), lambda i, j: (i, j)),
            ),
            compiler_params=pltpu.CompilerParams(
                dimension_semantics=("parallel", "parallel"),
                vmem_limit_bytes=32 * 1024 * 1024),
        )(a_p, w_p, s_p, t_p)

    kernel = functools.partial(_linear_bn_kernel_acc, relu=relu)
    return pl.pallas_call(
        kernel,
        out_shape=jax.ShapeDtypeStruct((Mp, Np), out_dtype),
        grid_spec=pltpu.PrefetchScalarGridSpec(
            num_scalar_prefetch=0,
            grid=(Mp // tm, Np // tn, Kp // tk),
            in_specs=[
                pl.BlockSpec((tm, tk), lambda i, j, k: (i, k)),
                pl.BlockSpec((tk, tn), lambda i, j, k: (k, j)),
                pl.BlockSpec((1, tn), lambda i, j, k: (0, j)),
                pl.BlockSpec((1, tn), lambda i, j, k: (0, j)),
            ],
            out_specs=pl.BlockSpec((tm, tn), lambda i, j, k: (i, j)),
            scratch_shapes=[pltpu.VMEM((tm, tn), jnp.float32)],
        ),
        compiler_params=pltpu.CompilerParams(
            dimension_semantics=("parallel", "parallel", "arbitrary"),
            vmem_limit_bytes=32 * 1024 * 1024),
    )(a_p, w_p, s_p, t_p)


# ----------------------------------------------------------------------------
# Parameter construction (deterministic, in-script, fully pre-processed)
# ----------------------------------------------------------------------------
def init_params(key, in_features, out_features, num_units=2048, eps=1e-4):
    """Pre-binarized, transposed, padded bf16 weights + folded, padded BN scale/shift."""
    layer_dims = [(in_features, num_units), (num_units, num_units),
                  (num_units, num_units), (num_units, out_features)]
    params = {"w": [], "s": [], "t": []}
    for fin, fout in layer_dims:
        key, kw, k1, k2, k3, k4 = jax.random.split(key, 6)
        kp, npad = _round_up(fin, 128), _round_up(fout, 128)

        w = 0.05 * jax.random.normal(kw, (fout, fin), jnp.float32)   # torch (out, in)
        # BinaryConnect deterministic binarization: sign with sign(0) = +1.
        wb = jnp.where(w >= 0, 1.0, -1.0).astype(jnp.bfloat16).T      # (in, out)
        params["w"].append(jnp.pad(wb, ((0, kp - fin), (0, npad - fout))))

        gamma = jax.random.uniform(k1, (fout,), jnp.float32, 0.5, 1.5)
        beta = 0.1 * jax.random.normal(k2, (fout,), jnp.float32)
        rmean = 0.1 * jax.random.normal(k3, (fout,), jnp.float32)
        rvar = jax.random.uniform(k4, (fout,), jnp.float32, 0.5, 1.5)
        sc = gamma / jnp.sqrt(rvar + eps)
        sh = beta - rmean * sc
        params["s"].append(
            jnp.pad(sc, (0, npad - fout), constant_values=1.0).reshape(1, npad))
        params["t"].append(jnp.pad(sh, (0, npad - fout)).reshape(1, npad))
    return params


# ----------------------------------------------------------------------------
# Full forward pass (mirrors MLPBinaryConnect.forward, inference mode)
# ----------------------------------------------------------------------------
def mlp_binaryconnect_forward(params, x, *, out_features):
    B = x.shape[0]
    x = x.reshape(B, -1).astype(jnp.bfloat16)       # x.view(-1, in_features)
    K = x.shape[1]
    Mp = _round_up(B, 16)                           # 16 sublanes = bf16 native tile
    Kp = params["w"][0].shape[0]
    x = jnp.pad(x, ((0, Mp - B), (0, Kp - K)))      # pad batch once at entry
    # dropout1..4 with p=drop_prob=0 are the identity.
    # TODO(synk): nonzero dropout probability not implemented (inference forward).
    w, s, t = params["w"], params["s"], params["t"]
    x = fused_linear_bn(x, w[0], s[0], t[0], relu=True,  out_dtype=jnp.bfloat16)  # fc1 -> relu(bn1)
    x = fused_linear_bn(x, w[1], s[1], t[1], relu=True,  out_dtype=jnp.bfloat16)  # fc2 -> relu(bn2)
    x = fused_linear_bn(x, w[2], s[2], t[2], relu=True,  out_dtype=jnp.bfloat16)  # fc3 -> relu(bn3)
    x = fused_linear_bn(x, w[3], s[3], t[3], relu=False, out_dtype=jnp.float32)   # fc4 -> bn4
    return x[:B, :out_features]                     # slice padding once at exit


# ----------------------------------------------------------------------------
if __name__ == "__main__":
    BATCH = 2
    C, H, W = 4, 16, 16
    IN_FEATURES = C * H * W      # 1024; forward flattens with x.view(-1, in_features)
    OUT_FEATURES = 10
    NUM_UNITS = 2048             # module default

    key = jax.random.PRNGKey(0)
    key, kx = jax.random.split(key)
    x = jax.random.normal(kx, (BATCH, C, H, W), jnp.float32)

    params = init_params(key, IN_FEATURES, OUT_FEATURES, NUM_UNITS)

    fwd = jax.jit(functools.partial(mlp_binaryconnect_forward,
                                    out_features=OUT_FEATURES))
    out = jax.block_until_ready(fwd(params, x))

    assert out.shape == (BATCH, OUT_FEATURES), out.shape
    assert bool(jnp.all(jnp.isfinite(out)))
    print("KERNEL_OK")
</pallas_src>

<mosaic_0001>
module attributes {stable_mosaic.version = 11 : i64} {
  func.func @_linear_bn_kernel_fullk(%arg0: i32, %arg1: i32, %arg2: memref<16x1024xbf16, #tpu.memory_space<vmem>>, %arg3: memref<1024x512xbf16, #tpu.memory_space<vmem>>, %arg4: memref<1x512xf32, #tpu.memory_space<vmem>>, %arg5: memref<1x512xf32, #tpu.memory_space<vmem>>, %arg6: memref<16x512xbf16, #tpu.memory_space<vmem>>) attributes {dimension_semantics = [#tpu.dimension_semantics<parallel>, #tpu.dimension_semantics<parallel>], iteration_bounds = array<i64: 1, 4>, scalar_prefetch = 0 : i64, scratch_operands = 0 : i64, tpu.core_type = #tpu.core_type<tc>, window_params = [{transform_indices = @transform_0, window_bounds = array<i64: 16, 1024>}, {transform_indices = @transform_1, window_bounds = array<i64: 1024, 512>}, {transform_indices = @transform_2, window_bounds = array<i64: 1, 512>}, {transform_indices = @transform_3, window_bounds = array<i64: 1, 512>}, {transform_indices = @transform_4, window_bounds = array<i64: 16, 512>}]} {
    %c0 = arith.constant 0 : index
    %c0_0 = arith.constant 0 : index
    %0 = vector.load %arg2[%c0, %c0_0] : memref<16x1024xbf16, #tpu.memory_space<vmem>>, vector<16x1024xbf16>
    %c0_1 = arith.constant 0 : index
    %c0_2 = arith.constant 0 : index
    %1 = vector.load %arg3[%c0_1, %c0_2] : memref<1024x512xbf16, #tpu.memory_space<vmem>>, vector<1024x512xbf16>
    %cst = arith.constant dense<0.000000e+00> : vector<16x512xf32>
    %2 = tpu.matmul %0, %1, %cst {dimension_numbers = #tpu.dot_dimension_numbers<[1], [0], [0], [1], [0, 0, 1, 1], [], []>} : vector<16x1024xbf16>, vector<1024x512xbf16>, vector<16x512xf32> -> vector<16x512xf32>
    %c0_3 = arith.constant 0 : index
    %c0_4 = arith.constant 0 : index
    %3 = vector.load %arg4[%c0_3, %c0_4] : memref<1x512xf32, #tpu.memory_space<vmem>>, vector<1x512xf32>
    %4 = vector.broadcast %3 : vector<1x512xf32> to vector<16x512xf32>
    %5 = arith.mulf %2, %4 : vector<16x512xf32>
    %c0_5 = arith.constant 0 : index
    %c0_6 = arith.constant 0 : index
    %6 = vector.load %arg5[%c0_5, %c0_6] : memref<1x512xf32, #tpu.memory_space<vmem>>, vector<1x512xf32>
    %7 = vector.broadcast %6 : vector<1x512xf32> to vector<16x512xf32>
    %8 = arith.addf %5, %7 : vector<16x512xf32>
    %cst_7 = arith.constant 0.000000e+00 : f32
    %9 = vector.broadcast %cst_7 : f32 to vector<16x512xf32>
    %10 = arith.maximumf %8, %9 : vector<16x512xf32>
    %11 = arith.truncf %10 : vector<16x512xf32> to vector<16x512xbf16>
    %c0_8 = arith.constant 0 : index
    %c0_9 = arith.constant 0 : index
    %12 = vector.load %arg6[%c0_8, %c0_9] : memref<16x512xbf16, #tpu.memory_space<vmem>>, vector<16x512xbf16>
    tpu.vector_store %arg6[%c0_8, %c0_9], %11 {strides = array<i32>} : memref<16x512xbf16, #tpu.memory_space<vmem>>, vector<16x512xbf16>,
    return
  }
  func.func @transform_0(%arg0: i32, %arg1: i32) -> (i32, i32) {
    %c0_i32 = arith.constant 0 : i32
    %c0_i32_0 = arith.constant 0 : i32
    return %arg0, %c0_i32 : i32, i32
  }
  func.func @transform_1(%arg0: i32, %arg1: i32) -> (i32, i32) {
    %c0_i32 = arith.constant 0 : i32
    %c0_i32_0 = arith.constant 0 : i32
    return %c0_i32, %arg1 : i32, i32
  }
  func.func @transform_2(%arg0: i32, %arg1: i32) -> (i32, i32) {
    %c0_i32 = arith.constant 0 : i32
    %c0_i32_0 = arith.constant 0 : i32
    return %c0_i32, %arg1 : i32, i32
  }
  func.func @transform_3(%arg0: i32, %arg1: i32) -> (i32, i32) {
    %c0_i32 = arith.constant 0 : i32
    %c0_i32_0 = arith.constant 0 : i32
    return %c0_i32, %arg1 : i32, i32
  }
  func.func @transform_4(%arg0: i32, %arg1: i32) -> (i32, i32) {
    %c0_i32 = arith.constant 0 : i32
    return %arg0, %arg1 : i32, i32
  }
}

module attributes {stable_mosaic.version = 11 : i64} {
  func.func @_linear_bn_kernel_fullk(%arg0: i32, %arg1: i32, %arg2: memref<16x2048xbf16, #tpu.memory_space<vmem>>, %arg3: memref<2048x512xbf16, #tpu.memory_space<vmem>>, %arg4: memref<1x512xf32, #tpu.memory_space<vmem>>, %arg5: memref<1x512xf32, #tpu.memory_space<vmem>>, %arg6: memref<16x512xbf16, #tpu.memory_space<vmem>>) attributes {dimension_semantics = [#tpu.dimension_semantics<parallel>, #tpu.dimension_semantics<parallel>], iteration_bounds = array<i64: 1, 4>, scalar_prefetch = 0 : i64, scratch_operands = 0 : i64, tpu.core_type = #tpu.core_type<tc>, window_params = [{transform_indices = @transform_0, window_bounds = array<i64: 16, 2048>}, {transform_indices = @transform_1, window_bounds = array<i64: 2048, 512>}, {transform_indices = @transform_2, window_bounds = array<i64: 1, 512>}, {transform_indices = @transform_3, window_bounds = array<i64: 1, 512>}, {transform_indices = @transform_4, window_bounds = array<i64: 16, 512>}]} {
    %c0 = arith.constant 0 : index
    %c0_0 = arith.constant 0 : index
    %0 = vector.load %arg2[%c0, %c0_0] : memref<16x2048xbf16, #tpu.memory_space<vmem>>, vector<16x2048xbf16>
    %c0_1 = arith.constant 0 : index
    %c0_2 = arith.constant 0 : index
    %1 = vector.load %arg3[%c0_1, %c0_2] : memref<2048x512xbf16, #tpu.memory_space<vmem>>, vector<2048x512xbf16>
    %cst = arith.constant dense<0.000000e+00> : vector<16x512xf32>
    %2 = tpu.matmul %0, %1, %cst {dimension_numbers = #tpu.dot_dimension_numbers<[1], [0], [0], [1], [0, 0, 1, 1], [], []>} : vector<16x2048xbf16>, vector<2048x512xbf16>, vector<16x512xf32> -> vector<16x512xf32>
    %c0_3 = arith.constant 0 : index
    %c0_4 = arith.constant 0 : index
    %3 = vector.load %arg4[%c0_3, %c0_4] : memref<1x512xf32, #tpu.memory_space<vmem>>, vector<1x512xf32>
    %4 = vector.broadcast %3 : vector<1x512xf32> to vector<16x512xf32>
    %5 = arith.mulf %2, %4 : vector<16x512xf32>
    %c0_5 = arith.constant 0 : index
    %c0_6 = arith.constant 0 : index
    %6 = vector.load %arg5[%c0_5, %c0_6] : memref<1x512xf32, #tpu.memory_space<vmem>>, vector<1x512xf32>
    %7 = vector.broadcast %6 : vector<1x512xf32> to vector<16x512xf32>
    %8 = arith.addf %5, %7 : vector<16x512xf32>
    %cst_7 = arith.constant 0.000000e+00 : f32
    %9 = vector.broadcast %cst_7 : f32 to vector<16x512xf32>
    %10 = arith.maximumf %8, %9 : vector<16x512xf32>
    %11 = arith.truncf %10 : vector<16x512xf32> to vector<16x512xbf16>
    %c0_8 = arith.constant 0 : index
    %c0_9 = arith.constant 0 : index
    %12 = vector.load %arg6[%c0_8, %c0_9] : memref<16x512xbf16, #tpu.memory_space<vmem>>, vector<16x512xbf16>
    tpu.vector_store %arg6[%c0_8, %c0_9], %11 {strides = array<i32>} : memref<16x512xbf16, #tpu.memory_space<vmem>>, vector<16x512xbf16>,
    return
  }
  func.func @transform_0(%arg0: i32, %arg1: i32) -> (i32, i32) {
    %c0_i32 = arith.constant 0 : i32
    %c0_i32_0 = arith.constant 0 : i32
    return %arg0, %c0_i32 : i32, i32
  }
  func.func @transform_1(%arg0: i32, %arg1: i32) -> (i32, i32) {
    %c0_i32 = arith.constant 0 : i32
    %c0_i32_0 = arith.constant 0 : i32
    return %c0_i32, %arg1 : i32, i32
  }
  func.func @transform_2(%arg0: i32, %arg1: i32) -> (i32, i32) {
    %c0_i32 = arith.constant 0 : i32
    %c0_i32_0 = arith.constant 0 : i32
    return %c0_i32, %arg1 : i32, i32
  }
  func.func @transform_3(%arg0: i32, %arg1: i32) -> (i32, i32) {
    %c0_i32 = arith.constant 0 : i32
    %c0_i32_0 = arith.constant 0 : i32
    return %c0_i32, %arg1 : i32, i32
  }
  func.func @transform_4(%arg0: i32, %arg1: i32) -> (i32, i32) {
    %c0_i32 = arith.constant 0 : i32
    return %arg0, %arg1 : i32, i32
  }
}

module attributes {stable_mosaic.version = 11 : i64} {
  func.func @_linear_bn_kernel_fullk(%arg0: i32, %arg1: i32, %arg2: memref<16x2048xbf16, #tpu.memory_space<vmem>>, %arg3: memref<2048x512xbf16, #tpu.memory_space<vmem>>, %arg4: memref<1x512xf32, #tpu.memory_space<vmem>>, %arg5: memref<1x512xf32, #tpu.memory_space<vmem>>, %arg6: memref<16x512xbf16, #tpu.memory_space<vmem>>) attributes {dimension_semantics = [#tpu.dimension_semantics<parallel>, #tpu.dimension_semantics<parallel>], iteration_bounds = array<i64: 1, 4>, scalar_prefetch = 0 : i64, scratch_operands = 0 : i64, tpu.core_type = #tpu.core_type<tc>, window_params = [{transform_indices = @transform_0, window_bounds = array<i64: 16, 2048>}, {transform_indices = @transform_1, window_bounds = array<i64: 2048, 512>}, {transform_indices = @transform_2, window_bounds = array<i64: 1, 512>}, {transform_indices = @transform_3, window_bounds = array<i64: 1, 512>}, {transform_indices = @transform_4, window_bounds = array<i64: 16, 512>}]} {
    %c0 = arith.constant 0 : index
    %c0_0 = arith.constant 0 : index
    %0 = vector.load %arg2[%c0, %c0_0] : memref<16x2048xbf16, #tpu.memory_space<vmem>>, vector<16x2048xbf16>
    %c0_1 = arith.constant 0 : index
    %c0_2 = arith.constant 0 : index
    %1 = vector.load %arg3[%c0_1, %c0_2] : memref<2048x512xbf16, #tpu.memory_space<vmem>>, vector<2048x512xbf16>
    %cst = arith.constant dense<0.000000e+00> : vector<16x512xf32>
    %2 = tpu.matmul %0, %1, %cst {dimension_numbers = #tpu.dot_dimension_numbers<[1], [0], [0], [1], [0, 0, 1, 1], [], []>} : vector<16x2048xbf16>, vector<2048x512xbf16>, vector<16x512xf32> -> vector<16x512xf32>
    %c0_3 = arith.constant 0 : index
    %c0_4 = arith.constant 0 : index
    %3 = vector.load %arg4[%c0_3, %c0_4] : memref<1x512xf32, #tpu.memory_space<vmem>>, vector<1x512xf32>
    %4 = vector.broadcast %3 : vector<1x512xf32> to vector<16x512xf32>
    %5 = arith.mulf %2, %4 : vector<16x512xf32>
    %c0_5 = arith.constant 0 : index
    %c0_6 = arith.constant 0 : index
    %6 = vector.load %arg5[%c0_5, %c0_6] : memref<1x512xf32, #tpu.memory_space<vmem>>, vector<1x512xf32>
    %7 = vector.broadcast %6 : vector<1x512xf32> to vector<16x512xf32>
    %8 = arith.addf %5, %7 : vector<16x512xf32>
    %cst_7 = arith.constant 0.000000e+00 : f32
    %9 = vector.broadcast %cst_7 : f32 to vector<16x512xf32>
    %10 = arith.maximumf %8, %9 : vector<16x512xf32>
    %11 = arith.truncf %10 : vector<16x512xf32> to vector<16x512xbf16>
    %c0_8 = arith.constant 0 : index
    %c0_9 = arith.constant 0 : index
    %12 = vector.load %arg6[%c0_8, %c0_9] : memref<16x512xbf16, #tpu.memory_space<vmem>>, vector<16x512xbf16>
    tpu.vector_store %arg6[%c0_8, %c0_9], %11 {strides = array<i32>} : memref<16x512xbf16, #tpu.memory_space<vmem>>, vector<16x512xbf16>,
    return
  }
  func.func @transform_0(%arg0: i32, %arg1: i32) -> (i32, i32) {
    %c0_i32 = arith.constant 0 : i32
    %c0_i32_0 = arith.constant 0 : i32
    return %arg0, %c0_i32 : i32, i32
  }
  func.func @transform_1(%arg0: i32, %arg1: i32) -> (i32, i32) {
    %c0_i32 = arith.constant 0 : i32
    %c0_i32_0 = arith.constant 0 : i32
    return %c0_i32, %arg1 : i32, i32
  }
  func.func @transform_2(%arg0: i32, %arg1: i32) -> (i32, i32) {
    %c0_i32 = arith.constant 0 : i32
    %c0_i32_0 = arith.constant 0 : i32
    return %c0_i32, %arg1 : i32, i32
  }
  func.func @transform_3(%arg0: i32, %arg1: i32) -> (i32, i32) {
    %c0_i32 = arith.constant 0 : i32
    %c0_i32_0 = arith.constant 0 : i32
    return %c0_i32, %arg1 : i32, i32
  }
  func.func @transform_4(%arg0: i32, %arg1: i32) -> (i32, i32) {
    %c0_i32 = arith.constant 0 : i32
    return %arg0, %arg1 : i32, i32
  }
}

module attributes {stable_mosaic.version = 11 : i64} {
  func.func @_linear_bn_kernel_fullk(%arg0: i32, %arg1: i32, %arg2: memref<16x2048xbf16, #tpu.memory_space<vmem>>, %arg3: memref<2048x128xbf16, #tpu.memory_space<vmem>>, %arg4: memref<1x128xf32, #tpu.memory_space<vmem>>, %arg5: memref<1x128xf32, #tpu.memory_space<vmem>>, %arg6: memref<16x128xf32, #tpu.memory_space<vmem>>) attributes {dimension_semantics = [#tpu.dimension_semantics<parallel>, #tpu.dimension_semantics<parallel>], iteration_bounds = array<i64: 1, 1>, scalar_prefetch = 0 : i64, scratch_operands = 0 : i64, tpu.core_type = #tpu.core_type<tc>, window_params = [{transform_indices = @transform_0, window_bounds = array<i64: 16, 2048>}, {transform_indices = @transform_1, window_bounds = array<i64: 2048, 128>}, {transform_indices = @transform_2, window_bounds = array<i64: 1, 128>}, {transform_indices = @transform_3, window_bounds = array<i64: 1, 128>}, {transform_indices = @transform_4, window_bounds = array<i64: 16, 128>}]} {
    %c0 = arith.constant 0 : index
    %c0_0 = arith.constant 0 : index
    %0 = vector.load %arg2[%c0, %c0_0] : memref<16x2048xbf16, #tpu.memory_space<vmem>>, vector<16x2048xbf16>
    %c0_1 = arith.constant 0 : index
    %c0_2 = arith.constant 0 : index
    %1 = vector.load %arg3[%c0_1, %c0_2] : memref<2048x128xbf16, #tpu.memory_space<vmem>>, vector<2048x128xbf16>
    %cst = arith.constant dense<0.000000e+00> : vector<16x128xf32>
    %2 = tpu.matmul %0, %1, %cst {dimension_numbers = #tpu.dot_dimension_numbers<[1], [0], [0], [1], [0, 0, 1, 1], [], []>} : vector<16x2048xbf16>, vector<2048x128xbf16>, vector<16x128xf32> -> vector<16x128xf32>
    %c0_3 = arith.constant 0 : index
    %c0_4 = arith.constant 0 : index
    %3 = vector.load %arg4[%c0_3, %c0_4] : memref<1x128xf32, #tpu.memory_space<vmem>>, vector<1x128xf32>
    %4 = vector.broadcast %3 : vector<1x128xf32> to vector<16x128xf32>
    %5 = arith.mulf %2, %4 : vector<16x128xf32>
    %c0_5 = arith.constant 0 : index
    %c0_6 = arith.constant 0 : index
    %6 = vector.load %arg5[%c0_5, %c0_6] : memref<1x128xf32, #tpu.memory_space<vmem>>, vector<1x128xf32>
    %7 = vector.broadcast %6 : vector<1x128xf32> to vector<16x128xf32>
    %8 = arith.addf %5, %7 : vector<16x128xf32>
    %c0_7 = arith.constant 0 : index
    %c0_8 = arith.constant 0 : index
    %9 = vector.load %arg6[%c0_7, %c0_8] : memref<16x128xf32, #tpu.memory_space<vmem>>, vector<16x128xf32>
    tpu.vector_store %arg6[%c0_7, %c0_8], %8 {strides = array<i32>} : memref<16x128xf32, #tpu.memory_space<vmem>>, vector<16x128xf32>,
    return
  }
  func.func @transform_0(%arg0: i32, %arg1: i32) -> (i32, i32) {
    %c0_i32 = arith.constant 0 : i32
    %c0_i32_0 = arith.constant 0 : i32
    return %arg0, %c0_i32 : i32, i32
  }
  func.func @transform_1(%arg0: i32, %arg1: i32) -> (i32, i32) {
    %c0_i32 = arith.constant 0 : i32
    %c0_i32_0 = arith.constant 0 : i32
    return %c0_i32, %arg1 : i32, i32
  }
  func.func @transform_2(%arg0: i32, %arg1: i32) -> (i32, i32) {
    %c0_i32 = arith.constant 0 : i32
    %c0_i32_0 = arith.constant 0 : i32
    return %c0_i32, %arg1 : i32, i32
  }
  func.func @transform_3(%arg0: i32, %arg1: i32) -> (i32, i32) {
    %c0_i32 = arith.constant 0 : i32
    %c0_i32_0 = arith.constant 0 : i32
    return %c0_i32, %arg1 : i32, i32
  }
  func.func @transform_4(%arg0: i32, %arg1: i32) -> (i32, i32) {
    %c0_i32 = arith.constant 0 : i32
    return %arg0, %arg1 : i32, i32
  }
}

</mosaic_0001>

<bundles_post_ra>
// kernel: mlp_binaryconnect_forward.4
= control target key start
LH: loop header
LB: loop body
LE: loop exit
PB: predicated region body
PF: predicated region fallthrough
CT: control target
= control target key end

     0   :  { %s3973_s0 = inlined_call_operand.vmem [shape: bf16[16,1024], index: 0, kind: input, shape index: {}]   ;;  %s3974_s1 = inlined_call_operand.hbm [shape: bf16[1024,2048], index: 1, kind: input, shape index: {}]   ;;  %s3975_s2 = inlined_call_operand.hbm [shape: f32[1,2048], index: 2, kind: input, shape index: {}]   ;;  %s3976_s3 = inlined_call_operand.hbm [shape: f32[1,2048], index: 3, kind: input, shape index: {}]   ;;  %s3977_s4 = inlined_call_operand.vmem [shape: bf16[16,2048], index: 4, kind: output, shape index: {}]  }
   0x1   :  { %3979 = sst [smem:[#allocation11_spill]] %s3974_s1 }
   0x2   :  { %9 = vsyncpa [#allocation3], 0 }
   0x3   :  { %11 = vsyncpa [#allocation3 + $0x1], 0 }
   0x4   :  { %12 = vsyncpa [#allocation5], 0 }
   0x5   :  { %14 = vsyncpa [#allocation5 + $0x1], 0  ;;  %s3443_s15 = smov 0   ;;  %s3445_s16 = smov 0  }
   0x6   :  { %s3447_s17 = smov 0   ;;  %s3449_s18 = smov 0  }
   0x7   :  { %s3451_s19 = smov 0   ;;  %s3453_s20 = smov 0  }
   0x8 LB: > { %s3472_s21 = sadd.s32 4294967295, %s3410_s20   ;;  %s29_s22 = sadd.s32 1, %s3406_s19  ;;  %s3410_s20 = sphi %s3453_s20, %s20_s20   ;;  %s3406_s19 = sphi %s3451_s19, %s3992_s19   ;;  %s3402_s18 = sphi %s3449_s18, %s3991_s18   ;;  %s3398_s17 = sphi %s3447_s17, %s3990_s17   ;;  %s3394_s16 = sphi %s3445_s16, %s3989_s16   ;;  %s3390_s15 = sphi %s3443_s15, %s3988_s15  }
   0x9   : > { %p30_p0 = scmp.ge.s32.totalorder %s29_s22, 4  ;;  %s65_s23 = sadd.s32 1, %s3398_s17 }
   0xa   : > { %p72_p1 = scmp.ne.s32.totalorder %s3398_s17, %s3394_s16  ;;  %p73_p2 = scmp.eq.s32.totalorder %s3410_s20, 0 }
   0xb   : > { %s3994_s22 = smov (%p30_p0, %s29_s22), 0  ;;  %p78_p4 = scmp.ne.s32.totalorder %s3394_s16, %s3390_s15 }
   0xc   : > { %3980 = sst [smem:[#allocation10_spill]] %s3994_s22  ;;  %p3481_p3 = por %p73_p2, %p72_p1 }
   0xd   : > { %s62_s25 = ssub.s32 %s3406_s19, %s3994_s22  ;;  %p79_p5 = scmp.eq.s32.totalorder %s3472_s21, 0 }
   0xe   : > { %p63_p6 = scmp.eq.s32.totalorder %s62_s25, 0  ;;  %p156_p7 = scmp.eq.s32.totalorder %s3472_s21, 3 }
   0xf   : > { %p3490_p8 = por %p79_p5, %p78_p4  ;;  %p2836_p10 = scmp.lt.s32.totalorder %s3410_s20, 4 }
  0x10   : > { %s3495_s27 = scalar_select %p63_p6, %s3398_s17, %s65_s23  }
  0x11   : > { %p3497_p9 = por %p156_p7, %p72_p1  ;;  %s3503_s29 = sand.u32 1, %s3398_s17  }
  0x12   : > { %s213_s30 = sand.u32 1, %s3410_s20   ;;  %s2525_s5 = sshll.u32 %s3503_s29, 11 }
  0x13   : > { %p3509_p11 = pnand %p2836_p10, %p3481_p3  ;;  %s196_s7 = scalar_lea.vmem [#allocation2], %s2525_s5 }
  0x14   : > { %s203_s8 = sshll.u32 %s196_s7, 4  ;;  %s2528_s9 = sshll.u32 %s3503_s29, 2  ;;  %s3513_s8 = int_to_ptr.vmem [resolvable:$true] %s203_s8 }
  0x15   : > { %s2813_s10 = sshll.u32 %s3406_s19, 6  ;;  %s217_s14 = scalar_lea.vmem [#allocation4], %s2528_s9 }
  0x16   : > { %s223_s13 = scalar_lea.hbm %s3975_s2, %s2813_s10  ;;  %s225_s15 = sshll.u32 %s217_s14, 4  ;;  %s226_s15 = int_to_ptr.vmem [resolvable:$true] %s225_s15 }
  0x17   : > { %s3525_s25 = scalar_lea.hbm %s3976_s3, %s2813_s10  ;;  %s3527_s22 = scalar_lea.sflag [#allocation5], %s213_s30 }
  0x18   : > { %p3274_p12 = pneg %p3509_p11  ;;  %s3285_s5 = scalar_lea.vmem %s226_s15, 64 }
  0x19   : > { %p3286_p13 = scmp.ne.s32.totalorder %s226_s15, %s3285_s5  ;;  %s3412_s7 = smov [#allocation4]  }
  0x1a   : > { %s3290_s11 = sshll.u32 %s3412_s7, 4  ;;  %s3291_s11 = int_to_ptr.vmem [resolvable:$false] %s3290_s11 }
  0x1b   : > { %p3288_p0 = pnand %p3286_p13, %p3274_p12  ;;  %s3292_s12 = scalar_lea.vmem %s3291_s11, 128 }
  0x1c   : > { %p3293_p2 = scmp.lt.s32.totalorder %s226_s15, %s3291_s11  ;;  %p3294_p3 = scmp.lt.s32.totalorder %s3292_s12, %s3285_s5 }
  0x1d   : > { %p3289_p1 = pneg %p3288_p0 }
  0x1e   : > { %p3295_p4 = por %p3294_p3, %p3293_p2 }
  0x20   : > { %p3296_p5 = pnand %p3295_p4, %p3289_p1 }
  0x22   : > { %3299 = shalt.err (!%p3296_p5)
}
  0x23   : > { %2832 = dma.hbm_to_vmem [thread:$0]  (!%p3509_p11), %s223_s13, 64, %s226_s15, %s3527_s22  }
  0x24   : > { %p2534_p6 = scmp.ge.s32.totalorder %s3410_s20, 1  ;;  %p249_p7 = scmp.lt.s32.totalorder %s3410_s20, 5 }
  0x25   : > { %s2812_s30 = sshll.u32 %s3406_s19, 8  ;;  %s3986_s1 = sld [smem:[#allocation11_spill]] }
  0x26   : > { %p3540_p10 = pnand %p2534_p6, %p249_p7  ;;  %s193_s5 = scalar_lea.sflag [#allocation3], %s3503_s29 }
  0x27   : > { %s3313_s7 = scalar_lea.vmem %s3513_s8, 32768  ;;  %s3413_s11 = smov [#allocation2]  }
  0x28   : > { %p3314_p13 = scmp.ne.s32.totalorder %s3513_s8, %s3313_s7  ;;  %s3318_s13 = sshll.u32 %s3413_s11, 4  ;;  %s3319_s13 = int_to_ptr.vmem [resolvable:$false] %s3318_s13 }
  0x29   : > { %s3320_s15 = scalar_lea.vmem %s3319_s13, 65536  ;;  %p3321_p2 = scmp.lt.s32.totalorder %s3513_s8, %s3319_s13 }
  0x2a   : > { %p3316_p0 = pnand %p3314_p13, %p3274_p12  ;;  %p3322_p3 = scmp.lt.s32.totalorder %s3320_s15, %s3313_s7 }
  0x2b   : > { %s202_s24 = scalar_lea.hbm %s3986_s1, %s2812_s30 }
  0x2c   : > { %p3317_p1 = pneg %p3316_p0  ;;  %p3323_p4 = por %p3322_p3, %p3321_p2 }
  0x2e   : > { %p3324_p5 = pnand %p3323_p4, %p3317_p1 }
  0x30   : > { %3327 = shalt.err (!%p3324_p5)
}
  0x31   : > { %s3414_s12 = smov 1024   ;;  %s3415_s30 = smov 256  }
  0x32   : > { %s3416_s14 = smov 16   ;;  %s236_s23 = scalar_lea.vmem [#allocation6], %s2528_s9 }
  0x33   : > { %2829 = dma.hbm_to_vmem [thread:$0]  (!%p3509_p11), %s202_s24, 32768, %s3513_s8, %s193_s5, %s3414_s12, %s3415_s30, %s3416_s14  }
  0x34   : > { %s244_s1 = sshll.u32 %s236_s23, 4  ;;  %s3417_s7 = smov [#allocation6]   ;;  %s245_s1 = int_to_ptr.vmem [resolvable:$true] %s244_s1 }
  0x35   : > { %s3341_s11 = scalar_lea.vmem %s245_s1, 64  ;;  %s3346_s13 = sshll.u32 %s3417_s7, 4  ;;  %s3347_s13 = int_to_ptr.vmem [resolvable:$false] %s3346_s13 }
  0x36   : > { %p3342_p6 = scmp.ne.s32.totalorder %s245_s1, %s3341_s11  ;;  %s3348_s15 = scalar_lea.vmem %s3347_s13, 128 }
  0x37   : > { %p3349_p0 = scmp.lt.s32.totalorder %s245_s1, %s3347_s13  ;;  %p3350_p1 = scmp.lt.s32.totalorder %s3348_s15, %s3341_s11 }
  0x38   : > { %p3344_p7 = pnand %p3342_p6, %p3274_p12 }
  0x39   : > { %p3351_p2 = por %p3350_p1, %p3349_p0 }
  0x3a   : > { %p3345_p13 = pneg %p3344_p7 }
  0x3c   : > { %p3352_p3 = pnand %p3351_p2, %p3345_p13 }
  0x3e   : > { %3355 = shalt.err (!%p3352_p3)
}
  0x3f   : > { %2835 = dma.hbm_to_vmem [thread:$0]  (!%p3509_p11), %s3525_s25, 64, %s245_s1, %s3527_s22  }
  0x40   : > { %253 = sbr.rel (%p3540_p10) target bundleno = 550 (0x226), region = 36  ;;  %s3569_s29 = sand.u32 (!%p3540_p10), 1, %s3394_s16  }
  0x41   : > { %s2535_s8 = sshll.u32 (!%p3540_p10), %s3569_s29, 11  ;;  %s256_s9 = scalar_lea.sflag (!%p3540_p10), [#allocation3], %s3569_s29 }
  0x42   : > { %s3573_s24 = scalar_lea.vmem (!%p3540_p10), [#allocation2], %s2535_s8 }
  0x45   : > { %3381 = dma.done.wait (%p3490_p8), %s256_s9, 32768  }
  0x46   : > { %3383 = vsyncadd (%p3490_p8), %s256_s9, 4294934528  ;;  %s264_s1 = sand.u32 1, %s3472_s21   ;;  %s2536_s22 = sshll.u32 %s3569_s29, 2 }
  0x47   : > { %s265_s6 = scalar_lea.sflag [#allocation5], %s264_s1  ;;  %s3583_s25 = scalar_lea.vmem [#allocation4], %s2536_s22 }
  0x48   : > { %3385 = dma.done.wait (%p3490_p8), %s265_s6, 128  }
  0x49   : > { %3387 = vsyncadd (%p3490_p8), %s265_s6, 4294967168  ;;  %v2888_v0 = vld [vmem:[%s3573_s24 + $0xe4] ss:$16 sps:$4 sm:$0xff]   ;;  %v2892_v2 = vld [vmem:[%s3573_s24 + $0xe0] ss:$16 sps:$4 sm:$0xff]  }
  0x4a   : > { %v2890_v1 = vld [vmem:[%s3573_s24 + $0x2e4] ss:$16 sps:$4 sm:$0xff]   ;;  %1913 = vmatprep.subr.bf16.mxu0 %v2888_v0  ;;  %v2893_v3 = vld [vmem:[%s3573_s24 + $0x2e0] ss:$16 sps:$4 sm:$0xff]   ;;  %v330_v50 = vld [vmem:[%s3973_s0 + $0x8] sm:$0xff] }
  0x4b   : > { %1956 = vmatprep.subr.bf16.mxu1 %v2890_v1  ;;  %v2894_v4 = vld [vmem:[%s3573_s24 + $0xc4] ss:$16 sps:$4 sm:$0xff]   ;;  %1914 = vmatpush1.bf16.msra.mxu0 %v2892_v2  ;;  %v2898_v6 = vld [vmem:[%s3573_s24 + $0xc0] ss:$16 sps:$4 sm:$0xff]   ;;  %v334_v51 = vld [vmem:[%s3973_s0 + $0x28] sm:$0xff] }
  0x4c   : > { %1957 = vmatpush1.bf16.msra.mxu1 %v2893_v3  ;;  %v2896_v5 = vld [vmem:[%s3573_s24 + $0x2c4] ss:$16 sps:$4 sm:$0xff]   ;;  %1915 = vmatprep.subr.bf16.mxu0 %v2894_v4  ;;  %v2899_v7 = vld [vmem:[%s3573_s24 + $0x2c0] ss:$16 sps:$4 sm:$0xff]   ;;  %v3653_v55 = vcombine.high %v330_v50, %v334_v51 }
  0x4d   : > { %1958 = vmatprep.subr.bf16.mxu1 %v2896_v5  ;;  %v2900_v8 = vld [vmem:[%s3573_s24 + $0xa4] ss:$16 sps:$4 sm:$0xff]   ;;  %v2904_v10 = vld [vmem:[%s3573_s24 + $0xa0] ss:$16 sps:$4 sm:$0xff]  }
  0x4e   : > { %v2902_v9 = vld [vmem:[%s3573_s24 + $0x2a4] ss:$16 sps:$4 sm:$0xff]   ;;  %v2905_v11 = vld [vmem:[%s3573_s24 + $0x2a0] ss:$16 sps:$4 sm:$0xff]   ;;  %1988 = vmatprep.mubr.bf16.mxu1 %v3653_v55 }
  0x4f   : > { %1916 = vmatpush1.bf16.msra.mxu0 %v2898_v6  ;;  %v2906_v12 = vld [vmem:[%s3573_s24 + $0x84] ss:$16 sps:$4 sm:$0xff]   ;;  %v2910_v14 = vld [vmem:[%s3573_s24 + $0x80] ss:$16 sps:$4 sm:$0xff]  }
  0x50   : > { %1959 = vmatpush1.bf16.msra.mxu1 %v2899_v7  ;;  %1917 = vmatprep.subr.bf16.mxu0 %v2900_v8  ;;  %v2908_v13 = vld [vmem:[%s3573_s24 + $0x284] ss:$16 sps:$4 sm:$0xff]   ;;  %v2911_v15 = vld [vmem:[%s3573_s24 + $0x280] ss:$16 sps:$4 sm:$0xff]  }
  0x51   : > { %1960 = vmatprep.subr.bf16.mxu1 %v2902_v9  ;;  %v2912_v16 = vld [vmem:[%s3573_s24 + $0x64] ss:$16 sps:$4 sm:$0xff]   ;;  %v2916_v18 = vld [vmem:[%s3573_s24 + $0x60] ss:$16 sps:$4 sm:$0xff]   ;;  %v3675_v9 = vcombine.low %v330_v50, %v334_v51 }
  0x52   : > { %v2914_v17 = vld [vmem:[%s3573_s24 + $0x264] ss:$16 sps:$4 sm:$0xff]   ;;  %v2917_v19 = vld [vmem:[%s3573_s24 + $0x260] ss:$16 sps:$4 sm:$0xff]  }
  0x53   : > { %1918 = vmatpush1.bf16.msra.mxu0 %v2904_v10  ;;  %v2918_v20 = vld [vmem:[%s3573_s24 + $0x44] ss:$16 sps:$4 sm:$0xff]   ;;  %v2922_v22 = vld [vmem:[%s3573_s24 + $0x40] ss:$16 sps:$4 sm:$0xff]  }
  0x54   : > { %1961 = vmatpush1.bf16.msra.mxu1 %v2905_v11  ;;  %1919 = vmatprep.subr.bf16.mxu0 %v2906_v12  ;;  %v2920_v21 = vld [vmem:[%s3573_s24 + $0x244] ss:$16 sps:$4 sm:$0xff]   ;;  %v2923_v23 = vld [vmem:[%s3573_s24 + $0x240] ss:$16 sps:$4 sm:$0xff]  }
  0x55   : > { %1962 = vmatprep.subr.bf16.mxu1 %v2908_v13  ;;  %v2924_v24 = vld [vmem:[%s3573_s24 + $0x24] ss:$16 sps:$4 sm:$0xff]   ;;  %v2928_v26 = vld [vmem:[%s3573_s24 + $0x20] ss:$16 sps:$4 sm:$0xff]  }
  0x56   : > { %v2926_v25 = vld [vmem:[%s3573_s24 + $0x224] ss:$16 sps:$4 sm:$0xff]   ;;  %v2929_v27 = vld [vmem:[%s3573_s24 + $0x220] ss:$16 sps:$4 sm:$0xff]  }
  0x57   : > { %1920 = vmatpush1.bf16.msra.mxu0 %v2910_v14  ;;  %v2930_v28 = vld [vmem:[%s3573_s24 + $0x4] ss:$16 sps:$4 sm:$0xff]   ;;  %v2934_v30 = vld [vmem:[%s3573_s24] ss:$16 sps:$4 sm:$0xff]  }
  0x58   : > { %1963 = vmatpush1.bf16.msra.mxu1 %v2911_v15  ;;  %1921 = vmatprep.subr.bf16.mxu0 %v2912_v16  ;;  %v2932_v29 = vld [vmem:[%s3573_s24 + $0x204] ss:$16 sps:$4 sm:$0xff]   ;;  %v2935_v31 = vld [vmem:[%s3573_s24 + $0x200] ss:$16 sps:$4 sm:$0xff]  }
  0x59   : > { %1964 = vmatprep.subr.bf16.mxu1 %v2914_v17  ;;  %v2936_v32 = vld [vmem:[%s3573_s24 + $0x1e4] ss:$16 sps:$4 sm:$0xff]   ;;  %v2940_v34 = vld [vmem:[%s3573_s24 + $0x1e0] ss:$16 sps:$4 sm:$0xff]  }
  0x5a   : > { %v2938_v33 = vld [vmem:[%s3573_s24 + $0x3e4] ss:$16 sps:$4 sm:$0xff]   ;;  %v2941_v35 = vld [vmem:[%s3573_s24 + $0x3e0] ss:$16 sps:$4 sm:$0xff]  }
  0x5b   : > { %1922 = vmatpush1.bf16.msra.mxu0 %v2916_v18  ;;  %v2942_v36 = vld [vmem:[%s3573_s24 + $0x1c4] ss:$16 sps:$4 sm:$0xff]   ;;  %v2946_v38 = vld [vmem:[%s3573_s24 + $0x1c0] ss:$16 sps:$4 sm:$0xff]  }
  0x5c   : > { %1965 = vmatpush1.bf16.msra.mxu1 %v2917_v19  ;;  %1923 = vmatprep.subr.bf16.mxu0 %v2918_v20  ;;  %v2944_v37 = vld [vmem:[%s3573_s24 + $0x3c4] ss:$16 sps:$4 sm:$0xff]   ;;  %v2947_v39 = vld [vmem:[%s3573_s24 + $0x3c0] ss:$16 sps:$4 sm:$0xff]  }
  0x5d   : > { %1966 = vmatprep.subr.bf16.mxu1 %v2920_v21  ;;  %v2948_v40 = vld [vmem:[%s3573_s24 + $0x1a4] ss:$16 sps:$4 sm:$0xff]   ;;  %v2952_v42 = vld [vmem:[%s3573_s24 + $0x1a0] ss:$16 sps:$4 sm:$0xff]  }
  0x5e   : > { %v2950_v41 = vld [vmem:[%s3573_s24 + $0x3a4] ss:$16 sps:$4 sm:$0xff]   ;;  %v2953_v43 = vld [vmem:[%s3573_s24 + $0x3a0] ss:$16 sps:$4 sm:$0xff]  }
  0x5f   : > { %1924 = vmatpush1.bf16.msra.mxu0 %v2922_v22  ;;  %v2954_v44 = vld [vmem:[%s3573_s24 + $0x184] ss:$16 sps:$4 sm:$0xff]   ;;  %v2958_v46 = vld [vmem:[%s3573_s24 + $0x180] ss:$16 sps:$4 sm:$0xff]  }
  0x60   : > { %1967 = vmatpush1.bf16.msra.mxu1 %v2923_v23  ;;  %1925 = vmatprep.subr.bf16.mxu0 %v2924_v24  ;;  %v2956_v45 = vld [vmem:[%s3573_s24 + $0x384] ss:$16 sps:$4 sm:$0xff]   ;;  %v2959_v47 = vld [vmem:[%s3573_s24 + $0x380] ss:$16 sps:$4 sm:$0xff]  }
  0x61   : > { %1968 = vmatprep.subr.bf16.mxu1 %v2926_v25  ;;  %v329_v48 = vld [vmem:[%s3973_s0] sm:$0xff] }
  0x62   : > { %v333_v49 = vld [vmem:[%s3973_s0 + $0x20] sm:$0xff] }
  0x63   : > { %1926 = vmatpush1.bf16.msra.mxu0 %v2928_v26  ;;  %v2960_v52 = vld [vmem:[%s3573_s24 + $0x164] ss:$16 sps:$4 sm:$0xff]   ;;  %v3650_v53 = vcombine.high %v329_v48, %v333_v49  ;;  %v2964_v56 = vld [vmem:[%s3573_s24 + $0x160] ss:$16 sps:$4 sm:$0xff]   ;;  %v3673_v8 = vcombine.low %v329_v48, %v333_v49 }
  0x64   : > { %1969 = vmatpush1.bf16.msra.mxu1 %v2929_v27  ;;  %1927 = vmatprep.subr.bf16.mxu0 %v2930_v28  ;;  %v2962_v54 = vld [vmem:[%s3573_s24 + $0x364] ss:$16 sps:$4 sm:$0xff]   ;;  %v2965_v57 = vld [vmem:[%s3573_s24 + $0x360] ss:$16 sps:$4 sm:$0xff]  }
  0x65   : > { %1970 = vmatprep.subr.bf16.mxu1 %v2932_v29  ;;  %1945 = vmatprep.mubr.bf16.mxu0 %v3650_v53  ;;  %v2966_v58 = vld [vmem:[%s3573_s24 + $0x144] ss:$16 sps:$4 sm:$0xff]   ;;  %v2970_v60 = vld [vmem:[%s3573_s24 + $0x140] ss:$16 sps:$4 sm:$0xff]  }
  0x66   : > { %v2968_v59 = vld [vmem:[%s3573_s24 + $0x344] ss:$16 sps:$4 sm:$0xff]   ;;  %v2971_v61 = vld [vmem:[%s3573_s24 + $0x340] ss:$16 sps:$4 sm:$0xff]  }
  0x67   : > { %1928 = vmatpush1.bf16.msra.mxu0 %v2934_v30  ;;  %v2972_v62 = vld [vmem:[%s3573_s24 + $0x124] ss:$16 sps:$4 sm:$0xff]   ;;  %v2976_v0 = vld [vmem:[%s3573_s24 + $0x120] ss:$16 sps:$4 sm:$0xff]  }
  0x68   : > { %1971 = vmatpush1.bf16.msra.mxu1 %v2935_v31  ;;  %1929 = vmatprep.subr.bf16.mxu0 %v2936_v32  ;;  %v2974_v63 = vld [vmem:[%s3573_s24 + $0x324] ss:$16 sps:$4 sm:$0xff]   ;;  %v2977_v1 = vld [vmem:[%s3573_s24 + $0x320] ss:$16 sps:$4 sm:$0xff]  }
  0x69   : > { %1972 = vmatprep.subr.bf16.mxu1 %v2938_v33  ;;  %v2978_v2 = vld [vmem:[%s3573_s24 + $0x104] ss:$16 sps:$4 sm:$0xff]   ;;  %v2982_v4 = vld [vmem:[%s3573_s24 + $0x100] ss:$16 sps:$4 sm:$0xff]  }
  0x6a   : > { %v2980_v3 = vld [vmem:[%s3573_s24 + $0x304] ss:$16 sps:$4 sm:$0xff]   ;;  %v2983_v5 = vld [vmem:[%s3573_s24 + $0x300] ss:$16 sps:$4 sm:$0xff]  }
  0x6b   : > { %1930 = vmatpush2.bf16.msra.mxu0 %v2940_v34  ;;  %v2986_v6 = vld [vmem:[%s3573_s24 + $0x4e4] ss:$16 sps:$4 sm:$0xff]   ;;  %v2984_v10 = vld [vmem:[%s3573_s24 + $0x4e0] ss:$16 sps:$4 sm:$0xff]  }
  0x6c   : > { %1973 = vmatpush2.bf16.msra.mxu1 %v2941_v35  ;;  %1931 = vmatprep.subr.bf16.mxu0 %v2942_v36  ;;  %v2989_v7 = vld [vmem:[%s3573_s24 + $0x6e4] ss:$16 sps:$4 sm:$0xff]   ;;  %v2987_v11 = vld [vmem:[%s3573_s24 + $0x6e0] ss:$16 sps:$4 sm:$0xff]  }
  0x6d   : > { %1974 = vmatprep.subr.bf16.mxu1 %v2944_v37  ;;  %v2992_v12 = vld [vmem:[%s3573_s24 + $0x4c4] ss:$16 sps:$4 sm:$0xff]   ;;  %v2990_v14 = vld [vmem:[%s3573_s24 + $0x4c0] ss:$16 sps:$4 sm:$0xff]  }
  0x6e   : > { %v2995_v13 = vld [vmem:[%s3573_s24 + $0x6c4] ss:$16 sps:$4 sm:$0xff]   ;;  %v2993_v15 = vld [vmem:[%s3573_s24 + $0x6c0] ss:$16 sps:$4 sm:$0xff]  }
  0x6f   : > { %1932 = vmatpush2.bf16.msra.mxu0 %v2946_v38  ;;  %v2998_v16 = vld [vmem:[%s3573_s24 + $0x4a4] ss:$16 sps:$4 sm:$0xff]   ;;  %v2996_v18 = vld [vmem:[%s3573_s24 + $0x4a0] ss:$16 sps:$4 sm:$0xff]   ;;  %v3718_v38 = vld [vmem:[%s3973_s0 + $0x18] sm:$0xff] }
  0x70   : > { %1975 = vmatpush2.bf16.msra.mxu1 %v2947_v39  ;;  %1933 = vmatprep.subr.bf16.mxu0 %v2948_v40  ;;  %v3001_v17 = vld [vmem:[%s3573_s24 + $0x6a4] ss:$16 sps:$4 sm:$0xff]   ;;  %v2999_v19 = vld [vmem:[%s3573_s24 + $0x6a0] ss:$16 sps:$4 sm:$0xff]   ;;  %v3723_v39 = vld [vmem:[%s3973_s0 + $0x38] sm:$0xff] }
  0x71   : > { %1976 = vmatprep.subr.bf16.mxu1 %v2950_v41  ;;  %v3004_v20 = vld [vmem:[%s3573_s24 + $0x484] ss:$16 sps:$4 sm:$0xff]   ;;  %v3002_v22 = vld [vmem:[%s3573_s24 + $0x480] ss:$16 sps:$4 sm:$0xff]  }
  0x72   : > { %v3007_v21 = vld [vmem:[%s3573_s24 + $0x684] ss:$16 sps:$4 sm:$0xff]   ;;  %v3005_v23 = vld [vmem:[%s3573_s24 + $0x680] ss:$16 sps:$4 sm:$0xff]  }
  0x73   : > { %1934 = vmatpush2.bf16.msra.mxu0 %v2952_v42  ;;  %v3010_v24 = vld [vmem:[%s3573_s24 + $0x464] ss:$16 sps:$4 sm:$0xff]   ;;  %v3008_v26 = vld [vmem:[%s3573_s24 + $0x460] ss:$16 sps:$4 sm:$0xff]  }
  0x74   : > { %1977 = vmatpush2.bf16.msra.mxu1 %v2953_v43  ;;  %1935 = vmatprep.subr.bf16.mxu0 %v2954_v44  ;;  %v3013_v25 = vld [vmem:[%s3573_s24 + $0x664] ss:$16 sps:$4 sm:$0xff]   ;;  %v3011_v27 = vld [vmem:[%s3573_s24 + $0x660] ss:$16 sps:$4 sm:$0xff]   ;;  %v3733_v43 = vcombine.high %v3718_v38, %v3723_v39 }
  0x75   : > { %1978 = vmatprep.subr.bf16.mxu1 %v2956_v45  ;;  %v3016_v28 = vld [vmem:[%s3573_s24 + $0x444] ss:$16 sps:$4 sm:$0xff]   ;;  %v3014_v30 = vld [vmem:[%s3573_s24 + $0x440] ss:$16 sps:$4 sm:$0xff]  }
  0x76   : > { %v3019_v29 = vld [vmem:[%s3573_s24 + $0x644] ss:$16 sps:$4 sm:$0xff]   ;;  %v3017_v31 = vld [vmem:[%s3573_s24 + $0x640] ss:$16 sps:$4 sm:$0xff]  }
  0x77   : > { %1936 = vmatpush2.bf16.msra.mxu0 %v2958_v46  ;;  %v3022_v32 = vld [vmem:[%s3573_s24 + $0x424] ss:$16 sps:$4 sm:$0xff]   ;;  %v3020_v34 = vld [vmem:[%s3573_s24 + $0x420] ss:$16 sps:$4 sm:$0xff]  }
  0x78   : > { %1979 = vmatpush2.bf16.msra.mxu1 %v2959_v47  ;;  %1937 = vmatprep.subr.bf16.mxu0 %v2960_v52  ;;  %v3025_v33 = vld [vmem:[%s3573_s24 + $0x624] ss:$16 sps:$4 sm:$0xff]   ;;  %v3023_v35 = vld [vmem:[%s3573_s24 + $0x620] ss:$16 sps:$4 sm:$0xff]  }
  0x79   : > { %1980 = vmatprep.subr.bf16.mxu1 %v2962_v54  ;;  %v3708_v36 = vld [vmem:[%s3973_s0 + $0x10] sm:$0xff] }
  0x7a   : > { %v3713_v37 = vld [vmem:[%s3973_s0 + $0x30] sm:$0xff] }
  0x7b   : > { %1938 = vmatpush2.bf16.msra.mxu0 %v2964_v56  ;;  %v3028_v40 = vld [vmem:[%s3573_s24 + $0x404] ss:$16 sps:$4 sm:$0xff]   ;;  %v3728_v41 = vcombine.high %v3708_v36, %v3713_v37  ;;  %v3026_v44 = vld [vmem:[%s3573_s24 + $0x400] ss:$16 sps:$4 sm:$0xff]  }
  0x7c   : > { %1981 = vmatpush2.bf16.msra.mxu1 %v2965_v57  ;;  %1939 = vmatprep.subr.bf16.mxu0 %v2966_v58  ;;  %v3031_v42 = vld [vmem:[%s3573_s24 + $0x604] ss:$16 sps:$4 sm:$0xff]   ;;  %v3029_v45 = vld [vmem:[%s3573_s24 + $0x600] ss:$16 sps:$4 sm:$0xff]  }
  0x7d   : > { %1982 = vmatprep.subr.bf16.mxu1 %v2968_v59  ;;  %v3034_v46 = vld [vmem:[%s3573_s24 + $0x5e4] ss:$16 sps:$4 sm:$0xff]   ;;  %v3032_v48 = vld [vmem:[%s3573_s24 + $0x5e0] ss:$16 sps:$4 sm:$0xff]  }
  0x7e   : > { %v3037_v47 = vld [vmem:[%s3573_s24 + $0x7e4] ss:$16 sps:$4 sm:$0xff]   ;;  %v3035_v49 = vld [vmem:[%s3573_s24 + $0x7e0] ss:$16 sps:$4 sm:$0xff]  }
  0x7f   : > { %1940 = vmatpush2.bf16.msra.mxu0 %v2970_v60  ;;  %v3040_v50 = vld [vmem:[%s3573_s24 + $0x5c4] ss:$16 sps:$4 sm:$0xff]   ;;  %v3038_v52 = vld [vmem:[%s3573_s24 + $0x5c0] ss:$16 sps:$4 sm:$0xff]  }
  0x80   : > { %1983 = vmatpush2.bf16.msra.mxu1 %v2971_v61  ;;  %1941 = vmatprep.subr.bf16.mxu0 %v2972_v62  ;;  %v3043_v51 = vld [vmem:[%s3573_s24 + $0x7c4] ss:$16 sps:$4 sm:$0xff]   ;;  %v3041_v54 = vld [vmem:[%s3573_s24 + $0x7c0] ss:$16 sps:$4 sm:$0xff]  }
  0x81   : > { %1984 = vmatprep.subr.bf16.mxu1 %v2974_v63  ;;  %v3046_v56 = vld [vmem:[%s3573_s24 + $0x5a4] ss:$16 sps:$4 sm:$0xff]   ;;  %v3044_v58 = vld [vmem:[%s3573_s24 + $0x5a0] ss:$16 sps:$4 sm:$0xff]  }
  0x82   : > { %v3049_v57 = vld [vmem:[%s3573_s24 + $0x7a4] ss:$16 sps:$4 sm:$0xff]   ;;  %v3047_v59 = vld [vmem:[%s3573_s24 + $0x7a0] ss:$16 sps:$4 sm:$0xff]  }
  0x83   : > { %1942 = vmatpush2.bf16.msra.mxu0 %v2976_v0  ;;  %v3052_v60 = vld [vmem:[%s3573_s24 + $0x584] ss:$16 sps:$4 sm:$0xff]   ;;  %v3050_v62 = vld [vmem:[%s3573_s24 + $0x580] ss:$16 sps:$4 sm:$0xff]  }
  0x84   : > { %1985 = vmatpush2.bf16.msra.mxu1 %v2977_v1  ;;  %1943 = vmatprep.subr.bf16.mxu0 %v2978_v2  ;;  %v3055_v61 = vld [vmem:[%s3573_s24 + $0x784] ss:$16 sps:$4 sm:$0xff]   ;;  %v3053_v63 = vld [vmem:[%s3573_s24 + $0x780] ss:$16 sps:$4 sm:$0xff]  }
  0x85   : > { %1986 = vmatprep.subr.bf16.mxu1 %v2980_v3  ;;  %v3058_v0 = vld [vmem:[%s3573_s24 + $0x564] ss:$16 sps:$4 sm:$0xff]   ;;  %v3056_v2 = vld [vmem:[%s3573_s24 + $0x560] ss:$16 sps:$4 sm:$0xff]  }
  0x86   : > { %v3061_v1 = vld [vmem:[%s3573_s24 + $0x764] ss:$16 sps:$4 sm:$0xff]   ;;  %v3059_v3 = vld [vmem:[%s3573_s24 + $0x760] ss:$16 sps:$4 sm:$0xff]  }
  0x87   : > { %1944 = vmatpush2.bf16.msra.mxu0 %v2982_v4  ;;  %v3064_v4 = vld [vmem:[%s3573_s24 + $0x544] ss:$16 sps:$4 sm:$0xff]  }
  0x88   : > { %1987 = vmatpush2.bf16.msra.mxu1 %v2983_v5  ;;  %1999 = vmatprep.subr.bf16.mxu0 %v2986_v6  ;;  %v3067_v5 = vld [vmem:[%s3573_s24 + $0x744] ss:$16 sps:$4 sm:$0xff]   ;;  %v3062_v6 = vld [vmem:[%s3573_s24 + $0x540] ss:$16 sps:$4 sm:$0xff]  }
  0x89   : > { %2042 = vmatprep.subr.bf16.mxu1 %v2989_v7  ;;  %v3065_v7 = vld [vmem:[%s3573_s24 + $0x740] ss:$16 sps:$4 sm:$0xff]  }
  0x8a   : > { %1946 = vmatmul.mubr.bf16.vlgmr.msra.gmra.mxu0 %v3673_v8 }
  0x8b   : > { %1989 = vmatmul.mubr.bf16.vlgmr.msra.gmra.mxu1 %v3675_v9  ;;  %2000 = vmatpush1.bf16.msra.mxu0 %v2984_v10  ;;  %v3070_v10 = vld [vmem:[%s3573_s24 + $0x524] ss:$16 sps:$4 sm:$0xff]  }
  0x8c   : > { %2043 = vmatpush1.bf16.msra.mxu1 %v2987_v11  ;;  %2001 = vmatprep.subr.bf16.mxu0 %v2992_v12  ;;  %v3073_v11 = vld [vmem:[%s3573_s24 + $0x724] ss:$16 sps:$4 sm:$0xff]   ;;  %v3068_v12 = vld [vmem:[%s3573_s24 + $0x520] ss:$16 sps:$4 sm:$0xff]  }
  0x8d   : > { %2044 = vmatprep.subr.bf16.mxu1 %v2995_v13  ;;  %2031 = vmatprep.mubr.bf16.mxu0 %v3728_v41  ;;  %v3071_v13 = vld [vmem:[%s3573_s24 + $0x720] ss:$16 sps:$4 sm:$0xff]  }
  0x8e   : > { %2074 = vmatprep.mubr.bf16.mxu1 %v3733_v43 }
  0x8f   : > { %2002 = vmatpush1.bf16.msra.mxu0 %v2990_v14  ;;  %v3076_v14 = vld [vmem:[%s3573_s24 + $0x504] ss:$16 sps:$4 sm:$0xff]  }
  0x90   : > { %2045 = vmatpush1.bf16.msra.mxu1 %v2993_v15  ;;  %2003 = vmatprep.subr.bf16.mxu0 %v2998_v16  ;;  %v3079_v15 = vld [vmem:[%s3573_s24 + $0x704] ss:$16 sps:$4 sm:$0xff]   ;;  %v3074_v16 = vld [vmem:[%s3573_s24 + $0x500] ss:$16 sps:$4 sm:$0xff]  }
  0x91   : > { %2046 = vmatprep.subr.bf16.mxu1 %v3001_v17  ;;  %v3077_v17 = vld [vmem:[%s3573_s24 + $0x700] ss:$16 sps:$4 sm:$0xff]  }
  0x93   : > { %2004 = vmatpush1.bf16.msra.mxu0 %v2996_v18  ;;  %v3082_v18 = vld [vmem:[%s3573_s24 + $0xec] ss:$16 sps:$4 sm:$0xff]  }
  0x94   : > { %2047 = vmatpush1.bf16.msra.mxu1 %v2999_v19  ;;  %2005 = vmatprep.subr.bf16.mxu0 %v3004_v20  ;;  %v3085_v19 = vld [vmem:[%s3573_s24 + $0x2ec] ss:$16 sps:$4 sm:$0xff]   ;;  %v3775_v20 = vcombine.low %v3708_v36, %v3713_v37  ;;  %v3104_v36 = vld [vmem:[%s3573_s24 + $0x68] ss:$16 sps:$4 sm:$0xff]  }
  0x95   : > { %2048 = vmatprep.subr.bf16.mxu1 %v3007_v21  ;;  %v3779_v21 = vcombine.low %v3718_v38, %v3723_v39  ;;  %v3107_v37 = vld [vmem:[%s3573_s24 + $0x268] ss:$16 sps:$4 sm:$0xff]   ;;  %v3112_v38 = vld [vmem:[%s3573_s24 + $0x4c] ss:$16 sps:$4 sm:$0xff]  }
  0x96   : > { %v3115_v39 = vld [vmem:[%s3573_s24 + $0x24c] ss:$16 sps:$4 sm:$0xff]  }
  0x97   : > { %2006 = vmatpush1.bf16.msra.mxu0 %v3002_v22  ;;  %v3080_v22 = vld [vmem:[%s3573_s24 + $0xe8] ss:$16 sps:$4 sm:$0xff]  }
  0x98   : > { %2049 = vmatpush1.bf16.msra.mxu1 %v3005_v23  ;;  %2007 = vmatprep.subr.bf16.mxu0 %v3010_v24  ;;  %v3083_v23 = vld [vmem:[%s3573_s24 + $0x2e8] ss:$16 sps:$4 sm:$0xff]   ;;  %v3088_v24 = vld [vmem:[%s3573_s24 + $0xcc] ss:$16 sps:$4 sm:$0xff]  }
  0x99   : > { %2050 = vmatprep.subr.bf16.mxu1 %v3013_v25  ;;  %v3091_v25 = vld [vmem:[%s3573_s24 + $0x2cc] ss:$16 sps:$4 sm:$0xff]  }
  0x9b   : > { %2008 = vmatpush1.bf16.msra.mxu0 %v3008_v26  ;;  %v3086_v26 = vld [vmem:[%s3573_s24 + $0xc8] ss:$16 sps:$4 sm:$0xff]  }
  0x9c   : > { %2051 = vmatpush1.bf16.msra.mxu1 %v3011_v27  ;;  %2009 = vmatprep.subr.bf16.mxu0 %v3016_v28  ;;  %v3089_v27 = vld [vmem:[%s3573_s24 + $0x2c8] ss:$16 sps:$4 sm:$0xff]   ;;  %v3094_v28 = vld [vmem:[%s3573_s24 + $0xac] ss:$16 sps:$4 sm:$0xff]  }
  0x9d   : > { %2052 = vmatprep.subr.bf16.mxu1 %v3019_v29  ;;  %v3097_v29 = vld [vmem:[%s3573_s24 + $0x2ac] ss:$16 sps:$4 sm:$0xff]  }
  0x9f   : > { %2010 = vmatpush1.bf16.msra.mxu0 %v3014_v30  ;;  %v3092_v30 = vld [vmem:[%s3573_s24 + $0xa8] ss:$16 sps:$4 sm:$0xff]  }
  0xa0   : > { %2053 = vmatpush1.bf16.msra.mxu1 %v3017_v31  ;;  %2011 = vmatprep.subr.bf16.mxu0 %v3022_v32  ;;  %v3095_v31 = vld [vmem:[%s3573_s24 + $0x2a8] ss:$16 sps:$4 sm:$0xff]   ;;  %v3100_v32 = vld [vmem:[%s3573_s24 + $0x8c] ss:$16 sps:$4 sm:$0xff]  }
  0xa1   : > { %2054 = vmatprep.subr.bf16.mxu1 %v3025_v33  ;;  %v3103_v33 = vld [vmem:[%s3573_s24 + $0x28c] ss:$16 sps:$4 sm:$0xff]  }
  0xa3   : > { %2012 = vmatpush1.bf16.msra.mxu0 %v3020_v34  ;;  %v3098_v34 = vld [vmem:[%s3573_s24 + $0x88] ss:$16 sps:$4 sm:$0xff]  }
  0xa4   : > { %2055 = vmatpush1.bf16.msra.mxu1 %v3023_v35  ;;  %2013 = vmatprep.subr.bf16.mxu0 %v3028_v40  ;;  %v3101_v35 = vld [vmem:[%s3573_s24 + $0x288] ss:$16 sps:$4 sm:$0xff]  }
  0xa5   : > { %2056 = vmatprep.subr.bf16.mxu1 %v3031_v42  ;;  %v3110_v40 = vld [vmem:[%s3573_s24 + $0x48] ss:$16 sps:$4 sm:$0xff]  }
  0xa6   : > { %v3113_v42 = vld [vmem:[%s3573_s24 + $0x248] ss:$16 sps:$4 sm:$0xff]  }
  0xa7   : > { %2014 = vmatpush1.bf16.msra.mxu0 %v3026_v44  ;;  %v3118_v44 = vld [vmem:[%s3573_s24 + $0x2c] ss:$16 sps:$4 sm:$0xff]  }
  0xa8   : > { %2057 = vmatpush1.bf16.msra.mxu1 %v3029_v45  ;;  %2015 = vmatprep.subr.bf16.mxu0 %v3034_v46  ;;  %v3121_v45 = vld [vmem:[%s3573_s24 + $0x22c] ss:$16 sps:$4 sm:$0xff]   ;;  %v3116_v46 = vld [vmem:[%s3573_s24 + $0x28] ss:$16 sps:$4 sm:$0xff]  }
  0xa9   : > { %2058 = vmatprep.subr.bf16.mxu1 %v3037_v47  ;;  %v3119_v47 = vld [vmem:[%s3573_s24 + $0x228] ss:$16 sps:$4 sm:$0xff]  }
  0xab   : > { %2016 = vmatpush2.bf16.msra.mxu0 %v3032_v48  ;;  %v3124_v48 = vld [vmem:[%s3573_s24 + $0xc] ss:$16 sps:$4 sm:$0xff]  }
  0xac   : > { %2059 = vmatpush2.bf16.msra.mxu1 %v3035_v49  ;;  %2017 = vmatprep.subr.bf16.mxu0 %v3040_v50  ;;  %v3127_v49 = vld [vmem:[%s3573_s24 + $0x20c] ss:$16 sps:$4 sm:$0xff]   ;;  %v3122_v50 = vld [vmem:[%s3573_s24 + $0x8] ss:$16 sps:$4 sm:$0xff]  }
  0xad   : > { %2060 = vmatprep.subr.bf16.mxu1 %v3043_v51  ;;  %v3125_v51 = vld [vmem:[%s3573_s24 + $0x208] ss:$16 sps:$4 sm:$0xff]  }
  0xaf   : > { %2018 = vmatpush2.bf16.msra.mxu0 %v3038_v52  ;;  %v3130_v52 = vld [vmem:[%s3573_s24 + $0x1ec] ss:$16 sps:$4 sm:$0xff]  }
  0xb0   : > { %2061 = vmatpush2.bf16.msra.mxu1 %v3041_v54  ;;  %2019 = vmatprep.subr.bf16.mxu0 %v3046_v56  ;;  %v3133_v54 = vld [vmem:[%s3573_s24 + $0x3ec] ss:$16 sps:$4 sm:$0xff]   ;;  %v3128_v56 = vld [vmem:[%s3573_s24 + $0x1e8] ss:$16 sps:$4 sm:$0xff]  }
  0xb1   : > { %2062 = vmatprep.subr.bf16.mxu1 %v3049_v57  ;;  %v3131_v57 = vld [vmem:[%s3573_s24 + $0x3e8] ss:$16 sps:$4 sm:$0xff]  }
  0xb3   : > { %2020 = vmatpush2.bf16.msra.mxu0 %v3044_v58  ;;  %v3136_v58 = vld [vmem:[%s3573_s24 + $0x1cc] ss:$16 sps:$4 sm:$0xff]  }
  0xb4   : > { %2063 = vmatpush2.bf16.msra.mxu1 %v3047_v59  ;;  %2021 = vmatprep.subr.bf16.mxu0 %v3052_v60  ;;  %v3139_v59 = vld [vmem:[%s3573_s24 + $0x3cc] ss:$16 sps:$4 sm:$0xff]   ;;  %v3134_v60 = vld [vmem:[%s3573_s24 + $0x1c8] ss:$16 sps:$4 sm:$0xff]  }
  0xb5   : > { %2064 = vmatprep.subr.bf16.mxu1 %v3055_v61  ;;  %v3137_v61 = vld [vmem:[%s3573_s24 + $0x3c8] ss:$16 sps:$4 sm:$0xff]  }
  0xb7   : > { %2022 = vmatpush2.bf16.msra.mxu0 %v3050_v62  ;;  %v3142_v62 = vld [vmem:[%s3573_s24 + $0x1ac] ss:$16 sps:$4 sm:$0xff]  }
  0xb8   : > { %2065 = vmatpush2.bf16.msra.mxu1 %v3053_v63  ;;  %2023 = vmatprep.subr.bf16.mxu0 %v3058_v0  ;;  %v3145_v63 = vld [vmem:[%s3573_s24 + $0x3ac] ss:$16 sps:$4 sm:$0xff]   ;;  %v3140_v0 = vld [vmem:[%s3573_s24 + $0x1a8] ss:$16 sps:$4 sm:$0xff]  }
  0xb9   : > { %2066 = vmatprep.subr.bf16.mxu1 %v3061_v1  ;;  %v3143_v1 = vld [vmem:[%s3573_s24 + $0x3a8] ss:$16 sps:$4 sm:$0xff]  }
  0xbb   : > { %2024 = vmatpush2.bf16.msra.mxu0 %v3056_v2  ;;  %v3148_v2 = vld [vmem:[%s3573_s24 + $0x18c] ss:$16 sps:$4 sm:$0xff]  }
  0xbc   : > { %2067 = vmatpush2.bf16.msra.mxu1 %v3059_v3  ;;  %2025 = vmatprep.subr.bf16.mxu0 %v3064_v4  ;;  %v3151_v3 = vld [vmem:[%s3573_s24 + $0x38c] ss:$16 sps:$4 sm:$0xff]   ;;  %v3146_v4 = vld [vmem:[%s3573_s24 + $0x188] ss:$16 sps:$4 sm:$0xff]  }
  0xbd   : > { %2068 = vmatprep.subr.bf16.mxu1 %v3067_v5  ;;  %v3149_v5 = vld [vmem:[%s3573_s24 + $0x388] ss:$16 sps:$4 sm:$0xff]  }
  0xbf   : > { %2026 = vmatpush2.bf16.msra.mxu0 %v3062_v6  ;;  %v3154_v6 = vld [vmem:[%s3573_s24 + $0x16c] ss:$16 sps:$4 sm:$0xff]  }
  0xc0   : > { %2069 = vmatpush2.bf16.msra.mxu1 %v3065_v7  ;;  %2027 = vmatprep.subr.bf16.mxu0 %v3070_v10  ;;  %v3157_v7 = vld [vmem:[%s3573_s24 + $0x36c] ss:$16 sps:$4 sm:$0xff]   ;;  %v3152_v10 = vld [vmem:[%s3573_s24 + $0x168] ss:$16 sps:$4 sm:$0xff]  }
  0xc1   : > { %2070 = vmatprep.subr.bf16.mxu1 %v3073_v11  ;;  %v3155_v11 = vld [vmem:[%s3573_s24 + $0x368] ss:$16 sps:$4 sm:$0xff]  }
  0xc3   : > { %2028 = vmatpush2.bf16.msra.mxu0 %v3068_v12  ;;  %v3160_v12 = vld [vmem:[%s3573_s24 + $0x14c] ss:$16 sps:$4 sm:$0xff]  }
  0xc4   : > { %2071 = vmatpush2.bf16.msra.mxu1 %v3071_v13  ;;  %2029 = vmatprep.subr.bf16.mxu0 %v3076_v14  ;;  %v3163_v13 = vld [vmem:[%s3573_s24 + $0x34c] ss:$16 sps:$4 sm:$0xff]   ;;  %v3158_v14 = vld [vmem:[%s3573_s24 + $0x148] ss:$16 sps:$4 sm:$0xff]  }
  0xc5   : > { %2072 = vmatprep.subr.bf16.mxu1 %v3079_v15  ;;  %v3161_v15 = vld [vmem:[%s3573_s24 + $0x348] ss:$16 sps:$4 sm:$0xff]  }
  0xc7   : > { %2030 = vmatpush2.bf16.msra.mxu0 %v3074_v16  ;;  %v3166_v16 = vld [vmem:[%s3573_s24 + $0x12c] ss:$16 sps:$4 sm:$0xff]  }
  0xc8   : > { %2073 = vmatpush2.bf16.msra.mxu1 %v3077_v17  ;;  %2085 = vmatprep.subr.bf16.mxu0 %v3082_v18  ;;  %v3169_v17 = vld [vmem:[%s3573_s24 + $0x32c] ss:$16 sps:$4 sm:$0xff]   ;;  %v3164_v18 = vld [vmem:[%s3573_s24 + $0x128] ss:$16 sps:$4 sm:$0xff]  }
  0xc9   : > { %2128 = vmatprep.subr.bf16.mxu1 %v3085_v19  ;;  %v3167_v19 = vld [vmem:[%s3573_s24 + $0x328] ss:$16 sps:$4 sm:$0xff]  }
  0xca   : > { %2032 = vmatmul.mubr.bf16.vlgmr.msra.gmra.mxu0 %v3775_v20 }
  0xcb   : > { %2075 = vmatmul.mubr.bf16.vlgmr.msra.gmra.mxu1 %v3779_v21  ;;  %2086 = vmatpush1.bf16.msra.mxu0 %v3080_v22  ;;  %v3172_v22 = vld [vmem:[%s3573_s24 + $0x10c] ss:$16 sps:$4 sm:$0xff]  }
  0xcc   : > { %2129 = vmatpush1.bf16.msra.mxu1 %v3083_v23  ;;  %2087 = vmatprep.subr.bf16.mxu0 %v3088_v24  ;;  %v3175_v23 = vld [vmem:[%s3573_s24 + $0x30c] ss:$16 sps:$4 sm:$0xff]   ;;  %v3170_v24 = vld [vmem:[%s3573_s24 + $0x108] ss:$16 sps:$4 sm:$0xff]  }
  0xcd   : > { %2130 = vmatprep.subr.bf16.mxu1 %v3091_v25  ;;  %2117 = vmatprep.mubr.bf16.mxu0 %v3650_v53  ;;  %v3106_v53 = vld [vmem:[%s3573_s24 + $0x6c] ss:$16 sps:$4 sm:$0xff]   ;;  %v3173_v25 = vld [vmem:[%s3573_s24 + $0x308] ss:$16 sps:$4 sm:$0xff]  }
  0xce   : > { %2160 = vmatprep.mubr.bf16.mxu1 %v3653_v55  ;;  %v3109_v55 = vld [vmem:[%s3573_s24 + $0x26c] ss:$16 sps:$4 sm:$0xff]  }
  0xcf   : > { %2088 = vmatpush1.bf16.msra.mxu0 %v3086_v26  ;;  %v3178_v26 = vld [vmem:[%s3573_s24 + $0x4ec] ss:$16 sps:$4 sm:$0xff]  }
  0xd0   : > { %2131 = vmatpush1.bf16.msra.mxu1 %v3089_v27  ;;  %2089 = vmatprep.subr.bf16.mxu0 %v3094_v28  ;;  %v3181_v27 = vld [vmem:[%s3573_s24 + $0x6ec] ss:$16 sps:$4 sm:$0xff]   ;;  %v3176_v28 = vld [vmem:[%s3573_s24 + $0x4e8] ss:$16 sps:$4 sm:$0xff]  }
  0xd1   : > { %2132 = vmatprep.subr.bf16.mxu1 %v3097_v29  ;;  %v3179_v29 = vld [vmem:[%s3573_s24 + $0x6e8] ss:$16 sps:$4 sm:$0xff]  }
  0xd3   : > { %2090 = vmatpush1.bf16.msra.mxu0 %v3092_v30  ;;  %v3184_v30 = vld [vmem:[%s3573_s24 + $0x4cc] ss:$16 sps:$4 sm:$0xff]  }
  0xd4   : > { %2133 = vmatpush1.bf16.msra.mxu1 %v3095_v31  ;;  %2091 = vmatprep.subr.bf16.mxu0 %v3100_v32  ;;  %v3187_v31 = vld [vmem:[%s3573_s24 + $0x6cc] ss:$16 sps:$4 sm:$0xff]   ;;  %v3182_v32 = vld [vmem:[%s3573_s24 + $0x4c8] ss:$16 sps:$4 sm:$0xff]  }
  0xd5   : > { %2134 = vmatprep.subr.bf16.mxu1 %v3103_v33  ;;  %v3185_v33 = vld [vmem:[%s3573_s24 + $0x6c8] ss:$16 sps:$4 sm:$0xff]  }
  0xd7   : > { %2092 = vmatpush1.bf16.msra.mxu0 %v3098_v34  ;;  %v3190_v34 = vld [vmem:[%s3573_s24 + $0x4ac] ss:$16 sps:$4 sm:$0xff]  }
  0xd8   : > { %2135 = vmatpush1.bf16.msra.mxu1 %v3101_v35  ;;  %2093 = vmatprep.subr.bf16.mxu0 %v3106_v53  ;;  %v3193_v35 = vld [vmem:[%s3573_s24 + $0x6ac] ss:$16 sps:$4 sm:$0xff]  }
  0xd9   : > { %2136 = vmatprep.subr.bf16.mxu1 %v3109_v55  ;;  %v3196_v53 = vld [vmem:[%s3573_s24 + $0x48c] ss:$16 sps:$4 sm:$0xff]  }
  0xda   : > { %v3199_v55 = vld [vmem:[%s3573_s24 + $0x68c] ss:$16 sps:$4 sm:$0xff]  }
  0xdb   : > { %2094 = vmatpush1.bf16.msra.mxu0 %v3104_v36  ;;  %v3194_v36 = vld [vmem:[%s3573_s24 + $0x488] ss:$16 sps:$4 sm:$0xff]  }
  0xdc   : > { %2137 = vmatpush1.bf16.msra.mxu1 %v3107_v37  ;;  %2095 = vmatprep.subr.bf16.mxu0 %v3112_v38  ;;  %v3205_v37 = vld [vmem:[%s3573_s24 + $0x66c] ss:$16 sps:$4 sm:$0xff]   ;;  %v3200_v38 = vld [vmem:[%s3573_s24 + $0x468] ss:$16 sps:$4 sm:$0xff]  }
  0xdd   : > { %2138 = vmatprep.subr.bf16.mxu1 %v3115_v39  ;;  %v3203_v39 = vld [vmem:[%s3573_s24 + $0x668] ss:$16 sps:$4 sm:$0xff]  }
  0xdf   : > { %2096 = vmatpush1.bf16.msra.mxu0 %v3110_v40  ;;  %v3208_v40 = vld [vmem:[%s3573_s24 + $0x44c] ss:$16 sps:$4 sm:$0xff]  }
  0xe0   : > { %2139 = vmatpush1.bf16.msra.mxu1 %v3113_v42  ;;  %2097 = vmatprep.subr.bf16.mxu0 %v3118_v44  ;;  %v3211_v42 = vld [vmem:[%s3573_s24 + $0x64c] ss:$16 sps:$4 sm:$0xff]   ;;  %v3206_v44 = vld [vmem:[%s3573_s24 + $0x448] ss:$16 sps:$4 sm:$0xff]  }
  0xe1   : > { %2140 = vmatprep.subr.bf16.mxu1 %v3121_v45  ;;  %v3209_v45 = vld [vmem:[%s3573_s24 + $0x648] ss:$16 sps:$4 sm:$0xff]  }
  0xe3   : > { %2098 = vmatpush1.bf16.msra.mxu0 %v3116_v46  ;;  %v3214_v46 = vld [vmem:[%s3573_s24 + $0x42c] ss:$16 sps:$4 sm:$0xff]  }
  0xe4   : > { %2141 = vmatpush1.bf16.msra.mxu1 %v3119_v47  ;;  %2099 = vmatprep.subr.bf16.mxu0 %v3124_v48  ;;  %v3217_v47 = vld [vmem:[%s3573_s24 + $0x62c] ss:$16 sps:$4 sm:$0xff]   ;;  %v3212_v48 = vld [vmem:[%s3573_s24 + $0x428] ss:$16 sps:$4 sm:$0xff]  }
  0xe5   : > { %2142 = vmatprep.subr.bf16.mxu1 %v3127_v49  ;;  %v3215_v49 = vld [vmem:[%s3573_s24 + $0x628] ss:$16 sps:$4 sm:$0xff]  }
  0xe7   : > { %2100 = vmatpush1.bf16.msra.mxu0 %v3122_v50  ;;  %v3220_v50 = vld [vmem:[%s3573_s24 + $0x40c] ss:$16 sps:$4 sm:$0xff]  }
  0xe8   : > { %2143 = vmatpush1.bf16.msra.mxu1 %v3125_v51  ;;  %2101 = vmatprep.subr.bf16.mxu0 %v3130_v52  ;;  %v3223_v51 = vld [vmem:[%s3573_s24 + $0x60c] ss:$16 sps:$4 sm:$0xff]   ;;  %v3218_v52 = vld [vmem:[%s3573_s24 + $0x408] ss:$16 sps:$4 sm:$0xff]  }
  0xe9   : > { %2144 = vmatprep.subr.bf16.mxu1 %v3133_v54  ;;  %v3221_v54 = vld [vmem:[%s3573_s24 + $0x608] ss:$16 sps:$4 sm:$0xff]  }
  0xeb   : > { %2102 = vmatpush2.bf16.msra.mxu0 %v3128_v56  ;;  %v3226_v56 = vld [vmem:[%s3573_s24 + $0x5ec] ss:$16 sps:$4 sm:$0xff]  }
  0xec   : > { %2145 = vmatpush2.bf16.msra.mxu1 %v3131_v57  ;;  %2103 = vmatprep.subr.bf16.mxu0 %v3136_v58  ;;  %v3229_v57 = vld [vmem:[%s3573_s24 + $0x7ec] ss:$16 sps:$4 sm:$0xff]   ;;  %v3224_v58 = vld [vmem:[%s3573_s24 + $0x5e8] ss:$16 sps:$4 sm:$0xff]  }
  0xed   : > { %2146 = vmatprep.subr.bf16.mxu1 %v3139_v59  ;;  %v3227_v59 = vld [vmem:[%s3573_s24 + $0x7e8] ss:$16 sps:$4 sm:$0xff]  }
  0xef   : > { %2104 = vmatpush2.bf16.msra.mxu0 %v3134_v60  ;;  %v3232_v60 = vld [vmem:[%s3573_s24 + $0x5cc] ss:$16 sps:$4 sm:$0xff]  }
  0xf0   : > { %2147 = vmatpush2.bf16.msra.mxu1 %v3137_v61  ;;  %2105 = vmatprep.subr.bf16.mxu0 %v3142_v62  ;;  %v3235_v61 = vld [vmem:[%s3573_s24 + $0x7cc] ss:$16 sps:$4 sm:$0xff]   ;;  %v3230_v62 = vld [vmem:[%s3573_s24 + $0x5c8] ss:$16 sps:$4 sm:$0xff]  }
  0xf1   : > { %2148 = vmatprep.subr.bf16.mxu1 %v3145_v63  ;;  %v3233_v63 = vld [vmem:[%s3573_s24 + $0x7c8] ss:$16 sps:$4 sm:$0xff]  }
  0xf3   : > { %2106 = vmatpush2.bf16.msra.mxu0 %v3140_v0  ;;  %v3238_v0 = vld [vmem:[%s3573_s24 + $0x5ac] ss:$16 sps:$4 sm:$0xff]  }
  0xf4   : > { %2149 = vmatpush2.bf16.msra.mxu1 %v3143_v1  ;;  %2107 = vmatprep.subr.bf16.mxu0 %v3148_v2  ;;  %v3241_v1 = vld [vmem:[%s3573_s24 + $0x7ac] ss:$16 sps:$4 sm:$0xff]   ;;  %v3236_v2 = vld [vmem:[%s3573_s24 + $0x5a8] ss:$16 sps:$4 sm:$0xff]  }
  0xf5   : > { %2150 = vmatprep.subr.bf16.mxu1 %v3151_v3  ;;  %v3239_v3 = vld [vmem:[%s3573_s24 + $0x7a8] ss:$16 sps:$4 sm:$0xff]  }
  0xf7   : > { %2108 = vmatpush2.bf16.msra.mxu0 %v3146_v4  ;;  %v3244_v4 = vld [vmem:[%s3573_s24 + $0x58c] ss:$16 sps:$4 sm:$0xff]  }
  0xf8   : > { %2151 = vmatpush2.bf16.msra.mxu1 %v3149_v5  ;;  %2109 = vmatprep.subr.bf16.mxu0 %v3154_v6  ;;  %v3247_v5 = vld [vmem:[%s3573_s24 + $0x78c] ss:$16 sps:$4 sm:$0xff]   ;;  %v3242_v6 = vld [vmem:[%s3573_s24 + $0x588] ss:$16 sps:$4 sm:$0xff]  }
  0xf9   : > { %2152 = vmatprep.subr.bf16.mxu1 %v3157_v7  ;;  %v3245_v7 = vld [vmem:[%s3573_s24 + $0x788] ss:$16 sps:$4 sm:$0xff]  }
  0xfb   : > { %2110 = vmatpush2.bf16.msra.mxu0 %v3152_v10  ;;  %v3250_v10 = vld [vmem:[%s3573_s24 + $0x56c] ss:$16 sps:$4 sm:$0xff]  }
  0xfc   : > { %2153 = vmatpush2.bf16.msra.mxu1 %v3155_v11  ;;  %2111 = vmatprep.subr.bf16.mxu0 %v3160_v12  ;;  %v3253_v11 = vld [vmem:[%s3573_s24 + $0x76c] ss:$16 sps:$4 sm:$0xff]   ;;  %v3248_v12 = vld [vmem:[%s3573_s24 + $0x568] ss:$16 sps:$4 sm:$0xff]  }
  0xfd   : > { %2154 = vmatprep.subr.bf16.mxu1 %v3163_v13  ;;  %v3251_v13 = vld [vmem:[%s3573_s24 + $0x768] ss:$16 sps:$4 sm:$0xff]  }
  0xff   : > { %2112 = vmatpush2.bf16.msra.mxu0 %v3158_v14  ;;  %v3256_v14 = vld [vmem:[%s3573_s24 + $0x54c] ss:$16 sps:$4 sm:$0xff]  }
 0x100   : > { %2155 = vmatpush2.bf16.msra.mxu1 %v3161_v15  ;;  %2113 = vmatprep.subr.bf16.mxu0 %v3166_v16  ;;  %v3259_v15 = vld [vmem:[%s3573_s24 + $0x74c] ss:$16 sps:$4 sm:$0xff]   ;;  %v3254_v16 = vld [vmem:[%s3573_s24 + $0x548] ss:$16 sps:$4 sm:$0xff]  }
 0x101   : > { %2156 = vmatprep.subr.bf16.mxu1 %v3169_v17  ;;  %v3257_v17 = vld [vmem:[%s3573_s24 + $0x748] ss:$16 sps:$4 sm:$0xff]  }
 0x103   : > { %2114 = vmatpush2.bf16.msra.mxu0 %v3164_v18  ;;  %v3262_v18 = vld [vmem:[%s3573_s24 + $0x52c] ss:$16 sps:$4 sm:$0xff]  }
 0x104   : > { %2157 = vmatpush2.bf16.msra.mxu1 %v3167_v19  ;;  %2115 = vmatprep.subr.bf16.mxu0 %v3172_v22  ;;  %v3265_v19 = vld [vmem:[%s3573_s24 + $0x72c] ss:$16 sps:$4 sm:$0xff]   ;;  %v3260_v22 = vld [vmem:[%s3573_s24 + $0x528] ss:$16 sps:$4 sm:$0xff]  }
 0x105   : > { %2158 = vmatprep.subr.bf16.mxu1 %v3175_v23  ;;  %v3263_v23 = vld [vmem:[%s3573_s24 + $0x728] ss:$16 sps:$4 sm:$0xff]  }
 0x107   : > { %2116 = vmatpush2.bf16.msra.mxu0 %v3170_v24  ;;  %v3268_v24 = vld [vmem:[%s3573_s24 + $0x50c] ss:$16 sps:$4 sm:$0xff]  }
 0x108   : > { %2159 = vmatpush2.bf16.msra.mxu1 %v3173_v25  ;;  %2171 = vmatprep.subr.bf16.mxu0 %v3178_v26  ;;  %v3271_v25 = vld [vmem:[%s3573_s24 + $0x70c] ss:$16 sps:$4 sm:$0xff]   ;;  %v3266_v26 = vld [vmem:[%s3573_s24 + $0x508] ss:$16 sps:$4 sm:$0xff]  }
 0x109   : > { %2214 = vmatprep.subr.bf16.mxu1 %v3181_v27  ;;  %v3269_v27 = vld [vmem:[%s3573_s24 + $0x708] ss:$16 sps:$4 sm:$0xff]  }
 0x10a   : > { %2118 = vmatmul.mubr.bf16.vlgmr.msra.gmra.mxu0 %v3673_v8  ;;  %v3188_v8 = vld [vmem:[%s3573_s24 + $0x4a8] ss:$16 sps:$4 sm:$0xff]  }
 0x10b   : > { %2161 = vmatmul.mubr.bf16.vlgmr.msra.gmra.mxu1 %v3675_v9  ;;  %2172 = vmatpush1.bf16.msra.mxu0 %v3176_v28  ;;  %v3191_v9 = vld [vmem:[%s3573_s24 + $0x6a8] ss:$16 sps:$4 sm:$0xff]  }
 0x10c   : > { %2215 = vmatpush1.bf16.msra.mxu1 %v3179_v29  ;;  %2173 = vmatprep.subr.bf16.mxu0 %v3184_v30  ;;  %v2259_v30 = vlaneseq }
 0x10d   : > { %2216 = vmatprep.subr.bf16.mxu1 %v3187_v31  ;;  %2203 = vmatprep.mubr.bf16.mxu0 %v3728_v41  ;;  %v3197_v41 = vld [vmem:[%s3573_s24 + $0x688] ss:$16 sps:$4 sm:$0xff]  }
 0x10e   : > { %2246 = vmatprep.mubr.bf16.mxu1 %v3733_v43  ;;  %v3202_v43 = vld [vmem:[%s3573_s24 + $0x46c] ss:$16 sps:$4 sm:$0xff]   ;;  %s277_s24 = scalar_lea.vmem [#allocation6], %s2536_s22  ;;  %s2538_s22 = sshll.u32 %s3569_s29, 5 }
 0x10f   : > { %2174 = vmatpush1.bf16.msra.mxu0 %v3182_v32  ;;  %s2819_s29 = sshll.u32 (%p3497_p9), %s3402_s18, 4 }
 0x110   : > { %2217 = vmatpush1.bf16.msra.mxu1 %v3185_v33  ;;  %2175 = vmatprep.subr.bf16.mxu0 %v3190_v34  ;;  %v3917_v33 = vshrl.u32 %v2259_v30, 7  ;;  %s2365_s10 = scalar_lea.vmem (%p3497_p9), %s3977_s4, %s2819_s29 }
 0x111   : > { %2218 = vmatprep.subr.bf16.mxu1 %v3193_v35 }
 0x113   : > { %2176 = vmatpush1.bf16.msra.mxu0 %v3188_v8  ;;  %v2261_v8 = vsub.s32 0, %v3917_v33 }
 0x114   : > { %2219 = vmatpush1.bf16.msra.mxu1 %v3191_v9  ;;  %2177 = vmatprep.subr.bf16.mxu0 %v3196_v53 }
 0x115   : > { %2220 = vmatprep.subr.bf16.mxu1 %v3199_v55  ;;  %v3921_v55 = vld [vmem:[%s3583_s25] sm:$0xf]  ;;  %s3933_s25 = scalar_lea.vmem [#allocation7], %s2538_s22 }
 0x117   : > { %2178 = vmatpush1.bf16.msra.mxu0 %v3194_v36 }
 0x118   : > { %2221 = vmatpush1.bf16.msra.mxu1 %v3197_v41  ;;  %2179 = vmatprep.subr.bf16.mxu0 %v3202_v43 }
 0x119   : > { %2222 = vmatprep.subr.bf16.mxu1 %v3205_v37 }
 0x11b   : > { %2180 = vmatpush1.bf16.msra.mxu0 %v3200_v38 }
 0x11c   : > { %2223 = vmatpush1.bf16.msra.mxu1 %v3203_v39  ;;  %2181 = vmatprep.subr.bf16.mxu0 %v3208_v40  ;;  %v2262_v39 = vrot.slane %v3921_v55, %v2261_v8 }
 0x11d   : > { %2224 = vmatprep.subr.bf16.mxu1 %v3211_v42 }
 0x11f   : > { %2182 = vmatpush1.bf16.msra.mxu0 %v3206_v44 }
 0x120   : > { %2225 = vmatpush1.bf16.msra.mxu1 %v3209_v45  ;;  %2183 = vmatprep.subr.bf16.mxu0 %v3214_v46 }
 0x121   : > { %2226 = vmatprep.subr.bf16.mxu1 %v3217_v47 }
 0x123   : > { %2184 = vmatpush1.bf16.msra.mxu0 %v3212_v48 }
 0x124   : > { %2227 = vmatpush1.bf16.msra.mxu1 %v3215_v49  ;;  %2185 = vmatprep.subr.bf16.mxu0 %v3220_v50 }
 0x125   : > { %2228 = vmatprep.subr.bf16.mxu1 %v3223_v51 }
 0x127   : > { %2186 = vmatpush1.bf16.msra.mxu0 %v3218_v52 }
 0x128   : > { %2229 = vmatpush1.bf16.msra.mxu1 %v3221_v54  ;;  %2187 = vmatprep.subr.bf16.mxu0 %v3226_v56 }
 0x129   : > { %2230 = vmatprep.subr.bf16.mxu1 %v3229_v57 }
 0x12b   : > { %2188 = vmatpush2.bf16.msra.mxu0 %v3224_v58 }
 0x12c   : > { %2231 = vmatpush2.bf16.msra.mxu1 %v3227_v59  ;;  %2189 = vmatprep.subr.bf16.mxu0 %v3232_v60 }
 0x12d   : > { %2232 = vmatprep.subr.bf16.mxu1 %v3235_v61 }
 0x12f   : > { %2190 = vmatpush2.bf16.msra.mxu0 %v3230_v62 }
 0x130   : > { %2233 = vmatpush2.bf16.msra.mxu1 %v3233_v63  ;;  %2191 = vmatprep.subr.bf16.mxu0 %v3238_v0 }
 0x131   : > { %2234 = vmatprep.subr.bf16.mxu1 %v3241_v1 }
 0x133   : > { %2192 = vmatpush2.bf16.msra.mxu0 %v3236_v2 }
 0x134   : > { %2235 = vmatpush2.bf16.msra.mxu1 %v3239_v3  ;;  %2193 = vmatprep.subr.bf16.mxu0 %v3244_v4 }
 0x135   : > { %2236 = vmatprep.subr.bf16.mxu1 %v3247_v5 }
 0x137   : > { %2194 = vmatpush2.bf16.msra.mxu0 %v3242_v6 }
 0x138   : > { %2237 = vmatpush2.bf16.msra.mxu1 %v3245_v7  ;;  %2195 = vmatprep.subr.bf16.mxu0 %v3250_v10 }
 0x139   : > { %2238 = vmatprep.subr.bf16.mxu1 %v3253_v11 }
 0x13b   : > { %2196 = vmatpush2.bf16.msra.mxu0 %v3248_v12 }
 0x13c   : > { %2239 = vmatpush2.bf16.msra.mxu1 %v3251_v13  ;;  %2197 = vmatprep.subr.bf16.mxu0 %v3256_v14 }
 0x13d   : > { %2240 = vmatprep.subr.bf16.mxu1 %v3259_v15 }
 0x13f   : > { %2198 = vmatpush2.bf16.msra.mxu0 %v3254_v16 }
 0x140   : > { %2241 = vmatpush2.bf16.msra.mxu1 %v3257_v17  ;;  %2199 = vmatprep.subr.bf16.mxu0 %v3262_v18 }
 0x141   : > { %2242 = vmatprep.subr.bf16.mxu1 %v3265_v19 }
 0x143   : > { %2200 = vmatpush2.bf16.msra.mxu0 %v3260_v22  ;;  %v2269_v22 = vsub.s32 2, %v3917_v33 }
 0x144   : > { %2243 = vmatpush2.bf16.msra.mxu1 %v3263_v23  ;;  %2201 = vmatprep.subr.bf16.mxu0 %v3268_v24 }
 0x145   : > { %2244 = vmatprep.subr.bf16.mxu1 %v3271_v25 }
 0x147   : > { %2202 = vmatpush2.bf16.msra.mxu0 %v3266_v26  ;;  %v2273_v26 = vsub.s32 3, %v3917_v33 }
 0x148   : > { %2245 = vmatpush2.bf16.msra.mxu1 %v3269_v27 }
 0x14a   : > { %2204 = vmatmul.mubr.bf16.vlgmr.msra.gmra.mxu0 %v3775_v20  ;;  %v1947_v28 = vpop.f32.mrf.mxu0  ;;  %v3925_v20 = vld [vmem:[%s277_s24] sm:$0xf] }
 0x14b   : > { %2247 = vmatmul.mubr.bf16.vlgmr.msra.gmra.mxu1 %v3779_v21  ;;  %v1990_v29 = vpop.f32.mrf.mxu1  ;;  %v2265_v21 = vsub.s32 1, %v3917_v33  ;;  %v2292_v40 = vrot.slane %v3925_v20, %v2261_v8 }
 0x14c   : > { %v1949_v31 = vpop.f32.mrf.mxu0  ;;  %v1991_v36 = vadd.f32 %v1990_v29, %v1947_v28 }
 0x14d   : > { %v1992_v32 = vpop.f32.mrf.mxu1  ;;  %v2266_v48 = vrot.slane %v3921_v55, %v2265_v21  ;;  %v2296_v49 = vrot.slane %v3925_v20, %v2265_v21  ;;  %v2304_v21 = vrot.slane %v3925_v20, %v2273_v26 }
 0x14e   : > { %v1951_v34 = vpop.f32.mrf.mxu0  ;;  %v1993_v37 = vadd.f32 %v1992_v32, %v1949_v31  ;;  %v2270_v31 = vrot.slane %v3921_v55, %v2269_v22  ;;  %v2300_v32 = vrot.slane %v3925_v20, %v2269_v22 }
 0x14f   : > { %v1994_v35 = vpop.f32.mrf.mxu1 }
 0x150   : > { %v1953_v9 = vpop.f32.mrf.mxu0  ;;  %v1995_v45 = vadd.f32 %v1994_v35, %v1951_v34 }
 0x151   : > { %v1996_v53 = vpop.f32.mrf.mxu1 }
 0x152   : > { %v1997_v52 = vadd.f32 %v1996_v53, %v1953_v9 }
 0x18a   : > { %v2033_v41 = vpop.f32.mrf.mxu0 }
 0x18b   : > { %v2076_v43 = vpop.f32.mrf.mxu1  ;;  %v2034_v38 = vadd.f32 %v2033_v41, %v1991_v36  ;;  %v2274_v36 = vrot.slane %v3921_v55, %v2273_v26 }
 0x18c   : > { %v2035_v42 = vpop.f32.mrf.mxu0 }
 0x18d   : > { %v2078_v44 = vpop.f32.mrf.mxu1  ;;  %v2077_v46 = vadd.f32 %v2076_v43, %v2034_v38  ;;  %v2036_v47 = vadd.f32 %v2035_v42, %v1993_v37 }
 0x18e   : > { %v2037_v50 = vpop.f32.mrf.mxu0 }
 0x18f   : > { %v2080_v51 = vpop.f32.mrf.mxu1  ;;  %v2279_v54 = vmul.f32 %v2262_v39, %v2077_v46  ;;  %v2079_v56 = vadd.f32 %v2078_v44, %v2036_v47  ;;  %v2038_v57 = vadd.f32 %v2037_v50, %v1995_v45 }
 0x190   : > { %v2039_v58 = vpop.f32.mrf.mxu0 }
 0x191   : > { %v2309_v59 = vadd.f32 %v2292_v40, %v2279_v54  ;;  %v2280_v60 = vmul.f32 %v2266_v48, %v2079_v56  ;;  %v2081_v61 = vadd.f32 %v2080_v51, %v2038_v57  ;;  %v2040_v62 = vadd.f32 %v2039_v58, %v1997_v52  ;;  %v2082_v63 = vpop.f32.mrf.mxu1 }
 0x193   : > { %v2310_v0 = vadd.f32 %v2296_v49, %v2280_v60  ;;  %v2283_v1 = vmul.f32 %v2262_v39, %v2081_v61  ;;  %v2083_v2 = vadd.f32 %v2082_v63, %v2040_v62  ;;  %v2317_v3 = vmax.f32 %v2309_v59, 0.0 }
 0x195   : > { %v2318_v4 = vmax.f32 %v2310_v0, 0.0  ;;  %v2313_v5 = vadd.f32 %v2292_v40, %v2283_v1  ;;  %v2284_v6 = vmul.f32 %v2266_v48, %v2083_v2 }
 0x197   : > { %v2815_v7 = vpack.c.bf16 %v2318_v4, %v2317_v3  ;;  %v2314_v10 = vadd.f32 %v2296_v49, %v2284_v6  ;;  %v2321_v11 = vmax.f32 %v2313_v5, 0.0 }
 0x199   : > { %2349 = vst [vmem:[%s3933_s25] sm:$0xff] %v2815_v7  ;;  %v2322_v12 = vmax.f32 %v2314_v10, 0.0 }
 0x19b   : > { %v2817_v13 = vpack.c.bf16 %v2322_v12, %v2321_v11 }
 0x19d   : > { %2351 = vst [vmem:[%s3933_s25 + $0x10] sm:$0xff] %v2817_v13 }
 0x1a0   : > { %v2378_v60 = vld [vmem:[%s3933_s25] sm:$0xff] (%p3497_p9) }
 0x1a1   : > { %2379 = vst [vmem:[%s2365_s10] sm:$0xff] (%p3497_p9), %v2378_v60 }
 0x1a4   : > { %v2382_v62 = vld [vmem:[%s3933_s25 + $0x10] sm:$0xff] (%p3497_p9) }
 0x1a5   : > { %2383 = vst [vmem:[%s2365_s10 + $0x40] sm:$0xff] (%p3497_p9), %v2382_v62 }
 0x1ca   : > { %v2119_v14 = vpop.f32.mrf.mxu0 }
 0x1cb   : > { %v2162_v15 = vpop.f32.mrf.mxu1 }
 0x1cc   : > { %v2121_v16 = vpop.f32.mrf.mxu0  ;;  %v2163_v25 = vadd.f32 %v2162_v15, %v2119_v14 }
 0x1cd   : > { %v2164_v17 = vpop.f32.mrf.mxu1 }
 0x1ce   : > { %v2123_v18 = vpop.f32.mrf.mxu0  ;;  %v2165_v29 = vadd.f32 %v2164_v17, %v2121_v16 }
 0x1cf   : > { %v2166_v19 = vpop.f32.mrf.mxu1 }
 0x1d0   : > { %v2125_v23 = vpop.f32.mrf.mxu0  ;;  %v2167_v8 = vadd.f32 %v2166_v19, %v2123_v18 }
 0x1d1   : > { %v2168_v24 = vpop.f32.mrf.mxu1 }
 0x1d2   : > { %v2169_v33 = vadd.f32 %v2168_v24, %v2125_v23 }
 0x20a   : > { %v2205_v27 = vpop.f32.mrf.mxu0 }
 0x20b   : > { %v2248_v28 = vpop.f32.mrf.mxu1  ;;  %v2206_v30 = vadd.f32 %v2205_v27, %v2163_v25 }
 0x20c   : > { %v2207_v34 = vpop.f32.mrf.mxu0 }
 0x20d   : > { %v2250_v35 = vpop.f32.mrf.mxu1  ;;  %v2249_v9 = vadd.f32 %v2248_v28, %v2206_v30  ;;  %v2208_v53 = vadd.f32 %v2207_v34, %v2165_v29 }
 0x20e   : > { %v2209_v41 = vpop.f32.mrf.mxu0 }
 0x20f   : > { %v2252_v43 = vpop.f32.mrf.mxu1  ;;  %v2281_v37 = vmul.f32 %v2270_v31, %v2249_v9  ;;  %v2251_v38 = vadd.f32 %v2250_v35, %v2208_v53  ;;  %v2210_v39 = vadd.f32 %v2209_v41, %v2167_v8 }
 0x210   : > { %v2211_v40 = vpop.f32.mrf.mxu0 }
 0x211   : > { %v2311_v42 = vadd.f32 %v2300_v32, %v2281_v37  ;;  %v2282_v44 = vmul.f32 %v2274_v36, %v2251_v38  ;;  %v2253_v45 = vadd.f32 %v2252_v43, %v2210_v39  ;;  %v2212_v46 = vadd.f32 %v2211_v40, %v2169_v33  ;;  %v2254_v47 = vpop.f32.mrf.mxu1 }
 0x213   : > { %v2312_v48 = vadd.f32 %v2304_v21, %v2282_v44  ;;  %v2285_v49 = vmul.f32 %v2270_v31, %v2253_v45  ;;  %v2255_v50 = vadd.f32 %v2254_v47, %v2212_v46  ;;  %v2319_v55 = vmax.f32 %v2311_v42, 0.0 }
 0x215   : > { %v2320_v51 = vmax.f32 %v2312_v48, 0.0  ;;  %v2315_v20 = vadd.f32 %v2300_v32, %v2285_v49  ;;  %v2286_v52 = vmul.f32 %v2274_v36, %v2255_v50 }
 0x217   : > { %v2816_v54 = vpack.c.bf16 %v2320_v51, %v2319_v55  ;;  %v2316_v56 = vadd.f32 %v2304_v21, %v2286_v52  ;;  %v2323_v57 = vmax.f32 %v2315_v20, 0.0 }
 0x219   : > { %2350 = vst [vmem:[%s3933_s25 + $0x8] sm:$0xff] %v2816_v54  ;;  %v2324_v58 = vmax.f32 %v2316_v56, 0.0  ;;  %2359 = sbr.rel (!%p3497_p9) target bundleno = 550 (0x226), region = 52 }
 0x21b   : > { %v2818_v59 = vpack.c.bf16 %v2324_v58, %v2323_v57 }
 0x21d   : > { %2352 = vst [vmem:[%s3933_s25 + $0x18] sm:$0xff] %v2818_v59 }
 0x220   : > { %v2380_v61 = vld [vmem:[%s3933_s25 + $0x8] sm:$0xff] }
 0x221   : > { %2381 = vst [vmem:[%s2365_s10 + $0x8] sm:$0xff] %v2380_v61 }
 0x224   : > { %v2384_v63 = vld [vmem:[%s3933_s25 + $0x18] sm:$0xff] }
 0x225   : > { %2385 = vst [vmem:[%s2365_s10 + $0x48] sm:$0xff] %v2384_v63 }
 0x226 PF: > { %s20_s20 = sadd.s32 1, %s3410_s20   ;;  %s3987_s28 = sld [smem:[#allocation10_spill]] }
 0x227   : > { %p17_p8 = scmp.ge.s32.totalorder %s20_s20, 6   ;;  %s3988_s15 = smov %s3394_s16 }
 0x228   : > { %s3989_s16 = smov %s3398_s17  ;;  %s3990_s17 = smov %s3495_s27 }
 0x229   : > { %s3991_s18 = smov %s3406_s19  ;;  %19 = sbr.rel (!%p17_p8) target bundleno = 8 (0x8), region = 126 }
 0x22c   : > { %s3992_s19 = smov %s3987_s28 }
 0x22e   :  { %2401 = vsyncpa [#allocation3], 1 }
 0x22f   :  { %2403 = vsyncpa [#allocation3 + $0x1], 1 }
 0x230   :  { %2404 = vsyncpa [#allocation5], 1 }
 0x231   :  { %2406 = vsyncpa [#allocation5 + $0x1], 1 }

// kernel: mlp_binaryconnect_forward.6
= control target key start
LH: loop header
LB: loop body
LE: loop exit
PB: predicated region body
PF: predicated region fallthrough
CT: control target
= control target key end

     0   :  { %s6832_s15 = smov 0   ;;  %s6834_s16 = smov 0   ;;  %s8682_s0 = inlined_call_operand.vmem [shape: bf16[16,2048], index: 0, kind: input, shape index: {}]   ;;  %s8683_s1 = inlined_call_operand.vmem [shape: bf16[2048,2048], index: 1, kind: input, shape index: {}]   ;;  %s8684_s2 = inlined_call_operand.vmem [shape: f32[1,2048], index: 2, kind: input, shape index: {}]   ;;  %s8685_s3 = inlined_call_operand.vmem [shape: f32[1,2048], index: 3, kind: input, shape index: {}]   ;;  %s8686_s4 = inlined_call_operand.vmem [shape: bf16[16,2048], index: 4, kind: output, shape index: {}]  }
   0x1   :  { %s6836_s17 = smov 0   ;;  %s6838_s18 = smov 0  }
   0x2   :  { %s6840_s19 = smov 0  }
   0x3 LB: > { %s23_s20 = sadd.s32 1, %s6801_s18  ;;  %s5403_s21 = sadd.s32 4294967295, %s6805_s19   ;;  %s6805_s19 = sphi %s6840_s19, %s14_s19   ;;  %s6801_s18 = sphi %s6838_s18, %s8692_s18   ;;  %s6797_s17 = sphi %s6836_s17, %s8691_s17   ;;  %s6793_s16 = sphi %s6834_s16, %s8690_s16   ;;  %s6789_s15 = sphi %s6832_s15, %s8689_s15  }
   0x4   : > { %p24_p0 = scmp.ge.s32.totalorder %s23_s20, 4  ;;  %p66_p1 = scmp.ne.s32.totalorder %s6793_s16, %s6789_s15 }
   0x5   : > { %p67_p2 = scmp.eq.s32.totalorder %s6805_s19, 0  ;;  %p150_p4 = scmp.eq.s32.totalorder %s5403_s21, 3 }
   0x6   : > { %s8694_s20 = smov (%p24_p0, %s23_s20), 0  ;;  %s59_s23 = sadd.s32 1, %s6793_s16 }
   0x7   : > { %p68_p3 = por %p67_p2, %p66_p1  ;;  %s56_s22 = ssub.s32 %s6801_s18, %s8694_s20 }
   0x8   : > { %p57_p5 = scmp.eq.s32.totalorder %s56_s22, 0  ;;  %p6867_p6 = por %p150_p4, %p66_p1 }
   0x9   : > { %p5407_p7 = scmp.ge.s32.totalorder %s6805_s19, 4 }
   0xa   : > { %s6872_s25 = scalar_select %p57_p5, %s6793_s16, %s59_s23  }
   0xb   : > { %182 = sbr.rel (%p5407_p7) target bundleno = 276 (0x114), region = 20 }
  0x10   : > { %185 = sbr.rel (!%p68_p3) target bundleno = 276 (0x114), region = 24  ;;  %s187_s26 = sand.u32 (%p68_p3), 1, %s6793_s16  }
  0x11   : > { %s5953_s27 = sshll.u32 (%p68_p3), %s6801_s18, 4  ;;  %s5408_s28 = sshll.u32 (%p68_p3), %s187_s26, 12 }
  0x12   : > { %s6880_s5 = scalar_lea.vmem (%p68_p3), %s8683_s1, %s5953_s27  ;;  %s6885_s6 = scalar_lea.vmem (%p68_p3), [#allocation2], %s5408_s28 }
  0x13   : > { %v205_v0 = vld [vmem:[%s6880_s5] sm:$0xff] (%p68_p3)  ;;  %v207_v1 = vld [vmem:[%s6880_s5 + $0x8] sm:$0xff] (%p68_p3) }
  0x14   : > { %v209_v2 = vld [vmem:[%s6880_s5 + $0x40] sm:$0xff] (%p68_p3)  ;;  %206 = vst [vmem:[%s6885_s6] sm:$0xff] (%p68_p3), %v205_v0  ;;  %208 = vst [vmem:[%s6885_s6 + $0x8] sm:$0xff] (%p68_p3), %v207_v1  ;;  %v211_v3 = vld [vmem:[%s6880_s5 + $0x48] sm:$0xff] (%p68_p3) }
  0x15   : > { %210 = vst [vmem:[%s6885_s6 + $0x10] sm:$0xff] %v209_v2  ;;  %v213_v4 = vld [vmem:[%s6880_s5 + $0x80] sm:$0xff]  ;;  %v215_v5 = vld [vmem:[%s6880_s5 + $0x88] sm:$0xff]  ;;  %212 = vst [vmem:[%s6885_s6 + $0x18] sm:$0xff] %v211_v3 }
  0x16   : > { %214 = vst [vmem:[%s6885_s6 + $0x20] sm:$0xff] %v213_v4  ;;  %216 = vst [vmem:[%s6885_s6 + $0x28] sm:$0xff] %v215_v5  ;;  %v217_v6 = vld [vmem:[%s6880_s5 + $0xc0] sm:$0xff]  ;;  %v219_v7 = vld [vmem:[%s6880_s5 + $0xc8] sm:$0xff] }
  0x17   : > { %v221_v8 = vld [vmem:[%s6880_s5 + $0x100] sm:$0xff]  ;;  %218 = vst [vmem:[%s6885_s6 + $0x30] sm:$0xff] %v217_v6  ;;  %220 = vst [vmem:[%s6885_s6 + $0x38] sm:$0xff] %v219_v7  ;;  %v223_v9 = vld [vmem:[%s6880_s5 + $0x108] sm:$0xff] }
  0x18   : > { %222 = vst [vmem:[%s6885_s6 + $0x40] sm:$0xff] %v221_v8  ;;  %v225_v10 = vld [vmem:[%s6880_s5 + $0x140] sm:$0xff]  ;;  %v227_v11 = vld [vmem:[%s6880_s5 + $0x148] sm:$0xff]  ;;  %224 = vst [vmem:[%s6885_s6 + $0x48] sm:$0xff] %v223_v9 }
  0x19   : > { %226 = vst [vmem:[%s6885_s6 + $0x50] sm:$0xff] %v225_v10  ;;  %228 = vst [vmem:[%s6885_s6 + $0x58] sm:$0xff] %v227_v11  ;;  %v229_v12 = vld [vmem:[%s6880_s5 + $0x180] sm:$0xff]  ;;  %v231_v13 = vld [vmem:[%s6880_s5 + $0x188] sm:$0xff] }
  0x1a   : > { %v233_v14 = vld [vmem:[%s6880_s5 + $0x1c0] sm:$0xff]  ;;  %230 = vst [vmem:[%s6885_s6 + $0x60] sm:$0xff] %v229_v12  ;;  %232 = vst [vmem:[%s6885_s6 + $0x68] sm:$0xff] %v231_v13  ;;  %v235_v15 = vld [vmem:[%s6880_s5 + $0x1c8] sm:$0xff] }
  0x1b   : > { %234 = vst [vmem:[%s6885_s6 + $0x70] sm:$0xff] %v233_v14  ;;  %v237_v16 = vld [vmem:[%s6880_s5 + $0x200] sm:$0xff]  ;;  %v239_v17 = vld [vmem:[%s6880_s5 + $0x208] sm:$0xff]  ;;  %236 = vst [vmem:[%s6885_s6 + $0x78] sm:$0xff] %v235_v15 }
  0x1c   : > { %238 = vst [vmem:[%s6885_s6 + $0x80] sm:$0xff] %v237_v16  ;;  %240 = vst [vmem:[%s6885_s6 + $0x88] sm:$0xff] %v239_v17  ;;  %v241_v18 = vld [vmem:[%s6880_s5 + $0x240] sm:$0xff]  ;;  %v243_v19 = vld [vmem:[%s6880_s5 + $0x248] sm:$0xff] }
  0x1d   : > { %v245_v20 = vld [vmem:[%s6880_s5 + $0x280] sm:$0xff]  ;;  %242 = vst [vmem:[%s6885_s6 + $0x90] sm:$0xff] %v241_v18  ;;  %244 = vst [vmem:[%s6885_s6 + $0x98] sm:$0xff] %v243_v19  ;;  %v247_v21 = vld [vmem:[%s6880_s5 + $0x288] sm:$0xff] }
  0x1e   : > { %246 = vst [vmem:[%s6885_s6 + $0xa0] sm:$0xff] %v245_v20  ;;  %v249_v22 = vld [vmem:[%s6880_s5 + $0x2c0] sm:$0xff]  ;;  %v251_v23 = vld [vmem:[%s6880_s5 + $0x2c8] sm:$0xff]  ;;  %248 = vst [vmem:[%s6885_s6 + $0xa8] sm:$0xff] %v247_v21 }
  0x1f   : > { %250 = vst [vmem:[%s6885_s6 + $0xb0] sm:$0xff] %v249_v22  ;;  %252 = vst [vmem:[%s6885_s6 + $0xb8] sm:$0xff] %v251_v23  ;;  %v253_v24 = vld [vmem:[%s6880_s5 + $0x300] sm:$0xff]  ;;  %v255_v25 = vld [vmem:[%s6880_s5 + $0x308] sm:$0xff] }
  0x20   : > { %v257_v26 = vld [vmem:[%s6880_s5 + $0x340] sm:$0xff]  ;;  %254 = vst [vmem:[%s6885_s6 + $0xc0] sm:$0xff] %v253_v24  ;;  %256 = vst [vmem:[%s6885_s6 + $0xc8] sm:$0xff] %v255_v25  ;;  %v259_v27 = vld [vmem:[%s6880_s5 + $0x348] sm:$0xff] }
  0x21   : > { %258 = vst [vmem:[%s6885_s6 + $0xd0] sm:$0xff] %v257_v26  ;;  %v261_v28 = vld [vmem:[%s6880_s5 + $0x380] sm:$0xff]  ;;  %v263_v29 = vld [vmem:[%s6880_s5 + $0x388] sm:$0xff]  ;;  %260 = vst [vmem:[%s6885_s6 + $0xd8] sm:$0xff] %v259_v27 }
  0x22   : > { %262 = vst [vmem:[%s6885_s6 + $0xe0] sm:$0xff] %v261_v28  ;;  %264 = vst [vmem:[%s6885_s6 + $0xe8] sm:$0xff] %v263_v29  ;;  %v265_v30 = vld [vmem:[%s6880_s5 + $0x3c0] sm:$0xff]  ;;  %v267_v31 = vld [vmem:[%s6880_s5 + $0x3c8] sm:$0xff] }
  0x23   : > { %v269_v32 = vld [vmem:[%s6880_s5 + $0x400] sm:$0xff]  ;;  %266 = vst [vmem:[%s6885_s6 + $0xf0] sm:$0xff] %v265_v30  ;;  %268 = vst [vmem:[%s6885_s6 + $0xf8] sm:$0xff] %v267_v31  ;;  %v271_v33 = vld [vmem:[%s6880_s5 + $0x408] sm:$0xff] }
  0x24   : > { %270 = vst [vmem:[%s6885_s6 + $0x100] sm:$0xff] %v269_v32  ;;  %v273_v34 = vld [vmem:[%s6880_s5 + $0x440] sm:$0xff]  ;;  %v275_v35 = vld [vmem:[%s6880_s5 + $0x448] sm:$0xff]  ;;  %272 = vst [vmem:[%s6885_s6 + $0x108] sm:$0xff] %v271_v33 }
  0x25   : > { %274 = vst [vmem:[%s6885_s6 + $0x110] sm:$0xff] %v273_v34  ;;  %276 = vst [vmem:[%s6885_s6 + $0x118] sm:$0xff] %v275_v35  ;;  %v277_v36 = vld [vmem:[%s6880_s5 + $0x480] sm:$0xff]  ;;  %v279_v37 = vld [vmem:[%s6880_s5 + $0x488] sm:$0xff] }
  0x26   : > { %v281_v38 = vld [vmem:[%s6880_s5 + $0x4c0] sm:$0xff]  ;;  %278 = vst [vmem:[%s6885_s6 + $0x120] sm:$0xff] %v277_v36  ;;  %280 = vst [vmem:[%s6885_s6 + $0x128] sm:$0xff] %v279_v37  ;;  %v283_v39 = vld [vmem:[%s6880_s5 + $0x4c8] sm:$0xff] }
  0x27   : > { %282 = vst [vmem:[%s6885_s6 + $0x130] sm:$0xff] %v281_v38  ;;  %v285_v40 = vld [vmem:[%s6880_s5 + $0x500] sm:$0xff]  ;;  %v287_v41 = vld [vmem:[%s6880_s5 + $0x508] sm:$0xff]  ;;  %284 = vst [vmem:[%s6885_s6 + $0x138] sm:$0xff] %v283_v39 }
  0x28   : > { %286 = vst [vmem:[%s6885_s6 + $0x140] sm:$0xff] %v285_v40  ;;  %288 = vst [vmem:[%s6885_s6 + $0x148] sm:$0xff] %v287_v41  ;;  %v289_v42 = vld [vmem:[%s6880_s5 + $0x540] sm:$0xff]  ;;  %v291_v43 = vld [vmem:[%s6880_s5 + $0x548] sm:$0xff] }
  0x29   : > { %v293_v44 = vld [vmem:[%s6880_s5 + $0x580] sm:$0xff]  ;;  %290 = vst [vmem:[%s6885_s6 + $0x150] sm:$0xff] %v289_v42  ;;  %292 = vst [vmem:[%s6885_s6 + $0x158] sm:$0xff] %v291_v43  ;;  %v295_v45 = vld [vmem:[%s6880_s5 + $0x588] sm:$0xff] }
  0x2a   : > { %294 = vst [vmem:[%s6885_s6 + $0x160] sm:$0xff] %v293_v44  ;;  %v297_v46 = vld [vmem:[%s6880_s5 + $0x5c0] sm:$0xff]  ;;  %v299_v47 = vld [vmem:[%s6880_s5 + $0x5c8] sm:$0xff]  ;;  %296 = vst [vmem:[%s6885_s6 + $0x168] sm:$0xff] %v295_v45 }
  0x2b   : > { %298 = vst [vmem:[%s6885_s6 + $0x170] sm:$0xff] %v297_v46  ;;  %300 = vst [vmem:[%s6885_s6 + $0x178] sm:$0xff] %v299_v47  ;;  %v301_v48 = vld [vmem:[%s6880_s5 + $0x600] sm:$0xff]  ;;  %v303_v49 = vld [vmem:[%s6880_s5 + $0x608] sm:$0xff] }
  0x2c   : > { %v305_v50 = vld [vmem:[%s6880_s5 + $0x640] sm:$0xff]  ;;  %302 = vst [vmem:[%s6885_s6 + $0x180] sm:$0xff] %v301_v48  ;;  %304 = vst [vmem:[%s6885_s6 + $0x188] sm:$0xff] %v303_v49  ;;  %v307_v51 = vld [vmem:[%s6880_s5 + $0x648] sm:$0xff] }
  0x2d   : > { %306 = vst [vmem:[%s6885_s6 + $0x190] sm:$0xff] %v305_v50  ;;  %v309_v52 = vld [vmem:[%s6880_s5 + $0x680] sm:$0xff]  ;;  %v311_v53 = vld [vmem:[%s6880_s5 + $0x688] sm:$0xff]  ;;  %308 = vst [vmem:[%s6885_s6 + $0x198] sm:$0xff] %v307_v51 }
  0x2e   : > { %310 = vst [vmem:[%s6885_s6 + $0x1a0] sm:$0xff] %v309_v52  ;;  %312 = vst [vmem:[%s6885_s6 + $0x1a8] sm:$0xff] %v311_v53  ;;  %v313_v54 = vld [vmem:[%s6880_s5 + $0x6c0] sm:$0xff]  ;;  %v315_v55 = vld [vmem:[%s6880_s5 + $0x6c8] sm:$0xff] }
  0x2f   : > { %v317_v56 = vld [vmem:[%s6880_s5 + $0x700] sm:$0xff]  ;;  %314 = vst [vmem:[%s6885_s6 + $0x1b0] sm:$0xff] %v313_v54  ;;  %316 = vst [vmem:[%s6885_s6 + $0x1b8] sm:$0xff] %v315_v55  ;;  %v319_v57 = vld [vmem:[%s6880_s5 + $0x708] sm:$0xff] }
  0x30   : > { %318 = vst [vmem:[%s6885_s6 + $0x1c0] sm:$0xff] %v317_v56  ;;  %v321_v58 = vld [vmem:[%s6880_s5 + $0x740] sm:$0xff]  ;;  %v323_v59 = vld [vmem:[%s6880_s5 + $0x748] sm:$0xff]  ;;  %320 = vst [vmem:[%s6885_s6 + $0x1c8] sm:$0xff] %v319_v57 }
  0x31   : > { %322 = vst [vmem:[%s6885_s6 + $0x1d0] sm:$0xff] %v321_v58  ;;  %324 = vst [vmem:[%s6885_s6 + $0x1d8] sm:$0xff] %v323_v59  ;;  %v325_v60 = vld [vmem:[%s6880_s5 + $0x780] sm:$0xff]  ;;  %v327_v61 = vld [vmem:[%s6880_s5 + $0x788] sm:$0xff] }
  0x32   : > { %v329_v62 = vld [vmem:[%s6880_s5 + $0x7c0] sm:$0xff]  ;;  %326 = vst [vmem:[%s6885_s6 + $0x1e0] sm:$0xff] %v325_v60  ;;  %328 = vst [vmem:[%s6885_s6 + $0x1e8] sm:$0xff] %v327_v61  ;;  %v331_v63 = vld [vmem:[%s6880_s5 + $0x7c8] sm:$0xff] }
  0x33   : > { %330 = vst [vmem:[%s6885_s6 + $0x1f0] sm:$0xff] %v329_v62  ;;  %v333_v0 = vld [vmem:[%s6880_s5 + $0x800] sm:$0xff]  ;;  %v335_v1 = vld [vmem:[%s6880_s5 + $0x808] sm:$0xff]  ;;  %332 = vst [vmem:[%s6885_s6 + $0x1f8] sm:$0xff] %v331_v63 }
  0x34   : > { %334 = vst [vmem:[%s6885_s6 + $0x200] sm:$0xff] %v333_v0  ;;  %336 = vst [vmem:[%s6885_s6 + $0x208] sm:$0xff] %v335_v1  ;;  %v337_v2 = vld [vmem:[%s6880_s5 + $0x840] sm:$0xff]  ;;  %v339_v3 = vld [vmem:[%s6880_s5 + $0x848] sm:$0xff] }
  0x35   : > { %v341_v4 = vld [vmem:[%s6880_s5 + $0x880] sm:$0xff]  ;;  %338 = vst [vmem:[%s6885_s6 + $0x210] sm:$0xff] %v337_v2  ;;  %340 = vst [vmem:[%s6885_s6 + $0x218] sm:$0xff] %v339_v3  ;;  %v343_v5 = vld [vmem:[%s6880_s5 + $0x888] sm:$0xff] }
  0x36   : > { %342 = vst [vmem:[%s6885_s6 + $0x220] sm:$0xff] %v341_v4  ;;  %v345_v6 = vld [vmem:[%s6880_s5 + $0x8c0] sm:$0xff]  ;;  %v347_v7 = vld [vmem:[%s6880_s5 + $0x8c8] sm:$0xff]  ;;  %344 = vst [vmem:[%s6885_s6 + $0x228] sm:$0xff] %v343_v5 }
  0x37   : > { %346 = vst [vmem:[%s6885_s6 + $0x230] sm:$0xff] %v345_v6  ;;  %348 = vst [vmem:[%s6885_s6 + $0x238] sm:$0xff] %v347_v7  ;;  %v349_v8 = vld [vmem:[%s6880_s5 + $0x900] sm:$0xff]  ;;  %v351_v9 = vld [vmem:[%s6880_s5 + $0x908] sm:$0xff] }
  0x38   : > { %v353_v10 = vld [vmem:[%s6880_s5 + $0x940] sm:$0xff]  ;;  %350 = vst [vmem:[%s6885_s6 + $0x240] sm:$0xff] %v349_v8  ;;  %352 = vst [vmem:[%s6885_s6 + $0x248] sm:$0xff] %v351_v9  ;;  %v355_v11 = vld [vmem:[%s6880_s5 + $0x948] sm:$0xff] }
  0x39   : > { %354 = vst [vmem:[%s6885_s6 + $0x250] sm:$0xff] %v353_v10  ;;  %v357_v12 = vld [vmem:[%s6880_s5 + $0x980] sm:$0xff]  ;;  %v359_v13 = vld [vmem:[%s6880_s5 + $0x988] sm:$0xff]  ;;  %356 = vst [vmem:[%s6885_s6 + $0x258] sm:$0xff] %v355_v11 }
  0x3a   : > { %358 = vst [vmem:[%s6885_s6 + $0x260] sm:$0xff] %v357_v12  ;;  %360 = vst [vmem:[%s6885_s6 + $0x268] sm:$0xff] %v359_v13  ;;  %v361_v14 = vld [vmem:[%s6880_s5 + $0x9c0] sm:$0xff]  ;;  %v363_v15 = vld [vmem:[%s6880_s5 + $0x9c8] sm:$0xff] }
  0x3b   : > { %v365_v16 = vld [vmem:[%s6880_s5 + $0xa00] sm:$0xff]  ;;  %362 = vst [vmem:[%s6885_s6 + $0x270] sm:$0xff] %v361_v14  ;;  %364 = vst [vmem:[%s6885_s6 + $0x278] sm:$0xff] %v363_v15  ;;  %v367_v17 = vld [vmem:[%s6880_s5 + $0xa08] sm:$0xff] }
  0x3c   : > { %366 = vst [vmem:[%s6885_s6 + $0x280] sm:$0xff] %v365_v16  ;;  %v369_v18 = vld [vmem:[%s6880_s5 + $0xa40] sm:$0xff]  ;;  %v371_v19 = vld [vmem:[%s6880_s5 + $0xa48] sm:$0xff]  ;;  %368 = vst [vmem:[%s6885_s6 + $0x288] sm:$0xff] %v367_v17 }
  0x3d   : > { %370 = vst [vmem:[%s6885_s6 + $0x290] sm:$0xff] %v369_v18  ;;  %372 = vst [vmem:[%s6885_s6 + $0x298] sm:$0xff] %v371_v19  ;;  %v373_v20 = vld [vmem:[%s6880_s5 + $0xa80] sm:$0xff]  ;;  %v375_v21 = vld [vmem:[%s6880_s5 + $0xa88] sm:$0xff] }
  0x3e   : > { %v377_v22 = vld [vmem:[%s6880_s5 + $0xac0] sm:$0xff]  ;;  %374 = vst [vmem:[%s6885_s6 + $0x2a0] sm:$0xff] %v373_v20  ;;  %376 = vst [vmem:[%s6885_s6 + $0x2a8] sm:$0xff] %v375_v21  ;;  %v379_v23 = vld [vmem:[%s6880_s5 + $0xac8] sm:$0xff] }
  0x3f   : > { %378 = vst [vmem:[%s6885_s6 + $0x2b0] sm:$0xff] %v377_v22  ;;  %v381_v24 = vld [vmem:[%s6880_s5 + $0xb00] sm:$0xff]  ;;  %v383_v25 = vld [vmem:[%s6880_s5 + $0xb08] sm:$0xff]  ;;  %380 = vst [vmem:[%s6885_s6 + $0x2b8] sm:$0xff] %v379_v23 }
  0x40   : > { %382 = vst [vmem:[%s6885_s6 + $0x2c0] sm:$0xff] %v381_v24  ;;  %384 = vst [vmem:[%s6885_s6 + $0x2c8] sm:$0xff] %v383_v25  ;;  %v385_v26 = vld [vmem:[%s6880_s5 + $0xb40] sm:$0xff]  ;;  %v387_v27 = vld [vmem:[%s6880_s5 + $0xb48] sm:$0xff] }
  0x41   : > { %v389_v28 = vld [vmem:[%s6880_s5 + $0xb80] sm:$0xff]  ;;  %386 = vst [vmem:[%s6885_s6 + $0x2d0] sm:$0xff] %v385_v26  ;;  %388 = vst [vmem:[%s6885_s6 + $0x2d8] sm:$0xff] %v387_v27  ;;  %v391_v29 = vld [vmem:[%s6880_s5 + $0xb88] sm:$0xff] }
  0x42   : > { %390 = vst [vmem:[%s6885_s6 + $0x2e0] sm:$0xff] %v389_v28  ;;  %v393_v30 = vld [vmem:[%s6880_s5 + $0xbc0] sm:$0xff]  ;;  %v395_v31 = vld [vmem:[%s6880_s5 + $0xbc8] sm:$0xff]  ;;  %392 = vst [vmem:[%s6885_s6 + $0x2e8] sm:$0xff] %v391_v29 }
  0x43   : > { %394 = vst [vmem:[%s6885_s6 + $0x2f0] sm:$0xff] %v393_v30  ;;  %396 = vst [vmem:[%s6885_s6 + $0x2f8] sm:$0xff] %v395_v31  ;;  %v397_v32 = vld [vmem:[%s6880_s5 + $0xc00] sm:$0xff]  ;;  %v399_v33 = vld [vmem:[%s6880_s5 + $0xc08] sm:$0xff] }
  0x44   : > { %v401_v34 = vld [vmem:[%s6880_s5 + $0xc40] sm:$0xff]  ;;  %398 = vst [vmem:[%s6885_s6 + $0x300] sm:$0xff] %v397_v32  ;;  %400 = vst [vmem:[%s6885_s6 + $0x308] sm:$0xff] %v399_v33  ;;  %v403_v35 = vld [vmem:[%s6880_s5 + $0xc48] sm:$0xff] }
  0x45   : > { %402 = vst [vmem:[%s6885_s6 + $0x310] sm:$0xff] %v401_v34  ;;  %v405_v36 = vld [vmem:[%s6880_s5 + $0xc80] sm:$0xff]  ;;  %v407_v37 = vld [vmem:[%s6880_s5 + $0xc88] sm:$0xff]  ;;  %404 = vst [vmem:[%s6885_s6 + $0x318] sm:$0xff] %v403_v35 }
  0x46   : > { %406 = vst [vmem:[%s6885_s6 + $0x320] sm:$0xff] %v405_v36  ;;  %408 = vst [vmem:[%s6885_s6 + $0x328] sm:$0xff] %v407_v37  ;;  %v409_v38 = vld [vmem:[%s6880_s5 + $0xcc0] sm:$0xff]  ;;  %v411_v39 = vld [vmem:[%s6880_s5 + $0xcc8] sm:$0xff] }
  0x47   : > { %v413_v40 = vld [vmem:[%s6880_s5 + $0xd00] sm:$0xff]  ;;  %410 = vst [vmem:[%s6885_s6 + $0x330] sm:$0xff] %v409_v38  ;;  %412 = vst [vmem:[%s6885_s6 + $0x338] sm:$0xff] %v411_v39  ;;  %v415_v41 = vld [vmem:[%s6880_s5 + $0xd08] sm:$0xff] }
  0x48   : > { %414 = vst [vmem:[%s6885_s6 + $0x340] sm:$0xff] %v413_v40  ;;  %v417_v42 = vld [vmem:[%s6880_s5 + $0xd40] sm:$0xff]  ;;  %v419_v43 = vld [vmem:[%s6880_s5 + $0xd48] sm:$0xff]  ;;  %416 = vst [vmem:[%s6885_s6 + $0x348] sm:$0xff] %v415_v41 }
  0x49   : > { %418 = vst [vmem:[%s6885_s6 + $0x350] sm:$0xff] %v417_v42  ;;  %420 = vst [vmem:[%s6885_s6 + $0x358] sm:$0xff] %v419_v43  ;;  %v421_v44 = vld [vmem:[%s6880_s5 + $0xd80] sm:$0xff]  ;;  %v423_v45 = vld [vmem:[%s6880_s5 + $0xd88] sm:$0xff] }
  0x4a   : > { %v425_v46 = vld [vmem:[%s6880_s5 + $0xdc0] sm:$0xff]  ;;  %422 = vst [vmem:[%s6885_s6 + $0x360] sm:$0xff] %v421_v44  ;;  %424 = vst [vmem:[%s6885_s6 + $0x368] sm:$0xff] %v423_v45  ;;  %v427_v47 = vld [vmem:[%s6880_s5 + $0xdc8] sm:$0xff] }
  0x4b   : > { %426 = vst [vmem:[%s6885_s6 + $0x370] sm:$0xff] %v425_v46  ;;  %v429_v48 = vld [vmem:[%s6880_s5 + $0xe00] sm:$0xff]  ;;  %v431_v49 = vld [vmem:[%s6880_s5 + $0xe08] sm:$0xff]  ;;  %428 = vst [vmem:[%s6885_s6 + $0x378] sm:$0xff] %v427_v47 }
  0x4c   : > { %430 = vst [vmem:[%s6885_s6 + $0x380] sm:$0xff] %v429_v48  ;;  %432 = vst [vmem:[%s6885_s6 + $0x388] sm:$0xff] %v431_v49  ;;  %v433_v50 = vld [vmem:[%s6880_s5 + $0xe40] sm:$0xff]  ;;  %v435_v51 = vld [vmem:[%s6880_s5 + $0xe48] sm:$0xff] }
  0x4d   : > { %v437_v52 = vld [vmem:[%s6880_s5 + $0xe80] sm:$0xff]  ;;  %434 = vst [vmem:[%s6885_s6 + $0x390] sm:$0xff] %v433_v50  ;;  %436 = vst [vmem:[%s6885_s6 + $0x398] sm:$0xff] %v435_v51  ;;  %v439_v53 = vld [vmem:[%s6880_s5 + $0xe88] sm:$0xff] }
  0x4e   : > { %438 = vst [vmem:[%s6885_s6 + $0x3a0] sm:$0xff] %v437_v52  ;;  %v441_v54 = vld [vmem:[%s6880_s5 + $0xec0] sm:$0xff]  ;;  %v443_v55 = vld [vmem:[%s6880_s5 + $0xec8] sm:$0xff]  ;;  %440 = vst [vmem:[%s6885_s6 + $0x3a8] sm:$0xff] %v439_v53 }
  0x4f   : > { %442 = vst [vmem:[%s6885_s6 + $0x3b0] sm:$0xff] %v441_v54  ;;  %444 = vst [vmem:[%s6885_s6 + $0x3b8] sm:$0xff] %v443_v55  ;;  %v445_v56 = vld [vmem:[%s6880_s5 + $0xf00] sm:$0xff]  ;;  %v447_v57 = vld [vmem:[%s6880_s5 + $0xf08] sm:$0xff] }
  0x50   : > { %v449_v58 = vld [vmem:[%s6880_s5 + $0xf40] sm:$0xff]  ;;  %446 = vst [vmem:[%s6885_s6 + $0x3c0] sm:$0xff] %v445_v56  ;;  %448 = vst [vmem:[%s6885_s6 + $0x3c8] sm:$0xff] %v447_v57  ;;  %v451_v59 = vld [vmem:[%s6880_s5 + $0xf48] sm:$0xff] }
  0x51   : > { %450 = vst [vmem:[%s6885_s6 + $0x3d0] sm:$0xff] %v449_v58  ;;  %v453_v60 = vld [vmem:[%s6880_s5 + $0xf80] sm:$0xff]  ;;  %v455_v61 = vld [vmem:[%s6880_s5 + $0xf88] sm:$0xff]  ;;  %452 = vst [vmem:[%s6885_s6 + $0x3d8] sm:$0xff] %v451_v59 }
  0x52   : > { %454 = vst [vmem:[%s6885_s6 + $0x3e0] sm:$0xff] %v453_v60  ;;  %456 = vst [vmem:[%s6885_s6 + $0x3e8] sm:$0xff] %v455_v61  ;;  %v457_v62 = vld [vmem:[%s6880_s5 + $0xfc0] sm:$0xff]  ;;  %v459_v63 = vld [vmem:[%s6880_s5 + $0xfc8] sm:$0xff] }
  0x53   : > { %v461_v0 = vld [vmem:[%s6880_s5 + $0x1000] sm:$0xff]  ;;  %458 = vst [vmem:[%s6885_s6 + $0x3f0] sm:$0xff] %v457_v62  ;;  %460 = vst [vmem:[%s6885_s6 + $0x3f8] sm:$0xff] %v459_v63  ;;  %v463_v1 = vld [vmem:[%s6880_s5 + $0x1008] sm:$0xff] }
  0x54   : > { %462 = vst [vmem:[%s6885_s6 + $0x400] sm:$0xff] %v461_v0  ;;  %v465_v2 = vld [vmem:[%s6880_s5 + $0x1040] sm:$0xff]  ;;  %v467_v3 = vld [vmem:[%s6880_s5 + $0x1048] sm:$0xff]  ;;  %464 = vst [vmem:[%s6885_s6 + $0x408] sm:$0xff] %v463_v1 }
  0x55   : > { %466 = vst [vmem:[%s6885_s6 + $0x410] sm:$0xff] %v465_v2  ;;  %468 = vst [vmem:[%s6885_s6 + $0x418] sm:$0xff] %v467_v3  ;;  %v469_v4 = vld [vmem:[%s6880_s5 + $0x1080] sm:$0xff]  ;;  %v471_v5 = vld [vmem:[%s6880_s5 + $0x1088] sm:$0xff] }
  0x56   : > { %v473_v6 = vld [vmem:[%s6880_s5 + $0x10c0] sm:$0xff]  ;;  %470 = vst [vmem:[%s6885_s6 + $0x420] sm:$0xff] %v469_v4  ;;  %472 = vst [vmem:[%s6885_s6 + $0x428] sm:$0xff] %v471_v5  ;;  %v475_v7 = vld [vmem:[%s6880_s5 + $0x10c8] sm:$0xff] }
  0x57   : > { %474 = vst [vmem:[%s6885_s6 + $0x430] sm:$0xff] %v473_v6  ;;  %v477_v8 = vld [vmem:[%s6880_s5 + $0x1100] sm:$0xff]  ;;  %v479_v9 = vld [vmem:[%s6880_s5 + $0x1108] sm:$0xff]  ;;  %476 = vst [vmem:[%s6885_s6 + $0x438] sm:$0xff] %v475_v7 }
  0x58   : > { %478 = vst [vmem:[%s6885_s6 + $0x440] sm:$0xff] %v477_v8  ;;  %480 = vst [vmem:[%s6885_s6 + $0x448] sm:$0xff] %v479_v9  ;;  %v481_v10 = vld [vmem:[%s6880_s5 + $0x1140] sm:$0xff]  ;;  %v483_v11 = vld [vmem:[%s6880_s5 + $0x1148] sm:$0xff] }
  0x59   : > { %v485_v12 = vld [vmem:[%s6880_s5 + $0x1180] sm:$0xff]  ;;  %482 = vst [vmem:[%s6885_s6 + $0x450] sm:$0xff] %v481_v10  ;;  %484 = vst [vmem:[%s6885_s6 + $0x458] sm:$0xff] %v483_v11  ;;  %v487_v13 = vld [vmem:[%s6880_s5 + $0x1188] sm:$0xff] }
  0x5a   : > { %486 = vst [vmem:[%s6885_s6 + $0x460] sm:$0xff] %v485_v12  ;;  %v489_v14 = vld [vmem:[%s6880_s5 + $0x11c0] sm:$0xff]  ;;  %v491_v15 = vld [vmem:[%s6880_s5 + $0x11c8] sm:$0xff]  ;;  %488 = vst [vmem:[%s6885_s6 + $0x468] sm:$0xff] %v487_v13 }
  0x5b   : > { %490 = vst [vmem:[%s6885_s6 + $0x470] sm:$0xff] %v489_v14  ;;  %492 = vst [vmem:[%s6885_s6 + $0x478] sm:$0xff] %v491_v15  ;;  %v493_v16 = vld [vmem:[%s6880_s5 + $0x1200] sm:$0xff]  ;;  %v495_v17 = vld [vmem:[%s6880_s5 + $0x1208] sm:$0xff] }
  0x5c   : > { %v497_v18 = vld [vmem:[%s6880_s5 + $0x1240] sm:$0xff]  ;;  %494 = vst [vmem:[%s6885_s6 + $0x480] sm:$0xff] %v493_v16  ;;  %496 = vst [vmem:[%s6885_s6 + $0x488] sm:$0xff] %v495_v17  ;;  %v499_v19 = vld [vmem:[%s6880_s5 + $0x1248] sm:$0xff] }
  0x5d   : > { %498 = vst [vmem:[%s6885_s6 + $0x490] sm:$0xff] %v497_v18  ;;  %v501_v20 = vld [vmem:[%s6880_s5 + $0x1280] sm:$0xff]  ;;  %v503_v21 = vld [vmem:[%s6880_s5 + $0x1288] sm:$0xff]  ;;  %500 = vst [vmem:[%s6885_s6 + $0x498] sm:$0xff] %v499_v19 }
  0x5e   : > { %502 = vst [vmem:[%s6885_s6 + $0x4a0] sm:$0xff] %v501_v20  ;;  %504 = vst [vmem:[%s6885_s6 + $0x4a8] sm:$0xff] %v503_v21  ;;  %v505_v22 = vld [vmem:[%s6880_s5 + $0x12c0] sm:$0xff]  ;;  %v507_v23 = vld [vmem:[%s6880_s5 + $0x12c8] sm:$0xff] }
  0x5f   : > { %v509_v24 = vld [vmem:[%s6880_s5 + $0x1300] sm:$0xff]  ;;  %506 = vst [vmem:[%s6885_s6 + $0x4b0] sm:$0xff] %v505_v22  ;;  %508 = vst [vmem:[%s6885_s6 + $0x4b8] sm:$0xff] %v507_v23  ;;  %v511_v25 = vld [vmem:[%s6880_s5 + $0x1308] sm:$0xff] }
  0x60   : > { %510 = vst [vmem:[%s6885_s6 + $0x4c0] sm:$0xff] %v509_v24  ;;  %v513_v26 = vld [vmem:[%s6880_s5 + $0x1340] sm:$0xff]  ;;  %v515_v27 = vld [vmem:[%s6880_s5 + $0x1348] sm:$0xff]  ;;  %512 = vst [vmem:[%s6885_s6 + $0x4c8] sm:$0xff] %v511_v25 }
  0x61   : > { %514 = vst [vmem:[%s6885_s6 + $0x4d0] sm:$0xff] %v513_v26  ;;  %516 = vst [vmem:[%s6885_s6 + $0x4d8] sm:$0xff] %v515_v27  ;;  %v517_v28 = vld [vmem:[%s6880_s5 + $0x1380] sm:$0xff]  ;;  %v519_v29 = vld [vmem:[%s6880_s5 + $0x1388] sm:$0xff] }
  0x62   : > { %v521_v30 = vld [vmem:[%s6880_s5 + $0x13c0] sm:$0xff]  ;;  %518 = vst [vmem:[%s6885_s6 + $0x4e0] sm:$0xff] %v517_v28  ;;  %520 = vst [vmem:[%s6885_s6 + $0x4e8] sm:$0xff] %v519_v29  ;;  %v523_v31 = vld [vmem:[%s6880_s5 + $0x13c8] sm:$0xff] }
  0x63   : > { %522 = vst [vmem:[%s6885_s6 + $0x4f0] sm:$0xff] %v521_v30  ;;  %v525_v32 = vld [vmem:[%s6880_s5 + $0x1400] sm:$0xff]  ;;  %v527_v33 = vld [vmem:[%s6880_s5 + $0x1408] sm:$0xff]  ;;  %524 = vst [vmem:[%s6885_s6 + $0x4f8] sm:$0xff] %v523_v31 }
  0x64   : > { %526 = vst [vmem:[%s6885_s6 + $0x500] sm:$0xff] %v525_v32  ;;  %528 = vst [vmem:[%s6885_s6 + $0x508] sm:$0xff] %v527_v33  ;;  %v529_v34 = vld [vmem:[%s6880_s5 + $0x1440] sm:$0xff]  ;;  %v531_v35 = vld [vmem:[%s6880_s5 + $0x1448] sm:$0xff] }
  0x65   : > { %v533_v36 = vld [vmem:[%s6880_s5 + $0x1480] sm:$0xff]  ;;  %530 = vst [vmem:[%s6885_s6 + $0x510] sm:$0xff] %v529_v34  ;;  %532 = vst [vmem:[%s6885_s6 + $0x518] sm:$0xff] %v531_v35  ;;  %v535_v37 = vld [vmem:[%s6880_s5 + $0x1488] sm:$0xff] }
  0x66   : > { %534 = vst [vmem:[%s6885_s6 + $0x520] sm:$0xff] %v533_v36  ;;  %v537_v38 = vld [vmem:[%s6880_s5 + $0x14c0] sm:$0xff]  ;;  %v539_v39 = vld [vmem:[%s6880_s5 + $0x14c8] sm:$0xff]  ;;  %536 = vst [vmem:[%s6885_s6 + $0x528] sm:$0xff] %v535_v37 }
  0x67   : > { %538 = vst [vmem:[%s6885_s6 + $0x530] sm:$0xff] %v537_v38  ;;  %540 = vst [vmem:[%s6885_s6 + $0x538] sm:$0xff] %v539_v39  ;;  %v541_v40 = vld [vmem:[%s6880_s5 + $0x1500] sm:$0xff]  ;;  %v543_v41 = vld [vmem:[%s6880_s5 + $0x1508] sm:$0xff] }
  0x68   : > { %v545_v42 = vld [vmem:[%s6880_s5 + $0x1540] sm:$0xff]  ;;  %542 = vst [vmem:[%s6885_s6 + $0x540] sm:$0xff] %v541_v40  ;;  %544 = vst [vmem:[%s6885_s6 + $0x548] sm:$0xff] %v543_v41  ;;  %v547_v43 = vld [vmem:[%s6880_s5 + $0x1548] sm:$0xff] }
  0x69   : > { %546 = vst [vmem:[%s6885_s6 + $0x550] sm:$0xff] %v545_v42  ;;  %v549_v44 = vld [vmem:[%s6880_s5 + $0x1580] sm:$0xff]  ;;  %v551_v45 = vld [vmem:[%s6880_s5 + $0x1588] sm:$0xff]  ;;  %548 = vst [vmem:[%s6885_s6 + $0x558] sm:$0xff] %v547_v43 }
  0x6a   : > { %550 = vst [vmem:[%s6885_s6 + $0x560] sm:$0xff] %v549_v44  ;;  %552 = vst [vmem:[%s6885_s6 + $0x568] sm:$0xff] %v551_v45  ;;  %v553_v46 = vld [vmem:[%s6880_s5 + $0x15c0] sm:$0xff]  ;;  %v555_v47 = vld [vmem:[%s6880_s5 + $0x15c8] sm:$0xff] }
  0x6b   : > { %v557_v48 = vld [vmem:[%s6880_s5 + $0x1600] sm:$0xff]  ;;  %554 = vst [vmem:[%s6885_s6 + $0x570] sm:$0xff] %v553_v46  ;;  %556 = vst [vmem:[%s6885_s6 + $0x578] sm:$0xff] %v555_v47  ;;  %v559_v49 = vld [vmem:[%s6880_s5 + $0x1608] sm:$0xff] }
  0x6c   : > { %558 = vst [vmem:[%s6885_s6 + $0x580] sm:$0xff] %v557_v48  ;;  %v561_v50 = vld [vmem:[%s6880_s5 + $0x1640] sm:$0xff]  ;;  %v563_v51 = vld [vmem:[%s6880_s5 + $0x1648] sm:$0xff]  ;;  %560 = vst [vmem:[%s6885_s6 + $0x588] sm:$0xff] %v559_v49 }
  0x6d   : > { %562 = vst [vmem:[%s6885_s6 + $0x590] sm:$0xff] %v561_v50  ;;  %564 = vst [vmem:[%s6885_s6 + $0x598] sm:$0xff] %v563_v51  ;;  %v565_v52 = vld [vmem:[%s6880_s5 + $0x1680] sm:$0xff]  ;;  %v567_v53 = vld [vmem:[%s6880_s5 + $0x1688] sm:$0xff] }
  0x6e   : > { %v569_v54 = vld [vmem:[%s6880_s5 + $0x16c0] sm:$0xff]  ;;  %566 = vst [vmem:[%s6885_s6 + $0x5a0] sm:$0xff] %v565_v52  ;;  %568 = vst [vmem:[%s6885_s6 + $0x5a8] sm:$0xff] %v567_v53  ;;  %v571_v55 = vld [vmem:[%s6880_s5 + $0x16c8] sm:$0xff] }
  0x6f   : > { %570 = vst [vmem:[%s6885_s6 + $0x5b0] sm:$0xff] %v569_v54  ;;  %v573_v56 = vld [vmem:[%s6880_s5 + $0x1700] sm:$0xff]  ;;  %v575_v57 = vld [vmem:[%s6880_s5 + $0x1708] sm:$0xff]  ;;  %572 = vst [vmem:[%s6885_s6 + $0x5b8] sm:$0xff] %v571_v55 }
  0x70   : > { %574 = vst [vmem:[%s6885_s6 + $0x5c0] sm:$0xff] %v573_v56  ;;  %576 = vst [vmem:[%s6885_s6 + $0x5c8] sm:$0xff] %v575_v57  ;;  %v577_v58 = vld [vmem:[%s6880_s5 + $0x1740] sm:$0xff]  ;;  %v579_v59 = vld [vmem:[%s6880_s5 + $0x1748] sm:$0xff] }
  0x71   : > { %v581_v60 = vld [vmem:[%s6880_s5 + $0x1780] sm:$0xff]  ;;  %578 = vst [vmem:[%s6885_s6 + $0x5d0] sm:$0xff] %v577_v58  ;;  %580 = vst [vmem:[%s6885_s6 + $0x5d8] sm:$0xff] %v579_v59  ;;  %v583_v61 = vld [vmem:[%s6880_s5 + $0x1788] sm:$0xff] }
  0x72   : > { %582 = vst [vmem:[%s6885_s6 + $0x5e0] sm:$0xff] %v581_v60  ;;  %v585_v62 = vld [vmem:[%s6880_s5 + $0x17c0] sm:$0xff]  ;;  %v587_v63 = vld [vmem:[%s6880_s5 + $0x17c8] sm:$0xff]  ;;  %584 = vst [vmem:[%s6885_s6 + $0x5e8] sm:$0xff] %v583_v61 }
  0x73   : > { %586 = vst [vmem:[%s6885_s6 + $0x5f0] sm:$0xff] %v585_v62  ;;  %588 = vst [vmem:[%s6885_s6 + $0x5f8] sm:$0xff] %v587_v63  ;;  %v589_v0 = vld [vmem:[%s6880_s5 + $0x1800] sm:$0xff]  ;;  %v591_v1 = vld [vmem:[%s6880_s5 + $0x1808] sm:$0xff] }
  0x74   : > { %v593_v2 = vld [vmem:[%s6880_s5 + $0x1840] sm:$0xff]  ;;  %590 = vst [vmem:[%s6885_s6 + $0x600] sm:$0xff] %v589_v0  ;;  %592 = vst [vmem:[%s6885_s6 + $0x608] sm:$0xff] %v591_v1  ;;  %v595_v3 = vld [vmem:[%s6880_s5 + $0x1848] sm:$0xff] }
  0x75   : > { %594 = vst [vmem:[%s6885_s6 + $0x610] sm:$0xff] %v593_v2  ;;  %v597_v4 = vld [vmem:[%s6880_s5 + $0x1880] sm:$0xff]  ;;  %v599_v5 = vld [vmem:[%s6880_s5 + $0x1888] sm:$0xff]  ;;  %596 = vst [vmem:[%s6885_s6 + $0x618] sm:$0xff] %v595_v3 }
  0x76   : > { %598 = vst [vmem:[%s6885_s6 + $0x620] sm:$0xff] %v597_v4  ;;  %600 = vst [vmem:[%s6885_s6 + $0x628] sm:$0xff] %v599_v5  ;;  %v601_v6 = vld [vmem:[%s6880_s5 + $0x18c0] sm:$0xff]  ;;  %v603_v7 = vld [vmem:[%s6880_s5 + $0x18c8] sm:$0xff] }
  0x77   : > { %v605_v8 = vld [vmem:[%s6880_s5 + $0x1900] sm:$0xff]  ;;  %602 = vst [vmem:[%s6885_s6 + $0x630] sm:$0xff] %v601_v6  ;;  %604 = vst [vmem:[%s6885_s6 + $0x638] sm:$0xff] %v603_v7  ;;  %v607_v9 = vld [vmem:[%s6880_s5 + $0x1908] sm:$0xff] }
  0x78   : > { %606 = vst [vmem:[%s6885_s6 + $0x640] sm:$0xff] %v605_v8  ;;  %v609_v10 = vld [vmem:[%s6880_s5 + $0x1940] sm:$0xff]  ;;  %v611_v11 = vld [vmem:[%s6880_s5 + $0x1948] sm:$0xff]  ;;  %608 = vst [vmem:[%s6885_s6 + $0x648] sm:$0xff] %v607_v9 }
  0x79   : > { %610 = vst [vmem:[%s6885_s6 + $0x650] sm:$0xff] %v609_v10  ;;  %612 = vst [vmem:[%s6885_s6 + $0x658] sm:$0xff] %v611_v11  ;;  %v613_v12 = vld [vmem:[%s6880_s5 + $0x1980] sm:$0xff]  ;;  %v615_v13 = vld [vmem:[%s6880_s5 + $0x1988] sm:$0xff] }
  0x7a   : > { %v617_v14 = vld [vmem:[%s6880_s5 + $0x19c0] sm:$0xff]  ;;  %614 = vst [vmem:[%s6885_s6 + $0x660] sm:$0xff] %v613_v12  ;;  %616 = vst [vmem:[%s6885_s6 + $0x668] sm:$0xff] %v615_v13  ;;  %v619_v15 = vld [vmem:[%s6880_s5 + $0x19c8] sm:$0xff] }
  0x7b   : > { %618 = vst [vmem:[%s6885_s6 + $0x670] sm:$0xff] %v617_v14  ;;  %v621_v16 = vld [vmem:[%s6880_s5 + $0x1a00] sm:$0xff]  ;;  %v623_v17 = vld [vmem:[%s6880_s5 + $0x1a08] sm:$0xff]  ;;  %620 = vst [vmem:[%s6885_s6 + $0x678] sm:$0xff] %v619_v15 }
  0x7c   : > { %622 = vst [vmem:[%s6885_s6 + $0x680] sm:$0xff] %v621_v16  ;;  %624 = vst [vmem:[%s6885_s6 + $0x688] sm:$0xff] %v623_v17  ;;  %v625_v18 = vld [vmem:[%s6880_s5 + $0x1a40] sm:$0xff]  ;;  %v627_v19 = vld [vmem:[%s6880_s5 + $0x1a48] sm:$0xff] }
  0x7d   : > { %v629_v20 = vld [vmem:[%s6880_s5 + $0x1a80] sm:$0xff]  ;;  %626 = vst [vmem:[%s6885_s6 + $0x690] sm:$0xff] %v625_v18  ;;  %628 = vst [vmem:[%s6885_s6 + $0x698] sm:$0xff] %v627_v19  ;;  %v631_v21 = vld [vmem:[%s6880_s5 + $0x1a88] sm:$0xff] }
  0x7e   : > { %630 = vst [vmem:[%s6885_s6 + $0x6a0] sm:$0xff] %v629_v20  ;;  %v633_v22 = vld [vmem:[%s6880_s5 + $0x1ac0] sm:$0xff]  ;;  %v635_v23 = vld [vmem:[%s6880_s5 + $0x1ac8] sm:$0xff]  ;;  %632 = vst [vmem:[%s6885_s6 + $0x6a8] sm:$0xff] %v631_v21 }
  0x7f   : > { %634 = vst [vmem:[%s6885_s6 + $0x6b0] sm:$0xff] %v633_v22  ;;  %636 = vst [vmem:[%s6885_s6 + $0x6b8] sm:$0xff] %v635_v23  ;;  %v637_v24 = vld [vmem:[%s6880_s5 + $0x1b00] sm:$0xff]  ;;  %v639_v25 = vld [vmem:[%s6880_s5 + $0x1b08] sm:$0xff] }
  0x80   : > { %v641_v26 = vld [vmem:[%s6880_s5 + $0x1b40] sm:$0xff]  ;;  %638 = vst [vmem:[%s6885_s6 + $0x6c0] sm:$0xff] %v637_v24  ;;  %640 = vst [vmem:[%s6885_s6 + $0x6c8] sm:$0xff] %v639_v25  ;;  %v643_v27 = vld [vmem:[%s6880_s5 + $0x1b48] sm:$0xff] }
  0x81   : > { %642 = vst [vmem:[%s6885_s6 + $0x6d0] sm:$0xff] %v641_v26  ;;  %v645_v28 = vld [vmem:[%s6880_s5 + $0x1b80] sm:$0xff]  ;;  %v647_v29 = vld [vmem:[%s6880_s5 + $0x1b88] sm:$0xff]  ;;  %644 = vst [vmem:[%s6885_s6 + $0x6d8] sm:$0xff] %v643_v27 }
  0x82   : > { %646 = vst [vmem:[%s6885_s6 + $0x6e0] sm:$0xff] %v645_v28  ;;  %648 = vst [vmem:[%s6885_s6 + $0x6e8] sm:$0xff] %v647_v29  ;;  %v649_v30 = vld [vmem:[%s6880_s5 + $0x1bc0] sm:$0xff]  ;;  %v651_v31 = vld [vmem:[%s6880_s5 + $0x1bc8] sm:$0xff] }
  0x83   : > { %v653_v32 = vld [vmem:[%s6880_s5 + $0x1c00] sm:$0xff]  ;;  %650 = vst [vmem:[%s6885_s6 + $0x6f0] sm:$0xff] %v649_v30  ;;  %652 = vst [vmem:[%s6885_s6 + $0x6f8] sm:$0xff] %v651_v31  ;;  %v655_v33 = vld [vmem:[%s6880_s5 + $0x1c08] sm:$0xff] }
  0x84   : > { %654 = vst [vmem:[%s6885_s6 + $0x700] sm:$0xff] %v653_v32  ;;  %v657_v34 = vld [vmem:[%s6880_s5 + $0x1c40] sm:$0xff]  ;;  %v659_v35 = vld [vmem:[%s6880_s5 + $0x1c48] sm:$0xff]  ;;  %656 = vst [vmem:[%s6885_s6 + $0x708] sm:$0xff] %v655_v33 }
  0x85   : > { %658 = vst [vmem:[%s6885_s6 + $0x710] sm:$0xff] %v657_v34  ;;  %660 = vst [vmem:[%s6885_s6 + $0x718] sm:$0xff] %v659_v35  ;;  %v661_v36 = vld [vmem:[%s6880_s5 + $0x1c80] sm:$0xff]  ;;  %v663_v37 = vld [vmem:[%s6880_s5 + $0x1c88] sm:$0xff] }
  0x86   : > { %v665_v38 = vld [vmem:[%s6880_s5 + $0x1cc0] sm:$0xff]  ;;  %662 = vst [vmem:[%s6885_s6 + $0x720] sm:$0xff] %v661_v36  ;;  %664 = vst [vmem:[%s6885_s6 + $0x728] sm:$0xff] %v663_v37  ;;  %v667_v39 = vld [vmem:[%s6880_s5 + $0x1cc8] sm:$0xff] }
  0x87   : > { %666 = vst [vmem:[%s6885_s6 + $0x730] sm:$0xff] %v665_v38  ;;  %v669_v40 = vld [vmem:[%s6880_s5 + $0x1d00] sm:$0xff]  ;;  %v671_v41 = vld [vmem:[%s6880_s5 + $0x1d08] sm:$0xff]  ;;  %668 = vst [vmem:[%s6885_s6 + $0x738] sm:$0xff] %v667_v39 }
  0x88   : > { %670 = vst [vmem:[%s6885_s6 + $0x740] sm:$0xff] %v669_v40  ;;  %672 = vst [vmem:[%s6885_s6 + $0x748] sm:$0xff] %v671_v41  ;;  %v673_v42 = vld [vmem:[%s6880_s5 + $0x1d40] sm:$0xff]  ;;  %v675_v43 = vld [vmem:[%s6880_s5 + $0x1d48] sm:$0xff] }
  0x89   : > { %v677_v44 = vld [vmem:[%s6880_s5 + $0x1d80] sm:$0xff]  ;;  %674 = vst [vmem:[%s6885_s6 + $0x750] sm:$0xff] %v673_v42  ;;  %676 = vst [vmem:[%s6885_s6 + $0x758] sm:$0xff] %v675_v43  ;;  %v679_v45 = vld [vmem:[%s6880_s5 + $0x1d88] sm:$0xff] }
  0x8a   : > { %678 = vst [vmem:[%s6885_s6 + $0x760] sm:$0xff] %v677_v44  ;;  %v681_v46 = vld [vmem:[%s6880_s5 + $0x1dc0] sm:$0xff]  ;;  %v683_v47 = vld [vmem:[%s6880_s5 + $0x1dc8] sm:$0xff]  ;;  %680 = vst [vmem:[%s6885_s6 + $0x768] sm:$0xff] %v679_v45 }
  0x8b   : > { %682 = vst [vmem:[%s6885_s6 + $0x770] sm:$0xff] %v681_v46  ;;  %684 = vst [vmem:[%s6885_s6 + $0x778] sm:$0xff] %v683_v47  ;;  %v685_v48 = vld [vmem:[%s6880_s5 + $0x1e00] sm:$0xff]  ;;  %v687_v49 = vld [vmem:[%s6880_s5 + $0x1e08] sm:$0xff] }
  0x8c   : > { %v689_v50 = vld [vmem:[%s6880_s5 + $0x1e40] sm:$0xff]  ;;  %686 = vst [vmem:[%s6885_s6 + $0x780] sm:$0xff] %v685_v48  ;;  %688 = vst [vmem:[%s6885_s6 + $0x788] sm:$0xff] %v687_v49  ;;  %v691_v51 = vld [vmem:[%s6880_s5 + $0x1e48] sm:$0xff] }
  0x8d   : > { %690 = vst [vmem:[%s6885_s6 + $0x790] sm:$0xff] %v689_v50  ;;  %v693_v52 = vld [vmem:[%s6880_s5 + $0x1e80] sm:$0xff]  ;;  %v695_v53 = vld [vmem:[%s6880_s5 + $0x1e88] sm:$0xff]  ;;  %692 = vst [vmem:[%s6885_s6 + $0x798] sm:$0xff] %v691_v51 }
  0x8e   : > { %694 = vst [vmem:[%s6885_s6 + $0x7a0] sm:$0xff] %v693_v52  ;;  %696 = vst [vmem:[%s6885_s6 + $0x7a8] sm:$0xff] %v695_v53  ;;  %v697_v54 = vld [vmem:[%s6880_s5 + $0x1ec0] sm:$0xff]  ;;  %v699_v55 = vld [vmem:[%s6880_s5 + $0x1ec8] sm:$0xff] }
  0x8f   : > { %v701_v56 = vld [vmem:[%s6880_s5 + $0x1f00] sm:$0xff]  ;;  %698 = vst [vmem:[%s6885_s6 + $0x7b0] sm:$0xff] %v697_v54  ;;  %700 = vst [vmem:[%s6885_s6 + $0x7b8] sm:$0xff] %v699_v55  ;;  %v703_v57 = vld [vmem:[%s6880_s5 + $0x1f08] sm:$0xff] }
  0x90   : > { %702 = vst [vmem:[%s6885_s6 + $0x7c0] sm:$0xff] %v701_v56  ;;  %v705_v58 = vld [vmem:[%s6880_s5 + $0x1f40] sm:$0xff]  ;;  %v707_v59 = vld [vmem:[%s6880_s5 + $0x1f48] sm:$0xff]  ;;  %704 = vst [vmem:[%s6885_s6 + $0x7c8] sm:$0xff] %v703_v57 }
  0x91   : > { %706 = vst [vmem:[%s6885_s6 + $0x7d0] sm:$0xff] %v705_v58  ;;  %708 = vst [vmem:[%s6885_s6 + $0x7d8] sm:$0xff] %v707_v59  ;;  %v709_v60 = vld [vmem:[%s6880_s5 + $0x1f80] sm:$0xff]  ;;  %v711_v61 = vld [vmem:[%s6880_s5 + $0x1f88] sm:$0xff] }
  0x92   : > { %v713_v62 = vld [vmem:[%s6880_s5 + $0x1fc0] sm:$0xff]  ;;  %710 = vst [vmem:[%s6885_s6 + $0x7e0] sm:$0xff] %v709_v60  ;;  %712 = vst [vmem:[%s6885_s6 + $0x7e8] sm:$0xff] %v711_v61  ;;  %v715_v63 = vld [vmem:[%s6880_s5 + $0x1fc8] sm:$0xff] }
  0x93   : > { %714 = vst [vmem:[%s6885_s6 + $0x7f0] sm:$0xff] %v713_v62  ;;  %v717_v0 = vld [vmem:[%s6880_s5 + $0x2000] sm:$0xff]  ;;  %v719_v1 = vld [vmem:[%s6880_s5 + $0x2008] sm:$0xff]  ;;  %716 = vst [vmem:[%s6885_s6 + $0x7f8] sm:$0xff] %v715_v63 }
  0x94   : > { %718 = vst [vmem:[%s6885_s6 + $0x800] sm:$0xff] %v717_v0  ;;  %720 = vst [vmem:[%s6885_s6 + $0x808] sm:$0xff] %v719_v1  ;;  %v721_v2 = vld [vmem:[%s6880_s5 + $0x2040] sm:$0xff]  ;;  %v723_v3 = vld [vmem:[%s6880_s5 + $0x2048] sm:$0xff] }
  0x95   : > { %v725_v4 = vld [vmem:[%s6880_s5 + $0x2080] sm:$0xff]  ;;  %722 = vst [vmem:[%s6885_s6 + $0x810] sm:$0xff] %v721_v2  ;;  %724 = vst [vmem:[%s6885_s6 + $0x818] sm:$0xff] %v723_v3  ;;  %v727_v5 = vld [vmem:[%s6880_s5 + $0x2088] sm:$0xff] }
  0x96   : > { %726 = vst [vmem:[%s6885_s6 + $0x820] sm:$0xff] %v725_v4  ;;  %v729_v6 = vld [vmem:[%s6880_s5 + $0x20c0] sm:$0xff]  ;;  %v731_v7 = vld [vmem:[%s6880_s5 + $0x20c8] sm:$0xff]  ;;  %728 = vst [vmem:[%s6885_s6 + $0x828] sm:$0xff] %v727_v5 }
  0x97   : > { %730 = vst [vmem:[%s6885_s6 + $0x830] sm:$0xff] %v729_v6  ;;  %732 = vst [vmem:[%s6885_s6 + $0x838] sm:$0xff] %v731_v7  ;;  %v733_v8 = vld [vmem:[%s6880_s5 + $0x2100] sm:$0xff]  ;;  %v735_v9 = vld [vmem:[%s6880_s5 + $0x2108] sm:$0xff] }
  0x98   : > { %v737_v10 = vld [vmem:[%s6880_s5 + $0x2140] sm:$0xff]  ;;  %734 = vst [vmem:[%s6885_s6 + $0x840] sm:$0xff] %v733_v8  ;;  %736 = vst [vmem:[%s6885_s6 + $0x848] sm:$0xff] %v735_v9  ;;  %v739_v11 = vld [vmem:[%s6880_s5 + $0x2148] sm:$0xff] }
  0x99   : > { %738 = vst [vmem:[%s6885_s6 + $0x850] sm:$0xff] %v737_v10  ;;  %v741_v12 = vld [vmem:[%s6880_s5 + $0x2180] sm:$0xff]  ;;  %v743_v13 = vld [vmem:[%s6880_s5 + $0x2188] sm:$0xff]  ;;  %740 = vst [vmem:[%s6885_s6 + $0x858] sm:$0xff] %v739_v11 }
  0x9a   : > { %742 = vst [vmem:[%s6885_s6 + $0x860] sm:$0xff] %v741_v12  ;;  %744 = vst [vmem:[%s6885_s6 + $0x868] sm:$0xff] %v743_v13  ;;  %v745_v14 = vld [vmem:[%s6880_s5 + $0x21c0] sm:$0xff]  ;;  %v747_v15 = vld [vmem:[%s6880_s5 + $0x21c8] sm:$0xff] }
  0x9b   : > { %v749_v16 = vld [vmem:[%s6880_s5 + $0x2200] sm:$0xff]  ;;  %746 = vst [vmem:[%s6885_s6 + $0x870] sm:$0xff] %v745_v14  ;;  %748 = vst [vmem:[%s6885_s6 + $0x878] sm:$0xff] %v747_v15  ;;  %v751_v17 = vld [vmem:[%s6880_s5 + $0x2208] sm:$0xff] }
  0x9c   : > { %750 = vst [vmem:[%s6885_s6 + $0x880] sm:$0xff] %v749_v16  ;;  %v753_v18 = vld [vmem:[%s6880_s5 + $0x2240] sm:$0xff]  ;;  %v755_v19 = vld [vmem:[%s6880_s5 + $0x2248] sm:$0xff]  ;;  %752 = vst [vmem:[%s6885_s6 + $0x888] sm:$0xff] %v751_v17 }
  0x9d   : > { %754 = vst [vmem:[%s6885_s6 + $0x890] sm:$0xff] %v753_v18  ;;  %756 = vst [vmem:[%s6885_s6 + $0x898] sm:$0xff] %v755_v19  ;;  %v757_v20 = vld [vmem:[%s6880_s5 + $0x2280] sm:$0xff]  ;;  %v759_v21 = vld [vmem:[%s6880_s5 + $0x2288] sm:$0xff] }
  0x9e   : > { %v761_v22 = vld [vmem:[%s6880_s5 + $0x22c0] sm:$0xff]  ;;  %758 = vst [vmem:[%s6885_s6 + $0x8a0] sm:$0xff] %v757_v20  ;;  %760 = vst [vmem:[%s6885_s6 + $0x8a8] sm:$0xff] %v759_v21  ;;  %v763_v23 = vld [vmem:[%s6880_s5 + $0x22c8] sm:$0xff] }
  0x9f   : > { %762 = vst [vmem:[%s6885_s6 + $0x8b0] sm:$0xff] %v761_v22  ;;  %v765_v24 = vld [vmem:[%s6880_s5 + $0x2300] sm:$0xff]  ;;  %v767_v25 = vld [vmem:[%s6880_s5 + $0x2308] sm:$0xff]  ;;  %764 = vst [vmem:[%s6885_s6 + $0x8b8] sm:$0xff] %v763_v23 }
  0xa0   : > { %766 = vst [vmem:[%s6885_s6 + $0x8c0] sm:$0xff] %v765_v24  ;;  %768 = vst [vmem:[%s6885_s6 + $0x8c8] sm:$0xff] %v767_v25  ;;  %v769_v26 = vld [vmem:[%s6880_s5 + $0x2340] sm:$0xff]  ;;  %v771_v27 = vld [vmem:[%s6880_s5 + $0x2348] sm:$0xff] }
  0xa1   : > { %v773_v28 = vld [vmem:[%s6880_s5 + $0x2380] sm:$0xff]  ;;  %770 = vst [vmem:[%s6885_s6 + $0x8d0] sm:$0xff] %v769_v26  ;;  %772 = vst [vmem:[%s6885_s6 + $0x8d8] sm:$0xff] %v771_v27  ;;  %v775_v29 = vld [vmem:[%s6880_s5 + $0x2388] sm:$0xff] }
  0xa2   : > { %774 = vst [vmem:[%s6885_s6 + $0x8e0] sm:$0xff] %v773_v28  ;;  %v777_v30 = vld [vmem:[%s6880_s5 + $0x23c0] sm:$0xff]  ;;  %v779_v31 = vld [vmem:[%s6880_s5 + $0x23c8] sm:$0xff]  ;;  %776 = vst [vmem:[%s6885_s6 + $0x8e8] sm:$0xff] %v775_v29 }
  0xa3   : > { %778 = vst [vmem:[%s6885_s6 + $0x8f0] sm:$0xff] %v777_v30  ;;  %780 = vst [vmem:[%s6885_s6 + $0x8f8] sm:$0xff] %v779_v31  ;;  %v781_v32 = vld [vmem:[%s6880_s5 + $0x2400] sm:$0xff]  ;;  %v783_v33 = vld [vmem:[%s6880_s5 + $0x2408] sm:$0xff] }
  0xa4   : > { %v785_v34 = vld [vmem:[%s6880_s5 + $0x2440] sm:$0xff]  ;;  %782 = vst [vmem:[%s6885_s6 + $0x900] sm:$0xff] %v781_v32  ;;  %784 = vst [vmem:[%s6885_s6 + $0x908] sm:$0xff] %v783_v33  ;;  %v787_v35 = vld [vmem:[%s6880_s5 + $0x2448] sm:$0xff] }
  0xa5   : > { %786 = vst [vmem:[%s6885_s6 + $0x910] sm:$0xff] %v785_v34  ;;  %v789_v36 = vld [vmem:[%s6880_s5 + $0x2480] sm:$0xff]  ;;  %v791_v37 = vld [vmem:[%s6880_s5 + $0x2488] sm:$0xff]  ;;  %788 = vst [vmem:[%s6885_s6 + $0x918] sm:$0xff] %v787_v35 }
  0xa6   : > { %790 = vst [vmem:[%s6885_s6 + $0x920] sm:$0xff] %v789_v36  ;;  %792 = vst [vmem:[%s6885_s6 + $0x928] sm:$0xff] %v791_v37  ;;  %v793_v38 = vld [vmem:[%s6880_s5 + $0x24c0] sm:$0xff]  ;;  %v795_v39 = vld [vmem:[%s6880_s5 + $0x24c8] sm:$0xff] }
  0xa7   : > { %v797_v40 = vld [vmem:[%s6880_s5 + $0x2500] sm:$0xff]  ;;  %794 = vst [vmem:[%s6885_s6 + $0x930] sm:$0xff] %v793_v38  ;;  %796 = vst [vmem:[%s6885_s6 + $0x938] sm:$0xff] %v795_v39  ;;  %v799_v41 = vld [vmem:[%s6880_s5 + $0x2508] sm:$0xff] }
  0xa8   : > { %798 = vst [vmem:[%s6885_s6 + $0x940] sm:$0xff] %v797_v40  ;;  %v801_v42 = vld [vmem:[%s6880_s5 + $0x2540] sm:$0xff]  ;;  %v803_v43 = vld [vmem:[%s6880_s5 + $0x2548] sm:$0xff]  ;;  %800 = vst [vmem:[%s6885_s6 + $0x948] sm:$0xff] %v799_v41 }
  0xa9   : > { %802 = vst [vmem:[%s6885_s6 + $0x950] sm:$0xff] %v801_v42  ;;  %804 = vst [vmem:[%s6885_s6 + $0x958] sm:$0xff] %v803_v43  ;;  %v805_v44 = vld [vmem:[%s6880_s5 + $0x2580] sm:$0xff]  ;;  %v807_v45 = vld [vmem:[%s6880_s5 + $0x2588] sm:$0xff] }
  0xaa   : > { %v809_v46 = vld [vmem:[%s6880_s5 + $0x25c0] sm:$0xff]  ;;  %806 = vst [vmem:[%s6885_s6 + $0x960] sm:$0xff] %v805_v44  ;;  %808 = vst [vmem:[%s6885_s6 + $0x968] sm:$0xff] %v807_v45  ;;  %v811_v47 = vld [vmem:[%s6880_s5 + $0x25c8] sm:$0xff] }
  0xab   : > { %810 = vst [vmem:[%s6885_s6 + $0x970] sm:$0xff] %v809_v46  ;;  %v813_v48 = vld [vmem:[%s6880_s5 + $0x2600] sm:$0xff]  ;;  %v815_v49 = vld [vmem:[%s6880_s5 + $0x2608] sm:$0xff]  ;;  %812 = vst [vmem:[%s6885_s6 + $0x978] sm:$0xff] %v811_v47 }
  0xac   : > { %814 = vst [vmem:[%s6885_s6 + $0x980] sm:$0xff] %v813_v48  ;;  %816 = vst [vmem:[%s6885_s6 + $0x988] sm:$0xff] %v815_v49  ;;  %v817_v50 = vld [vmem:[%s6880_s5 + $0x2640] sm:$0xff]  ;;  %v819_v51 = vld [vmem:[%s6880_s5 + $0x2648] sm:$0xff] }
  0xad   : > { %v821_v52 = vld [vmem:[%s6880_s5 + $0x2680] sm:$0xff]  ;;  %818 = vst [vmem:[%s6885_s6 + $0x990] sm:$0xff] %v817_v50  ;;  %820 = vst [vmem:[%s6885_s6 + $0x998] sm:$0xff] %v819_v51  ;;  %v823_v53 = vld [vmem:[%s6880_s5 + $0x2688] sm:$0xff] }
  0xae   : > { %822 = vst [vmem:[%s6885_s6 + $0x9a0] sm:$0xff] %v821_v52  ;;  %v825_v54 = vld [vmem:[%s6880_s5 + $0x26c0] sm:$0xff]  ;;  %v827_v55 = vld [vmem:[%s6880_s5 + $0x26c8] sm:$0xff]  ;;  %824 = vst [vmem:[%s6885_s6 + $0x9a8] sm:$0xff] %v823_v53 }
  0xaf   : > { %826 = vst [vmem:[%s6885_s6 + $0x9b0] sm:$0xff] %v825_v54  ;;  %828 = vst [vmem:[%s6885_s6 + $0x9b8] sm:$0xff] %v827_v55  ;;  %v829_v56 = vld [vmem:[%s6880_s5 + $0x2700] sm:$0xff]  ;;  %v831_v57 = vld [vmem:[%s6880_s5 + $0x2708] sm:$0xff] }
  0xb0   : > { %v833_v58 = vld [vmem:[%s6880_s5 + $0x2740] sm:$0xff]  ;;  %830 = vst [vmem:[%s6885_s6 + $0x9c0] sm:$0xff] %v829_v56  ;;  %832 = vst [vmem:[%s6885_s6 + $0x9c8] sm:$0xff] %v831_v57  ;;  %v835_v59 = vld [vmem:[%s6880_s5 + $0x2748] sm:$0xff] }
  0xb1   : > { %834 = vst [vmem:[%s6885_s6 + $0x9d0] sm:$0xff] %v833_v58  ;;  %v837_v60 = vld [vmem:[%s6880_s5 + $0x2780] sm:$0xff]  ;;  %v839_v61 = vld [vmem:[%s6880_s5 + $0x2788] sm:$0xff]  ;;  %836 = vst [vmem:[%s6885_s6 + $0x9d8] sm:$0xff] %v835_v59 }
  0xb2   : > { %838 = vst [vmem:[%s6885_s6 + $0x9e0] sm:$0xff] %v837_v60  ;;  %840 = vst [vmem:[%s6885_s6 + $0x9e8] sm:$0xff] %v839_v61  ;;  %v841_v62 = vld [vmem:[%s6880_s5 + $0x27c0] sm:$0xff]  ;;  %v843_v63 = vld [vmem:[%s6880_s5 + $0x27c8] sm:$0xff] }
  0xb3   : > { %v845_v0 = vld [vmem:[%s6880_s5 + $0x2800] sm:$0xff]  ;;  %842 = vst [vmem:[%s6885_s6 + $0x9f0] sm:$0xff] %v841_v62  ;;  %844 = vst [vmem:[%s6885_s6 + $0x9f8] sm:$0xff] %v843_v63  ;;  %v847_v1 = vld [vmem:[%s6880_s5 + $0x2808] sm:$0xff] }
  0xb4   : > { %846 = vst [vmem:[%s6885_s6 + $0xa00] sm:$0xff] %v845_v0  ;;  %v849_v2 = vld [vmem:[%s6880_s5 + $0x2840] sm:$0xff]  ;;  %v851_v3 = vld [vmem:[%s6880_s5 + $0x2848] sm:$0xff]  ;;  %848 = vst [vmem:[%s6885_s6 + $0xa08] sm:$0xff] %v847_v1 }
  0xb5   : > { %850 = vst [vmem:[%s6885_s6 + $0xa10] sm:$0xff] %v849_v2  ;;  %852 = vst [vmem:[%s6885_s6 + $0xa18] sm:$0xff] %v851_v3  ;;  %v853_v4 = vld [vmem:[%s6880_s5 + $0x2880] sm:$0xff]  ;;  %v855_v5 = vld [vmem:[%s6880_s5 + $0x2888] sm:$0xff] }
  0xb6   : > { %v857_v6 = vld [vmem:[%s6880_s5 + $0x28c0] sm:$0xff]  ;;  %854 = vst [vmem:[%s6885_s6 + $0xa20] sm:$0xff] %v853_v4  ;;  %856 = vst [vmem:[%s6885_s6 + $0xa28] sm:$0xff] %v855_v5  ;;  %v859_v7 = vld [vmem:[%s6880_s5 + $0x28c8] sm:$0xff] }
  0xb7   : > { %858 = vst [vmem:[%s6885_s6 + $0xa30] sm:$0xff] %v857_v6  ;;  %v861_v8 = vld [vmem:[%s6880_s5 + $0x2900] sm:$0xff]  ;;  %v863_v9 = vld [vmem:[%s6880_s5 + $0x2908] sm:$0xff]  ;;  %860 = vst [vmem:[%s6885_s6 + $0xa38] sm:$0xff] %v859_v7 }
  0xb8   : > { %862 = vst [vmem:[%s6885_s6 + $0xa40] sm:$0xff] %v861_v8  ;;  %864 = vst [vmem:[%s6885_s6 + $0xa48] sm:$0xff] %v863_v9  ;;  %v865_v10 = vld [vmem:[%s6880_s5 + $0x2940] sm:$0xff]  ;;  %v867_v11 = vld [vmem:[%s6880_s5 + $0x2948] sm:$0xff] }
  0xb9   : > { %v869_v12 = vld [vmem:[%s6880_s5 + $0x2980] sm:$0xff]  ;;  %866 = vst [vmem:[%s6885_s6 + $0xa50] sm:$0xff] %v865_v10  ;;  %868 = vst [vmem:[%s6885_s6 + $0xa58] sm:$0xff] %v867_v11  ;;  %v871_v13 = vld [vmem:[%s6880_s5 + $0x2988] sm:$0xff] }
  0xba   : > { %870 = vst [vmem:[%s6885_s6 + $0xa60] sm:$0xff] %v869_v12  ;;  %v873_v14 = vld [vmem:[%s6880_s5 + $0x29c0] sm:$0xff]  ;;  %v875_v15 = vld [vmem:[%s6880_s5 + $0x29c8] sm:$0xff]  ;;  %872 = vst [vmem:[%s6885_s6 + $0xa68] sm:$0xff] %v871_v13 }
  0xbb   : > { %874 = vst [vmem:[%s6885_s6 + $0xa70] sm:$0xff] %v873_v14  ;;  %876 = vst [vmem:[%s6885_s6 + $0xa78] sm:$0xff] %v875_v15  ;;  %v877_v16 = vld [vmem:[%s6880_s5 + $0x2a00] sm:$0xff]  ;;  %v879_v17 = vld [vmem:[%s6880_s5 + $0x2a08] sm:$0xff] }
  0xbc   : > { %v881_v18 = vld [vmem:[%s6880_s5 + $0x2a40] sm:$0xff]  ;;  %878 = vst [vmem:[%s6885_s6 + $0xa80] sm:$0xff] %v877_v16  ;;  %880 = vst [vmem:[%s6885_s6 + $0xa88] sm:$0xff] %v879_v17  ;;  %v883_v19 = vld [vmem:[%s6880_s5 + $0x2a48] sm:$0xff] }
  0xbd   : > { %882 = vst [vmem:[%s6885_s6 + $0xa90] sm:$0xff] %v881_v18  ;;  %v885_v20 = vld [vmem:[%s6880_s5 + $0x2a80] sm:$0xff]  ;;  %v887_v21 = vld [vmem:[%s6880_s5 + $0x2a88] sm:$0xff]  ;;  %884 = vst [vmem:[%s6885_s6 + $0xa98] sm:$0xff] %v883_v19 }
  0xbe   : > { %886 = vst [vmem:[%s6885_s6 + $0xaa0] sm:$0xff] %v885_v20  ;;  %888 = vst [vmem:[%s6885_s6 + $0xaa8] sm:$0xff] %v887_v21  ;;  %v889_v22 = vld [vmem:[%s6880_s5 + $0x2ac0] sm:$0xff]  ;;  %v891_v23 = vld [vmem:[%s6880_s5 + $0x2ac8] sm:$0xff] }
  0xbf   : > { %v893_v24 = vld [vmem:[%s6880_s5 + $0x2b00] sm:$0xff]  ;;  %890 = vst [vmem:[%s6885_s6 + $0xab0] sm:$0xff] %v889_v22  ;;  %892 = vst [vmem:[%s6885_s6 + $0xab8] sm:$0xff] %v891_v23  ;;  %v895_v25 = vld [vmem:[%s6880_s5 + $0x2b08] sm:$0xff] }
  0xc0   : > { %894 = vst [vmem:[%s6885_s6 + $0xac0] sm:$0xff] %v893_v24  ;;  %v897_v26 = vld [vmem:[%s6880_s5 + $0x2b40] sm:$0xff]  ;;  %v899_v27 = vld [vmem:[%s6880_s5 + $0x2b48] sm:$0xff]  ;;  %896 = vst [vmem:[%s6885_s6 + $0xac8] sm:$0xff] %v895_v25 }
  0xc1   : > { %898 = vst [vmem:[%s6885_s6 + $0xad0] sm:$0xff] %v897_v26  ;;  %900 = vst [vmem:[%s6885_s6 + $0xad8] sm:$0xff] %v899_v27  ;;  %v901_v28 = vld [vmem:[%s6880_s5 + $0x2b80] sm:$0xff]  ;;  %v903_v29 = vld [vmem:[%s6880_s5 + $0x2b88] sm:$0xff] }
  0xc2   : > { %v905_v30 = vld [vmem:[%s6880_s5 + $0x2bc0] sm:$0xff]  ;;  %902 = vst [vmem:[%s6885_s6 + $0xae0] sm:$0xff] %v901_v28  ;;  %904 = vst [vmem:[%s6885_s6 + $0xae8] sm:$0xff] %v903_v29  ;;  %v907_v31 = vld [vmem:[%s6880_s5 + $0x2bc8] sm:$0xff] }
  0xc3   : > { %906 = vst [vmem:[%s6885_s6 + $0xaf0] sm:$0xff] %v905_v30  ;;  %v909_v32 = vld [vmem:[%s6880_s5 + $0x2c00] sm:$0xff]  ;;  %v911_v33 = vld [vmem:[%s6880_s5 + $0x2c08] sm:$0xff]  ;;  %908 = vst [vmem:[%s6885_s6 + $0xaf8] sm:$0xff] %v907_v31 }
  0xc4   : > { %910 = vst [vmem:[%s6885_s6 + $0xb00] sm:$0xff] %v909_v32  ;;  %912 = vst [vmem:[%s6885_s6 + $0xb08] sm:$0xff] %v911_v33  ;;  %v913_v34 = vld [vmem:[%s6880_s5 + $0x2c40] sm:$0xff]  ;;  %v915_v35 = vld [vmem:[%s6880_s5 + $0x2c48] sm:$0xff] }
  0xc5   : > { %v917_v36 = vld [vmem:[%s6880_s5 + $0x2c80] sm:$0xff]  ;;  %914 = vst [vmem:[%s6885_s6 + $0xb10] sm:$0xff] %v913_v34  ;;  %916 = vst [vmem:[%s6885_s6 + $0xb18] sm:$0xff] %v915_v35  ;;  %v919_v37 = vld [vmem:[%s6880_s5 + $0x2c88] sm:$0xff] }
  0xc6   : > { %918 = vst [vmem:[%s6885_s6 + $0xb20] sm:$0xff] %v917_v36  ;;  %v921_v38 = vld [vmem:[%s6880_s5 + $0x2cc0] sm:$0xff]  ;;  %v923_v39 = vld [vmem:[%s6880_s5 + $0x2cc8] sm:$0xff]  ;;  %920 = vst [vmem:[%s6885_s6 + $0xb28] sm:$0xff] %v919_v37 }
  0xc7   : > { %922 = vst [vmem:[%s6885_s6 + $0xb30] sm:$0xff] %v921_v38  ;;  %924 = vst [vmem:[%s6885_s6 + $0xb38] sm:$0xff] %v923_v39  ;;  %v925_v40 = vld [vmem:[%s6880_s5 + $0x2d00] sm:$0xff]  ;;  %v927_v41 = vld [vmem:[%s6880_s5 + $0x2d08] sm:$0xff] }
  0xc8   : > { %v929_v42 = vld [vmem:[%s6880_s5 + $0x2d40] sm:$0xff]  ;;  %926 = vst [vmem:[%s6885_s6 + $0xb40] sm:$0xff] %v925_v40  ;;  %928 = vst [vmem:[%s6885_s6 + $0xb48] sm:$0xff] %v927_v41  ;;  %v931_v43 = vld [vmem:[%s6880_s5 + $0x2d48] sm:$0xff] }
  0xc9   : > { %930 = vst [vmem:[%s6885_s6 + $0xb50] sm:$0xff] %v929_v42  ;;  %v933_v44 = vld [vmem:[%s6880_s5 + $0x2d80] sm:$0xff]  ;;  %v935_v45 = vld [vmem:[%s6880_s5 + $0x2d88] sm:$0xff]  ;;  %932 = vst [vmem:[%s6885_s6 + $0xb58] sm:$0xff] %v931_v43 }
  0xca   : > { %934 = vst [vmem:[%s6885_s6 + $0xb60] sm:$0xff] %v933_v44  ;;  %936 = vst [vmem:[%s6885_s6 + $0xb68] sm:$0xff] %v935_v45  ;;  %v937_v46 = vld [vmem:[%s6880_s5 + $0x2dc0] sm:$0xff]  ;;  %v939_v47 = vld [vmem:[%s6880_s5 + $0x2dc8] sm:$0xff] }
  0xcb   : > { %v941_v48 = vld [vmem:[%s6880_s5 + $0x2e00] sm:$0xff]  ;;  %938 = vst [vmem:[%s6885_s6 + $0xb70] sm:$0xff] %v937_v46  ;;  %940 = vst [vmem:[%s6885_s6 + $0xb78] sm:$0xff] %v939_v47  ;;  %v943_v49 = vld [vmem:[%s6880_s5 + $0x2e08] sm:$0xff] }
  0xcc   : > { %942 = vst [vmem:[%s6885_s6 + $0xb80] sm:$0xff] %v941_v48  ;;  %v945_v50 = vld [vmem:[%s6880_s5 + $0x2e40] sm:$0xff]  ;;  %v947_v51 = vld [vmem:[%s6880_s5 + $0x2e48] sm:$0xff]  ;;  %944 = vst [vmem:[%s6885_s6 + $0xb88] sm:$0xff] %v943_v49 }
  0xcd   : > { %946 = vst [vmem:[%s6885_s6 + $0xb90] sm:$0xff] %v945_v50  ;;  %948 = vst [vmem:[%s6885_s6 + $0xb98] sm:$0xff] %v947_v51  ;;  %v949_v52 = vld [vmem:[%s6880_s5 + $0x2e80] sm:$0xff]  ;;  %v951_v53 = vld [vmem:[%s6880_s5 + $0x2e88] sm:$0xff] }
  0xce   : > { %v953_v54 = vld [vmem:[%s6880_s5 + $0x2ec0] sm:$0xff]  ;;  %950 = vst [vmem:[%s6885_s6 + $0xba0] sm:$0xff] %v949_v52  ;;  %952 = vst [vmem:[%s6885_s6 + $0xba8] sm:$0xff] %v951_v53  ;;  %v955_v55 = vld [vmem:[%s6880_s5 + $0x2ec8] sm:$0xff] }
  0xcf   : > { %954 = vst [vmem:[%s6885_s6 + $0xbb0] sm:$0xff] %v953_v54  ;;  %v957_v56 = vld [vmem:[%s6880_s5 + $0x2f00] sm:$0xff]  ;;  %v959_v57 = vld [vmem:[%s6880_s5 + $0x2f08] sm:$0xff]  ;;  %956 = vst [vmem:[%s6885_s6 + $0xbb8] sm:$0xff] %v955_v55 }
  0xd0   : > { %958 = vst [vmem:[%s6885_s6 + $0xbc0] sm:$0xff] %v957_v56  ;;  %960 = vst [vmem:[%s6885_s6 + $0xbc8] sm:$0xff] %v959_v57  ;;  %v961_v58 = vld [vmem:[%s6880_s5 + $0x2f40] sm:$0xff]  ;;  %v963_v59 = vld [vmem:[%s6880_s5 + $0x2f48] sm:$0xff] }
  0xd1   : > { %v965_v60 = vld [vmem:[%s6880_s5 + $0x2f80] sm:$0xff]  ;;  %962 = vst [vmem:[%s6885_s6 + $0xbd0] sm:$0xff] %v961_v58  ;;  %964 = vst [vmem:[%s6885_s6 + $0xbd8] sm:$0xff] %v963_v59  ;;  %v967_v61 = vld [vmem:[%s6880_s5 + $0x2f88] sm:$0xff] }
  0xd2   : > { %966 = vst [vmem:[%s6885_s6 + $0xbe0] sm:$0xff] %v965_v60  ;;  %v969_v62 = vld [vmem:[%s6880_s5 + $0x2fc0] sm:$0xff]  ;;  %v971_v63 = vld [vmem:[%s6880_s5 + $0x2fc8] sm:$0xff]  ;;  %968 = vst [vmem:[%s6885_s6 + $0xbe8] sm:$0xff] %v967_v61 }
  0xd3   : > { %970 = vst [vmem:[%s6885_s6 + $0xbf0] sm:$0xff] %v969_v62  ;;  %972 = vst [vmem:[%s6885_s6 + $0xbf8] sm:$0xff] %v971_v63  ;;  %v973_v0 = vld [vmem:[%s6880_s5 + $0x3000] sm:$0xff]  ;;  %v975_v1 = vld [vmem:[%s6880_s5 + $0x3008] sm:$0xff] }
  0xd4   : > { %v977_v2 = vld [vmem:[%s6880_s5 + $0x3040] sm:$0xff]  ;;  %974 = vst [vmem:[%s6885_s6 + $0xc00] sm:$0xff] %v973_v0  ;;  %976 = vst [vmem:[%s6885_s6 + $0xc08] sm:$0xff] %v975_v1  ;;  %v979_v3 = vld [vmem:[%s6880_s5 + $0x3048] sm:$0xff] }
  0xd5   : > { %978 = vst [vmem:[%s6885_s6 + $0xc10] sm:$0xff] %v977_v2  ;;  %v981_v4 = vld [vmem:[%s6880_s5 + $0x3080] sm:$0xff]  ;;  %v983_v5 = vld [vmem:[%s6880_s5 + $0x3088] sm:$0xff]  ;;  %980 = vst [vmem:[%s6885_s6 + $0xc18] sm:$0xff] %v979_v3 }
  0xd6   : > { %982 = vst [vmem:[%s6885_s6 + $0xc20] sm:$0xff] %v981_v4  ;;  %984 = vst [vmem:[%s6885_s6 + $0xc28] sm:$0xff] %v983_v5  ;;  %v985_v6 = vld [vmem:[%s6880_s5 + $0x30c0] sm:$0xff]  ;;  %v987_v7 = vld [vmem:[%s6880_s5 + $0x30c8] sm:$0xff] }
  0xd7   : > { %v989_v8 = vld [vmem:[%s6880_s5 + $0x3100] sm:$0xff]  ;;  %986 = vst [vmem:[%s6885_s6 + $0xc30] sm:$0xff] %v985_v6  ;;  %988 = vst [vmem:[%s6885_s6 + $0xc38] sm:$0xff] %v987_v7  ;;  %v991_v9 = vld [vmem:[%s6880_s5 + $0x3108] sm:$0xff] }
  0xd8   : > { %990 = vst [vmem:[%s6885_s6 + $0xc40] sm:$0xff] %v989_v8  ;;  %v993_v10 = vld [vmem:[%s6880_s5 + $0x3140] sm:$0xff]  ;;  %v995_v11 = vld [vmem:[%s6880_s5 + $0x3148] sm:$0xff]  ;;  %992 = vst [vmem:[%s6885_s6 + $0xc48] sm:$0xff] %v991_v9 }
  0xd9   : > { %994 = vst [vmem:[%s6885_s6 + $0xc50] sm:$0xff] %v993_v10  ;;  %996 = vst [vmem:[%s6885_s6 + $0xc58] sm:$0xff] %v995_v11  ;;  %v997_v12 = vld [vmem:[%s6880_s5 + $0x3180] sm:$0xff]  ;;  %v999_v13 = vld [vmem:[%s6880_s5 + $0x3188] sm:$0xff] }
  0xda   : > { %v1001_v14 = vld [vmem:[%s6880_s5 + $0x31c0] sm:$0xff]  ;;  %998 = vst [vmem:[%s6885_s6 + $0xc60] sm:$0xff] %v997_v12  ;;  %1000 = vst [vmem:[%s6885_s6 + $0xc68] sm:$0xff] %v999_v13  ;;  %v1003_v15 = vld [vmem:[%s6880_s5 + $0x31c8] sm:$0xff] }
  0xdb   : > { %1002 = vst [vmem:[%s6885_s6 + $0xc70] sm:$0xff] %v1001_v14  ;;  %v1005_v16 = vld [vmem:[%s6880_s5 + $0x3200] sm:$0xff]  ;;  %v1007_v17 = vld [vmem:[%s6880_s5 + $0x3208] sm:$0xff]  ;;  %1004 = vst [vmem:[%s6885_s6 + $0xc78] sm:$0xff] %v1003_v15 }
  0xdc   : > { %1006 = vst [vmem:[%s6885_s6 + $0xc80] sm:$0xff] %v1005_v16  ;;  %1008 = vst [vmem:[%s6885_s6 + $0xc88] sm:$0xff] %v1007_v17  ;;  %v1009_v18 = vld [vmem:[%s6880_s5 + $0x3240] sm:$0xff]  ;;  %v1011_v19 = vld [vmem:[%s6880_s5 + $0x3248] sm:$0xff] }
  0xdd   : > { %v1013_v20 = vld [vmem:[%s6880_s5 + $0x3280] sm:$0xff]  ;;  %1010 = vst [vmem:[%s6885_s6 + $0xc90] sm:$0xff] %v1009_v18  ;;  %1012 = vst [vmem:[%s6885_s6 + $0xc98] sm:$0xff] %v1011_v19  ;;  %v1015_v21 = vld [vmem:[%s6880_s5 + $0x3288] sm:$0xff] }
  0xde   : > { %1014 = vst [vmem:[%s6885_s6 + $0xca0] sm:$0xff] %v1013_v20  ;;  %v1017_v22 = vld [vmem:[%s6880_s5 + $0x32c0] sm:$0xff]  ;;  %v1019_v23 = vld [vmem:[%s6880_s5 + $0x32c8] sm:$0xff]  ;;  %1016 = vst [vmem:[%s6885_s6 + $0xca8] sm:$0xff] %v1015_v21 }
  0xdf   : > { %1018 = vst [vmem:[%s6885_s6 + $0xcb0] sm:$0xff] %v1017_v22  ;;  %1020 = vst [vmem:[%s6885_s6 + $0xcb8] sm:$0xff] %v1019_v23  ;;  %v1021_v24 = vld [vmem:[%s6880_s5 + $0x3300] sm:$0xff]  ;;  %v1023_v25 = vld [vmem:[%s6880_s5 + $0x3308] sm:$0xff] }
  0xe0   : > { %v1025_v26 = vld [vmem:[%s6880_s5 + $0x3340] sm:$0xff]  ;;  %1022 = vst [vmem:[%s6885_s6 + $0xcc0] sm:$0xff] %v1021_v24  ;;  %1024 = vst [vmem:[%s6885_s6 + $0xcc8] sm:$0xff] %v1023_v25  ;;  %v1027_v27 = vld [vmem:[%s6880_s5 + $0x3348] sm:$0xff] }
  0xe1   : > { %1026 = vst [vmem:[%s6885_s6 + $0xcd0] sm:$0xff] %v1025_v26  ;;  %v1029_v28 = vld [vmem:[%s6880_s5 + $0x3380] sm:$0xff]  ;;  %v1031_v29 = vld [vmem:[%s6880_s5 + $0x3388] sm:$0xff]  ;;  %1028 = vst [vmem:[%s6885_s6 + $0xcd8] sm:$0xff] %v1027_v27 }
  0xe2   : > { %1030 = vst [vmem:[%s6885_s6 + $0xce0] sm:$0xff] %v1029_v28  ;;  %1032 = vst [vmem:[%s6885_s6 + $0xce8] sm:$0xff] %v1031_v29  ;;  %v1033_v30 = vld [vmem:[%s6880_s5 + $0x33c0] sm:$0xff]  ;;  %v1035_v31 = vld [vmem:[%s6880_s5 + $0x33c8] sm:$0xff] }
  0xe3   : > { %v1037_v32 = vld [vmem:[%s6880_s5 + $0x3400] sm:$0xff]  ;;  %1034 = vst [vmem:[%s6885_s6 + $0xcf0] sm:$0xff] %v1033_v30  ;;  %1036 = vst [vmem:[%s6885_s6 + $0xcf8] sm:$0xff] %v1035_v31  ;;  %v1039_v33 = vld [vmem:[%s6880_s5 + $0x3408] sm:$0xff] }
  0xe4   : > { %1038 = vst [vmem:[%s6885_s6 + $0xd00] sm:$0xff] %v1037_v32  ;;  %v1041_v34 = vld [vmem:[%s6880_s5 + $0x3440] sm:$0xff]  ;;  %v1043_v35 = vld [vmem:[%s6880_s5 + $0x3448] sm:$0xff]  ;;  %1040 = vst [vmem:[%s6885_s6 + $0xd08] sm:$0xff] %v1039_v33 }
  0xe5   : > { %1042 = vst [vmem:[%s6885_s6 + $0xd10] sm:$0xff] %v1041_v34  ;;  %1044 = vst [vmem:[%s6885_s6 + $0xd18] sm:$0xff] %v1043_v35  ;;  %v1045_v36 = vld [vmem:[%s6880_s5 + $0x3480] sm:$0xff]  ;;  %v1047_v37 = vld [vmem:[%s6880_s5 + $0x3488] sm:$0xff] }
  0xe6   : > { %v1049_v38 = vld [vmem:[%s6880_s5 + $0x34c0] sm:$0xff]  ;;  %1046 = vst [vmem:[%s6885_s6 + $0xd20] sm:$0xff] %v1045_v36  ;;  %1048 = vst [vmem:[%s6885_s6 + $0xd28] sm:$0xff] %v1047_v37  ;;  %v1051_v39 = vld [vmem:[%s6880_s5 + $0x34c8] sm:$0xff] }
  0xe7   : > { %1050 = vst [vmem:[%s6885_s6 + $0xd30] sm:$0xff] %v1049_v38  ;;  %v1053_v40 = vld [vmem:[%s6880_s5 + $0x3500] sm:$0xff]  ;;  %v1055_v41 = vld [vmem:[%s6880_s5 + $0x3508] sm:$0xff]  ;;  %1052 = vst [vmem:[%s6885_s6 + $0xd38] sm:$0xff] %v1051_v39 }
  0xe8   : > { %1054 = vst [vmem:[%s6885_s6 + $0xd40] sm:$0xff] %v1053_v40  ;;  %1056 = vst [vmem:[%s6885_s6 + $0xd48] sm:$0xff] %v1055_v41  ;;  %v1057_v42 = vld [vmem:[%s6880_s5 + $0x3540] sm:$0xff]  ;;  %v1059_v43 = vld [vmem:[%s6880_s5 + $0x3548] sm:$0xff] }
  0xe9   : > { %v1061_v44 = vld [vmem:[%s6880_s5 + $0x3580] sm:$0xff]  ;;  %1058 = vst [vmem:[%s6885_s6 + $0xd50] sm:$0xff] %v1057_v42  ;;  %1060 = vst [vmem:[%s6885_s6 + $0xd58] sm:$0xff] %v1059_v43  ;;  %v1063_v45 = vld [vmem:[%s6880_s5 + $0x3588] sm:$0xff] }
  0xea   : > { %1062 = vst [vmem:[%s6885_s6 + $0xd60] sm:$0xff] %v1061_v44  ;;  %v1065_v46 = vld [vmem:[%s6880_s5 + $0x35c0] sm:$0xff]  ;;  %v1067_v47 = vld [vmem:[%s6880_s5 + $0x35c8] sm:$0xff]  ;;  %1064 = vst [vmem:[%s6885_s6 + $0xd68] sm:$0xff] %v1063_v45 }
  0xeb   : > { %1066 = vst [vmem:[%s6885_s6 + $0xd70] sm:$0xff] %v1065_v46  ;;  %1068 = vst [vmem:[%s6885_s6 + $0xd78] sm:$0xff] %v1067_v47  ;;  %v1069_v48 = vld [vmem:[%s6880_s5 + $0x3600] sm:$0xff]  ;;  %v1071_v49 = vld [vmem:[%s6880_s5 + $0x3608] sm:$0xff] }
  0xec   : > { %v1073_v50 = vld [vmem:[%s6880_s5 + $0x3640] sm:$0xff]  ;;  %1070 = vst [vmem:[%s6885_s6 + $0xd80] sm:$0xff] %v1069_v48  ;;  %1072 = vst [vmem:[%s6885_s6 + $0xd88] sm:$0xff] %v1071_v49  ;;  %v1075_v51 = vld [vmem:[%s6880_s5 + $0x3648] sm:$0xff] }
  0xed   : > { %1074 = vst [vmem:[%s6885_s6 + $0xd90] sm:$0xff] %v1073_v50  ;;  %v1077_v52 = vld [vmem:[%s6880_s5 + $0x3680] sm:$0xff]  ;;  %v1079_v53 = vld [vmem:[%s6880_s5 + $0x3688] sm:$0xff]  ;;  %1076 = vst [vmem:[%s6885_s6 + $0xd98] sm:$0xff] %v1075_v51 }
  0xee   : > { %1078 = vst [vmem:[%s6885_s6 + $0xda0] sm:$0xff] %v1077_v52  ;;  %1080 = vst [vmem:[%s6885_s6 + $0xda8] sm:$0xff] %v1079_v53  ;;  %v1081_v54 = vld [vmem:[%s6880_s5 + $0x36c0] sm:$0xff]  ;;  %v1083_v55 = vld [vmem:[%s6880_s5 + $0x36c8] sm:$0xff] }
  0xef   : > { %v1085_v56 = vld [vmem:[%s6880_s5 + $0x3700] sm:$0xff]  ;;  %1082 = vst [vmem:[%s6885_s6 + $0xdb0] sm:$0xff] %v1081_v54  ;;  %1084 = vst [vmem:[%s6885_s6 + $0xdb8] sm:$0xff] %v1083_v55  ;;  %v1087_v57 = vld [vmem:[%s6880_s5 + $0x3708] sm:$0xff] }
  0xf0   : > { %1086 = vst [vmem:[%s6885_s6 + $0xdc0] sm:$0xff] %v1085_v56  ;;  %v1089_v58 = vld [vmem:[%s6880_s5 + $0x3740] sm:$0xff]  ;;  %v1091_v59 = vld [vmem:[%s6880_s5 + $0x3748] sm:$0xff]  ;;  %1088 = vst [vmem:[%s6885_s6 + $0xdc8] sm:$0xff] %v1087_v57 }
  0xf1   : > { %1090 = vst [vmem:[%s6885_s6 + $0xdd0] sm:$0xff] %v1089_v58  ;;  %1092 = vst [vmem:[%s6885_s6 + $0xdd8] sm:$0xff] %v1091_v59  ;;  %v1093_v60 = vld [vmem:[%s6880_s5 + $0x3780] sm:$0xff]  ;;  %v1095_v61 = vld [vmem:[%s6880_s5 + $0x3788] sm:$0xff] }
  0xf2   : > { %v1097_v62 = vld [vmem:[%s6880_s5 + $0x37c0] sm:$0xff]  ;;  %1094 = vst [vmem:[%s6885_s6 + $0xde0] sm:$0xff] %v1093_v60  ;;  %1096 = vst [vmem:[%s6885_s6 + $0xde8] sm:$0xff] %v1095_v61  ;;  %v1099_v63 = vld [vmem:[%s6880_s5 + $0x37c8] sm:$0xff] }
  0xf3   : > { %1098 = vst [vmem:[%s6885_s6 + $0xdf0] sm:$0xff] %v1097_v62  ;;  %v1101_v0 = vld [vmem:[%s6880_s5 + $0x3800] sm:$0xff]  ;;  %v1103_v1 = vld [vmem:[%s6880_s5 + $0x3808] sm:$0xff]  ;;  %1100 = vst [vmem:[%s6885_s6 + $0xdf8] sm:$0xff] %v1099_v63 }
  0xf4   : > { %1102 = vst [vmem:[%s6885_s6 + $0xe00] sm:$0xff] %v1101_v0  ;;  %1104 = vst [vmem:[%s6885_s6 + $0xe08] sm:$0xff] %v1103_v1  ;;  %v1105_v2 = vld [vmem:[%s6880_s5 + $0x3840] sm:$0xff]  ;;  %v1107_v3 = vld [vmem:[%s6880_s5 + $0x3848] sm:$0xff] }
  0xf5   : > { %v1109_v4 = vld [vmem:[%s6880_s5 + $0x3880] sm:$0xff]  ;;  %1106 = vst [vmem:[%s6885_s6 + $0xe10] sm:$0xff] %v1105_v2  ;;  %1108 = vst [vmem:[%s6885_s6 + $0xe18] sm:$0xff] %v1107_v3  ;;  %v1111_v5 = vld [vmem:[%s6880_s5 + $0x3888] sm:$0xff] }
  0xf6   : > { %1110 = vst [vmem:[%s6885_s6 + $0xe20] sm:$0xff] %v1109_v4  ;;  %v1113_v6 = vld [vmem:[%s6880_s5 + $0x38c0] sm:$0xff]  ;;  %v1115_v7 = vld [vmem:[%s6880_s5 + $0x38c8] sm:$0xff]  ;;  %1112 = vst [vmem:[%s6885_s6 + $0xe28] sm:$0xff] %v1111_v5 }
  0xf7   : > { %1114 = vst [vmem:[%s6885_s6 + $0xe30] sm:$0xff] %v1113_v6  ;;  %1116 = vst [vmem:[%s6885_s6 + $0xe38] sm:$0xff] %v1115_v7  ;;  %v1117_v8 = vld [vmem:[%s6880_s5 + $0x3900] sm:$0xff]  ;;  %v1119_v9 = vld [vmem:[%s6880_s5 + $0x3908] sm:$0xff] }
  0xf8   : > { %v1121_v10 = vld [vmem:[%s6880_s5 + $0x3940] sm:$0xff]  ;;  %1118 = vst [vmem:[%s6885_s6 + $0xe40] sm:$0xff] %v1117_v8  ;;  %1120 = vst [vmem:[%s6885_s6 + $0xe48] sm:$0xff] %v1119_v9  ;;  %v1123_v11 = vld [vmem:[%s6880_s5 + $0x3948] sm:$0xff] }
  0xf9   : > { %1122 = vst [vmem:[%s6885_s6 + $0xe50] sm:$0xff] %v1121_v10  ;;  %v1125_v12 = vld [vmem:[%s6880_s5 + $0x3980] sm:$0xff]  ;;  %v1127_v13 = vld [vmem:[%s6880_s5 + $0x3988] sm:$0xff]  ;;  %1124 = vst [vmem:[%s6885_s6 + $0xe58] sm:$0xff] %v1123_v11 }
  0xfa   : > { %1126 = vst [vmem:[%s6885_s6 + $0xe60] sm:$0xff] %v1125_v12  ;;  %1128 = vst [vmem:[%s6885_s6 + $0xe68] sm:$0xff] %v1127_v13  ;;  %v1129_v14 = vld [vmem:[%s6880_s5 + $0x39c0] sm:$0xff]  ;;  %v1131_v15 = vld [vmem:[%s6880_s5 + $0x39c8] sm:$0xff] }
  0xfb   : > { %v1133_v16 = vld [vmem:[%s6880_s5 + $0x3a00] sm:$0xff]  ;;  %1130 = vst [vmem:[%s6885_s6 + $0xe70] sm:$0xff] %v1129_v14  ;;  %1132 = vst [vmem:[%s6885_s6 + $0xe78] sm:$0xff] %v1131_v15  ;;  %v1135_v17 = vld [vmem:[%s6880_s5 + $0x3a08] sm:$0xff] }
  0xfc   : > { %1134 = vst [vmem:[%s6885_s6 + $0xe80] sm:$0xff] %v1133_v16  ;;  %v1137_v18 = vld [vmem:[%s6880_s5 + $0x3a40] sm:$0xff]  ;;  %v1139_v19 = vld [vmem:[%s6880_s5 + $0x3a48] sm:$0xff]  ;;  %1136 = vst [vmem:[%s6885_s6 + $0xe88] sm:$0xff] %v1135_v17 }
  0xfd   : > { %1138 = vst [vmem:[%s6885_s6 + $0xe90] sm:$0xff] %v1137_v18  ;;  %1140 = vst [vmem:[%s6885_s6 + $0xe98] sm:$0xff] %v1139_v19  ;;  %v1141_v20 = vld [vmem:[%s6880_s5 + $0x3a80] sm:$0xff]  ;;  %v1143_v21 = vld [vmem:[%s6880_s5 + $0x3a88] sm:$0xff] }
  0xfe   : > { %v1145_v22 = vld [vmem:[%s6880_s5 + $0x3ac0] sm:$0xff]  ;;  %1142 = vst [vmem:[%s6885_s6 + $0xea0] sm:$0xff] %v1141_v20  ;;  %1144 = vst [vmem:[%s6885_s6 + $0xea8] sm:$0xff] %v1143_v21  ;;  %v1147_v23 = vld [vmem:[%s6880_s5 + $0x3ac8] sm:$0xff] }
  0xff   : > { %1146 = vst [vmem:[%s6885_s6 + $0xeb0] sm:$0xff] %v1145_v22  ;;  %v1149_v24 = vld [vmem:[%s6880_s5 + $0x3b00] sm:$0xff]  ;;  %v1151_v25 = vld [vmem:[%s6880_s5 + $0x3b08] sm:$0xff]  ;;  %1148 = vst [vmem:[%s6885_s6 + $0xeb8] sm:$0xff] %v1147_v23 }
 0x100   : > { %1150 = vst [vmem:[%s6885_s6 + $0xec0] sm:$0xff] %v1149_v24  ;;  %1152 = vst [vmem:[%s6885_s6 + $0xec8] sm:$0xff] %v1151_v25  ;;  %v1153_v26 = vld [vmem:[%s6880_s5 + $0x3b40] sm:$0xff]  ;;  %v1155_v27 = vld [vmem:[%s6880_s5 + $0x3b48] sm:$0xff] }
 0x101   : > { %v1157_v28 = vld [vmem:[%s6880_s5 + $0x3b80] sm:$0xff]  ;;  %1154 = vst [vmem:[%s6885_s6 + $0xed0] sm:$0xff] %v1153_v26  ;;  %1156 = vst [vmem:[%s6885_s6 + $0xed8] sm:$0xff] %v1155_v27  ;;  %v1159_v29 = vld [vmem:[%s6880_s5 + $0x3b88] sm:$0xff] }
 0x102   : > { %1158 = vst [vmem:[%s6885_s6 + $0xee0] sm:$0xff] %v1157_v28  ;;  %v1161_v30 = vld [vmem:[%s6880_s5 + $0x3bc0] sm:$0xff]  ;;  %v1163_v31 = vld [vmem:[%s6880_s5 + $0x3bc8] sm:$0xff]  ;;  %1160 = vst [vmem:[%s6885_s6 + $0xee8] sm:$0xff] %v1159_v29 }
 0x103   : > { %1162 = vst [vmem:[%s6885_s6 + $0xef0] sm:$0xff] %v1161_v30  ;;  %1164 = vst [vmem:[%s6885_s6 + $0xef8] sm:$0xff] %v1163_v31  ;;  %v1165_v32 = vld [vmem:[%s6880_s5 + $0x3c00] sm:$0xff]  ;;  %v1167_v33 = vld [vmem:[%s6880_s5 + $0x3c08] sm:$0xff] }
 0x104   : > { %v1169_v34 = vld [vmem:[%s6880_s5 + $0x3c40] sm:$0xff]  ;;  %1166 = vst [vmem:[%s6885_s6 + $0xf00] sm:$0xff] %v1165_v32  ;;  %1168 = vst [vmem:[%s6885_s6 + $0xf08] sm:$0xff] %v1167_v33  ;;  %v1171_v35 = vld [vmem:[%s6880_s5 + $0x3c48] sm:$0xff] }
 0x105   : > { %1170 = vst [vmem:[%s6885_s6 + $0xf10] sm:$0xff] %v1169_v34  ;;  %v1173_v36 = vld [vmem:[%s6880_s5 + $0x3c80] sm:$0xff]  ;;  %v1175_v37 = vld [vmem:[%s6880_s5 + $0x3c88] sm:$0xff]  ;;  %1172 = vst [vmem:[%s6885_s6 + $0xf18] sm:$0xff] %v1171_v35 }
 0x106   : > { %1174 = vst [vmem:[%s6885_s6 + $0xf20] sm:$0xff] %v1173_v36  ;;  %1176 = vst [vmem:[%s6885_s6 + $0xf28] sm:$0xff] %v1175_v37  ;;  %v1177_v38 = vld [vmem:[%s6880_s5 + $0x3cc0] sm:$0xff]  ;;  %v1179_v39 = vld [vmem:[%s6880_s5 + $0x3cc8] sm:$0xff] }
 0x107   : > { %v1181_v40 = vld [vmem:[%s6880_s5 + $0x3d00] sm:$0xff]  ;;  %1178 = vst [vmem:[%s6885_s6 + $0xf30] sm:$0xff] %v1177_v38  ;;  %1180 = vst [vmem:[%s6885_s6 + $0xf38] sm:$0xff] %v1179_v39  ;;  %v1183_v41 = vld [vmem:[%s6880_s5 + $0x3d08] sm:$0xff] }
 0x108   : > { %1182 = vst [vmem:[%s6885_s6 + $0xf40] sm:$0xff] %v1181_v40  ;;  %v1185_v42 = vld [vmem:[%s6880_s5 + $0x3d40] sm:$0xff]  ;;  %v1187_v43 = vld [vmem:[%s6880_s5 + $0x3d48] sm:$0xff]  ;;  %1184 = vst [vmem:[%s6885_s6 + $0xf48] sm:$0xff] %v1183_v41 }
 0x109   : > { %1186 = vst [vmem:[%s6885_s6 + $0xf50] sm:$0xff] %v1185_v42  ;;  %1188 = vst [vmem:[%s6885_s6 + $0xf58] sm:$0xff] %v1187_v43  ;;  %v1189_v44 = vld [vmem:[%s6880_s5 + $0x3d80] sm:$0xff]  ;;  %v1191_v45 = vld [vmem:[%s6880_s5 + $0x3d88] sm:$0xff] }
 0x10a   : > { %v1193_v46 = vld [vmem:[%s6880_s5 + $0x3dc0] sm:$0xff]  ;;  %1190 = vst [vmem:[%s6885_s6 + $0xf60] sm:$0xff] %v1189_v44  ;;  %1192 = vst [vmem:[%s6885_s6 + $0xf68] sm:$0xff] %v1191_v45  ;;  %v1195_v47 = vld [vmem:[%s6880_s5 + $0x3dc8] sm:$0xff] }
 0x10b   : > { %1194 = vst [vmem:[%s6885_s6 + $0xf70] sm:$0xff] %v1193_v46  ;;  %v1197_v48 = vld [vmem:[%s6880_s5 + $0x3e00] sm:$0xff]  ;;  %v1199_v49 = vld [vmem:[%s6880_s5 + $0x3e08] sm:$0xff]  ;;  %1196 = vst [vmem:[%s6885_s6 + $0xf78] sm:$0xff] %v1195_v47 }
 0x10c   : > { %1198 = vst [vmem:[%s6885_s6 + $0xf80] sm:$0xff] %v1197_v48  ;;  %1200 = vst [vmem:[%s6885_s6 + $0xf88] sm:$0xff] %v1199_v49  ;;  %v1201_v50 = vld [vmem:[%s6880_s5 + $0x3e40] sm:$0xff]  ;;  %v1203_v51 = vld [vmem:[%s6880_s5 + $0x3e48] sm:$0xff] }
 0x10d   : > { %v1205_v52 = vld [vmem:[%s6880_s5 + $0x3e80] sm:$0xff]  ;;  %1202 = vst [vmem:[%s6885_s6 + $0xf90] sm:$0xff] %v1201_v50  ;;  %1204 = vst [vmem:[%s6885_s6 + $0xf98] sm:$0xff] %v1203_v51  ;;  %v1207_v53 = vld [vmem:[%s6880_s5 + $0x3e88] sm:$0xff] }
 0x10e   : > { %1206 = vst [vmem:[%s6885_s6 + $0xfa0] sm:$0xff] %v1205_v52  ;;  %v1209_v54 = vld [vmem:[%s6880_s5 + $0x3ec0] sm:$0xff]  ;;  %v1211_v55 = vld [vmem:[%s6880_s5 + $0x3ec8] sm:$0xff]  ;;  %1208 = vst [vmem:[%s6885_s6 + $0xfa8] sm:$0xff] %v1207_v53 }
 0x10f   : > { %1210 = vst [vmem:[%s6885_s6 + $0xfb0] sm:$0xff] %v1209_v54  ;;  %1212 = vst [vmem:[%s6885_s6 + $0xfb8] sm:$0xff] %v1211_v55  ;;  %v1213_v56 = vld [vmem:[%s6880_s5 + $0x3f00] sm:$0xff]  ;;  %v1215_v57 = vld [vmem:[%s6880_s5 + $0x3f08] sm:$0xff] }
 0x110   : > { %v1217_v58 = vld [vmem:[%s6880_s5 + $0x3f40] sm:$0xff]  ;;  %1214 = vst [vmem:[%s6885_s6 + $0xfc0] sm:$0xff] %v1213_v56  ;;  %1216 = vst [vmem:[%s6885_s6 + $0xfc8] sm:$0xff] %v1215_v57  ;;  %v1219_v59 = vld [vmem:[%s6880_s5 + $0x3f48] sm:$0xff] }
 0x111   : > { %1218 = vst [vmem:[%s6885_s6 + $0xfd0] sm:$0xff] %v1217_v58  ;;  %v1221_v60 = vld [vmem:[%s6880_s5 + $0x3f80] sm:$0xff]  ;;  %v1223_v61 = vld [vmem:[%s6880_s5 + $0x3f88] sm:$0xff]  ;;  %1220 = vst [vmem:[%s6885_s6 + $0xfd8] sm:$0xff] %v1219_v59 }
 0x112   : > { %1222 = vst [vmem:[%s6885_s6 + $0xfe0] sm:$0xff] %v1221_v60  ;;  %1224 = vst [vmem:[%s6885_s6 + $0xfe8] sm:$0xff] %v1223_v61  ;;  %v1225_v62 = vld [vmem:[%s6880_s5 + $0x3fc0] sm:$0xff]  ;;  %v1227_v63 = vld [vmem:[%s6880_s5 + $0x3fc8] sm:$0xff] }
 0x113   : > { %1226 = vst [vmem:[%s6885_s6 + $0xff0] sm:$0xff] %v1225_v62  ;;  %1228 = vst [vmem:[%s6885_s6 + $0xff8] sm:$0xff] %v1227_v63 }
 0x114 PF: > { %p5411_p8 = scmp.ge.s32.totalorder %s6805_s19, 1  ;;  %p1249_p9 = scmp.lt.s32.totalorder %s6805_s19, 5 }
 0x116   : > { %p1250_p10 = pnand %p5411_p8, %p1249_p9 }
 0x117   : > { %s1256_s7 = sand.u32 (!%p1250_p10), 1, %s6789_s15   ;;  %s5414_s9 = sshll.u32 (!%p1250_p10), %s6797_s17, 2 }
 0x118   : > { %1253 = sbr.rel (%p1250_p10) target bundleno = 1021 (0x3fd), region = 55  ;;  %s5412_s14 = sshll.u32 (!%p1250_p10), %s1256_s7, 12 }
 0x119   : > { %s7933_s23 = scalar_lea.vmem (!%p1250_p10), [#allocation2], %s5412_s14  ;;  %p8530_p11 = scmp.lt.s32.totalorder (!%p1250_p10), %s5414_s9, 15 }
 0x11a   : > { %s5413_s26 = sshll.u32 (!%p1250_p10), %s1256_s7, 5 }
 0x11b   : > { %s8601_s15 = scalar_lea.vmem (!%p1250_p10), [#allocation3], %s5413_s26 }
 0x11d   : > { %v1314_v0 = vld [vmem:[%s8682_s0] sm:$0xff]  ;;  %v1315_v2 = vld [vmem:[%s8682_s0 + $0x8] sm:$0xff]  ;;  %s8696_s9 = smov (!%p8530_p11, %s5414_s9), 15  ;;  %s5958_s7 = sshll.u32 (%p6867_p6), %s6797_s17, 4 }
 0x11e   : > { %v1322_v1 = vld [vmem:[%s8682_s0 + $0x40] sm:$0xff]  ;;  %v1323_v5 = vld [vmem:[%s8682_s0 + $0x48] sm:$0xff]  ;;  %s1305_s13 = scalar_lea.vmem %s8684_s2, %s8696_s9  ;;  %s1310_s22 = scalar_lea.vmem %s8685_s3, %s8696_s9 }
 0x11f   : > { %v7922_v3 = vcombine.low %v1314_v0, %v1322_v1  ;;  %v7924_v4 = vcombine.high %v1314_v0, %v1322_v1  ;;  %v7929_v6 = vcombine.low %v1315_v2, %v1323_v5  ;;  %v7931_v7 = vcombine.high %v1315_v2, %v1323_v5  ;;  %v5999_v8 = vld [vmem:[%s7933_s23 + $0xe4] ss:$16 sps:$4 sm:$0xff]   ;;  %v6003_v10 = vld [vmem:[%s7933_s23 + $0xe0] ss:$16 sps:$4 sm:$0xff]   ;;  %s5278_s28 = scalar_lea.vmem (%p6867_p6), %s8686_s4, %s5958_s7 }
 0x120   : > { %v6001_v9 = vld [vmem:[%s7933_s23 + $0x2e4] ss:$16 sps:$4 sm:$0xff]   ;;  %4482 = vmatprep.subr.bf16.mxu0 %v5999_v8  ;;  %v6004_v11 = vld [vmem:[%s7933_s23 + $0x2e0] ss:$16 sps:$4 sm:$0xff]  }
 0x121   : > { %4514 = vmatprep.mubr.bf16.mxu0 %v7924_v4  ;;  %4557 = vmatprep.mubr.bf16.mxu1 %v7931_v7  ;;  %v6005_v12 = vld [vmem:[%s7933_s23 + $0xc4] ss:$16 sps:$4 sm:$0xff]   ;;  %v6009_v14 = vld [vmem:[%s7933_s23 + $0xc0] ss:$16 sps:$4 sm:$0xff]  }
 0x122   : > { %4525 = vmatprep.subr.bf16.mxu1 %v6001_v9  ;;  %4483 = vmatpush1.bf16.msra.mxu0 %v6003_v10  ;;  %v6007_v13 = vld [vmem:[%s7933_s23 + $0x2c4] ss:$16 sps:$4 sm:$0xff]   ;;  %v6010_v15 = vld [vmem:[%s7933_s23 + $0x2c0] ss:$16 sps:$4 sm:$0xff]  }
 0x123   : > { %4526 = vmatpush1.bf16.msra.mxu1 %v6004_v11  ;;  %4484 = vmatprep.subr.bf16.mxu0 %v6005_v12  ;;  %v6011_v16 = vld [vmem:[%s7933_s23 + $0xa4] ss:$16 sps:$4 sm:$0xff]   ;;  %v6015_v18 = vld [vmem:[%s7933_s23 + $0xa0] ss:$16 sps:$4 sm:$0xff]  }
 0x124   : > { %4527 = vmatprep.subr.bf16.mxu1 %v6007_v13  ;;  %v6013_v17 = vld [vmem:[%s7933_s23 + $0x2a4] ss:$16 sps:$4 sm:$0xff]   ;;  %v6016_v19 = vld [vmem:[%s7933_s23 + $0x2a0] ss:$16 sps:$4 sm:$0xff]  }
 0x125   : > { %v6017_v20 = vld [vmem:[%s7933_s23 + $0x84] ss:$16 sps:$4 sm:$0xff]   ;;  %v6021_v22 = vld [vmem:[%s7933_s23 + $0x80] ss:$16 sps:$4 sm:$0xff]  }
 0x126   : > { %4485 = vmatpush1.bf16.msra.mxu0 %v6009_v14  ;;  %v6019_v21 = vld [vmem:[%s7933_s23 + $0x284] ss:$16 sps:$4 sm:$0xff]   ;;  %v6022_v23 = vld [vmem:[%s7933_s23 + $0x280] ss:$16 sps:$4 sm:$0xff]  }
 0x127   : > { %4528 = vmatpush1.bf16.msra.mxu1 %v6010_v15  ;;  %4486 = vmatprep.subr.bf16.mxu0 %v6011_v16  ;;  %v6023_v24 = vld [vmem:[%s7933_s23 + $0x64] ss:$16 sps:$4 sm:$0xff]   ;;  %v6027_v26 = vld [vmem:[%s7933_s23 + $0x60] ss:$16 sps:$4 sm:$0xff]  }
 0x128   : > { %4529 = vmatprep.subr.bf16.mxu1 %v6013_v17  ;;  %v6025_v25 = vld [vmem:[%s7933_s23 + $0x264] ss:$16 sps:$4 sm:$0xff]   ;;  %v6028_v27 = vld [vmem:[%s7933_s23 + $0x260] ss:$16 sps:$4 sm:$0xff]  }
 0x129   : > { %v6029_v28 = vld [vmem:[%s7933_s23 + $0x44] ss:$16 sps:$4 sm:$0xff]   ;;  %v6033_v30 = vld [vmem:[%s7933_s23 + $0x40] ss:$16 sps:$4 sm:$0xff]  }
 0x12a   : > { %4487 = vmatpush1.bf16.msra.mxu0 %v6015_v18  ;;  %v6031_v29 = vld [vmem:[%s7933_s23 + $0x244] ss:$16 sps:$4 sm:$0xff]   ;;  %v6034_v31 = vld [vmem:[%s7933_s23 + $0x240] ss:$16 sps:$4 sm:$0xff]  }
 0x12b   : > { %4530 = vmatpush1.bf16.msra.mxu1 %v6016_v19  ;;  %4488 = vmatprep.subr.bf16.mxu0 %v6017_v20  ;;  %v6035_v32 = vld [vmem:[%s7933_s23 + $0x24] ss:$16 sps:$4 sm:$0xff]   ;;  %v6039_v34 = vld [vmem:[%s7933_s23 + $0x20] ss:$16 sps:$4 sm:$0xff]  }
 0x12c   : > { %4531 = vmatprep.subr.bf16.mxu1 %v6019_v21  ;;  %v6037_v33 = vld [vmem:[%s7933_s23 + $0x224] ss:$16 sps:$4 sm:$0xff]   ;;  %v6040_v35 = vld [vmem:[%s7933_s23 + $0x220] ss:$16 sps:$4 sm:$0xff]  }
 0x12d   : > { %v6041_v36 = vld [vmem:[%s7933_s23 + $0x4] ss:$16 sps:$4 sm:$0xff]   ;;  %v6045_v38 = vld [vmem:[%s7933_s23] ss:$16 sps:$4 sm:$0xff]  }
 0x12e   : > { %4489 = vmatpush1.bf16.msra.mxu0 %v6021_v22  ;;  %v6043_v37 = vld [vmem:[%s7933_s23 + $0x204] ss:$16 sps:$4 sm:$0xff]   ;;  %v6046_v39 = vld [vmem:[%s7933_s23 + $0x200] ss:$16 sps:$4 sm:$0xff]  }
 0x12f   : > { %4532 = vmatpush1.bf16.msra.mxu1 %v6022_v23  ;;  %4490 = vmatprep.subr.bf16.mxu0 %v6023_v24  ;;  %v6047_v40 = vld [vmem:[%s7933_s23 + $0x1e4] ss:$16 sps:$4 sm:$0xff]   ;;  %v6051_v42 = vld [vmem:[%s7933_s23 + $0x1e0] ss:$16 sps:$4 sm:$0xff]  }
 0x130   : > { %4533 = vmatprep.subr.bf16.mxu1 %v6025_v25  ;;  %v6049_v41 = vld [vmem:[%s7933_s23 + $0x3e4] ss:$16 sps:$4 sm:$0xff]   ;;  %v6052_v43 = vld [vmem:[%s7933_s23 + $0x3e0] ss:$16 sps:$4 sm:$0xff]  }
 0x131   : > { %v6053_v44 = vld [vmem:[%s7933_s23 + $0x1c4] ss:$16 sps:$4 sm:$0xff]   ;;  %v6057_v46 = vld [vmem:[%s7933_s23 + $0x1c0] ss:$16 sps:$4 sm:$0xff]  }
 0x132   : > { %4491 = vmatpush1.bf16.msra.mxu0 %v6027_v26  ;;  %v6055_v45 = vld [vmem:[%s7933_s23 + $0x3c4] ss:$16 sps:$4 sm:$0xff]   ;;  %v6058_v47 = vld [vmem:[%s7933_s23 + $0x3c0] ss:$16 sps:$4 sm:$0xff]  }
 0x133   : > { %4534 = vmatpush1.bf16.msra.mxu1 %v6028_v27  ;;  %4492 = vmatprep.subr.bf16.mxu0 %v6029_v28  ;;  %v6059_v48 = vld [vmem:[%s7933_s23 + $0x1a4] ss:$16 sps:$4 sm:$0xff]   ;;  %v6063_v50 = vld [vmem:[%s7933_s23 + $0x1a0] ss:$16 sps:$4 sm:$0xff]  }
 0x134   : > { %4535 = vmatprep.subr.bf16.mxu1 %v6031_v29  ;;  %v6061_v49 = vld [vmem:[%s7933_s23 + $0x3a4] ss:$16 sps:$4 sm:$0xff]   ;;  %v6064_v51 = vld [vmem:[%s7933_s23 + $0x3a0] ss:$16 sps:$4 sm:$0xff]  }
 0x135   : > { %v6065_v52 = vld [vmem:[%s7933_s23 + $0x184] ss:$16 sps:$4 sm:$0xff]   ;;  %v6069_v54 = vld [vmem:[%s7933_s23 + $0x180] ss:$16 sps:$4 sm:$0xff]  }
 0x136   : > { %4493 = vmatpush1.bf16.msra.mxu0 %v6033_v30  ;;  %v6067_v53 = vld [vmem:[%s7933_s23 + $0x384] ss:$16 sps:$4 sm:$0xff]   ;;  %v6070_v55 = vld [vmem:[%s7933_s23 + $0x380] ss:$16 sps:$4 sm:$0xff]  }
 0x137   : > { %4536 = vmatpush1.bf16.msra.mxu1 %v6034_v31  ;;  %4494 = vmatprep.subr.bf16.mxu0 %v6035_v32  ;;  %v6071_v56 = vld [vmem:[%s7933_s23 + $0x164] ss:$16 sps:$4 sm:$0xff]   ;;  %v6075_v58 = vld [vmem:[%s7933_s23 + $0x160] ss:$16 sps:$4 sm:$0xff]  }
 0x138   : > { %4537 = vmatprep.subr.bf16.mxu1 %v6037_v33  ;;  %v6073_v57 = vld [vmem:[%s7933_s23 + $0x364] ss:$16 sps:$4 sm:$0xff]   ;;  %v6076_v59 = vld [vmem:[%s7933_s23 + $0x360] ss:$16 sps:$4 sm:$0xff]  }
 0x139   : > { %v6077_v60 = vld [vmem:[%s7933_s23 + $0x144] ss:$16 sps:$4 sm:$0xff]   ;;  %v6081_v62 = vld [vmem:[%s7933_s23 + $0x140] ss:$16 sps:$4 sm:$0xff]  }
 0x13a   : > { %4495 = vmatpush1.bf16.msra.mxu0 %v6039_v34  ;;  %v6079_v61 = vld [vmem:[%s7933_s23 + $0x344] ss:$16 sps:$4 sm:$0xff]   ;;  %v6082_v63 = vld [vmem:[%s7933_s23 + $0x340] ss:$16 sps:$4 sm:$0xff]  }
 0x13b   : > { %4538 = vmatpush1.bf16.msra.mxu1 %v6040_v35  ;;  %4496 = vmatprep.subr.bf16.mxu0 %v6041_v36  ;;  %v6083_v0 = vld [vmem:[%s7933_s23 + $0x124] ss:$16 sps:$4 sm:$0xff]   ;;  %v6087_v2 = vld [vmem:[%s7933_s23 + $0x120] ss:$16 sps:$4 sm:$0xff]  }
 0x13c   : > { %4539 = vmatprep.subr.bf16.mxu1 %v6043_v37  ;;  %v6085_v1 = vld [vmem:[%s7933_s23 + $0x324] ss:$16 sps:$4 sm:$0xff]   ;;  %v6088_v5 = vld [vmem:[%s7933_s23 + $0x320] ss:$16 sps:$4 sm:$0xff]   ;;  %v8043_v37 = vld [vmem:[%s8682_s0 + $0x18] sm:$0xff] }
 0x13d   : > { %v6089_v8 = vld [vmem:[%s7933_s23 + $0x104] ss:$16 sps:$4 sm:$0xff]   ;;  %v6093_v10 = vld [vmem:[%s7933_s23 + $0x100] ss:$16 sps:$4 sm:$0xff]  }
 0x13e   : > { %4497 = vmatpush1.bf16.msra.mxu0 %v6045_v38  ;;  %v6091_v9 = vld [vmem:[%s7933_s23 + $0x304] ss:$16 sps:$4 sm:$0xff]   ;;  %v6094_v11 = vld [vmem:[%s7933_s23 + $0x300] ss:$16 sps:$4 sm:$0xff]  }
 0x13f   : > { %4540 = vmatpush1.bf16.msra.mxu1 %v6046_v39  ;;  %4498 = vmatprep.subr.bf16.mxu0 %v6047_v40  ;;  %v6097_v12 = vld [vmem:[%s7933_s23 + $0x4e4] ss:$16 sps:$4 sm:$0xff]   ;;  %v6095_v16 = vld [vmem:[%s7933_s23 + $0x4e0] ss:$16 sps:$4 sm:$0xff]  }
 0x140   : > { %4541 = vmatprep.subr.bf16.mxu1 %v6049_v41  ;;  %v6100_v13 = vld [vmem:[%s7933_s23 + $0x6e4] ss:$16 sps:$4 sm:$0xff]   ;;  %v6098_v17 = vld [vmem:[%s7933_s23 + $0x6e0] ss:$16 sps:$4 sm:$0xff]  }
 0x141   : > { %v8006_v14 = vld [vmem:[%s8682_s0 + $0x10] sm:$0xff] }
 0x142   : > { %4499 = vmatpush2.bf16.msra.mxu0 %v6051_v42  ;;  %v8011_v15 = vld [vmem:[%s8682_s0 + $0x50] sm:$0xff]  ;;  %v8052_v42 = vld [vmem:[%s8682_s0 + $0x58] sm:$0xff] }
 0x143   : > { %4542 = vmatpush2.bf16.msra.mxu1 %v6052_v43  ;;  %4500 = vmatprep.subr.bf16.mxu0 %v6053_v44  ;;  %v6103_v18 = vld [vmem:[%s7933_s23 + $0x4c4] ss:$16 sps:$4 sm:$0xff]   ;;  %v8019_v20 = vcombine.high %v8006_v14, %v8011_v15  ;;  %v6101_v21 = vld [vmem:[%s7933_s23 + $0x4c0] ss:$16 sps:$4 sm:$0xff]   ;;  %v8056_v43 = vcombine.high %v8043_v37, %v8052_v42 }
 0x144   : > { %4543 = vmatprep.subr.bf16.mxu1 %v6055_v45  ;;  %v6106_v19 = vld [vmem:[%s7933_s23 + $0x6c4] ss:$16 sps:$4 sm:$0xff]   ;;  %v6104_v22 = vld [vmem:[%s7933_s23 + $0x6c0] ss:$16 sps:$4 sm:$0xff]  }
 0x145   : > { %v6109_v23 = vld [vmem:[%s7933_s23 + $0x4a4] ss:$16 sps:$4 sm:$0xff]   ;;  %v6107_v25 = vld [vmem:[%s7933_s23 + $0x4a0] ss:$16 sps:$4 sm:$0xff]  }
 0x146   : > { %4501 = vmatpush2.bf16.msra.mxu0 %v6057_v46  ;;  %v6112_v24 = vld [vmem:[%s7933_s23 + $0x6a4] ss:$16 sps:$4 sm:$0xff]   ;;  %v6110_v26 = vld [vmem:[%s7933_s23 + $0x6a0] ss:$16 sps:$4 sm:$0xff]  }
 0x147   : > { %4544 = vmatpush2.bf16.msra.mxu1 %v6058_v47  ;;  %4502 = vmatprep.subr.bf16.mxu0 %v6059_v48  ;;  %v6115_v27 = vld [vmem:[%s7933_s23 + $0x484] ss:$16 sps:$4 sm:$0xff]   ;;  %v6113_v29 = vld [vmem:[%s7933_s23 + $0x480] ss:$16 sps:$4 sm:$0xff]  }
 0x148   : > { %4545 = vmatprep.subr.bf16.mxu1 %v6061_v49  ;;  %v6118_v28 = vld [vmem:[%s7933_s23 + $0x684] ss:$16 sps:$4 sm:$0xff]   ;;  %v6116_v30 = vld [vmem:[%s7933_s23 + $0x680] ss:$16 sps:$4 sm:$0xff]  }
 0x149   : > { %v6121_v31 = vld [vmem:[%s7933_s23 + $0x464] ss:$16 sps:$4 sm:$0xff]   ;;  %v6119_v33 = vld [vmem:[%s7933_s23 + $0x460] ss:$16 sps:$4 sm:$0xff]  }
 0x14a   : > { %4503 = vmatpush2.bf16.msra.mxu0 %v6063_v50  ;;  %v6124_v32 = vld [vmem:[%s7933_s23 + $0x664] ss:$16 sps:$4 sm:$0xff]   ;;  %v6122_v34 = vld [vmem:[%s7933_s23 + $0x660] ss:$16 sps:$4 sm:$0xff]  }
 0x14b   : > { %4546 = vmatpush2.bf16.msra.mxu1 %v6064_v51  ;;  %4504 = vmatprep.subr.bf16.mxu0 %v6065_v52  ;;  %v6127_v35 = vld [vmem:[%s7933_s23 + $0x444] ss:$16 sps:$4 sm:$0xff]   ;;  %v6125_v38 = vld [vmem:[%s7933_s23 + $0x440] ss:$16 sps:$4 sm:$0xff]  }
 0x14c   : > { %4547 = vmatprep.subr.bf16.mxu1 %v6067_v53  ;;  %v6130_v36 = vld [vmem:[%s7933_s23 + $0x644] ss:$16 sps:$4 sm:$0xff]   ;;  %v6128_v39 = vld [vmem:[%s7933_s23 + $0x640] ss:$16 sps:$4 sm:$0xff]  }
 0x14d   : > { %v6133_v40 = vld [vmem:[%s7933_s23 + $0x424] ss:$16 sps:$4 sm:$0xff]   ;;  %v6131_v44 = vld [vmem:[%s7933_s23 + $0x420] ss:$16 sps:$4 sm:$0xff]  }
 0x14e   : > { %4505 = vmatpush2.bf16.msra.mxu0 %v6069_v54  ;;  %v6136_v41 = vld [vmem:[%s7933_s23 + $0x624] ss:$16 sps:$4 sm:$0xff]   ;;  %v6134_v45 = vld [vmem:[%s7933_s23 + $0x620] ss:$16 sps:$4 sm:$0xff]  }
 0x14f   : > { %4548 = vmatpush2.bf16.msra.mxu1 %v6070_v55  ;;  %4506 = vmatprep.subr.bf16.mxu0 %v6071_v56  ;;  %v6139_v46 = vld [vmem:[%s7933_s23 + $0x404] ss:$16 sps:$4 sm:$0xff]   ;;  %v6137_v48 = vld [vmem:[%s7933_s23 + $0x400] ss:$16 sps:$4 sm:$0xff]  }
 0x150   : > { %4549 = vmatprep.subr.bf16.mxu1 %v6073_v57  ;;  %v6142_v47 = vld [vmem:[%s7933_s23 + $0x604] ss:$16 sps:$4 sm:$0xff]   ;;  %v6140_v49 = vld [vmem:[%s7933_s23 + $0x600] ss:$16 sps:$4 sm:$0xff]  }
 0x151   : > { %v6145_v50 = vld [vmem:[%s7933_s23 + $0x5e4] ss:$16 sps:$4 sm:$0xff]   ;;  %v6143_v52 = vld [vmem:[%s7933_s23 + $0x5e0] ss:$16 sps:$4 sm:$0xff]  }
 0x152   : > { %4507 = vmatpush2.bf16.msra.mxu0 %v6075_v58  ;;  %v6148_v51 = vld [vmem:[%s7933_s23 + $0x7e4] ss:$16 sps:$4 sm:$0xff]   ;;  %v6146_v53 = vld [vmem:[%s7933_s23 + $0x7e0] ss:$16 sps:$4 sm:$0xff]  }
 0x153   : > { %4550 = vmatpush2.bf16.msra.mxu1 %v6076_v59  ;;  %4508 = vmatprep.subr.bf16.mxu0 %v6077_v60  ;;  %v6151_v54 = vld [vmem:[%s7933_s23 + $0x5c4] ss:$16 sps:$4 sm:$0xff]   ;;  %v6149_v56 = vld [vmem:[%s7933_s23 + $0x5c0] ss:$16 sps:$4 sm:$0xff]  }
 0x154   : > { %4551 = vmatprep.subr.bf16.mxu1 %v6079_v61  ;;  %v6154_v55 = vld [vmem:[%s7933_s23 + $0x7c4] ss:$16 sps:$4 sm:$0xff]   ;;  %v6152_v57 = vld [vmem:[%s7933_s23 + $0x7c0] ss:$16 sps:$4 sm:$0xff]  }
 0x155   : > { %v6157_v58 = vld [vmem:[%s7933_s23 + $0x5a4] ss:$16 sps:$4 sm:$0xff]   ;;  %v6155_v60 = vld [vmem:[%s7933_s23 + $0x5a0] ss:$16 sps:$4 sm:$0xff]  }
 0x156   : > { %4509 = vmatpush2.bf16.msra.mxu0 %v6081_v62  ;;  %v6160_v59 = vld [vmem:[%s7933_s23 + $0x7a4] ss:$16 sps:$4 sm:$0xff]   ;;  %v6158_v61 = vld [vmem:[%s7933_s23 + $0x7a0] ss:$16 sps:$4 sm:$0xff]  }
 0x157   : > { %4552 = vmatpush2.bf16.msra.mxu1 %v6082_v63  ;;  %4510 = vmatprep.subr.bf16.mxu0 %v6083_v0  ;;  %v6163_v62 = vld [vmem:[%s7933_s23 + $0x584] ss:$16 sps:$4 sm:$0xff]   ;;  %v6161_v0 = vld [vmem:[%s7933_s23 + $0x580] ss:$16 sps:$4 sm:$0xff]  }
 0x158   : > { %4553 = vmatprep.subr.bf16.mxu1 %v6085_v1  ;;  %v6166_v63 = vld [vmem:[%s7933_s23 + $0x784] ss:$16 sps:$4 sm:$0xff]   ;;  %v6164_v1 = vld [vmem:[%s7933_s23 + $0x780] ss:$16 sps:$4 sm:$0xff]  }
 0x15a   : > { %4511 = vmatpush2.bf16.msra.mxu0 %v6087_v2  ;;  %v6169_v2 = vld [vmem:[%s7933_s23 + $0x564] ss:$16 sps:$4 sm:$0xff]  }
 0x15b   : > { %4554 = vmatpush2.bf16.msra.mxu1 %v6088_v5  ;;  %4512 = vmatprep.subr.bf16.mxu0 %v6089_v8  ;;  %v6172_v5 = vld [vmem:[%s7933_s23 + $0x764] ss:$16 sps:$4 sm:$0xff]   ;;  %v6167_v8 = vld [vmem:[%s7933_s23 + $0x560] ss:$16 sps:$4 sm:$0xff]  }
 0x15c   : > { %4555 = vmatprep.subr.bf16.mxu1 %v6091_v9  ;;  %v6170_v9 = vld [vmem:[%s7933_s23 + $0x760] ss:$16 sps:$4 sm:$0xff]  }
 0x15e   : > { %4513 = vmatpush2.bf16.msra.mxu0 %v6093_v10  ;;  %v6175_v10 = vld [vmem:[%s7933_s23 + $0x544] ss:$16 sps:$4 sm:$0xff]  }
 0x15f   : > { %4556 = vmatpush2.bf16.msra.mxu1 %v6094_v11  ;;  %4568 = vmatprep.subr.bf16.mxu0 %v6097_v12  ;;  %v6178_v11 = vld [vmem:[%s7933_s23 + $0x744] ss:$16 sps:$4 sm:$0xff]   ;;  %v6173_v12 = vld [vmem:[%s7933_s23 + $0x540] ss:$16 sps:$4 sm:$0xff]  }
 0x160   : > { %4611 = vmatprep.subr.bf16.mxu1 %v6100_v13  ;;  %v6176_v13 = vld [vmem:[%s7933_s23 + $0x740] ss:$16 sps:$4 sm:$0xff]  }
 0x161   : > { %4515 = vmatmul.mubr.bf16.vlgmr.msra.gmra.mxu0 %v7922_v3 }
 0x162   : > { %4558 = vmatmul.mubr.bf16.vlgmr.msra.gmra.mxu1 %v7929_v6  ;;  %4569 = vmatpush1.bf16.msra.mxu0 %v6095_v16  ;;  %v6181_v16 = vld [vmem:[%s7933_s23 + $0x524] ss:$16 sps:$4 sm:$0xff]  }
 0x163   : > { %4612 = vmatpush1.bf16.msra.mxu1 %v6098_v17  ;;  %4570 = vmatprep.subr.bf16.mxu0 %v6103_v18  ;;  %v6184_v17 = vld [vmem:[%s7933_s23 + $0x724] ss:$16 sps:$4 sm:$0xff]   ;;  %v6179_v18 = vld [vmem:[%s7933_s23 + $0x520] ss:$16 sps:$4 sm:$0xff]  }
 0x164   : > { %4613 = vmatprep.subr.bf16.mxu1 %v6106_v19  ;;  %4600 = vmatprep.mubr.bf16.mxu0 %v8019_v20  ;;  %v6182_v19 = vld [vmem:[%s7933_s23 + $0x720] ss:$16 sps:$4 sm:$0xff]  }
 0x165   : > { %4643 = vmatprep.mubr.bf16.mxu1 %v8056_v43 }
 0x166   : > { %4571 = vmatpush1.bf16.msra.mxu0 %v6101_v21  ;;  %v6187_v21 = vld [vmem:[%s7933_s23 + $0x504] ss:$16 sps:$4 sm:$0xff]  }
 0x167   : > { %4614 = vmatpush1.bf16.msra.mxu1 %v6104_v22  ;;  %4572 = vmatprep.subr.bf16.mxu0 %v6109_v23  ;;  %v6190_v22 = vld [vmem:[%s7933_s23 + $0x704] ss:$16 sps:$4 sm:$0xff]   ;;  %v6185_v23 = vld [vmem:[%s7933_s23 + $0x500] ss:$16 sps:$4 sm:$0xff]  }
 0x168   : > { %4615 = vmatprep.subr.bf16.mxu1 %v6112_v24  ;;  %v6188_v24 = vld [vmem:[%s7933_s23 + $0x700] ss:$16 sps:$4 sm:$0xff]  }
 0x16a   : > { %4573 = vmatpush1.bf16.msra.mxu0 %v6107_v25  ;;  %v6193_v25 = vld [vmem:[%s7933_s23 + $0x8e4] ss:$16 sps:$4 sm:$0xff]  }
 0x16b   : > { %4616 = vmatpush1.bf16.msra.mxu1 %v6110_v26  ;;  %4574 = vmatprep.subr.bf16.mxu0 %v6115_v27  ;;  %v6196_v26 = vld [vmem:[%s7933_s23 + $0xae4] ss:$16 sps:$4 sm:$0xff]   ;;  %v6191_v27 = vld [vmem:[%s7933_s23 + $0x8e0] ss:$16 sps:$4 sm:$0xff]  }
 0x16c   : > { %4617 = vmatprep.subr.bf16.mxu1 %v6118_v28  ;;  %v6194_v28 = vld [vmem:[%s7933_s23 + $0xae0] ss:$16 sps:$4 sm:$0xff]  }
 0x16e   : > { %4575 = vmatpush1.bf16.msra.mxu0 %v6113_v29  ;;  %v8103_v29 = vcombine.low %v8006_v14, %v8011_v15  ;;  %v8119_v14 = vld [vmem:[%s8682_s0 + $0x60] sm:$0xff]  ;;  %v8124_v15 = vld [vmem:[%s8682_s0 + $0x28] sm:$0xff] }
 0x16f   : > { %4618 = vmatpush1.bf16.msra.mxu1 %v6116_v30  ;;  %4576 = vmatprep.subr.bf16.mxu0 %v6121_v31  ;;  %v8107_v30 = vcombine.low %v8043_v37, %v8052_v42  ;;  %v6199_v31 = vld [vmem:[%s7933_s23 + $0x8c4] ss:$16 sps:$4 sm:$0xff]   ;;  %v6197_v37 = vld [vmem:[%s7933_s23 + $0x8c0] ss:$16 sps:$4 sm:$0xff]  }
 0x170   : > { %4619 = vmatprep.subr.bf16.mxu1 %v6124_v32  ;;  %v6202_v32 = vld [vmem:[%s7933_s23 + $0xac4] ss:$16 sps:$4 sm:$0xff]   ;;  %v6206_v42 = vld [vmem:[%s7933_s23 + $0xaa0] ss:$16 sps:$4 sm:$0xff]  }
 0x172   : > { %4577 = vmatpush1.bf16.msra.mxu0 %v6119_v33  ;;  %v8114_v33 = vld [vmem:[%s8682_s0 + $0x20] sm:$0xff] }
 0x173   : > { %4620 = vmatpush1.bf16.msra.mxu1 %v6122_v34  ;;  %4578 = vmatprep.subr.bf16.mxu0 %v6127_v35  ;;  %v8129_v34 = vld [vmem:[%s8682_s0 + $0x68] sm:$0xff]  ;;  %v8133_v35 = vcombine.high %v8114_v33, %v8119_v14 }
 0x174   : > { %4621 = vmatprep.subr.bf16.mxu1 %v6130_v36  ;;  %v8137_v36 = vcombine.high %v8124_v15, %v8129_v34 }
 0x176   : > { %4579 = vmatpush1.bf16.msra.mxu0 %v6125_v38  ;;  %v6200_v38 = vld [vmem:[%s7933_s23 + $0xac0] ss:$16 sps:$4 sm:$0xff]  }
 0x177   : > { %4622 = vmatpush1.bf16.msra.mxu1 %v6128_v39  ;;  %4580 = vmatprep.subr.bf16.mxu0 %v6133_v40  ;;  %v6205_v39 = vld [vmem:[%s7933_s23 + $0x8a4] ss:$16 sps:$4 sm:$0xff]  }
 0x178   : > { %4623 = vmatprep.subr.bf16.mxu1 %v6136_v41  ;;  %v6208_v40 = vld [vmem:[%s7933_s23 + $0xaa4] ss:$16 sps:$4 sm:$0xff]   ;;  %v6203_v41 = vld [vmem:[%s7933_s23 + $0x8a0] ss:$16 sps:$4 sm:$0xff]  }
 0x17a   : > { %4581 = vmatpush1.bf16.msra.mxu0 %v6131_v44  ;;  %v6211_v44 = vld [vmem:[%s7933_s23 + $0x884] ss:$16 sps:$4 sm:$0xff]  }
 0x17b   : > { %4624 = vmatpush1.bf16.msra.mxu1 %v6134_v45  ;;  %4582 = vmatprep.subr.bf16.mxu0 %v6139_v46  ;;  %v6214_v45 = vld [vmem:[%s7933_s23 + $0xa84] ss:$16 sps:$4 sm:$0xff]   ;;  %v6209_v46 = vld [vmem:[%s7933_s23 + $0x880] ss:$16 sps:$4 sm:$0xff]  }
 0x17c   : > { %4625 = vmatprep.subr.bf16.mxu1 %v6142_v47  ;;  %v6212_v47 = vld [vmem:[%s7933_s23 + $0xa80] ss:$16 sps:$4 sm:$0xff]  }
 0x17e   : > { %4583 = vmatpush1.bf16.msra.mxu0 %v6137_v48  ;;  %v6217_v48 = vld [vmem:[%s7933_s23 + $0x864] ss:$16 sps:$4 sm:$0xff]  }
 0x17f   : > { %4626 = vmatpush1.bf16.msra.mxu1 %v6140_v49  ;;  %4584 = vmatprep.subr.bf16.mxu0 %v6145_v50  ;;  %v6220_v49 = vld [vmem:[%s7933_s23 + $0xa64] ss:$16 sps:$4 sm:$0xff]   ;;  %v6215_v50 = vld [vmem:[%s7933_s23 + $0x860] ss:$16 sps:$4 sm:$0xff]  }
 0x180   : > { %4627 = vmatprep.subr.bf16.mxu1 %v6148_v51  ;;  %v6218_v51 = vld [vmem:[%s7933_s23 + $0xa60] ss:$16 sps:$4 sm:$0xff]  }
 0x182   : > { %4585 = vmatpush2.bf16.msra.mxu0 %v6143_v52  ;;  %v6223_v52 = vld [vmem:[%s7933_s23 + $0x844] ss:$16 sps:$4 sm:$0xff]  }
 0x183   : > { %4628 = vmatpush2.bf16.msra.mxu1 %v6146_v53  ;;  %4586 = vmatprep.subr.bf16.mxu0 %v6151_v54  ;;  %v6226_v53 = vld [vmem:[%s7933_s23 + $0xa44] ss:$16 sps:$4 sm:$0xff]   ;;  %v6221_v54 = vld [vmem:[%s7933_s23 + $0x840] ss:$16 sps:$4 sm:$0xff]  }
 0x184   : > { %4629 = vmatprep.subr.bf16.mxu1 %v6154_v55  ;;  %v6224_v55 = vld [vmem:[%s7933_s23 + $0xa40] ss:$16 sps:$4 sm:$0xff]  }
 0x186   : > { %4587 = vmatpush2.bf16.msra.mxu0 %v6149_v56  ;;  %v6229_v56 = vld [vmem:[%s7933_s23 + $0x824] ss:$16 sps:$4 sm:$0xff]  }
 0x187   : > { %4630 = vmatpush2.bf16.msra.mxu1 %v6152_v57  ;;  %4588 = vmatprep.subr.bf16.mxu0 %v6157_v58  ;;  %v6232_v57 = vld [vmem:[%s7933_s23 + $0xa24] ss:$16 sps:$4 sm:$0xff]   ;;  %v6227_v58 = vld [vmem:[%s7933_s23 + $0x820] ss:$16 sps:$4 sm:$0xff]  }
 0x188   : > { %4631 = vmatprep.subr.bf16.mxu1 %v6160_v59  ;;  %v6230_v59 = vld [vmem:[%s7933_s23 + $0xa20] ss:$16 sps:$4 sm:$0xff]  }
 0x18a   : > { %4589 = vmatpush2.bf16.msra.mxu0 %v6155_v60  ;;  %v6235_v60 = vld [vmem:[%s7933_s23 + $0x804] ss:$16 sps:$4 sm:$0xff]  }
 0x18b   : > { %4632 = vmatpush2.bf16.msra.mxu1 %v6158_v61  ;;  %4590 = vmatprep.subr.bf16.mxu0 %v6163_v62  ;;  %v6238_v61 = vld [vmem:[%s7933_s23 + $0xa04] ss:$16 sps:$4 sm:$0xff]   ;;  %v6233_v62 = vld [vmem:[%s7933_s23 + $0x800] ss:$16 sps:$4 sm:$0xff]  }
 0x18c   : > { %4633 = vmatprep.subr.bf16.mxu1 %v6166_v63  ;;  %v6236_v63 = vld [vmem:[%s7933_s23 + $0xa00] ss:$16 sps:$4 sm:$0xff]  }
 0x18e   : > { %4591 = vmatpush2.bf16.msra.mxu0 %v6161_v0  ;;  %v6241_v0 = vld [vmem:[%s7933_s23 + $0x9e4] ss:$16 sps:$4 sm:$0xff]  }
 0x18f   : > { %4634 = vmatpush2.bf16.msra.mxu1 %v6164_v1  ;;  %4592 = vmatprep.subr.bf16.mxu0 %v6169_v2  ;;  %v6244_v1 = vld [vmem:[%s7933_s23 + $0xbe4] ss:$16 sps:$4 sm:$0xff]   ;;  %v6239_v2 = vld [vmem:[%s7933_s23 + $0x9e0] ss:$16 sps:$4 sm:$0xff]  }
 0x190   : > { %4635 = vmatprep.subr.bf16.mxu1 %v6172_v5  ;;  %v6242_v5 = vld [vmem:[%s7933_s23 + $0xbe0] ss:$16 sps:$4 sm:$0xff]  }
 0x192   : > { %4593 = vmatpush2.bf16.msra.mxu0 %v6167_v8  ;;  %v6247_v8 = vld [vmem:[%s7933_s23 + $0x9c4] ss:$16 sps:$4 sm:$0xff]  }
 0x193   : > { %4636 = vmatpush2.bf16.msra.mxu1 %v6170_v9  ;;  %4594 = vmatprep.subr.bf16.mxu0 %v6175_v10  ;;  %v6250_v9 = vld [vmem:[%s7933_s23 + $0xbc4] ss:$16 sps:$4 sm:$0xff]   ;;  %v6245_v10 = vld [vmem:[%s7933_s23 + $0x9c0] ss:$16 sps:$4 sm:$0xff]  }
 0x194   : > { %4637 = vmatprep.subr.bf16.mxu1 %v6178_v11  ;;  %v6248_v11 = vld [vmem:[%s7933_s23 + $0xbc0] ss:$16 sps:$4 sm:$0xff]  }
 0x196   : > { %4595 = vmatpush2.bf16.msra.mxu0 %v6173_v12  ;;  %v6253_v12 = vld [vmem:[%s7933_s23 + $0x9a4] ss:$16 sps:$4 sm:$0xff]  }
 0x197   : > { %4638 = vmatpush2.bf16.msra.mxu1 %v6176_v13  ;;  %4596 = vmatprep.subr.bf16.mxu0 %v6181_v16  ;;  %v6256_v13 = vld [vmem:[%s7933_s23 + $0xba4] ss:$16 sps:$4 sm:$0xff]   ;;  %v6251_v16 = vld [vmem:[%s7933_s23 + $0x9a0] ss:$16 sps:$4 sm:$0xff]  }
 0x198   : > { %4639 = vmatprep.subr.bf16.mxu1 %v6184_v17  ;;  %v6254_v17 = vld [vmem:[%s7933_s23 + $0xba0] ss:$16 sps:$4 sm:$0xff]  }
 0x19a   : > { %4597 = vmatpush2.bf16.msra.mxu0 %v6179_v18  ;;  %v6259_v18 = vld [vmem:[%s7933_s23 + $0x984] ss:$16 sps:$4 sm:$0xff]  }
 0x19b   : > { %4640 = vmatpush2.bf16.msra.mxu1 %v6182_v19  ;;  %4598 = vmatprep.subr.bf16.mxu0 %v6187_v21  ;;  %v6262_v19 = vld [vmem:[%s7933_s23 + $0xb84] ss:$16 sps:$4 sm:$0xff]   ;;  %v6257_v21 = vld [vmem:[%s7933_s23 + $0x980] ss:$16 sps:$4 sm:$0xff]  }
 0x19c   : > { %4641 = vmatprep.subr.bf16.mxu1 %v6190_v22  ;;  %v6260_v22 = vld [vmem:[%s7933_s23 + $0xb80] ss:$16 sps:$4 sm:$0xff]  }
 0x19e   : > { %4599 = vmatpush2.bf16.msra.mxu0 %v6185_v23  ;;  %v6265_v23 = vld [vmem:[%s7933_s23 + $0x964] ss:$16 sps:$4 sm:$0xff]  }
 0x19f   : > { %4642 = vmatpush2.bf16.msra.mxu1 %v6188_v24  ;;  %4654 = vmatprep.subr.bf16.mxu0 %v6193_v25  ;;  %v6268_v24 = vld [vmem:[%s7933_s23 + $0xb64] ss:$16 sps:$4 sm:$0xff]   ;;  %v6263_v25 = vld [vmem:[%s7933_s23 + $0x960] ss:$16 sps:$4 sm:$0xff]  }
 0x1a0   : > { %4697 = vmatprep.subr.bf16.mxu1 %v6196_v26  ;;  %v6266_v26 = vld [vmem:[%s7933_s23 + $0xb60] ss:$16 sps:$4 sm:$0xff]  }
 0x1a1   : > { %4601 = vmatmul.mubr.bf16.vlgmr.msra.gmra.mxu0 %v8103_v29 }
 0x1a2   : > { %4644 = vmatmul.mubr.bf16.vlgmr.msra.gmra.mxu1 %v8107_v30  ;;  %4655 = vmatpush1.bf16.msra.mxu0 %v6191_v27  ;;  %v6271_v27 = vld [vmem:[%s7933_s23 + $0x944] ss:$16 sps:$4 sm:$0xff]  }
 0x1a3   : > { %4698 = vmatpush1.bf16.msra.mxu1 %v6194_v28  ;;  %4656 = vmatprep.subr.bf16.mxu0 %v6199_v31  ;;  %v6274_v28 = vld [vmem:[%s7933_s23 + $0xb44] ss:$16 sps:$4 sm:$0xff]   ;;  %v6269_v31 = vld [vmem:[%s7933_s23 + $0x940] ss:$16 sps:$4 sm:$0xff]  }
 0x1a4   : > { %4699 = vmatprep.subr.bf16.mxu1 %v6202_v32  ;;  %4686 = vmatprep.mubr.bf16.mxu0 %v8133_v35  ;;  %v6272_v32 = vld [vmem:[%s7933_s23 + $0xb40] ss:$16 sps:$4 sm:$0xff]  }
 0x1a5   : > { %4729 = vmatprep.mubr.bf16.mxu1 %v8137_v36 }
 0x1a6   : > { %4657 = vmatpush1.bf16.msra.mxu0 %v6197_v37  ;;  %v6277_v37 = vld [vmem:[%s7933_s23 + $0x924] ss:$16 sps:$4 sm:$0xff]  }
 0x1a7   : > { %4700 = vmatpush1.bf16.msra.mxu1 %v6200_v38  ;;  %4658 = vmatprep.subr.bf16.mxu0 %v6205_v39  ;;  %v6280_v38 = vld [vmem:[%s7933_s23 + $0xb24] ss:$16 sps:$4 sm:$0xff]   ;;  %v6275_v39 = vld [vmem:[%s7933_s23 + $0x920] ss:$16 sps:$4 sm:$0xff]  }
 0x1a8   : > { %4701 = vmatprep.subr.bf16.mxu1 %v6208_v40  ;;  %v6278_v40 = vld [vmem:[%s7933_s23 + $0xb20] ss:$16 sps:$4 sm:$0xff]  }
 0x1aa   : > { %4659 = vmatpush1.bf16.msra.mxu0 %v6203_v41  ;;  %v6283_v41 = vld [vmem:[%s7933_s23 + $0x904] ss:$16 sps:$4 sm:$0xff]  }
 0x1ab   : > { %4702 = vmatpush1.bf16.msra.mxu1 %v6206_v42  ;;  %4660 = vmatprep.subr.bf16.mxu0 %v6211_v44  ;;  %v6286_v42 = vld [vmem:[%s7933_s23 + $0xb04] ss:$16 sps:$4 sm:$0xff]   ;;  %v6281_v44 = vld [vmem:[%s7933_s23 + $0x900] ss:$16 sps:$4 sm:$0xff]  }
 0x1ac   : > { %4703 = vmatprep.subr.bf16.mxu1 %v6214_v45  ;;  %v6284_v45 = vld [vmem:[%s7933_s23 + $0xb00] ss:$16 sps:$4 sm:$0xff]  }
 0x1ae   : > { %4661 = vmatpush1.bf16.msra.mxu0 %v6209_v46  ;;  %v6289_v46 = vld [vmem:[%s7933_s23 + $0xce4] ss:$16 sps:$4 sm:$0xff]  }
 0x1af   : > { %4704 = vmatpush1.bf16.msra.mxu1 %v6212_v47  ;;  %4662 = vmatprep.subr.bf16.mxu0 %v6217_v48  ;;  %v6292_v47 = vld [vmem:[%s7933_s23 + $0xee4] ss:$16 sps:$4 sm:$0xff]  }
 0x1b0   : > { %4705 = vmatprep.subr.bf16.mxu1 %v6220_v49  ;;  %v8206_v48 = vld [vmem:[%s8682_s0 + $0x30] sm:$0xff] }
 0x1b1   : > { %v6287_v49 = vld [vmem:[%s7933_s23 + $0xce0] ss:$16 sps:$4 sm:$0xff]  }
 0x1b2   : > { %4663 = vmatpush1.bf16.msra.mxu0 %v6215_v50  ;;  %v8212_v50 = vld [vmem:[%s8682_s0 + $0x70] sm:$0xff] }
 0x1b3   : > { %4706 = vmatpush1.bf16.msra.mxu1 %v6218_v51  ;;  %4664 = vmatprep.subr.bf16.mxu0 %v6223_v52  ;;  %v8217_v51 = vld [vmem:[%s8682_s0 + $0x38] sm:$0xff]  ;;  %v8221_v52 = vcombine.low %v8114_v33, %v8119_v14  ;;  %v6298_v33 = vld [vmem:[%s7933_s23 + $0xec4] ss:$16 sps:$4 sm:$0xff]   ;;  %v8237_v14 = vcombine.high %v8206_v48, %v8212_v50 }
 0x1b4   : > { %4707 = vmatprep.subr.bf16.mxu1 %v6226_v53  ;;  %v8225_v53 = vcombine.low %v8124_v15, %v8129_v34  ;;  %v6293_v34 = vld [vmem:[%s7933_s23 + $0xcc0] ss:$16 sps:$4 sm:$0xff]  }
 0x1b6   : > { %4665 = vmatpush1.bf16.msra.mxu0 %v6221_v54  ;;  %v8230_v54 = vld [vmem:[%s8682_s0 + $0x78] sm:$0xff] }
 0x1b7   : > { %4708 = vmatpush1.bf16.msra.mxu1 %v6224_v55  ;;  %4666 = vmatprep.subr.bf16.mxu0 %v6229_v56  ;;  %v6290_v55 = vld [vmem:[%s7933_s23 + $0xee0] ss:$16 sps:$4 sm:$0xff]   ;;  %v6295_v56 = vld [vmem:[%s7933_s23 + $0xcc4] ss:$16 sps:$4 sm:$0xff]   ;;  %v8241_v15 = vcombine.high %v8217_v51, %v8230_v54 }
 0x1b8   : > { %4709 = vmatprep.subr.bf16.mxu1 %v6232_v57  ;;  %v6296_v57 = vld [vmem:[%s7933_s23 + $0xec0] ss:$16 sps:$4 sm:$0xff]  }
 0x1ba   : > { %4667 = vmatpush1.bf16.msra.mxu0 %v6227_v58  ;;  %v6301_v58 = vld [vmem:[%s7933_s23 + $0xca4] ss:$16 sps:$4 sm:$0xff]  }
 0x1bb   : > { %4710 = vmatpush1.bf16.msra.mxu1 %v6230_v59  ;;  %4668 = vmatprep.subr.bf16.mxu0 %v6235_v60  ;;  %v6304_v59 = vld [vmem:[%s7933_s23 + $0xea4] ss:$16 sps:$4 sm:$0xff]   ;;  %v6299_v60 = vld [vmem:[%s7933_s23 + $0xca0] ss:$16 sps:$4 sm:$0xff]  }
 0x1bc   : > { %4711 = vmatprep.subr.bf16.mxu1 %v6238_v61  ;;  %v6302_v61 = vld [vmem:[%s7933_s23 + $0xea0] ss:$16 sps:$4 sm:$0xff]  }
 0x1be   : > { %4669 = vmatpush1.bf16.msra.mxu0 %v6233_v62  ;;  %v6307_v62 = vld [vmem:[%s7933_s23 + $0xc84] ss:$16 sps:$4 sm:$0xff]  }
 0x1bf   : > { %4712 = vmatpush1.bf16.msra.mxu1 %v6236_v63  ;;  %4670 = vmatprep.subr.bf16.mxu0 %v6241_v0  ;;  %v6310_v63 = vld [vmem:[%s7933_s23 + $0xe84] ss:$16 sps:$4 sm:$0xff]   ;;  %v6305_v0 = vld [vmem:[%s7933_s23 + $0xc80] ss:$16 sps:$4 sm:$0xff]  }
 0x1c0   : > { %4713 = vmatprep.subr.bf16.mxu1 %v6244_v1  ;;  %v6308_v1 = vld [vmem:[%s7933_s23 + $0xe80] ss:$16 sps:$4 sm:$0xff]  }
 0x1c2   : > { %4671 = vmatpush2.bf16.msra.mxu0 %v6239_v2  ;;  %v6313_v2 = vld [vmem:[%s7933_s23 + $0xc64] ss:$16 sps:$4 sm:$0xff]  }
 0x1c3   : > { %4714 = vmatpush2.bf16.msra.mxu1 %v6242_v5  ;;  %4672 = vmatprep.subr.bf16.mxu0 %v6247_v8  ;;  %v6316_v5 = vld [vmem:[%s7933_s23 + $0xe64] ss:$16 sps:$4 sm:$0xff]   ;;  %v6311_v8 = vld [vmem:[%s7933_s23 + $0xc60] ss:$16 sps:$4 sm:$0xff]  }
 0x1c4   : > { %4715 = vmatprep.subr.bf16.mxu1 %v6250_v9  ;;  %v6314_v9 = vld [vmem:[%s7933_s23 + $0xe60] ss:$16 sps:$4 sm:$0xff]  }
 0x1c6   : > { %4673 = vmatpush2.bf16.msra.mxu0 %v6245_v10  ;;  %v6319_v10 = vld [vmem:[%s7933_s23 + $0xc44] ss:$16 sps:$4 sm:$0xff]  }
 0x1c7   : > { %4716 = vmatpush2.bf16.msra.mxu1 %v6248_v11  ;;  %4674 = vmatprep.subr.bf16.mxu0 %v6253_v12  ;;  %v6322_v11 = vld [vmem:[%s7933_s23 + $0xe44] ss:$16 sps:$4 sm:$0xff]   ;;  %v6317_v12 = vld [vmem:[%s7933_s23 + $0xc40] ss:$16 sps:$4 sm:$0xff]  }
 0x1c8   : > { %4717 = vmatprep.subr.bf16.mxu1 %v6256_v13  ;;  %v6320_v13 = vld [vmem:[%s7933_s23 + $0xe40] ss:$16 sps:$4 sm:$0xff]  }
 0x1ca   : > { %4675 = vmatpush2.bf16.msra.mxu0 %v6251_v16  ;;  %v6325_v16 = vld [vmem:[%s7933_s23 + $0xc24] ss:$16 sps:$4 sm:$0xff]  }
 0x1cb   : > { %4718 = vmatpush2.bf16.msra.mxu1 %v6254_v17  ;;  %4676 = vmatprep.subr.bf16.mxu0 %v6259_v18  ;;  %v6328_v17 = vld [vmem:[%s7933_s23 + $0xe24] ss:$16 sps:$4 sm:$0xff]   ;;  %v6323_v18 = vld [vmem:[%s7933_s23 + $0xc20] ss:$16 sps:$4 sm:$0xff]  }
 0x1cc   : > { %4719 = vmatprep.subr.bf16.mxu1 %v6262_v19  ;;  %v6326_v19 = vld [vmem:[%s7933_s23 + $0xe20] ss:$16 sps:$4 sm:$0xff]  }
 0x1ce   : > { %4677 = vmatpush2.bf16.msra.mxu0 %v6257_v21  ;;  %v6331_v21 = vld [vmem:[%s7933_s23 + $0xc04] ss:$16 sps:$4 sm:$0xff]  }
 0x1cf   : > { %4720 = vmatpush2.bf16.msra.mxu1 %v6260_v22  ;;  %4678 = vmatprep.subr.bf16.mxu0 %v6265_v23  ;;  %v6334_v22 = vld [vmem:[%s7933_s23 + $0xe04] ss:$16 sps:$4 sm:$0xff]   ;;  %v6329_v23 = vld [vmem:[%s7933_s23 + $0xc00] ss:$16 sps:$4 sm:$0xff]  }
 0x1d0   : > { %4721 = vmatprep.subr.bf16.mxu1 %v6268_v24  ;;  %v6332_v24 = vld [vmem:[%s7933_s23 + $0xe00] ss:$16 sps:$4 sm:$0xff]  }
 0x1d2   : > { %4679 = vmatpush2.bf16.msra.mxu0 %v6263_v25  ;;  %v6337_v25 = vld [vmem:[%s7933_s23 + $0xde4] ss:$16 sps:$4 sm:$0xff]  }
 0x1d3   : > { %4722 = vmatpush2.bf16.msra.mxu1 %v6266_v26  ;;  %4680 = vmatprep.subr.bf16.mxu0 %v6271_v27  ;;  %v6340_v26 = vld [vmem:[%s7933_s23 + $0xfe4] ss:$16 sps:$4 sm:$0xff]   ;;  %v6335_v27 = vld [vmem:[%s7933_s23 + $0xde0] ss:$16 sps:$4 sm:$0xff]  }
 0x1d4   : > { %4723 = vmatprep.subr.bf16.mxu1 %v6274_v28  ;;  %v6338_v28 = vld [vmem:[%s7933_s23 + $0xfe0] ss:$16 sps:$4 sm:$0xff]  }
 0x1d6   : > { %4681 = vmatpush2.bf16.msra.mxu0 %v6269_v31  ;;  %v6343_v31 = vld [vmem:[%s7933_s23 + $0xdc4] ss:$16 sps:$4 sm:$0xff]  }
 0x1d7   : > { %4724 = vmatpush2.bf16.msra.mxu1 %v6272_v32  ;;  %4682 = vmatprep.subr.bf16.mxu0 %v6277_v37  ;;  %v6346_v32 = vld [vmem:[%s7933_s23 + $0xfc4] ss:$16 sps:$4 sm:$0xff]   ;;  %v6341_v37 = vld [vmem:[%s7933_s23 + $0xdc0] ss:$16 sps:$4 sm:$0xff]  }
 0x1d8   : > { %4725 = vmatprep.subr.bf16.mxu1 %v6280_v38  ;;  %v6344_v38 = vld [vmem:[%s7933_s23 + $0xfc0] ss:$16 sps:$4 sm:$0xff]  }
 0x1da   : > { %4683 = vmatpush2.bf16.msra.mxu0 %v6275_v39  ;;  %v6349_v39 = vld [vmem:[%s7933_s23 + $0xda4] ss:$16 sps:$4 sm:$0xff]  }
 0x1db   : > { %4726 = vmatpush2.bf16.msra.mxu1 %v6278_v40  ;;  %4684 = vmatprep.subr.bf16.mxu0 %v6283_v41  ;;  %v6352_v40 = vld [vmem:[%s7933_s23 + $0xfa4] ss:$16 sps:$4 sm:$0xff]   ;;  %v6347_v41 = vld [vmem:[%s7933_s23 + $0xda0] ss:$16 sps:$4 sm:$0xff]  }
 0x1dc   : > { %4727 = vmatprep.subr.bf16.mxu1 %v6286_v42  ;;  %v6350_v42 = vld [vmem:[%s7933_s23 + $0xfa0] ss:$16 sps:$4 sm:$0xff]  }
 0x1de   : > { %4685 = vmatpush2.bf16.msra.mxu0 %v6281_v44  ;;  %v6355_v44 = vld [vmem:[%s7933_s23 + $0xd84] ss:$16 sps:$4 sm:$0xff]  }
 0x1df   : > { %4728 = vmatpush2.bf16.msra.mxu1 %v6284_v45  ;;  %4740 = vmatprep.subr.bf16.mxu0 %v6289_v46  ;;  %v6358_v45 = vld [vmem:[%s7933_s23 + $0xf84] ss:$16 sps:$4 sm:$0xff]   ;;  %v6353_v46 = vld [vmem:[%s7933_s23 + $0xd80] ss:$16 sps:$4 sm:$0xff]  }
 0x1e0   : > { %4783 = vmatprep.subr.bf16.mxu1 %v6292_v47  ;;  %v6356_v47 = vld [vmem:[%s7933_s23 + $0xf80] ss:$16 sps:$4 sm:$0xff]  }
 0x1e1   : > { %4687 = vmatmul.mubr.bf16.vlgmr.msra.gmra.mxu0 %v8221_v52 }
 0x1e2   : > { %4730 = vmatmul.mubr.bf16.vlgmr.msra.gmra.mxu1 %v8225_v53  ;;  %4741 = vmatpush1.bf16.msra.mxu0 %v6287_v49  ;;  %v6361_v49 = vld [vmem:[%s7933_s23 + $0xd64] ss:$16 sps:$4 sm:$0xff]  }
 0x1e3   : > { %4784 = vmatpush1.bf16.msra.mxu1 %v6290_v55  ;;  %4742 = vmatprep.subr.bf16.mxu0 %v6295_v56  ;;  %v6364_v55 = vld [vmem:[%s7933_s23 + $0xf64] ss:$16 sps:$4 sm:$0xff]   ;;  %v6359_v56 = vld [vmem:[%s7933_s23 + $0xd60] ss:$16 sps:$4 sm:$0xff]  }
 0x1e4   : > { %4785 = vmatprep.subr.bf16.mxu1 %v6298_v33  ;;  %4772 = vmatprep.mubr.bf16.mxu0 %v8237_v14  ;;  %v6362_v33 = vld [vmem:[%s7933_s23 + $0xf60] ss:$16 sps:$4 sm:$0xff]  }
 0x1e5   : > { %4815 = vmatprep.mubr.bf16.mxu1 %v8241_v15 }
 0x1e6   : > { %4743 = vmatpush1.bf16.msra.mxu0 %v6293_v34  ;;  %v6367_v34 = vld [vmem:[%s7933_s23 + $0xd44] ss:$16 sps:$4 sm:$0xff]  }
 0x1e7   : > { %4786 = vmatpush1.bf16.msra.mxu1 %v6296_v57  ;;  %4744 = vmatprep.subr.bf16.mxu0 %v6301_v58  ;;  %v6370_v57 = vld [vmem:[%s7933_s23 + $0xf44] ss:$16 sps:$4 sm:$0xff]   ;;  %v6365_v58 = vld [vmem:[%s7933_s23 + $0xd40] ss:$16 sps:$4 sm:$0xff]  }
 0x1e8   : > { %4787 = vmatprep.subr.bf16.mxu1 %v6304_v59  ;;  %v6368_v59 = vld [vmem:[%s7933_s23 + $0xf40] ss:$16 sps:$4 sm:$0xff]  }
 0x1ea   : > { %4745 = vmatpush1.bf16.msra.mxu0 %v6299_v60  ;;  %v6373_v60 = vld [vmem:[%s7933_s23 + $0xd24] ss:$16 sps:$4 sm:$0xff]  }
 0x1eb   : > { %4788 = vmatpush1.bf16.msra.mxu1 %v6302_v61  ;;  %4746 = vmatprep.subr.bf16.mxu0 %v6307_v62  ;;  %v6376_v61 = vld [vmem:[%s7933_s23 + $0xf24] ss:$16 sps:$4 sm:$0xff]   ;;  %v6371_v62 = vld [vmem:[%s7933_s23 + $0xd20] ss:$16 sps:$4 sm:$0xff]  }
 0x1ec   : > { %4789 = vmatprep.subr.bf16.mxu1 %v6310_v63  ;;  %v6374_v63 = vld [vmem:[%s7933_s23 + $0xf20] ss:$16 sps:$4 sm:$0xff]  }
 0x1ee   : > { %4747 = vmatpush1.bf16.msra.mxu0 %v6305_v0  ;;  %v6379_v0 = vld [vmem:[%s7933_s23 + $0xd04] ss:$16 sps:$4 sm:$0xff]  }
 0x1ef   : > { %4790 = vmatpush1.bf16.msra.mxu1 %v6308_v1  ;;  %4748 = vmatprep.subr.bf16.mxu0 %v6313_v2  ;;  %v6382_v1 = vld [vmem:[%s7933_s23 + $0xf04] ss:$16 sps:$4 sm:$0xff]   ;;  %v6377_v2 = vld [vmem:[%s7933_s23 + $0xd00] ss:$16 sps:$4 sm:$0xff]  }
 0x1f0   : > { %4791 = vmatprep.subr.bf16.mxu1 %v6316_v5  ;;  %v6380_v5 = vld [vmem:[%s7933_s23 + $0xf00] ss:$16 sps:$4 sm:$0xff]  }
 0x1f2   : > { %4749 = vmatpush1.bf16.msra.mxu0 %v6311_v8  ;;  %v6385_v8 = vld [vmem:[%s7933_s23 + $0xec] ss:$16 sps:$4 sm:$0xff]  }
 0x1f3   : > { %4792 = vmatpush1.bf16.msra.mxu1 %v6314_v9  ;;  %4750 = vmatprep.subr.bf16.mxu0 %v6319_v10  ;;  %v6388_v9 = vld [vmem:[%s7933_s23 + $0x2ec] ss:$16 sps:$4 sm:$0xff]   ;;  %v8309_v10 = vcombine.low %v8206_v48, %v8212_v50  ;;  %v6389_v48 = vld [vmem:[%s7933_s23 + $0xc8] ss:$16 sps:$4 sm:$0xff]  }
 0x1f4   : > { %4793 = vmatprep.subr.bf16.mxu1 %v6322_v11  ;;  %v8313_v11 = vcombine.low %v8217_v51, %v8230_v54  ;;  %v6392_v50 = vld [vmem:[%s7933_s23 + $0x2c8] ss:$16 sps:$4 sm:$0xff]   ;;  %v6397_v51 = vld [vmem:[%s7933_s23 + $0xac] ss:$16 sps:$4 sm:$0xff]  }
 0x1f5   : > { %v6400_v54 = vld [vmem:[%s7933_s23 + $0x2ac] ss:$16 sps:$4 sm:$0xff]  }
 0x1f6   : > { %4751 = vmatpush1.bf16.msra.mxu0 %v6317_v12  ;;  %v6383_v12 = vld [vmem:[%s7933_s23 + $0xe8] ss:$16 sps:$4 sm:$0xff]  }
 0x1f7   : > { %4794 = vmatpush1.bf16.msra.mxu1 %v6320_v13  ;;  %4752 = vmatprep.subr.bf16.mxu0 %v6325_v16  ;;  %v6386_v13 = vld [vmem:[%s7933_s23 + $0x2e8] ss:$16 sps:$4 sm:$0xff]   ;;  %v6391_v16 = vld [vmem:[%s7933_s23 + $0xcc] ss:$16 sps:$4 sm:$0xff]  }
 0x1f8   : > { %4795 = vmatprep.subr.bf16.mxu1 %v6328_v17  ;;  %v6394_v17 = vld [vmem:[%s7933_s23 + $0x2cc] ss:$16 sps:$4 sm:$0xff]  }
 0x1fa   : > { %4753 = vmatpush1.bf16.msra.mxu0 %v6323_v18  ;;  %v6395_v18 = vld [vmem:[%s7933_s23 + $0xa8] ss:$16 sps:$4 sm:$0xff]  }
 0x1fb   : > { %4796 = vmatpush1.bf16.msra.mxu1 %v6326_v19  ;;  %4754 = vmatprep.subr.bf16.mxu0 %v6331_v21  ;;  %v6398_v19 = vld [vmem:[%s7933_s23 + $0x2a8] ss:$16 sps:$4 sm:$0xff]   ;;  %v6403_v21 = vld [vmem:[%s7933_s23 + $0x8c] ss:$16 sps:$4 sm:$0xff]  }
 0x1fc   : > { %4797 = vmatprep.subr.bf16.mxu1 %v6334_v22  ;;  %v6406_v22 = vld [vmem:[%s7933_s23 + $0x28c] ss:$16 sps:$4 sm:$0xff]  }
 0x1fe   : > { %4755 = vmatpush1.bf16.msra.mxu0 %v6329_v23  ;;  %v6401_v23 = vld [vmem:[%s7933_s23 + $0x88] ss:$16 sps:$4 sm:$0xff]  }
 0x1ff   : > { %4798 = vmatpush1.bf16.msra.mxu1 %v6332_v24  ;;  %4756 = vmatprep.subr.bf16.mxu0 %v6337_v25  ;;  %v6404_v24 = vld [vmem:[%s7933_s23 + $0x288] ss:$16 sps:$4 sm:$0xff]  }
 0x200   : > { %4799 = vmatprep.subr.bf16.mxu1 %v6340_v26  ;;  %v6407_v25 = vld [vmem:[%s7933_s23 + $0x68] ss:$16 sps:$4 sm:$0xff]  }
 0x201   : > { %v6410_v26 = vld [vmem:[%s7933_s23 + $0x268] ss:$16 sps:$4 sm:$0xff]  }
 0x202   : > { %4757 = vmatpush2.bf16.msra.mxu0 %v6335_v27  ;;  %v6415_v27 = vld [vmem:[%s7933_s23 + $0x4c] ss:$16 sps:$4 sm:$0xff]  }
 0x203   : > { %4800 = vmatpush2.bf16.msra.mxu1 %v6338_v28  ;;  %4758 = vmatprep.subr.bf16.mxu0 %v6343_v31  ;;  %v6418_v28 = vld [vmem:[%s7933_s23 + $0x24c] ss:$16 sps:$4 sm:$0xff]   ;;  %v6413_v31 = vld [vmem:[%s7933_s23 + $0x48] ss:$16 sps:$4 sm:$0xff]  }
 0x204   : > { %4801 = vmatprep.subr.bf16.mxu1 %v6346_v32  ;;  %v6416_v32 = vld [vmem:[%s7933_s23 + $0x248] ss:$16 sps:$4 sm:$0xff]  }
 0x206   : > { %4759 = vmatpush2.bf16.msra.mxu0 %v6341_v37  ;;  %v6421_v37 = vld [vmem:[%s7933_s23 + $0x2c] ss:$16 sps:$4 sm:$0xff]  }
 0x207   : > { %4802 = vmatpush2.bf16.msra.mxu1 %v6344_v38  ;;  %4760 = vmatprep.subr.bf16.mxu0 %v6349_v39  ;;  %v6424_v38 = vld [vmem:[%s7933_s23 + $0x22c] ss:$16 sps:$4 sm:$0xff]   ;;  %v6419_v39 = vld [vmem:[%s7933_s23 + $0x28] ss:$16 sps:$4 sm:$0xff]  }
 0x208   : > { %4803 = vmatprep.subr.bf16.mxu1 %v6352_v40  ;;  %v6422_v40 = vld [vmem:[%s7933_s23 + $0x228] ss:$16 sps:$4 sm:$0xff]  }
 0x20a   : > { %4761 = vmatpush2.bf16.msra.mxu0 %v6347_v41  ;;  %v6427_v41 = vld [vmem:[%s7933_s23 + $0xc] ss:$16 sps:$4 sm:$0xff]  }
 0x20b   : > { %4804 = vmatpush2.bf16.msra.mxu1 %v6350_v42  ;;  %4762 = vmatprep.subr.bf16.mxu0 %v6355_v44  ;;  %v6430_v42 = vld [vmem:[%s7933_s23 + $0x20c] ss:$16 sps:$4 sm:$0xff]   ;;  %v6425_v44 = vld [vmem:[%s7933_s23 + $0x8] ss:$16 sps:$4 sm:$0xff]  }
 0x20c   : > { %4805 = vmatprep.subr.bf16.mxu1 %v6358_v45  ;;  %v6428_v45 = vld [vmem:[%s7933_s23 + $0x208] ss:$16 sps:$4 sm:$0xff]  }
 0x20e   : > { %4763 = vmatpush2.bf16.msra.mxu0 %v6353_v46  ;;  %v6433_v46 = vld [vmem:[%s7933_s23 + $0x1ec] ss:$16 sps:$4 sm:$0xff]  }
 0x20f   : > { %4806 = vmatpush2.bf16.msra.mxu1 %v6356_v47  ;;  %4764 = vmatprep.subr.bf16.mxu0 %v6361_v49  ;;  %v6436_v47 = vld [vmem:[%s7933_s23 + $0x3ec] ss:$16 sps:$4 sm:$0xff]   ;;  %v6431_v49 = vld [vmem:[%s7933_s23 + $0x1e8] ss:$16 sps:$4 sm:$0xff]  }
 0x210   : > { %4807 = vmatprep.subr.bf16.mxu1 %v6364_v55  ;;  %v6434_v55 = vld [vmem:[%s7933_s23 + $0x3e8] ss:$16 sps:$4 sm:$0xff]  }
 0x212   : > { %4765 = vmatpush2.bf16.msra.mxu0 %v6359_v56  ;;  %v6439_v56 = vld [vmem:[%s7933_s23 + $0x1cc] ss:$16 sps:$4 sm:$0xff]  }
 0x213   : > { %4808 = vmatpush2.bf16.msra.mxu1 %v6362_v33  ;;  %4766 = vmatprep.subr.bf16.mxu0 %v6367_v34  ;;  %v6442_v33 = vld [vmem:[%s7933_s23 + $0x3cc] ss:$16 sps:$4 sm:$0xff]   ;;  %v6437_v34 = vld [vmem:[%s7933_s23 + $0x1c8] ss:$16 sps:$4 sm:$0xff]  }
 0x214   : > { %4809 = vmatprep.subr.bf16.mxu1 %v6370_v57  ;;  %v6440_v57 = vld [vmem:[%s7933_s23 + $0x3c8] ss:$16 sps:$4 sm:$0xff]  }
 0x216   : > { %4767 = vmatpush2.bf16.msra.mxu0 %v6365_v58  ;;  %v6445_v58 = vld [vmem:[%s7933_s23 + $0x1ac] ss:$16 sps:$4 sm:$0xff]  }
 0x217   : > { %4810 = vmatpush2.bf16.msra.mxu1 %v6368_v59  ;;  %4768 = vmatprep.subr.bf16.mxu0 %v6373_v60  ;;  %v6448_v59 = vld [vmem:[%s7933_s23 + $0x3ac] ss:$16 sps:$4 sm:$0xff]   ;;  %v6443_v60 = vld [vmem:[%s7933_s23 + $0x1a8] ss:$16 sps:$4 sm:$0xff]  }
 0x218   : > { %4811 = vmatprep.subr.bf16.mxu1 %v6376_v61  ;;  %v6446_v61 = vld [vmem:[%s7933_s23 + $0x3a8] ss:$16 sps:$4 sm:$0xff]  }
 0x21a   : > { %4769 = vmatpush2.bf16.msra.mxu0 %v6371_v62  ;;  %v6451_v62 = vld [vmem:[%s7933_s23 + $0x18c] ss:$16 sps:$4 sm:$0xff]  }
 0x21b   : > { %4812 = vmatpush2.bf16.msra.mxu1 %v6374_v63  ;;  %4770 = vmatprep.subr.bf16.mxu0 %v6379_v0  ;;  %v6454_v63 = vld [vmem:[%s7933_s23 + $0x38c] ss:$16 sps:$4 sm:$0xff]   ;;  %v6449_v0 = vld [vmem:[%s7933_s23 + $0x188] ss:$16 sps:$4 sm:$0xff]  }
 0x21c   : > { %4813 = vmatprep.subr.bf16.mxu1 %v6382_v1  ;;  %v6452_v1 = vld [vmem:[%s7933_s23 + $0x388] ss:$16 sps:$4 sm:$0xff]  }
 0x21e   : > { %4771 = vmatpush2.bf16.msra.mxu0 %v6377_v2  ;;  %v6457_v2 = vld [vmem:[%s7933_s23 + $0x16c] ss:$16 sps:$4 sm:$0xff]  }
 0x21f   : > { %4814 = vmatpush2.bf16.msra.mxu1 %v6380_v5  ;;  %4826 = vmatprep.subr.bf16.mxu0 %v6385_v8  ;;  %v6460_v5 = vld [vmem:[%s7933_s23 + $0x36c] ss:$16 sps:$4 sm:$0xff]   ;;  %v6455_v8 = vld [vmem:[%s7933_s23 + $0x168] ss:$16 sps:$4 sm:$0xff]  }
 0x220   : > { %4869 = vmatprep.subr.bf16.mxu1 %v6388_v9  ;;  %v6458_v9 = vld [vmem:[%s7933_s23 + $0x368] ss:$16 sps:$4 sm:$0xff]  }
 0x221   : > { %4773 = vmatmul.mubr.bf16.vlgmr.msra.gmra.mxu0 %v8309_v10 }
 0x222   : > { %4816 = vmatmul.mubr.bf16.vlgmr.msra.gmra.mxu1 %v8313_v11  ;;  %4827 = vmatpush1.bf16.msra.mxu0 %v6383_v12  ;;  %v6463_v12 = vld [vmem:[%s7933_s23 + $0x14c] ss:$16 sps:$4 sm:$0xff]  }
 0x223   : > { %4870 = vmatpush1.bf16.msra.mxu1 %v6386_v13  ;;  %4828 = vmatprep.subr.bf16.mxu0 %v6391_v16  ;;  %v6466_v13 = vld [vmem:[%s7933_s23 + $0x34c] ss:$16 sps:$4 sm:$0xff]   ;;  %v6461_v16 = vld [vmem:[%s7933_s23 + $0x148] ss:$16 sps:$4 sm:$0xff]  }
 0x224   : > { %4871 = vmatprep.subr.bf16.mxu1 %v6394_v17  ;;  %4858 = vmatprep.mubr.bf16.mxu0 %v7924_v4  ;;  %v6409_v4 = vld [vmem:[%s7933_s23 + $0x6c] ss:$16 sps:$4 sm:$0xff]   ;;  %v6464_v17 = vld [vmem:[%s7933_s23 + $0x348] ss:$16 sps:$4 sm:$0xff]  }
 0x225   : > { %4901 = vmatprep.mubr.bf16.mxu1 %v7931_v7  ;;  %v6412_v7 = vld [vmem:[%s7933_s23 + $0x26c] ss:$16 sps:$4 sm:$0xff]  }
 0x226   : > { %4829 = vmatpush1.bf16.msra.mxu0 %v6389_v48  ;;  %v6469_v48 = vld [vmem:[%s7933_s23 + $0x12c] ss:$16 sps:$4 sm:$0xff]  }
 0x227   : > { %4872 = vmatpush1.bf16.msra.mxu1 %v6392_v50  ;;  %4830 = vmatprep.subr.bf16.mxu0 %v6397_v51  ;;  %v6472_v50 = vld [vmem:[%s7933_s23 + $0x32c] ss:$16 sps:$4 sm:$0xff]   ;;  %v6467_v51 = vld [vmem:[%s7933_s23 + $0x128] ss:$16 sps:$4 sm:$0xff]  }
 0x228   : > { %4873 = vmatprep.subr.bf16.mxu1 %v6400_v54  ;;  %v6470_v54 = vld [vmem:[%s7933_s23 + $0x328] ss:$16 sps:$4 sm:$0xff]  }
 0x22a   : > { %4831 = vmatpush1.bf16.msra.mxu0 %v6395_v18  ;;  %v6475_v18 = vld [vmem:[%s7933_s23 + $0x10c] ss:$16 sps:$4 sm:$0xff]  }
 0x22b   : > { %4874 = vmatpush1.bf16.msra.mxu1 %v6398_v19  ;;  %4832 = vmatprep.subr.bf16.mxu0 %v6403_v21  ;;  %v6478_v19 = vld [vmem:[%s7933_s23 + $0x30c] ss:$16 sps:$4 sm:$0xff]   ;;  %v6473_v21 = vld [vmem:[%s7933_s23 + $0x108] ss:$16 sps:$4 sm:$0xff]  }
 0x22c   : > { %4875 = vmatprep.subr.bf16.mxu1 %v6406_v22  ;;  %v6476_v22 = vld [vmem:[%s7933_s23 + $0x308] ss:$16 sps:$4 sm:$0xff]  }
 0x22e   : > { %4833 = vmatpush1.bf16.msra.mxu0 %v6401_v23  ;;  %v6481_v23 = vld [vmem:[%s7933_s23 + $0x4ec] ss:$16 sps:$4 sm:$0xff]  }
 0x22f   : > { %4876 = vmatpush1.bf16.msra.mxu1 %v6404_v24  ;;  %4834 = vmatprep.subr.bf16.mxu0 %v6409_v4  ;;  %v6484_v24 = vld [vmem:[%s7933_s23 + $0x6ec] ss:$16 sps:$4 sm:$0xff]   ;;  %v6479_v4 = vld [vmem:[%s7933_s23 + $0x4e8] ss:$16 sps:$4 sm:$0xff]  }
 0x230   : > { %4877 = vmatprep.subr.bf16.mxu1 %v6412_v7  ;;  %v6482_v7 = vld [vmem:[%s7933_s23 + $0x6e8] ss:$16 sps:$4 sm:$0xff]  }
 0x232   : > { %4835 = vmatpush1.bf16.msra.mxu0 %v6407_v25  ;;  %v6487_v25 = vld [vmem:[%s7933_s23 + $0x4cc] ss:$16 sps:$4 sm:$0xff]  }
 0x233   : > { %4878 = vmatpush1.bf16.msra.mxu1 %v6410_v26  ;;  %4836 = vmatprep.subr.bf16.mxu0 %v6415_v27  ;;  %v6490_v26 = vld [vmem:[%s7933_s23 + $0x6cc] ss:$16 sps:$4 sm:$0xff]   ;;  %v6485_v27 = vld [vmem:[%s7933_s23 + $0x4c8] ss:$16 sps:$4 sm:$0xff]  }
 0x234   : > { %4879 = vmatprep.subr.bf16.mxu1 %v6418_v28  ;;  %v6488_v28 = vld [vmem:[%s7933_s23 + $0x6c8] ss:$16 sps:$4 sm:$0xff]  }
 0x236   : > { %4837 = vmatpush1.bf16.msra.mxu0 %v6413_v31  ;;  %v6493_v31 = vld [vmem:[%s7933_s23 + $0x4ac] ss:$16 sps:$4 sm:$0xff]  }
 0x237   : > { %4880 = vmatpush1.bf16.msra.mxu1 %v6416_v32  ;;  %4838 = vmatprep.subr.bf16.mxu0 %v6421_v37  ;;  %v6496_v32 = vld [vmem:[%s7933_s23 + $0x6ac] ss:$16 sps:$4 sm:$0xff]  }
 0x238   : > { %4881 = vmatprep.subr.bf16.mxu1 %v6424_v38  ;;  %v6499_v37 = vld [vmem:[%s7933_s23 + $0x48c] ss:$16 sps:$4 sm:$0xff]  }
 0x239   : > { %v6502_v38 = vld [vmem:[%s7933_s23 + $0x68c] ss:$16 sps:$4 sm:$0xff]  }
 0x23a   : > { %4839 = vmatpush1.bf16.msra.mxu0 %v6419_v39  ;;  %v6497_v39 = vld [vmem:[%s7933_s23 + $0x488] ss:$16 sps:$4 sm:$0xff]  }
 0x23b   : > { %4882 = vmatpush1.bf16.msra.mxu1 %v6422_v40  ;;  %4840 = vmatprep.subr.bf16.mxu0 %v6427_v41  ;;  %v6508_v40 = vld [vmem:[%s7933_s23 + $0x66c] ss:$16 sps:$4 sm:$0xff]   ;;  %v6503_v41 = vld [vmem:[%s7933_s23 + $0x468] ss:$16 sps:$4 sm:$0xff]  }
 0x23c   : > { %4883 = vmatprep.subr.bf16.mxu1 %v6430_v42  ;;  %v6506_v42 = vld [vmem:[%s7933_s23 + $0x668] ss:$16 sps:$4 sm:$0xff]  }
 0x23e   : > { %4841 = vmatpush1.bf16.msra.mxu0 %v6425_v44  ;;  %v6511_v44 = vld [vmem:[%s7933_s23 + $0x44c] ss:$16 sps:$4 sm:$0xff]  }
 0x23f   : > { %4884 = vmatpush1.bf16.msra.mxu1 %v6428_v45  ;;  %4842 = vmatprep.subr.bf16.mxu0 %v6433_v46  ;;  %v6514_v45 = vld [vmem:[%s7933_s23 + $0x64c] ss:$16 sps:$4 sm:$0xff]   ;;  %v6509_v46 = vld [vmem:[%s7933_s23 + $0x448] ss:$16 sps:$4 sm:$0xff]  }
 0x240   : > { %4885 = vmatprep.subr.bf16.mxu1 %v6436_v47  ;;  %v6512_v47 = vld [vmem:[%s7933_s23 + $0x648] ss:$16 sps:$4 sm:$0xff]  }
 0x242   : > { %4843 = vmatpush2.bf16.msra.mxu0 %v6431_v49  ;;  %v6517_v49 = vld [vmem:[%s7933_s23 + $0x42c] ss:$16 sps:$4 sm:$0xff]  }
 0x243   : > { %4886 = vmatpush2.bf16.msra.mxu1 %v6434_v55  ;;  %4844 = vmatprep.subr.bf16.mxu0 %v6439_v56  ;;  %v6520_v55 = vld [vmem:[%s7933_s23 + $0x62c] ss:$16 sps:$4 sm:$0xff]   ;;  %v6515_v56 = vld [vmem:[%s7933_s23 + $0x428] ss:$16 sps:$4 sm:$0xff]  }
 0x244   : > { %4887 = vmatprep.subr.bf16.mxu1 %v6442_v33  ;;  %v6518_v33 = vld [vmem:[%s7933_s23 + $0x628] ss:$16 sps:$4 sm:$0xff]  }
 0x246   : > { %4845 = vmatpush2.bf16.msra.mxu0 %v6437_v34  ;;  %v6523_v34 = vld [vmem:[%s7933_s23 + $0x40c] ss:$16 sps:$4 sm:$0xff]  }
 0x247   : > { %4888 = vmatpush2.bf16.msra.mxu1 %v6440_v57  ;;  %4846 = vmatprep.subr.bf16.mxu0 %v6445_v58  ;;  %v6526_v57 = vld [vmem:[%s7933_s23 + $0x60c] ss:$16 sps:$4 sm:$0xff]   ;;  %v6521_v58 = vld [vmem:[%s7933_s23 + $0x408] ss:$16 sps:$4 sm:$0xff]  }
 0x248   : > { %4889 = vmatprep.subr.bf16.mxu1 %v6448_v59  ;;  %v6524_v59 = vld [vmem:[%s7933_s23 + $0x608] ss:$16 sps:$4 sm:$0xff]  }
 0x24a   : > { %4847 = vmatpush2.bf16.msra.mxu0 %v6443_v60  ;;  %v6529_v60 = vld [vmem:[%s7933_s23 + $0x5ec] ss:$16 sps:$4 sm:$0xff]  }
 0x24b   : > { %4890 = vmatpush2.bf16.msra.mxu1 %v6446_v61  ;;  %4848 = vmatprep.subr.bf16.mxu0 %v6451_v62  ;;  %v6532_v61 = vld [vmem:[%s7933_s23 + $0x7ec] ss:$16 sps:$4 sm:$0xff]   ;;  %v6527_v62 = vld [vmem:[%s7933_s23 + $0x5e8] ss:$16 sps:$4 sm:$0xff]  }
 0x24c   : > { %4891 = vmatprep.subr.bf16.mxu1 %v6454_v63  ;;  %v6530_v63 = vld [vmem:[%s7933_s23 + $0x7e8] ss:$16 sps:$4 sm:$0xff]  }
 0x24e   : > { %4849 = vmatpush2.bf16.msra.mxu0 %v6449_v0  ;;  %v6535_v0 = vld [vmem:[%s7933_s23 + $0x5cc] ss:$16 sps:$4 sm:$0xff]  }
 0x24f   : > { %4892 = vmatpush2.bf16.msra.mxu1 %v6452_v1  ;;  %4850 = vmatprep.subr.bf16.mxu0 %v6457_v2  ;;  %v6538_v1 = vld [vmem:[%s7933_s23 + $0x7cc] ss:$16 sps:$4 sm:$0xff]   ;;  %v6533_v2 = vld [vmem:[%s7933_s23 + $0x5c8] ss:$16 sps:$4 sm:$0xff]  }
 0x250   : > { %4893 = vmatprep.subr.bf16.mxu1 %v6460_v5  ;;  %v6536_v5 = vld [vmem:[%s7933_s23 + $0x7c8] ss:$16 sps:$4 sm:$0xff]  }
 0x252   : > { %4851 = vmatpush2.bf16.msra.mxu0 %v6455_v8  ;;  %v6541_v8 = vld [vmem:[%s7933_s23 + $0x5ac] ss:$16 sps:$4 sm:$0xff]  }
 0x253   : > { %4894 = vmatpush2.bf16.msra.mxu1 %v6458_v9  ;;  %4852 = vmatprep.subr.bf16.mxu0 %v6463_v12  ;;  %v6544_v9 = vld [vmem:[%s7933_s23 + $0x7ac] ss:$16 sps:$4 sm:$0xff]   ;;  %v6539_v12 = vld [vmem:[%s7933_s23 + $0x5a8] ss:$16 sps:$4 sm:$0xff]  }
 0x254   : > { %4895 = vmatprep.subr.bf16.mxu1 %v6466_v13  ;;  %v6542_v13 = vld [vmem:[%s7933_s23 + $0x7a8] ss:$16 sps:$4 sm:$0xff]  }
 0x256   : > { %4853 = vmatpush2.bf16.msra.mxu0 %v6461_v16  ;;  %v6547_v16 = vld [vmem:[%s7933_s23 + $0x58c] ss:$16 sps:$4 sm:$0xff]  }
 0x257   : > { %4896 = vmatpush2.bf16.msra.mxu1 %v6464_v17  ;;  %4854 = vmatprep.subr.bf16.mxu0 %v6469_v48  ;;  %v6550_v17 = vld [vmem:[%s7933_s23 + $0x78c] ss:$16 sps:$4 sm:$0xff]   ;;  %v6545_v48 = vld [vmem:[%s7933_s23 + $0x588] ss:$16 sps:$4 sm:$0xff]  }
 0x258   : > { %4897 = vmatprep.subr.bf16.mxu1 %v6472_v50  ;;  %v6548_v50 = vld [vmem:[%s7933_s23 + $0x788] ss:$16 sps:$4 sm:$0xff]  }
 0x25a   : > { %4855 = vmatpush2.bf16.msra.mxu0 %v6467_v51  ;;  %v6553_v51 = vld [vmem:[%s7933_s23 + $0x56c] ss:$16 sps:$4 sm:$0xff]  }
 0x25b   : > { %4898 = vmatpush2.bf16.msra.mxu1 %v6470_v54  ;;  %4856 = vmatprep.subr.bf16.mxu0 %v6475_v18  ;;  %v6556_v54 = vld [vmem:[%s7933_s23 + $0x76c] ss:$16 sps:$4 sm:$0xff]   ;;  %v6551_v18 = vld [vmem:[%s7933_s23 + $0x568] ss:$16 sps:$4 sm:$0xff]  }
 0x25c   : > { %4899 = vmatprep.subr.bf16.mxu1 %v6478_v19  ;;  %v6554_v19 = vld [vmem:[%s7933_s23 + $0x768] ss:$16 sps:$4 sm:$0xff]  }
 0x25e   : > { %4857 = vmatpush2.bf16.msra.mxu0 %v6473_v21  ;;  %v6559_v21 = vld [vmem:[%s7933_s23 + $0x54c] ss:$16 sps:$4 sm:$0xff]  }
 0x25f   : > { %4900 = vmatpush2.bf16.msra.mxu1 %v6476_v22  ;;  %4912 = vmatprep.subr.bf16.mxu0 %v6481_v23  ;;  %v6562_v22 = vld [vmem:[%s7933_s23 + $0x74c] ss:$16 sps:$4 sm:$0xff]   ;;  %v6557_v23 = vld [vmem:[%s7933_s23 + $0x548] ss:$16 sps:$4 sm:$0xff]  }
 0x260   : > { %4955 = vmatprep.subr.bf16.mxu1 %v6484_v24  ;;  %v6560_v24 = vld [vmem:[%s7933_s23 + $0x748] ss:$16 sps:$4 sm:$0xff]  }
 0x261   : > { %4859 = vmatmul.mubr.bf16.vlgmr.msra.gmra.mxu0 %v7922_v3  ;;  %v6491_v3 = vld [vmem:[%s7933_s23 + $0x4a8] ss:$16 sps:$4 sm:$0xff]  }
 0x262   : > { %4902 = vmatmul.mubr.bf16.vlgmr.msra.gmra.mxu1 %v7929_v6  ;;  %4913 = vmatpush1.bf16.msra.mxu0 %v6479_v4  ;;  %v6494_v6 = vld [vmem:[%s7933_s23 + $0x6a8] ss:$16 sps:$4 sm:$0xff]   ;;  %v6565_v4 = vld [vmem:[%s7933_s23 + $0x52c] ss:$16 sps:$4 sm:$0xff]  }
 0x263   : > { %4956 = vmatpush1.bf16.msra.mxu1 %v6482_v7  ;;  %4914 = vmatprep.subr.bf16.mxu0 %v6487_v25  ;;  %v6568_v7 = vld [vmem:[%s7933_s23 + $0x72c] ss:$16 sps:$4 sm:$0xff]   ;;  %v6563_v25 = vld [vmem:[%s7933_s23 + $0x528] ss:$16 sps:$4 sm:$0xff]  }
 0x264   : > { %4957 = vmatprep.subr.bf16.mxu1 %v6490_v26  ;;  %4944 = vmatprep.mubr.bf16.mxu0 %v8019_v20  ;;  %v6500_v20 = vld [vmem:[%s7933_s23 + $0x688] ss:$16 sps:$4 sm:$0xff]  }
 0x265   : > { %4987 = vmatprep.mubr.bf16.mxu1 %v8056_v43  ;;  %v6505_v43 = vld [vmem:[%s7933_s23 + $0x46c] ss:$16 sps:$4 sm:$0xff]   ;;  %v6566_v26 = vld [vmem:[%s7933_s23 + $0x728] ss:$16 sps:$4 sm:$0xff]  }
 0x266   : > { %4915 = vmatpush1.bf16.msra.mxu0 %v6485_v27  ;;  %v6571_v27 = vld [vmem:[%s7933_s23 + $0x50c] ss:$16 sps:$4 sm:$0xff]  }
 0x267   : > { %4958 = vmatpush1.bf16.msra.mxu1 %v6488_v28  ;;  %4916 = vmatprep.subr.bf16.mxu0 %v6493_v31  ;;  %v6574_v28 = vld [vmem:[%s7933_s23 + $0x70c] ss:$16 sps:$4 sm:$0xff]   ;;  %v6569_v31 = vld [vmem:[%s7933_s23 + $0x508] ss:$16 sps:$4 sm:$0xff]  }
 0x268   : > { %4959 = vmatprep.subr.bf16.mxu1 %v6496_v32  ;;  %v6572_v32 = vld [vmem:[%s7933_s23 + $0x708] ss:$16 sps:$4 sm:$0xff]  }
 0x26a   : > { %4917 = vmatpush1.bf16.msra.mxu0 %v6491_v3  ;;  %v6577_v3 = vld [vmem:[%s7933_s23 + $0x8ec] ss:$16 sps:$4 sm:$0xff]  }
 0x26b   : > { %4960 = vmatpush1.bf16.msra.mxu1 %v6494_v6  ;;  %4918 = vmatprep.subr.bf16.mxu0 %v6499_v37  ;;  %v6580_v6 = vld [vmem:[%s7933_s23 + $0xaec] ss:$16 sps:$4 sm:$0xff]   ;;  %v6575_v37 = vld [vmem:[%s7933_s23 + $0x8e8] ss:$16 sps:$4 sm:$0xff]  }
 0x26c   : > { %4961 = vmatprep.subr.bf16.mxu1 %v6502_v38  ;;  %v6578_v38 = vld [vmem:[%s7933_s23 + $0xae8] ss:$16 sps:$4 sm:$0xff]  }
 0x26e   : > { %4919 = vmatpush1.bf16.msra.mxu0 %v6497_v39  ;;  %v6583_v39 = vld [vmem:[%s7933_s23 + $0x8cc] ss:$16 sps:$4 sm:$0xff]  }
 0x26f   : > { %4962 = vmatpush1.bf16.msra.mxu1 %v6500_v20  ;;  %4920 = vmatprep.subr.bf16.mxu0 %v6505_v43  ;;  %v6586_v20 = vld [vmem:[%s7933_s23 + $0xacc] ss:$16 sps:$4 sm:$0xff]   ;;  %v6581_v43 = vld [vmem:[%s7933_s23 + $0x8c8] ss:$16 sps:$4 sm:$0xff]  }
 0x270   : > { %4963 = vmatprep.subr.bf16.mxu1 %v6508_v40  ;;  %v6584_v40 = vld [vmem:[%s7933_s23 + $0xac8] ss:$16 sps:$4 sm:$0xff]  }
 0x272   : > { %4921 = vmatpush1.bf16.msra.mxu0 %v6503_v41  ;;  %v6589_v41 = vld [vmem:[%s7933_s23 + $0x8ac] ss:$16 sps:$4 sm:$0xff]  }
 0x273   : > { %4964 = vmatpush1.bf16.msra.mxu1 %v6506_v42  ;;  %4922 = vmatprep.subr.bf16.mxu0 %v6511_v44  ;;  %v6592_v42 = vld [vmem:[%s7933_s23 + $0xaac] ss:$16 sps:$4 sm:$0xff]  }
 0x274   : > { %4965 = vmatprep.subr.bf16.mxu1 %v6514_v45  ;;  %v6595_v44 = vld [vmem:[%s7933_s23 + $0x88c] ss:$16 sps:$4 sm:$0xff]  }
 0x275   : > { %v6598_v45 = vld [vmem:[%s7933_s23 + $0xa8c] ss:$16 sps:$4 sm:$0xff]  }
 0x276   : > { %4923 = vmatpush1.bf16.msra.mxu0 %v6509_v46  ;;  %v6593_v46 = vld [vmem:[%s7933_s23 + $0x888] ss:$16 sps:$4 sm:$0xff]  }
 0x277   : > { %4966 = vmatpush1.bf16.msra.mxu1 %v6512_v47  ;;  %4924 = vmatprep.subr.bf16.mxu0 %v6517_v49  ;;  %v6604_v47 = vld [vmem:[%s7933_s23 + $0xa6c] ss:$16 sps:$4 sm:$0xff]   ;;  %v6599_v49 = vld [vmem:[%s7933_s23 + $0x868] ss:$16 sps:$4 sm:$0xff]  }
 0x278   : > { %4967 = vmatprep.subr.bf16.mxu1 %v6520_v55  ;;  %v6602_v55 = vld [vmem:[%s7933_s23 + $0xa68] ss:$16 sps:$4 sm:$0xff]  }
 0x27a   : > { %4925 = vmatpush1.bf16.msra.mxu0 %v6515_v56  ;;  %v6607_v56 = vld [vmem:[%s7933_s23 + $0x84c] ss:$16 sps:$4 sm:$0xff]  }
 0x27b   : > { %4968 = vmatpush1.bf16.msra.mxu1 %v6518_v33  ;;  %4926 = vmatprep.subr.bf16.mxu0 %v6523_v34  ;;  %v6610_v33 = vld [vmem:[%s7933_s23 + $0xa4c] ss:$16 sps:$4 sm:$0xff]   ;;  %v6605_v34 = vld [vmem:[%s7933_s23 + $0x848] ss:$16 sps:$4 sm:$0xff]  }
 0x27c   : > { %4969 = vmatprep.subr.bf16.mxu1 %v6526_v57  ;;  %v6608_v57 = vld [vmem:[%s7933_s23 + $0xa48] ss:$16 sps:$4 sm:$0xff]  }
 0x27e   : > { %4927 = vmatpush1.bf16.msra.mxu0 %v6521_v58  ;;  %v6613_v58 = vld [vmem:[%s7933_s23 + $0x82c] ss:$16 sps:$4 sm:$0xff]  }
 0x27f   : > { %4970 = vmatpush1.bf16.msra.mxu1 %v6524_v59  ;;  %4928 = vmatprep.subr.bf16.mxu0 %v6529_v60  ;;  %v6616_v59 = vld [vmem:[%s7933_s23 + $0xa2c] ss:$16 sps:$4 sm:$0xff]   ;;  %v8479_v60 = vpop.f32.mrf.mxu0 }
 0x280   : > { %4971 = vmatprep.subr.bf16.mxu1 %v6532_v61  ;;  %v6611_v61 = vld [vmem:[%s7933_s23 + $0x828] ss:$16 sps:$4 sm:$0xff]  }
 0x282   : > { %4929 = vmatpush2.bf16.msra.mxu0 %v6527_v62  ;;  %v6614_v62 = vld [vmem:[%s7933_s23 + $0xa28] ss:$16 sps:$4 sm:$0xff]  }
 0x283   : > { %4972 = vmatpush2.bf16.msra.mxu1 %v6530_v63  ;;  %4930 = vmatprep.subr.bf16.mxu0 %v6535_v0  ;;  %v8483_v63 = vpop.f32.mrf.mxu1  ;;  %v6619_v0 = vld [vmem:[%s7933_s23 + $0x80c] ss:$16 sps:$4 sm:$0xff]  }
 0x284   : > { %4973 = vmatprep.subr.bf16.mxu1 %v6538_v1  ;;  %v6622_v1 = vld [vmem:[%s7933_s23 + $0xa0c] ss:$16 sps:$4 sm:$0xff]  }
 0x286   : > { %4931 = vmatpush2.bf16.msra.mxu0 %v6533_v2  ;;  %v8487_v2 = vpop.f32.mrf.mxu0 }
 0x287   : > { %4974 = vmatpush2.bf16.msra.mxu1 %v6536_v5  ;;  %4932 = vmatprep.subr.bf16.mxu0 %v6541_v8  ;;  %v6617_v5 = vld [vmem:[%s7933_s23 + $0x808] ss:$16 sps:$4 sm:$0xff]  }
 0x288   : > { %4975 = vmatprep.subr.bf16.mxu1 %v6544_v9  ;;  %v6620_v8 = vld [vmem:[%s7933_s23 + $0xa08] ss:$16 sps:$4 sm:$0xff]   ;;  %v8491_v9 = vpop.f32.mrf.mxu1 }
 0x28a   : > { %4933 = vmatpush2.bf16.msra.mxu0 %v6539_v12  ;;  %v6625_v12 = vld [vmem:[%s7933_s23 + $0x9ec] ss:$16 sps:$4 sm:$0xff]  }
 0x28b   : > { %4976 = vmatpush2.bf16.msra.mxu1 %v6542_v13  ;;  %4934 = vmatprep.subr.bf16.mxu0 %v6547_v16  ;;  %v6628_v13 = vld [vmem:[%s7933_s23 + $0xbec] ss:$16 sps:$4 sm:$0xff]   ;;  %v8495_v16 = vpop.f32.mrf.mxu0 }
 0x28c   : > { %4977 = vmatprep.subr.bf16.mxu1 %v6550_v17  ;;  %v6623_v17 = vld [vmem:[%s7933_s23 + $0x9e8] ss:$16 sps:$4 sm:$0xff]  }
 0x28e   : > { %4935 = vmatpush2.bf16.msra.mxu0 %v6545_v48  ;;  %v6626_v48 = vld [vmem:[%s7933_s23 + $0xbe8] ss:$16 sps:$4 sm:$0xff]  }
 0x28f   : > { %4978 = vmatpush2.bf16.msra.mxu1 %v6548_v50  ;;  %4936 = vmatprep.subr.bf16.mxu0 %v6553_v51  ;;  %v8499_v50 = vpop.f32.mrf.mxu1  ;;  %v6631_v51 = vld [vmem:[%s7933_s23 + $0x9cc] ss:$16 sps:$4 sm:$0xff]  }
 0x290   : > { %4979 = vmatprep.subr.bf16.mxu1 %v6556_v54  ;;  %v6634_v54 = vld [vmem:[%s7933_s23 + $0xbcc] ss:$16 sps:$4 sm:$0xff]  }
 0x292   : > { %4937 = vmatpush2.bf16.msra.mxu0 %v6551_v18  ;;  %v8503_v18 = vpop.f32.mrf.mxu0 }
 0x293   : > { %4980 = vmatpush2.bf16.msra.mxu1 %v6554_v19  ;;  %4938 = vmatprep.subr.bf16.mxu0 %v6559_v21  ;;  %v6629_v19 = vld [vmem:[%s7933_s23 + $0x9c8] ss:$16 sps:$4 sm:$0xff]  }
 0x294   : > { %4981 = vmatprep.subr.bf16.mxu1 %v6562_v22  ;;  %v6632_v21 = vld [vmem:[%s7933_s23 + $0xbc8] ss:$16 sps:$4 sm:$0xff]   ;;  %v8507_v22 = vpop.f32.mrf.mxu1 }
 0x296   : > { %4939 = vmatpush2.bf16.msra.mxu0 %v6557_v23  ;;  %v6637_v23 = vld [vmem:[%s7933_s23 + $0x9ac] ss:$16 sps:$4 sm:$0xff]  }
 0x297   : > { %4982 = vmatpush2.bf16.msra.mxu1 %v6560_v24  ;;  %4940 = vmatprep.subr.bf16.mxu0 %v6565_v4  ;;  %v6640_v24 = vld [vmem:[%s7933_s23 + $0xbac] ss:$16 sps:$4 sm:$0xff]   ;;  %v4602_v4 = vpop.f32.mrf.mxu0 }
 0x298   : > { %4983 = vmatprep.subr.bf16.mxu1 %v6568_v7  ;;  %v4645_v7 = vpop.f32.mrf.mxu1 }
 0x29a   : > { %4941 = vmatpush2.bf16.msra.mxu0 %v6563_v25  ;;  %v6635_v25 = vld [vmem:[%s7933_s23 + $0x9a8] ss:$16 sps:$4 sm:$0xff]  }
 0x29b   : > { %4984 = vmatpush2.bf16.msra.mxu1 %v6566_v26  ;;  %4942 = vmatprep.subr.bf16.mxu0 %v6571_v27  ;;  %v6638_v26 = vld [vmem:[%s7933_s23 + $0xba8] ss:$16 sps:$4 sm:$0xff]   ;;  %v6643_v27 = vld [vmem:[%s7933_s23 + $0x98c] ss:$16 sps:$4 sm:$0xff]  }
 0x29c   : > { %4985 = vmatprep.subr.bf16.mxu1 %v6574_v28  ;;  %v6646_v28 = vld [vmem:[%s7933_s23 + $0xb8c] ss:$16 sps:$4 sm:$0xff]  }
 0x29e   : > { %4943 = vmatpush2.bf16.msra.mxu0 %v6569_v31  ;;  %v4604_v31 = vpop.f32.mrf.mxu0 }
 0x29f   : > { %4986 = vmatpush2.bf16.msra.mxu1 %v6572_v32  ;;  %4998 = vmatprep.subr.bf16.mxu0 %v6577_v3  ;;  %v8515_v32 = vpop.f32.mrf.mxu1  ;;  %v6641_v3 = vld [vmem:[%s7933_s23 + $0x988] ss:$16 sps:$4 sm:$0xff]  }
 0x2a0   : > { %5041 = vmatprep.subr.bf16.mxu1 %v6580_v6  ;;  %v6644_v6 = vld [vmem:[%s7933_s23 + $0xb88] ss:$16 sps:$4 sm:$0xff]  }
 0x2a1   : > { %4945 = vmatmul.mubr.bf16.vlgmr.msra.gmra.mxu0 %v8103_v29  ;;  %v6587_v29 = vld [vmem:[%s7933_s23 + $0x8a8] ss:$16 sps:$4 sm:$0xff]  }
 0x2a2   : > { %4988 = vmatmul.mubr.bf16.vlgmr.msra.gmra.mxu1 %v8107_v30  ;;  %4999 = vmatpush1.bf16.msra.mxu0 %v6575_v37  ;;  %v6590_v30 = vld [vmem:[%s7933_s23 + $0xaa8] ss:$16 sps:$4 sm:$0xff]   ;;  %v6649_v37 = vld [vmem:[%s7933_s23 + $0x96c] ss:$16 sps:$4 sm:$0xff]  }
 0x2a3   : > { %5042 = vmatpush1.bf16.msra.mxu1 %v6578_v38  ;;  %5000 = vmatprep.subr.bf16.mxu0 %v6583_v39  ;;  %v6652_v38 = vld [vmem:[%s7933_s23 + $0xb6c] ss:$16 sps:$4 sm:$0xff]   ;;  %v4606_v39 = vpop.f32.mrf.mxu0 }
 0x2a4   : > { %5043 = vmatprep.subr.bf16.mxu1 %v6586_v20  ;;  %5030 = vmatprep.mubr.bf16.mxu0 %v8133_v35  ;;  %v6596_v35 = vld [vmem:[%s7933_s23 + $0xa88] ss:$16 sps:$4 sm:$0xff]   ;;  %v4649_v20 = vpop.f32.mrf.mxu1 }
 0x2a5   : > { %5073 = vmatprep.mubr.bf16.mxu1 %v8137_v36  ;;  %v6601_v36 = vld [vmem:[%s7933_s23 + $0x86c] ss:$16 sps:$4 sm:$0xff]  }
 0x2a6   : > { %5001 = vmatpush1.bf16.msra.mxu0 %v6581_v43  ;;  %v6647_v43 = vld [vmem:[%s7933_s23 + $0x968] ss:$16 sps:$4 sm:$0xff]  }
 0x2a7   : > { %5044 = vmatpush1.bf16.msra.mxu1 %v6584_v40  ;;  %5002 = vmatprep.subr.bf16.mxu0 %v6589_v41  ;;  %v6650_v40 = vld [vmem:[%s7933_s23 + $0xb68] ss:$16 sps:$4 sm:$0xff]   ;;  %v6655_v41 = vld [vmem:[%s7933_s23 + $0x94c] ss:$16 sps:$4 sm:$0xff]  }
 0x2a8   : > { %5045 = vmatprep.subr.bf16.mxu1 %v6592_v42  ;;  %v6658_v42 = vld [vmem:[%s7933_s23 + $0xb4c] ss:$16 sps:$4 sm:$0xff]  }
 0x2aa   : > { %5003 = vmatpush1.bf16.msra.mxu0 %v6587_v29  ;;  %v4608_v29 = vpop.f32.mrf.mxu0 }
 0x2ab   : > { %5046 = vmatpush1.bf16.msra.mxu1 %v6590_v30  ;;  %5004 = vmatprep.subr.bf16.mxu0 %v6595_v44  ;;  %v4651_v30 = vpop.f32.mrf.mxu1 }
 0x2ac   : > { %5047 = vmatprep.subr.bf16.mxu1 %v6598_v45  ;;  %v4688_v44 = vpop.f32.mrf.mxu0  ;;  %v6653_v45 = vld [vmem:[%s7933_s23 + $0x948] ss:$16 sps:$4 sm:$0xff]  }
 0x2ae   : > { %5005 = vmatpush1.bf16.msra.mxu0 %v6593_v46  ;;  %v6656_v46 = vld [vmem:[%s7933_s23 + $0xb48] ss:$16 sps:$4 sm:$0xff]  }
 0x2af   : > { %5048 = vmatpush1.bf16.msra.mxu1 %v6596_v35  ;;  %5006 = vmatprep.subr.bf16.mxu0 %v6601_v36  ;;  %v4731_v35 = vpop.f32.mrf.mxu1  ;;  %v6661_v36 = vld [vmem:[%s7933_s23 + $0x92c] ss:$16 sps:$4 sm:$0xff]  }
 0x2b0   : > { %5049 = vmatprep.subr.bf16.mxu1 %v6604_v47  ;;  %v6664_v47 = vld [vmem:[%s7933_s23 + $0xb2c] ss:$16 sps:$4 sm:$0xff]  }
 0x2b2   : > { %5007 = vmatpush1.bf16.msra.mxu0 %v6599_v49  ;;  %v4560_v49 = vadd.f32 %v8483_v63, %v8479_v60  ;;  %v4564_v60 = vadd.f32 %v8499_v50, %v8495_v16  ;;  %v6673_v16 = vld [vmem:[%s7933_s23 + $0xcec] ss:$16 sps:$4 sm:$0xff]  }
 0x2b3   : > { %5050 = vmatpush1.bf16.msra.mxu1 %v6602_v55  ;;  %5008 = vmatprep.subr.bf16.mxu0 %v6607_v56  ;;  %v4562_v55 = vadd.f32 %v8491_v9, %v8487_v2  ;;  %v6668_v9 = vld [vmem:[%s7933_s23 + $0xb08] ss:$16 sps:$4 sm:$0xff]  }
 0x2b4   : > { %5051 = vmatprep.subr.bf16.mxu1 %v6610_v33  ;;  %v4603_v56 = vadd.f32 %v4602_v4, %v4560_v49  ;;  %v4690_v33 = vpop.f32.mrf.mxu0  ;;  %v4607_v2 = vadd.f32 %v4606_v39, %v4564_v60 }
 0x2b5   : > { %v4605_v63 = vadd.f32 %v4604_v31, %v4562_v55 }
 0x2b6   : > { %5009 = vmatpush1.bf16.msra.mxu0 %v6605_v34  ;;  %v6659_v34 = vld [vmem:[%s7933_s23 + $0x928] ss:$16 sps:$4 sm:$0xff]  }
 0x2b7   : > { %5052 = vmatpush1.bf16.msra.mxu1 %v6608_v57  ;;  %5010 = vmatprep.subr.bf16.mxu0 %v6613_v58  ;;  %v6662_v57 = vld [vmem:[%s7933_s23 + $0xb28] ss:$16 sps:$4 sm:$0xff]   ;;  %v5172_v58 = vlaneseq  ;;  %v4648_v50 = vadd.f32 %v8515_v32, %v4605_v63  ;;  %v8573_v32 = vld [vmem:[%s1310_s22] sm:$0xf] }
 0x2b8   : > { %5053 = vmatprep.subr.bf16.mxu1 %v6616_v59  ;;  %v4733_v59 = vpop.f32.mrf.mxu1 }
 0x2ba   : > { %5011 = vmatpush1.bf16.msra.mxu0 %v6611_v61  ;;  %v6667_v61 = vld [vmem:[%s7933_s23 + $0x90c] ss:$16 sps:$4 sm:$0xff]  }
 0x2bb   : > { %5054 = vmatpush1.bf16.msra.mxu1 %v6614_v62  ;;  %5012 = vmatprep.subr.bf16.mxu0 %v6619_v0  ;;  %v6670_v62 = vld [vmem:[%s7933_s23 + $0xb0c] ss:$16 sps:$4 sm:$0xff]   ;;  %v4566_v0 = vadd.f32 %v8507_v22, %v8503_v18  ;;  %v4650_v18 = vadd.f32 %v4649_v20, %v4607_v2  ;;  %v8566_v22 = vld [vmem:[%s1305_s13] sm:$0xf] }
 0x2bc   : > { %5055 = vmatprep.subr.bf16.mxu1 %v6622_v1  ;;  %v4646_v1 = vadd.f32 %v4645_v7, %v4603_v56 }
 0x2be   : > { %5013 = vmatpush1.bf16.msra.mxu0 %v6617_v5  ;;  %v4692_v5 = vpop.f32.mrf.mxu0 }
 0x2bf   : > { %5056 = vmatpush1.bf16.msra.mxu1 %v6620_v8  ;;  %5014 = vmatprep.subr.bf16.mxu0 %v6625_v12  ;;  %v6665_v8 = vld [vmem:[%s7933_s23 + $0x908] ss:$16 sps:$4 sm:$0xff]   ;;  %v8552_v12 = vshrl.u32 %v5172_v58, 7  ;;  %v4693_v31 = vadd.f32 %v4692_v5, %v4650_v18 }
 0x2c0   : > { %5057 = vmatprep.subr.bf16.mxu1 %v6628_v13  ;;  %v4609_v13 = vadd.f32 %v4608_v29, %v4566_v0  ;;  %v6689_v5 = vld [vmem:[%s7933_s23 + $0xc88] ss:$16 sps:$4 sm:$0xff]  }
 0x2c1   : > { %v6695_v18 = vld [vmem:[%s7933_s23 + $0xc68] ss:$16 sps:$4 sm:$0xff]  }
 0x2c2   : > { %5015 = vmatpush2.bf16.msra.mxu0 %v6623_v17  ;;  %v4735_v17 = vpop.f32.mrf.mxu1  ;;  %v4652_v4 = vadd.f32 %v4651_v30, %v4609_v13  ;;  %v6700_v13 = vld [vmem:[%s7933_s23 + $0xe6c] ss:$16 sps:$4 sm:$0xff]  }
 0x2c3   : > { %5058 = vmatpush2.bf16.msra.mxu1 %v6626_v48  ;;  %5016 = vmatprep.subr.bf16.mxu0 %v6631_v51  ;;  %v6676_v48 = vld [vmem:[%s7933_s23 + $0xeec] ss:$16 sps:$4 sm:$0xff]   ;;  %v4689_v51 = vadd.f32 %v4688_v44, %v4646_v1 }
 0x2c4   : > { %5059 = vmatprep.subr.bf16.mxu1 %v6634_v54  ;;  %v6671_v54 = vld [vmem:[%s7933_s23 + $0xce8] ss:$16 sps:$4 sm:$0xff]   ;;  %v4737_v7 = vpop.f32.mrf.mxu1  ;;  %v6688_v44 = vld [vmem:[%s7933_s23 + $0xeac] ss:$16 sps:$4 sm:$0xff]  }
 0x2c6   : > { %5017 = vmatpush2.bf16.msra.mxu0 %v6629_v19  ;;  %v4691_v19 = vadd.f32 %v4690_v33, %v4648_v50 }
 0x2c7   : > { %5060 = vmatpush2.bf16.msra.mxu1 %v6632_v21  ;;  %5018 = vmatprep.subr.bf16.mxu0 %v6637_v23  ;;  %v4694_v21 = vpop.f32.mrf.mxu0  ;;  %v5174_v23 = vsub.s32 0, %v8552_v12 }
 0x2c8   : > { %5061 = vmatprep.subr.bf16.mxu1 %v6640_v24  ;;  %v6674_v24 = vld [vmem:[%s7933_s23 + $0xee8] ss:$16 sps:$4 sm:$0xff]  }
 0x2c9   : > { %v5175_v20 = vrot.slane %v8566_v22, %v5174_v23 }
 0x2ca   : > { %5019 = vmatpush2.bf16.msra.mxu0 %v6635_v25  ;;  %v5178_v25 = vsub.s32 1, %v8552_v12 }
 0x2cb   : > { %5062 = vmatpush2.bf16.msra.mxu1 %v6638_v26  ;;  %5020 = vmatprep.subr.bf16.mxu0 %v6643_v27  ;;  %v6679_v26 = vld [vmem:[%s7933_s23 + $0xccc] ss:$16 sps:$4 sm:$0xff]  }
 0x2cc   : > { %5063 = vmatprep.subr.bf16.mxu1 %v6646_v28  ;;  %v6682_v27 = vld [vmem:[%s7933_s23 + $0xecc] ss:$16 sps:$4 sm:$0xff]   ;;  %v4732_v28 = vadd.f32 %v4731_v35, %v4689_v51  ;;  %v5179_v30 = vrot.slane %v8566_v22, %v5178_v25 }
 0x2ce   : > { %5021 = vmatpush2.bf16.msra.mxu0 %v6641_v3  ;;  %v4695_v3 = vadd.f32 %v4694_v21, %v4652_v4  ;;  %v6703_v21 = vld [vmem:[%s7933_s23 + $0xc4c] ss:$16 sps:$4 sm:$0xff]  }
 0x2cf   : > { %5064 = vmatpush2.bf16.msra.mxu1 %v6644_v6  ;;  %5022 = vmatprep.subr.bf16.mxu0 %v6649_v37 }
 0x2d0   : > { %5065 = vmatprep.subr.bf16.mxu1 %v6652_v38  ;;  %v4734_v38 = vadd.f32 %v4733_v59, %v4691_v19  ;;  %v4738_v35 = vadd.f32 %v4737_v7, %v4695_v3  ;;  %v6698_v19 = vld [vmem:[%s7933_s23 + $0xe68] ss:$16 sps:$4 sm:$0xff]  }
 0x2d1   : > { %v6710_v3 = vld [vmem:[%s7933_s23 + $0xe28] ss:$16 sps:$4 sm:$0xff]  }
 0x2d2   : > { %5023 = vmatpush2.bf16.msra.mxu0 %v6647_v43  ;;  %v6677_v43 = vld [vmem:[%s7933_s23 + $0xcc8] ss:$16 sps:$4 sm:$0xff]  }
 0x2d3   : > { %5066 = vmatpush2.bf16.msra.mxu1 %v6650_v40  ;;  %5024 = vmatprep.subr.bf16.mxu0 %v6655_v41  ;;  %v6680_v40 = vld [vmem:[%s7933_s23 + $0xec8] ss:$16 sps:$4 sm:$0xff]   ;;  %v5205_v41 = vrot.slane %v8573_v32, %v5174_v23  ;;  %v6706_v23 = vld [vmem:[%s7933_s23 + $0xe4c] ss:$16 sps:$4 sm:$0xff]  }
 0x2d4   : > { %5067 = vmatprep.subr.bf16.mxu1 %v6658_v42 }
 0x2d6   : > { %5025 = vmatpush2.bf16.msra.mxu0 %v6653_v45 }
 0x2d7   : > { %5068 = vmatpush2.bf16.msra.mxu1 %v6656_v46  ;;  %5026 = vmatprep.subr.bf16.mxu0 %v6661_v36  ;;  %v5209_v36 = vrot.slane %v8573_v32, %v5178_v25  ;;  %v6701_v25 = vld [vmem:[%s7933_s23 + $0xc48] ss:$16 sps:$4 sm:$0xff]  }
 0x2d8   : > { %5069 = vmatprep.subr.bf16.mxu1 %v6664_v47 }
 0x2da   : > { %5027 = vmatpush2.bf16.msra.mxu0 %v6659_v34  ;;  %v6683_v34 = vld [vmem:[%s7933_s23 + $0xca8] ss:$16 sps:$4 sm:$0xff]  }
 0x2db   : > { %5070 = vmatpush2.bf16.msra.mxu1 %v6662_v57  ;;  %5028 = vmatprep.subr.bf16.mxu0 %v6667_v61  ;;  %v6686_v57 = vld [vmem:[%s7933_s23 + $0xea8] ss:$16 sps:$4 sm:$0xff]  }
 0x2dc   : > { %5071 = vmatprep.subr.bf16.mxu1 %v6670_v62 }
 0x2de   : > { %5029 = vmatpush2.bf16.msra.mxu0 %v6665_v8  ;;  %v6692_v8 = vld [vmem:[%s7933_s23 + $0xe88] ss:$16 sps:$4 sm:$0xff]  }
 0x2df   : > { %5072 = vmatpush2.bf16.msra.mxu1 %v6668_v9  ;;  %5084 = vmatprep.subr.bf16.mxu0 %v6673_v16  ;;  %v6697_v9 = vld [vmem:[%s7933_s23 + $0xc6c] ss:$16 sps:$4 sm:$0xff]  }
 0x2e0   : > { %5127 = vmatprep.subr.bf16.mxu1 %v6676_v48 }
 0x2e1   : > { %v4774_v6 = vpop.f32.mrf.mxu0  ;;  %5031 = vmatmul.mubr.bf16.vlgmr.msra.gmra.mxu0 %v8221_v52  ;;  %v6685_v52 = vld [vmem:[%s7933_s23 + $0xcac] ss:$16 sps:$4 sm:$0xff]  }
 0x2e2   : > { %v4817_v37 = vpop.f32.mrf.mxu1  ;;  %5074 = vmatmul.mubr.bf16.vlgmr.msra.gmra.mxu1 %v8225_v53  ;;  %v4775_v39 = vadd.f32 %v4774_v6, %v4732_v28  ;;  %5085 = vmatpush1.bf16.msra.mxu0 %v6671_v54  ;;  %v4736_v53 = vadd.f32 %v4735_v17, %v4693_v31  ;;  %v6712_v28 = vld [vmem:[%s7933_s23 + $0xe2c] ss:$16 sps:$4 sm:$0xff]   ;;  %v6707_v31 = vld [vmem:[%s7933_s23 + $0xc28] ss:$16 sps:$4 sm:$0xff]  }
 0x2e3   : > { %5128 = vmatpush1.bf16.msra.mxu1 %v6674_v24  ;;  %v4776_v42 = vpop.f32.mrf.mxu0  ;;  %5086 = vmatprep.subr.bf16.mxu0 %v6679_v26  ;;  %v6704_v26 = vld [vmem:[%s7933_s23 + $0xe48] ss:$16 sps:$4 sm:$0xff]   ;;  %v6715_v6 = vld [vmem:[%s7933_s23 + $0xc0c] ss:$16 sps:$4 sm:$0xff]  }
 0x2e4   : > { %v4819_v29 = vpop.f32.mrf.mxu1  ;;  %5129 = vmatprep.subr.bf16.mxu1 %v6682_v27  ;;  %v4818_v45 = vadd.f32 %v4817_v37, %v4775_v39  ;;  %v4777_v46 = vadd.f32 %v4776_v42, %v4734_v38  ;;  %5116 = vmatprep.mubr.bf16.mxu0 %v8237_v14  ;;  %v6691_v14 = vld [vmem:[%s7933_s23 + $0xc8c] ss:$16 sps:$4 sm:$0xff]   ;;  %v6713_v38 = vld [vmem:[%s7933_s23 + $0xc08] ss:$16 sps:$4 sm:$0xff]  }
 0x2e5   : > { %5159 = vmatprep.mubr.bf16.mxu1 %v8241_v15  ;;  %v4778_v47 = vpop.f32.mrf.mxu0  ;;  %v6694_v15 = vld [vmem:[%s7933_s23 + $0xe8c] ss:$16 sps:$4 sm:$0xff]   ;;  %v6716_v39 = vld [vmem:[%s7933_s23 + $0xe08] ss:$16 sps:$4 sm:$0xff]  }
 0x2e6   : > { %v4821_v49 = vpop.f32.mrf.mxu1  ;;  %v5192_v55 = vmul.f32 %v5175_v20, %v4818_v45  ;;  %v4820_v56 = vadd.f32 %v4819_v29, %v4777_v46  ;;  %v4779_v33 = vadd.f32 %v4778_v47, %v4736_v53  ;;  %5087 = vmatpush1.bf16.msra.mxu0 %v6677_v43  ;;  %v6709_v27 = vld [vmem:[%s7933_s23 + $0xc2c] ss:$16 sps:$4 sm:$0xff]   ;;  %v6731_v45 = vld [vmem:[%s7933_s23 + $0xda8] ss:$16 sps:$4 sm:$0xff]  }
 0x2e7   : > { %5130 = vmatpush1.bf16.msra.mxu1 %v6680_v40  ;;  %v4780_v58 = vpop.f32.mrf.mxu0  ;;  %5088 = vmatprep.subr.bf16.mxu0 %v6685_v52  ;;  %v6718_v37 = vld [vmem:[%s7933_s23 + $0xe0c] ss:$16 sps:$4 sm:$0xff]   ;;  %v6719_v40 = vld [vmem:[%s7933_s23 + $0xde8] ss:$16 sps:$4 sm:$0xff]  }
 0x2e8   : > { %5131 = vmatprep.subr.bf16.mxu1 %v6688_v44  ;;  %v5222_v59 = vadd.f32 %v5205_v41, %v5192_v55  ;;  %v5193_v61 = vmul.f32 %v5179_v30, %v4820_v56  ;;  %v4822_v62 = vadd.f32 %v4821_v49, %v4779_v33  ;;  %v4781_v60 = vadd.f32 %v4780_v58, %v4738_v35  ;;  %v4823_v63 = vpop.f32.mrf.mxu1  ;;  %v6724_v43 = vld [vmem:[%s7933_s23 + $0xfec] ss:$16 sps:$4 sm:$0xff]   ;;  %v6728_v52 = vld [vmem:[%s7933_s23 + $0xfc8] ss:$16 sps:$4 sm:$0xff]  }
 0x2e9   : > { %v6727_v42 = vld [vmem:[%s7933_s23 + $0xdcc] ss:$16 sps:$4 sm:$0xff]   ;;  %v6734_v46 = vld [vmem:[%s7933_s23 + $0xfa8] ss:$16 sps:$4 sm:$0xff]  }
 0x2ea   : > { %v5223_v0 = vadd.f32 %v5209_v36, %v5193_v61  ;;  %v5196_v1 = vmul.f32 %v5175_v20, %v4822_v62  ;;  %v4824_v2 = vadd.f32 %v4823_v63, %v4781_v60  ;;  %5089 = vmatpush1.bf16.msra.mxu0 %v6683_v34  ;;  %v5230_v17 = vmax.f32 %v5222_v59, 0.0  ;;  %v6721_v20 = vld [vmem:[%s7933_s23 + $0xdec] ss:$16 sps:$4 sm:$0xff]   ;;  %v6737_v47 = vld [vmem:[%s7933_s23 + $0xd88] ss:$16 sps:$4 sm:$0xff]  }
 0x2eb   : > { %5132 = vmatpush1.bf16.msra.mxu1 %v6686_v57  ;;  %5090 = vmatprep.subr.bf16.mxu0 %v6691_v14  ;;  %v6730_v29 = vld [vmem:[%s7933_s23 + $0xfcc] ss:$16 sps:$4 sm:$0xff]   ;;  %v6740_v49 = vld [vmem:[%s7933_s23 + $0xf88] ss:$16 sps:$4 sm:$0xff]  }
 0x2ec   : > { %5133 = vmatprep.subr.bf16.mxu1 %v6694_v15  ;;  %v5231_v16 = vmax.f32 %v5223_v0, 0.0  ;;  %v5226_v48 = vadd.f32 %v5205_v41, %v5196_v1  ;;  %v5197_v50 = vmul.f32 %v5179_v30, %v4824_v2  ;;  %v6722_v41 = vld [vmem:[%s7933_s23 + $0xfe8] ss:$16 sps:$4 sm:$0xff]   ;;  %v6733_v44 = vld [vmem:[%s7933_s23 + $0xdac] ss:$16 sps:$4 sm:$0xff]  }
 0x2ed   : > { %v6725_v30 = vld [vmem:[%s7933_s23 + $0xdc8] ss:$16 sps:$4 sm:$0xff]   ;;  %v6736_v53 = vld [vmem:[%s7933_s23 + $0xfac] ss:$16 sps:$4 sm:$0xff]  }
 0x2ee   : > { %v5954_v51 = vpack.c.bf16 %v5231_v16, %v5230_v17  ;;  %v5227_v54 = vadd.f32 %v5209_v36, %v5197_v50  ;;  %5091 = vmatpush1.bf16.msra.mxu0 %v6689_v5  ;;  %v5234_v24 = vmax.f32 %v5226_v48, 0.0  ;;  %v6739_v35 = vld [vmem:[%s7933_s23 + $0xd8c] ss:$16 sps:$4 sm:$0xff]   ;;  %v6743_v33 = vld [vmem:[%s7933_s23 + $0xd68] ss:$16 sps:$4 sm:$0xff]  }
 0x2ef   : > { %5134 = vmatpush1.bf16.msra.mxu1 %v6692_v8  ;;  %5092 = vmatprep.subr.bf16.mxu0 %v6697_v9  ;;  %v6742_v36 = vld [vmem:[%s7933_s23 + $0xf8c] ss:$16 sps:$4 sm:$0xff]   ;;  %v6746_v34 = vld [vmem:[%s7933_s23 + $0xf68] ss:$16 sps:$4 sm:$0xff]  }
 0x2f0   : > { %5135 = vmatprep.subr.bf16.mxu1 %v6700_v13  ;;  %5262 = vst [vmem:[%s8601_s15] sm:$0xff] %v5954_v51  ;;  %v5235_v4 = vmax.f32 %v5227_v54, 0.0  ;;  %v6745_v55 = vld [vmem:[%s7933_s23 + $0xd6c] ss:$16 sps:$4 sm:$0xff]   ;;  %v6749_v14 = vld [vmem:[%s7933_s23 + $0xd48] ss:$16 sps:$4 sm:$0xff]  }
 0x2f1   : > { %v6748_v56 = vld [vmem:[%s7933_s23 + $0xf6c] ss:$16 sps:$4 sm:$0xff]   ;;  %v6752_v15 = vld [vmem:[%s7933_s23 + $0xf48] ss:$16 sps:$4 sm:$0xff]  }
 0x2f2   : > { %v5956_v7 = vpack.c.bf16 %v5235_v4, %v5234_v24  ;;  %5093 = vmatpush1.bf16.msra.mxu0 %v6695_v18  ;;  %v6751_v57 = vld [vmem:[%s7933_s23 + $0xd4c] ss:$16 sps:$4 sm:$0xff]   ;;  %v6755_v62 = vld [vmem:[%s7933_s23 + $0xd28] ss:$16 sps:$4 sm:$0xff]  }
 0x2f3   : > { %5136 = vmatpush1.bf16.msra.mxu1 %v6698_v19  ;;  %5094 = vmatprep.subr.bf16.mxu0 %v6703_v21  ;;  %v6754_v58 = vld [vmem:[%s7933_s23 + $0xf4c] ss:$16 sps:$4 sm:$0xff]   ;;  %v6758_v60 = vld [vmem:[%s7933_s23 + $0xf28] ss:$16 sps:$4 sm:$0xff]  }
 0x2f4   : > { %5137 = vmatprep.subr.bf16.mxu1 %v6706_v23  ;;  %5264 = vst [vmem:[%s8601_s15 + $0x10] sm:$0xff] %v5956_v7  ;;  %v6757_v59 = vld [vmem:[%s7933_s23 + $0xd2c] ss:$16 sps:$4 sm:$0xff]   ;;  %v6761_v1 = vld [vmem:[%s7933_s23 + $0xd08] ss:$16 sps:$4 sm:$0xff]  }
 0x2f5   : > { %v6760_v61 = vld [vmem:[%s7933_s23 + $0xf2c] ss:$16 sps:$4 sm:$0xff]   ;;  %v6764_v2 = vld [vmem:[%s7933_s23 + $0xf08] ss:$16 sps:$4 sm:$0xff]  }
 0x2f6   : > { %5095 = vmatpush1.bf16.msra.mxu0 %v6701_v25  ;;  %v6763_v63 = vld [vmem:[%s7933_s23 + $0xd0c] ss:$16 sps:$4 sm:$0xff]  }
 0x2f7   : > { %5138 = vmatpush1.bf16.msra.mxu1 %v6704_v26  ;;  %5096 = vmatprep.subr.bf16.mxu0 %v6709_v27  ;;  %v6766_v0 = vld [vmem:[%s7933_s23 + $0xf0c] ss:$16 sps:$4 sm:$0xff]  }
 0x2f8   : > { %5139 = vmatprep.subr.bf16.mxu1 %v6712_v28 }
 0x2fa   : > { %5097 = vmatpush1.bf16.msra.mxu0 %v6707_v31 }
 0x2fb   : > { %5140 = vmatpush1.bf16.msra.mxu1 %v6710_v3  ;;  %5098 = vmatprep.subr.bf16.mxu0 %v6715_v6 }
 0x2fc   : > { %5141 = vmatprep.subr.bf16.mxu1 %v6718_v37 }
 0x2fe   : > { %5099 = vmatpush1.bf16.msra.mxu0 %v6713_v38 }
 0x2ff   : > { %5142 = vmatpush1.bf16.msra.mxu1 %v6716_v39  ;;  %5100 = vmatprep.subr.bf16.mxu0 %v6721_v20 }
 0x300   : > { %5143 = vmatprep.subr.bf16.mxu1 %v6724_v43 }
 0x302   : > { %5101 = vmatpush2.bf16.msra.mxu0 %v6719_v40 }
 0x303   : > { %5144 = vmatpush2.bf16.msra.mxu1 %v6722_v41  ;;  %5102 = vmatprep.subr.bf16.mxu0 %v6727_v42 }
 0x304   : > { %5145 = vmatprep.subr.bf16.mxu1 %v6730_v29 }
 0x306   : > { %5103 = vmatpush2.bf16.msra.mxu0 %v6725_v30  ;;  %v5182_v30 = vsub.s32 2, %v8552_v12 }
 0x307   : > { %5146 = vmatpush2.bf16.msra.mxu1 %v6728_v52  ;;  %5104 = vmatprep.subr.bf16.mxu0 %v6733_v44 }
 0x308   : > { %5147 = vmatprep.subr.bf16.mxu1 %v6736_v53 }
 0x30a   : > { %5105 = vmatpush2.bf16.msra.mxu0 %v6731_v45 }
 0x30b   : > { %5148 = vmatpush2.bf16.msra.mxu1 %v6734_v46  ;;  %5106 = vmatprep.subr.bf16.mxu0 %v6739_v35  ;;  %v5186_v35 = vsub.s32 3, %v8552_v12 }
 0x30c   : > { %5149 = vmatprep.subr.bf16.mxu1 %v6742_v36 }
 0x30e   : > { %5107 = vmatpush2.bf16.msra.mxu0 %v6737_v47 }
 0x30f   : > { %5150 = vmatpush2.bf16.msra.mxu1 %v6740_v49  ;;  %5108 = vmatprep.subr.bf16.mxu0 %v6745_v55 }
 0x310   : > { %5151 = vmatprep.subr.bf16.mxu1 %v6748_v56 }
 0x312   : > { %5109 = vmatpush2.bf16.msra.mxu0 %v6743_v33  ;;  %v5183_v33 = vrot.slane %v8566_v22, %v5182_v30 }
 0x313   : > { %5152 = vmatpush2.bf16.msra.mxu1 %v6746_v34  ;;  %5110 = vmatprep.subr.bf16.mxu0 %v6751_v57  ;;  %v5213_v34 = vrot.slane %v8573_v32, %v5182_v30 }
 0x314   : > { %5153 = vmatprep.subr.bf16.mxu1 %v6754_v58 }
 0x316   : > { %5111 = vmatpush2.bf16.msra.mxu0 %v6749_v14 }
 0x317   : > { %5154 = vmatpush2.bf16.msra.mxu1 %v6752_v15  ;;  %5112 = vmatprep.subr.bf16.mxu0 %v6757_v59 }
 0x318   : > { %5155 = vmatprep.subr.bf16.mxu1 %v6760_v61  ;;  %v5187_v61 = vrot.slane %v8566_v22, %v5186_v35 }
 0x31a   : > { %5113 = vmatpush2.bf16.msra.mxu0 %v6755_v62  ;;  %v5217_v62 = vrot.slane %v8573_v32, %v5186_v35 }
 0x31b   : > { %5156 = vmatpush2.bf16.msra.mxu1 %v6758_v60  ;;  %5114 = vmatprep.subr.bf16.mxu0 %v6763_v63 }
 0x31c   : > { %5157 = vmatprep.subr.bf16.mxu1 %v6766_v0 }
 0x31e   : > { %5115 = vmatpush2.bf16.msra.mxu0 %v6761_v1 }
 0x31f   : > { %5158 = vmatpush2.bf16.msra.mxu1 %v6764_v2 }
 0x321   : > { %5117 = vmatmul.mubr.bf16.vlgmr.msra.gmra.mxu0 %v8309_v10  ;;  %v4860_v5 = vpop.f32.mrf.mxu0 }
 0x322   : > { %5160 = vmatmul.mubr.bf16.vlgmr.msra.gmra.mxu1 %v8313_v11  ;;  %v4903_v8 = vpop.f32.mrf.mxu1 }
 0x323   : > { %v4862_v9 = vpop.f32.mrf.mxu0  ;;  %v4904_v25 = vadd.f32 %v4903_v8, %v4860_v5 }
 0x324   : > { %v4905_v13 = vpop.f32.mrf.mxu1 }
 0x325   : > { %v4864_v17 = vpop.f32.mrf.mxu0  ;;  %v4906_v11 = vadd.f32 %v4905_v13, %v4862_v9 }
 0x326   : > { %v4907_v16 = vpop.f32.mrf.mxu1 }
 0x327   : > { %v4866_v48 = vpop.f32.mrf.mxu0  ;;  %v4908_v31 = vadd.f32 %v4907_v16, %v4864_v17 }
 0x328   : > { %v4909_v50 = vpop.f32.mrf.mxu1 }
 0x329   : > { %v4910_v6 = vadd.f32 %v4909_v50, %v4866_v48 }
 0x361   : > { %v4946_v51 = vpop.f32.mrf.mxu0 }
 0x362   : > { %v4989_v54 = vpop.f32.mrf.mxu1  ;;  %v4947_v26 = vadd.f32 %v4946_v51, %v4904_v25  ;;  %v5295_v25 = vld [vmem:[%s8601_s15 + $0x10] sm:$0xff] (%p6867_p6) }
 0x363   : > { %v4948_v18 = vpop.f32.mrf.mxu0  ;;  %5296 = vst [vmem:[%s5278_s28 + $0x40] sm:$0xff] (%p6867_p6), %v5295_v25 }
 0x364   : > { %v4991_v19 = vpop.f32.mrf.mxu1  ;;  %v4949_v3 = vadd.f32 %v4948_v18, %v4906_v11  ;;  %v4990_v37 = vadd.f32 %v4989_v54, %v4947_v26 }
 0x365   : > { %v4950_v21 = vpop.f32.mrf.mxu0 }
 0x366   : > { %v4993_v23 = vpop.f32.mrf.mxu1  ;;  %v4951_v38 = vadd.f32 %v4950_v21, %v4908_v31  ;;  %v4992_v43 = vadd.f32 %v4991_v19, %v4949_v3 }
 0x367   : > { %v4952_v24 = vpop.f32.mrf.mxu0 }
 0x368   : > { %v4995_v4 = vpop.f32.mrf.mxu1  ;;  %v4953_v40 = vadd.f32 %v4952_v24, %v4910_v6  ;;  %v4994_v42 = vadd.f32 %v4993_v23, %v4951_v38 }
 0x36a   : > { %v4996_v53 = vadd.f32 %v4995_v4, %v4953_v40 }
 0x3a1   : > { %v5032_v7 = vpop.f32.mrf.mxu0 }
 0x3a2   : > { %v5075_v10 = vpop.f32.mrf.mxu1  ;;  %v5033_v41 = vadd.f32 %v5032_v7, %v4990_v37  ;;  %v5291_v7 = vld [vmem:[%s8601_s15] sm:$0xff] (%p6867_p6) }
 0x3a3   : > { %v5034_v27 = vpop.f32.mrf.mxu0  ;;  %5292 = vst [vmem:[%s5278_s28] sm:$0xff] (%p6867_p6), %v5291_v7 }
 0x3a4   : > { %v5077_v28 = vpop.f32.mrf.mxu1  ;;  %v5035_v29 = vadd.f32 %v5034_v27, %v4992_v43  ;;  %v5076_v45 = vadd.f32 %v5075_v10, %v5033_v41 }
 0x3a5   : > { %v5036_v39 = vpop.f32.mrf.mxu0 }
 0x3a6   : > { %v5079_v20 = vpop.f32.mrf.mxu1  ;;  %v5037_v46 = vadd.f32 %v5036_v39, %v4994_v42  ;;  %v5078_v49 = vadd.f32 %v5077_v28, %v5035_v29 }
 0x3a7   : > { %v5038_v52 = vpop.f32.mrf.mxu0 }
 0x3a8   : > { %v5081_v44 = vpop.f32.mrf.mxu1  ;;  %v5039_v55 = vadd.f32 %v5038_v52, %v4996_v53  ;;  %v5080_v14 = vadd.f32 %v5079_v20, %v5037_v46 }
 0x3aa   : > { %v5082_v63 = vadd.f32 %v5081_v44, %v5039_v55 }
 0x3e1   : > { %v5118_v36 = vpop.f32.mrf.mxu0 }
 0x3e2   : > { %v5161_v47 = vpop.f32.mrf.mxu1  ;;  %v5119_v56 = vadd.f32 %v5118_v36, %v5076_v45 }
 0x3e3   : > { %v5120_v57 = vpop.f32.mrf.mxu0 }
 0x3e4   : > { %v5163_v58 = vpop.f32.mrf.mxu1  ;;  %v5162_v15 = vadd.f32 %v5161_v47, %v5119_v56  ;;  %v5121_v59 = vadd.f32 %v5120_v57, %v5078_v49 }
 0x3e5   : > { %v5122_v60 = vpop.f32.mrf.mxu0 }
 0x3e6   : > { %v5165_v12 = vpop.f32.mrf.mxu1  ;;  %v5194_v0 = vmul.f32 %v5183_v33, %v5162_v15  ;;  %v5164_v1 = vadd.f32 %v5163_v58, %v5121_v59  ;;  %v5123_v2 = vadd.f32 %v5122_v60, %v5080_v14 }
 0x3e7   : > { %v5124_v5 = vpop.f32.mrf.mxu0 }
 0x3e8   : > { %v5224_v8 = vadd.f32 %v5213_v34, %v5194_v0  ;;  %v5195_v9 = vmul.f32 %v5187_v61, %v5164_v1  ;;  %v5166_v13 = vadd.f32 %v5165_v12, %v5123_v2  ;;  %v5125_v17 = vadd.f32 %v5124_v5, %v5082_v63  ;;  %v5167_v16 = vpop.f32.mrf.mxu1 }
 0x3ea   : > { %v5225_v48 = vadd.f32 %v5217_v62, %v5195_v9  ;;  %v5198_v50 = vmul.f32 %v5183_v33, %v5166_v13  ;;  %v5168_v51 = vadd.f32 %v5167_v16, %v5125_v17  ;;  %v5232_v22 = vmax.f32 %v5224_v8, 0.0 }
 0x3ec   : > { %v5233_v54 = vmax.f32 %v5225_v48, 0.0  ;;  %v5228_v32 = vadd.f32 %v5213_v34, %v5198_v50  ;;  %v5199_v18 = vmul.f32 %v5187_v61, %v5168_v51 }
 0x3ee   : > { %v5955_v19 = vpack.c.bf16 %v5233_v54, %v5232_v22  ;;  %v5229_v21 = vadd.f32 %v5217_v62, %v5199_v18  ;;  %v5236_v23 = vmax.f32 %v5228_v32, 0.0 }
 0x3f0   : > { %5263 = vst [vmem:[%s8601_s15 + $0x8] sm:$0xff] %v5955_v19  ;;  %v5237_v24 = vmax.f32 %v5229_v21, 0.0  ;;  %5272 = sbr.rel (!%p6867_p6) target bundleno = 1021 (0x3fd), region = 63 }
 0x3f2   : > { %v5957_v4 = vpack.c.bf16 %v5237_v24, %v5236_v23 }
 0x3f4   : > { %5265 = vst [vmem:[%s8601_s15 + $0x18] sm:$0xff] %v5957_v4 }
 0x3f7   : > { %v5293_v10 = vld [vmem:[%s8601_s15 + $0x8] sm:$0xff] }
 0x3f8   : > { %5294 = vst [vmem:[%s5278_s28 + $0x8] sm:$0xff] %v5293_v10 }
 0x3fb   : > { %v5297_v11 = vld [vmem:[%s8601_s15 + $0x18] sm:$0xff] }
 0x3fc   : > { %5298 = vst [vmem:[%s5278_s28 + $0x48] sm:$0xff] %v5297_v11 }
 0x3fd PF: > { %s14_s19 = sadd.s32 1, %s6805_s19   ;;  %s8689_s15 = smov %s6793_s16 }
 0x3fe   : > { %p11_p12 = scmp.ge.s32.totalorder %s14_s19, 6   ;;  %s8690_s16 = smov %s6872_s25 }
 0x3ff   : > { %s8691_s17 = smov %s6801_s18  ;;  %s8692_s18 = smov %s8694_s20 }
 0x400   :  { %13 = sbr.rel (!%p11_p12) target bundleno = 3 (0x3), region = 126 }

// kernel: mlp_binaryconnect_forward.5
= control target key start
LH: loop header
LB: loop body
LE: loop exit
PB: predicated region body
PF: predicated region fallthrough
CT: control target
= control target key end

     0   :  { %s6917_s0 = inlined_call_operand.vmem [shape: bf16[16,2048], index: 0, kind: input, shape index: {}]   ;;  %s6918_s1 = inlined_call_operand.hbm [shape: bf16[2048,2048], index: 1, kind: input, shape index: {}]   ;;  %s6919_s2 = inlined_call_operand.hbm [shape: f32[1,2048], index: 2, kind: input, shape index: {}]   ;;  %s6920_s3 = inlined_call_operand.hbm [shape: f32[1,2048], index: 3, kind: input, shape index: {}]   ;;  %s6921_s4 = inlined_call_operand.vmem [shape: bf16[16,2048], index: 4, kind: output, shape index: {}]  }
   0x1   :  { %6923 = sst [smem:[#allocation11_spill]] %s6918_s1 }
   0x2   :  { %9 = vsyncpa [#allocation3], 0 }
   0x3   :  { %11 = vsyncpa [#allocation3 + $0x1], 0 }
   0x4   :  { %12 = vsyncpa [#allocation5], 0 }
   0x5   :  { %14 = vsyncpa [#allocation5 + $0x1], 0  ;;  %s6019_s15 = smov 0   ;;  %s6021_s16 = smov 0  }
   0x6   :  { %s6023_s17 = smov 0   ;;  %s6025_s18 = smov 0  }
   0x7   :  { %s6027_s19 = smov 0   ;;  %s6029_s20 = smov 0  }
   0x8 LB: > { %s6048_s21 = sadd.s32 4294967295, %s5986_s20   ;;  %s29_s22 = sadd.s32 1, %s5982_s19  ;;  %s5986_s20 = sphi %s6029_s20, %s20_s20   ;;  %s5982_s19 = sphi %s6027_s19, %s6936_s19   ;;  %s5978_s18 = sphi %s6025_s18, %s6935_s18   ;;  %s5974_s17 = sphi %s6023_s17, %s6934_s17   ;;  %s5970_s16 = sphi %s6021_s16, %s6933_s16   ;;  %s5966_s15 = sphi %s6019_s15, %s6932_s15  }
   0x9   : > { %p30_p0 = scmp.ge.s32.totalorder %s29_s22, 4  ;;  %s65_s23 = sadd.s32 1, %s5974_s17 }
   0xa   : > { %p72_p1 = scmp.ne.s32.totalorder %s5974_s17, %s5970_s16  ;;  %p73_p2 = scmp.eq.s32.totalorder %s5986_s20, 0 }
   0xb   : > { %s6938_s22 = smov (%p30_p0, %s29_s22), 0  ;;  %p78_p4 = scmp.ne.s32.totalorder %s5970_s16, %s5966_s15 }
   0xc   : > { %6924 = sst [smem:[#allocation10_spill]] %s6938_s22  ;;  %p6057_p3 = por %p73_p2, %p72_p1 }
   0xd   : > { %s62_s25 = ssub.s32 %s5982_s19, %s6938_s22  ;;  %p79_p5 = scmp.eq.s32.totalorder %s6048_s21, 0 }
   0xe   : > { %p63_p6 = scmp.eq.s32.totalorder %s62_s25, 0  ;;  %p156_p7 = scmp.eq.s32.totalorder %s6048_s21, 3 }
   0xf   : > { %p6066_p8 = por %p79_p5, %p78_p4  ;;  %p5028_p10 = scmp.lt.s32.totalorder %s5986_s20, 4 }
  0x10   : > { %s6071_s27 = scalar_select %p63_p6, %s5974_s17, %s65_s23  }
  0x11   : > { %p6073_p9 = por %p156_p7, %p72_p1  ;;  %s6079_s29 = sand.u32 1, %s5974_s17  }
  0x12   : > { %s213_s30 = sand.u32 1, %s5986_s20   ;;  %s4453_s5 = sshll.u32 %s6079_s29, 12 }
  0x13   : > { %p6085_p11 = pnand %p5028_p10, %p6057_p3  ;;  %s196_s7 = scalar_lea.vmem [#allocation2], %s4453_s5 }
  0x14   : > { %s203_s8 = sshll.u32 %s196_s7, 4  ;;  %s4456_s9 = sshll.u32 %s6079_s29, 2  ;;  %s6089_s8 = int_to_ptr.vmem [resolvable:$true] %s203_s8 }
  0x15   : > { %s5005_s10 = sshll.u32 %s5982_s19, 6  ;;  %s217_s14 = scalar_lea.vmem [#allocation4], %s4456_s9 }
  0x16   : > { %s223_s13 = scalar_lea.hbm %s6919_s2, %s5005_s10  ;;  %s225_s15 = sshll.u32 %s217_s14, 4  ;;  %s226_s15 = int_to_ptr.vmem [resolvable:$true] %s225_s15 }
  0x17   : > { %s6101_s25 = scalar_lea.hbm %s6920_s3, %s5005_s10  ;;  %s6103_s22 = scalar_lea.sflag [#allocation5], %s213_s30 }
  0x18   : > { %p5850_p12 = pneg %p6085_p11  ;;  %s5861_s5 = scalar_lea.vmem %s226_s15, 64 }
  0x19   : > { %p5862_p13 = scmp.ne.s32.totalorder %s226_s15, %s5861_s5  ;;  %s5988_s7 = smov [#allocation4]  }
  0x1a   : > { %s5866_s11 = sshll.u32 %s5988_s7, 4  ;;  %s5867_s11 = int_to_ptr.vmem [resolvable:$false] %s5866_s11 }
  0x1b   : > { %p5864_p0 = pnand %p5862_p13, %p5850_p12  ;;  %s5868_s12 = scalar_lea.vmem %s5867_s11, 128 }
  0x1c   : > { %p5869_p2 = scmp.lt.s32.totalorder %s226_s15, %s5867_s11  ;;  %p5870_p3 = scmp.lt.s32.totalorder %s5868_s12, %s5861_s5 }
  0x1d   : > { %p5865_p1 = pneg %p5864_p0 }
  0x1e   : > { %p5871_p4 = por %p5870_p3, %p5869_p2 }
  0x20   : > { %p5872_p5 = pnand %p5871_p4, %p5865_p1 }
  0x22   : > { %5875 = shalt.err (!%p5872_p5)
}
  0x23   : > { %5024 = dma.hbm_to_vmem [thread:$0]  (!%p6085_p11), %s223_s13, 64, %s226_s15, %s6103_s22  }
  0x24   : > { %p4462_p6 = scmp.ge.s32.totalorder %s5986_s20, 1  ;;  %p249_p7 = scmp.lt.s32.totalorder %s5986_s20, 5 }
  0x25   : > { %s5004_s30 = sshll.u32 %s5982_s19, 8  ;;  %s6930_s1 = sld [smem:[#allocation11_spill]] }
  0x26   : > { %p6116_p10 = pnand %p4462_p6, %p249_p7  ;;  %s193_s5 = scalar_lea.sflag [#allocation3], %s6079_s29 }
  0x27   : > { %s5889_s7 = scalar_lea.vmem %s6089_s8, 65536  ;;  %s5989_s11 = smov [#allocation2]  }
  0x28   : > { %p5890_p13 = scmp.ne.s32.totalorder %s6089_s8, %s5889_s7  ;;  %s5894_s13 = sshll.u32 %s5989_s11, 4  ;;  %s5895_s13 = int_to_ptr.vmem [resolvable:$false] %s5894_s13 }
  0x29   : > { %s5896_s15 = scalar_lea.vmem %s5895_s13, 131072  ;;  %p5897_p2 = scmp.lt.s32.totalorder %s6089_s8, %s5895_s13 }
  0x2a   : > { %p5892_p0 = pnand %p5890_p13, %p5850_p12  ;;  %p5898_p3 = scmp.lt.s32.totalorder %s5896_s15, %s5889_s7 }
  0x2b   : > { %s202_s24 = scalar_lea.hbm %s6930_s1, %s5004_s30 }
  0x2c   : > { %p5893_p1 = pneg %p5892_p0  ;;  %p5899_p4 = por %p5898_p3, %p5897_p2 }
  0x2e   : > { %p5900_p5 = pnand %p5899_p4, %p5893_p1 }
  0x30   : > { %5903 = shalt.err (!%p5900_p5)
}
  0x31   : > { %s5990_s12 = smov 1024   ;;  %s5991_s30 = smov 256  }
  0x32   : > { %s5992_s14 = smov 16   ;;  %s236_s23 = scalar_lea.vmem [#allocation6], %s4456_s9 }
  0x33   : > { %5021 = dma.hbm_to_vmem [thread:$0]  (!%p6085_p11), %s202_s24, 65536, %s6089_s8, %s193_s5, %s5990_s12, %s5991_s30, %s5992_s14  }
  0x34   : > { %s244_s1 = sshll.u32 %s236_s23, 4  ;;  %s5993_s7 = smov [#allocation6]   ;;  %s245_s1 = int_to_ptr.vmem [resolvable:$true] %s244_s1 }
  0x35   : > { %s5917_s11 = scalar_lea.vmem %s245_s1, 64  ;;  %s5922_s13 = sshll.u32 %s5993_s7, 4  ;;  %s5923_s13 = int_to_ptr.vmem [resolvable:$false] %s5922_s13 }
  0x36   : > { %p5918_p6 = scmp.ne.s32.totalorder %s245_s1, %s5917_s11  ;;  %s5924_s15 = scalar_lea.vmem %s5923_s13, 128 }
  0x37   : > { %p5925_p0 = scmp.lt.s32.totalorder %s245_s1, %s5923_s13  ;;  %p5926_p1 = scmp.lt.s32.totalorder %s5924_s15, %s5917_s11 }
  0x38   : > { %p5920_p7 = pnand %p5918_p6, %p5850_p12 }
  0x39   : > { %p5927_p2 = por %p5926_p1, %p5925_p0 }
  0x3a   : > { %p5921_p13 = pneg %p5920_p7 }
  0x3c   : > { %p5928_p3 = pnand %p5927_p2, %p5921_p13 }
  0x3e   : > { %5931 = shalt.err (!%p5928_p3)
}
  0x3f   : > { %5027 = dma.hbm_to_vmem [thread:$0]  (!%p6085_p11), %s6101_s25, 64, %s245_s1, %s6103_s22  }
  0x40   : > { %253 = sbr.rel (%p6116_p10) target bundleno = 806 (0x326), region = 36  ;;  %s6145_s29 = sand.u32 (!%p6116_p10), 1, %s5970_s16  }
  0x41   : > { %s4463_s8 = sshll.u32 (!%p6116_p10), %s6145_s29, 12  ;;  %s256_s9 = scalar_lea.sflag (!%p6116_p10), [#allocation3], %s6145_s29 }
  0x42   : > { %s6149_s24 = scalar_lea.vmem (!%p6116_p10), [#allocation2], %s4463_s8 }
  0x45   : > { %5957 = dma.done.wait (%p6066_p8), %s256_s9, 65536  }
  0x46   : > { %5959 = vsyncadd (%p6066_p8), %s256_s9, 4294901760  ;;  %s264_s1 = sand.u32 1, %s6048_s21   ;;  %s4464_s22 = sshll.u32 %s6145_s29, 2 }
  0x47   : > { %s265_s6 = scalar_lea.sflag [#allocation5], %s264_s1  ;;  %s6159_s25 = scalar_lea.vmem [#allocation4], %s4464_s22 }
  0x48   : > { %5961 = dma.done.wait (%p6066_p8), %s265_s6, 128  }
  0x49   : > { %5963 = vsyncadd (%p6066_p8), %s265_s6, 4294967168  ;;  %v5080_v0 = vld [vmem:[%s6149_s24 + $0xe4] ss:$16 sps:$4 sm:$0xff]   ;;  %v5084_v2 = vld [vmem:[%s6149_s24 + $0xe0] ss:$16 sps:$4 sm:$0xff]   ;;  %s277_s21 = scalar_lea.vmem [#allocation6], %s4464_s22 }
  0x4a   : > { %v5082_v1 = vld [vmem:[%s6149_s24 + $0x2e4] ss:$16 sps:$4 sm:$0xff]   ;;  %3497 = vmatprep.subr.bf16.mxu0 %v5080_v0  ;;  %v5085_v3 = vld [vmem:[%s6149_s24 + $0x2e0] ss:$16 sps:$4 sm:$0xff]   ;;  %v330_v50 = vld [vmem:[%s6917_s0 + $0x8] sm:$0xff]  ;;  %s4466_s22 = sshll.u32 %s6145_s29, 5 }
  0x4b   : > { %3540 = vmatprep.subr.bf16.mxu1 %v5082_v1  ;;  %v5086_v4 = vld [vmem:[%s6149_s24 + $0xc4] ss:$16 sps:$4 sm:$0xff]   ;;  %3498 = vmatpush1.bf16.msra.mxu0 %v5084_v2  ;;  %v5090_v6 = vld [vmem:[%s6149_s24 + $0xc0] ss:$16 sps:$4 sm:$0xff]   ;;  %v338_v51 = vld [vmem:[%s6917_s0 + $0x48] sm:$0xff]  ;;  %s6833_s29 = scalar_lea.vmem [#allocation7], %s4466_s22 }
  0x4c   : > { %3541 = vmatpush1.bf16.msra.mxu1 %v5085_v3  ;;  %v5088_v5 = vld [vmem:[%s6149_s24 + $0x2c4] ss:$16 sps:$4 sm:$0xff]   ;;  %3499 = vmatprep.subr.bf16.mxu0 %v5086_v4  ;;  %v5091_v7 = vld [vmem:[%s6149_s24 + $0x2c0] ss:$16 sps:$4 sm:$0xff]   ;;  %v6229_v55 = vcombine.high %v330_v50, %v338_v51 }
  0x4d   : > { %3542 = vmatprep.subr.bf16.mxu1 %v5088_v5  ;;  %v5092_v8 = vld [vmem:[%s6149_s24 + $0xa4] ss:$16 sps:$4 sm:$0xff]   ;;  %v5096_v10 = vld [vmem:[%s6149_s24 + $0xa0] ss:$16 sps:$4 sm:$0xff]  }
  0x4e   : > { %v5094_v9 = vld [vmem:[%s6149_s24 + $0x2a4] ss:$16 sps:$4 sm:$0xff]   ;;  %v5097_v11 = vld [vmem:[%s6149_s24 + $0x2a0] ss:$16 sps:$4 sm:$0xff]   ;;  %3572 = vmatprep.mubr.bf16.mxu1 %v6229_v55 }
  0x4f   : > { %3500 = vmatpush1.bf16.msra.mxu0 %v5090_v6  ;;  %v5098_v12 = vld [vmem:[%s6149_s24 + $0x84] ss:$16 sps:$4 sm:$0xff]   ;;  %v5102_v14 = vld [vmem:[%s6149_s24 + $0x80] ss:$16 sps:$4 sm:$0xff]  }
  0x50   : > { %3543 = vmatpush1.bf16.msra.mxu1 %v5091_v7  ;;  %3501 = vmatprep.subr.bf16.mxu0 %v5092_v8  ;;  %v5100_v13 = vld [vmem:[%s6149_s24 + $0x284] ss:$16 sps:$4 sm:$0xff]   ;;  %v5103_v15 = vld [vmem:[%s6149_s24 + $0x280] ss:$16 sps:$4 sm:$0xff]  }
  0x51   : > { %3544 = vmatprep.subr.bf16.mxu1 %v5094_v9  ;;  %v5104_v16 = vld [vmem:[%s6149_s24 + $0x64] ss:$16 sps:$4 sm:$0xff]   ;;  %v5108_v18 = vld [vmem:[%s6149_s24 + $0x60] ss:$16 sps:$4 sm:$0xff]   ;;  %v6251_v9 = vcombine.low %v330_v50, %v338_v51 }
  0x52   : > { %v5106_v17 = vld [vmem:[%s6149_s24 + $0x264] ss:$16 sps:$4 sm:$0xff]   ;;  %v5109_v19 = vld [vmem:[%s6149_s24 + $0x260] ss:$16 sps:$4 sm:$0xff]  }
  0x53   : > { %3502 = vmatpush1.bf16.msra.mxu0 %v5096_v10  ;;  %v5110_v20 = vld [vmem:[%s6149_s24 + $0x44] ss:$16 sps:$4 sm:$0xff]   ;;  %v5114_v22 = vld [vmem:[%s6149_s24 + $0x40] ss:$16 sps:$4 sm:$0xff]  }
  0x54   : > { %3545 = vmatpush1.bf16.msra.mxu1 %v5097_v11  ;;  %3503 = vmatprep.subr.bf16.mxu0 %v5098_v12  ;;  %v5112_v21 = vld [vmem:[%s6149_s24 + $0x244] ss:$16 sps:$4 sm:$0xff]   ;;  %v5115_v23 = vld [vmem:[%s6149_s24 + $0x240] ss:$16 sps:$4 sm:$0xff]  }
  0x55   : > { %3546 = vmatprep.subr.bf16.mxu1 %v5100_v13  ;;  %v5116_v24 = vld [vmem:[%s6149_s24 + $0x24] ss:$16 sps:$4 sm:$0xff]   ;;  %v5120_v26 = vld [vmem:[%s6149_s24 + $0x20] ss:$16 sps:$4 sm:$0xff]  }
  0x56   : > { %v5118_v25 = vld [vmem:[%s6149_s24 + $0x224] ss:$16 sps:$4 sm:$0xff]   ;;  %v5121_v27 = vld [vmem:[%s6149_s24 + $0x220] ss:$16 sps:$4 sm:$0xff]  }
  0x57   : > { %3504 = vmatpush1.bf16.msra.mxu0 %v5102_v14  ;;  %v5122_v28 = vld [vmem:[%s6149_s24 + $0x4] ss:$16 sps:$4 sm:$0xff]   ;;  %v5126_v30 = vld [vmem:[%s6149_s24] ss:$16 sps:$4 sm:$0xff]  }
  0x58   : > { %3547 = vmatpush1.bf16.msra.mxu1 %v5103_v15  ;;  %3505 = vmatprep.subr.bf16.mxu0 %v5104_v16  ;;  %v5124_v29 = vld [vmem:[%s6149_s24 + $0x204] ss:$16 sps:$4 sm:$0xff]   ;;  %v5127_v31 = vld [vmem:[%s6149_s24 + $0x200] ss:$16 sps:$4 sm:$0xff]  }
  0x59   : > { %3548 = vmatprep.subr.bf16.mxu1 %v5106_v17  ;;  %v5128_v32 = vld [vmem:[%s6149_s24 + $0x1e4] ss:$16 sps:$4 sm:$0xff]   ;;  %v5132_v34 = vld [vmem:[%s6149_s24 + $0x1e0] ss:$16 sps:$4 sm:$0xff]  }
  0x5a   : > { %v5130_v33 = vld [vmem:[%s6149_s24 + $0x3e4] ss:$16 sps:$4 sm:$0xff]   ;;  %v5133_v35 = vld [vmem:[%s6149_s24 + $0x3e0] ss:$16 sps:$4 sm:$0xff]  }
  0x5b   : > { %3506 = vmatpush1.bf16.msra.mxu0 %v5108_v18  ;;  %v5134_v36 = vld [vmem:[%s6149_s24 + $0x1c4] ss:$16 sps:$4 sm:$0xff]   ;;  %v5138_v38 = vld [vmem:[%s6149_s24 + $0x1c0] ss:$16 sps:$4 sm:$0xff]  }
  0x5c   : > { %3549 = vmatpush1.bf16.msra.mxu1 %v5109_v19  ;;  %3507 = vmatprep.subr.bf16.mxu0 %v5110_v20  ;;  %v5136_v37 = vld [vmem:[%s6149_s24 + $0x3c4] ss:$16 sps:$4 sm:$0xff]   ;;  %v5139_v39 = vld [vmem:[%s6149_s24 + $0x3c0] ss:$16 sps:$4 sm:$0xff]  }
  0x5d   : > { %3550 = vmatprep.subr.bf16.mxu1 %v5112_v21  ;;  %v5140_v40 = vld [vmem:[%s6149_s24 + $0x1a4] ss:$16 sps:$4 sm:$0xff]   ;;  %v5144_v42 = vld [vmem:[%s6149_s24 + $0x1a0] ss:$16 sps:$4 sm:$0xff]  }
  0x5e   : > { %v5142_v41 = vld [vmem:[%s6149_s24 + $0x3a4] ss:$16 sps:$4 sm:$0xff]   ;;  %v5145_v43 = vld [vmem:[%s6149_s24 + $0x3a0] ss:$16 sps:$4 sm:$0xff]  }
  0x5f   : > { %3508 = vmatpush1.bf16.msra.mxu0 %v5114_v22  ;;  %v5146_v44 = vld [vmem:[%s6149_s24 + $0x184] ss:$16 sps:$4 sm:$0xff]   ;;  %v5150_v46 = vld [vmem:[%s6149_s24 + $0x180] ss:$16 sps:$4 sm:$0xff]  }
  0x60   : > { %3551 = vmatpush1.bf16.msra.mxu1 %v5115_v23  ;;  %3509 = vmatprep.subr.bf16.mxu0 %v5116_v24  ;;  %v5148_v45 = vld [vmem:[%s6149_s24 + $0x384] ss:$16 sps:$4 sm:$0xff]   ;;  %v5151_v47 = vld [vmem:[%s6149_s24 + $0x380] ss:$16 sps:$4 sm:$0xff]  }
  0x61   : > { %3552 = vmatprep.subr.bf16.mxu1 %v5118_v25  ;;  %v329_v48 = vld [vmem:[%s6917_s0] sm:$0xff] }
  0x62   : > { %v337_v49 = vld [vmem:[%s6917_s0 + $0x40] sm:$0xff] }
  0x63   : > { %3510 = vmatpush1.bf16.msra.mxu0 %v5120_v26  ;;  %v5152_v52 = vld [vmem:[%s6149_s24 + $0x164] ss:$16 sps:$4 sm:$0xff]   ;;  %v6226_v53 = vcombine.high %v329_v48, %v337_v49  ;;  %v5156_v56 = vld [vmem:[%s6149_s24 + $0x160] ss:$16 sps:$4 sm:$0xff]   ;;  %v6249_v8 = vcombine.low %v329_v48, %v337_v49 }
  0x64   : > { %3553 = vmatpush1.bf16.msra.mxu1 %v5121_v27  ;;  %3511 = vmatprep.subr.bf16.mxu0 %v5122_v28  ;;  %v5154_v54 = vld [vmem:[%s6149_s24 + $0x364] ss:$16 sps:$4 sm:$0xff]   ;;  %v5157_v57 = vld [vmem:[%s6149_s24 + $0x360] ss:$16 sps:$4 sm:$0xff]  }
  0x65   : > { %3554 = vmatprep.subr.bf16.mxu1 %v5124_v29  ;;  %3529 = vmatprep.mubr.bf16.mxu0 %v6226_v53  ;;  %v5158_v58 = vld [vmem:[%s6149_s24 + $0x144] ss:$16 sps:$4 sm:$0xff]   ;;  %v5162_v60 = vld [vmem:[%s6149_s24 + $0x140] ss:$16 sps:$4 sm:$0xff]  }
  0x66   : > { %v5160_v59 = vld [vmem:[%s6149_s24 + $0x344] ss:$16 sps:$4 sm:$0xff]   ;;  %v5163_v61 = vld [vmem:[%s6149_s24 + $0x340] ss:$16 sps:$4 sm:$0xff]  }
  0x67   : > { %3512 = vmatpush1.bf16.msra.mxu0 %v5126_v30  ;;  %v5164_v62 = vld [vmem:[%s6149_s24 + $0x124] ss:$16 sps:$4 sm:$0xff]   ;;  %v5168_v0 = vld [vmem:[%s6149_s24 + $0x120] ss:$16 sps:$4 sm:$0xff]  }
  0x68   : > { %3555 = vmatpush1.bf16.msra.mxu1 %v5127_v31  ;;  %3513 = vmatprep.subr.bf16.mxu0 %v5128_v32  ;;  %v5166_v63 = vld [vmem:[%s6149_s24 + $0x324] ss:$16 sps:$4 sm:$0xff]   ;;  %v5169_v1 = vld [vmem:[%s6149_s24 + $0x320] ss:$16 sps:$4 sm:$0xff]  }
  0x69   : > { %3556 = vmatprep.subr.bf16.mxu1 %v5130_v33  ;;  %v5170_v2 = vld [vmem:[%s6149_s24 + $0x104] ss:$16 sps:$4 sm:$0xff]   ;;  %v5174_v4 = vld [vmem:[%s6149_s24 + $0x100] ss:$16 sps:$4 sm:$0xff]  }
  0x6a   : > { %v5172_v3 = vld [vmem:[%s6149_s24 + $0x304] ss:$16 sps:$4 sm:$0xff]   ;;  %v5175_v5 = vld [vmem:[%s6149_s24 + $0x300] ss:$16 sps:$4 sm:$0xff]  }
  0x6b   : > { %3514 = vmatpush2.bf16.msra.mxu0 %v5132_v34  ;;  %v5178_v6 = vld [vmem:[%s6149_s24 + $0x4e4] ss:$16 sps:$4 sm:$0xff]   ;;  %v5176_v10 = vld [vmem:[%s6149_s24 + $0x4e0] ss:$16 sps:$4 sm:$0xff]  }
  0x6c   : > { %3557 = vmatpush2.bf16.msra.mxu1 %v5133_v35  ;;  %3515 = vmatprep.subr.bf16.mxu0 %v5134_v36  ;;  %v5181_v7 = vld [vmem:[%s6149_s24 + $0x6e4] ss:$16 sps:$4 sm:$0xff]   ;;  %v5179_v11 = vld [vmem:[%s6149_s24 + $0x6e0] ss:$16 sps:$4 sm:$0xff]  }
  0x6d   : > { %3558 = vmatprep.subr.bf16.mxu1 %v5136_v37  ;;  %v5184_v12 = vld [vmem:[%s6149_s24 + $0x4c4] ss:$16 sps:$4 sm:$0xff]   ;;  %v5182_v14 = vld [vmem:[%s6149_s24 + $0x4c0] ss:$16 sps:$4 sm:$0xff]  }
  0x6e   : > { %v5187_v13 = vld [vmem:[%s6149_s24 + $0x6c4] ss:$16 sps:$4 sm:$0xff]   ;;  %v5185_v15 = vld [vmem:[%s6149_s24 + $0x6c0] ss:$16 sps:$4 sm:$0xff]  }
  0x6f   : > { %3516 = vmatpush2.bf16.msra.mxu0 %v5138_v38  ;;  %v5190_v16 = vld [vmem:[%s6149_s24 + $0x4a4] ss:$16 sps:$4 sm:$0xff]   ;;  %v5188_v18 = vld [vmem:[%s6149_s24 + $0x4a0] ss:$16 sps:$4 sm:$0xff]   ;;  %v6294_v38 = vld [vmem:[%s6917_s0 + $0x18] sm:$0xff] }
  0x70   : > { %3559 = vmatpush2.bf16.msra.mxu1 %v5139_v39  ;;  %3517 = vmatprep.subr.bf16.mxu0 %v5140_v40  ;;  %v5193_v17 = vld [vmem:[%s6149_s24 + $0x6a4] ss:$16 sps:$4 sm:$0xff]   ;;  %v5191_v19 = vld [vmem:[%s6149_s24 + $0x6a0] ss:$16 sps:$4 sm:$0xff]   ;;  %v6299_v39 = vld [vmem:[%s6917_s0 + $0x58] sm:$0xff] }
  0x71   : > { %3560 = vmatprep.subr.bf16.mxu1 %v5142_v41  ;;  %v5196_v20 = vld [vmem:[%s6149_s24 + $0x484] ss:$16 sps:$4 sm:$0xff]   ;;  %v5194_v22 = vld [vmem:[%s6149_s24 + $0x480] ss:$16 sps:$4 sm:$0xff]  }
  0x72   : > { %v5199_v21 = vld [vmem:[%s6149_s24 + $0x684] ss:$16 sps:$4 sm:$0xff]   ;;  %v5197_v23 = vld [vmem:[%s6149_s24 + $0x680] ss:$16 sps:$4 sm:$0xff]  }
  0x73   : > { %3518 = vmatpush2.bf16.msra.mxu0 %v5144_v42  ;;  %v5202_v24 = vld [vmem:[%s6149_s24 + $0x464] ss:$16 sps:$4 sm:$0xff]   ;;  %v5200_v26 = vld [vmem:[%s6149_s24 + $0x460] ss:$16 sps:$4 sm:$0xff]  }
  0x74   : > { %3561 = vmatpush2.bf16.msra.mxu1 %v5145_v43  ;;  %3519 = vmatprep.subr.bf16.mxu0 %v5146_v44  ;;  %v5205_v25 = vld [vmem:[%s6149_s24 + $0x664] ss:$16 sps:$4 sm:$0xff]   ;;  %v5203_v27 = vld [vmem:[%s6149_s24 + $0x660] ss:$16 sps:$4 sm:$0xff]   ;;  %v6309_v43 = vcombine.high %v6294_v38, %v6299_v39 }
  0x75   : > { %3562 = vmatprep.subr.bf16.mxu1 %v5148_v45  ;;  %v5208_v28 = vld [vmem:[%s6149_s24 + $0x444] ss:$16 sps:$4 sm:$0xff]   ;;  %v5206_v30 = vld [vmem:[%s6149_s24 + $0x440] ss:$16 sps:$4 sm:$0xff]  }
  0x76   : > { %v5211_v29 = vld [vmem:[%s6149_s24 + $0x644] ss:$16 sps:$4 sm:$0xff]   ;;  %v5209_v31 = vld [vmem:[%s6149_s24 + $0x640] ss:$16 sps:$4 sm:$0xff]  }
  0x77   : > { %3520 = vmatpush2.bf16.msra.mxu0 %v5150_v46  ;;  %v5214_v32 = vld [vmem:[%s6149_s24 + $0x424] ss:$16 sps:$4 sm:$0xff]   ;;  %v5212_v34 = vld [vmem:[%s6149_s24 + $0x420] ss:$16 sps:$4 sm:$0xff]  }
  0x78   : > { %3563 = vmatpush2.bf16.msra.mxu1 %v5151_v47  ;;  %3521 = vmatprep.subr.bf16.mxu0 %v5152_v52  ;;  %v5217_v33 = vld [vmem:[%s6149_s24 + $0x624] ss:$16 sps:$4 sm:$0xff]   ;;  %v5215_v35 = vld [vmem:[%s6149_s24 + $0x620] ss:$16 sps:$4 sm:$0xff]  }
  0x79   : > { %3564 = vmatprep.subr.bf16.mxu1 %v5154_v54  ;;  %v6284_v36 = vld [vmem:[%s6917_s0 + $0x10] sm:$0xff] }
  0x7a   : > { %v6289_v37 = vld [vmem:[%s6917_s0 + $0x50] sm:$0xff] }
  0x7b   : > { %3522 = vmatpush2.bf16.msra.mxu0 %v5156_v56  ;;  %v5220_v40 = vld [vmem:[%s6149_s24 + $0x404] ss:$16 sps:$4 sm:$0xff]   ;;  %v6304_v41 = vcombine.high %v6284_v36, %v6289_v37  ;;  %v5218_v44 = vld [vmem:[%s6149_s24 + $0x400] ss:$16 sps:$4 sm:$0xff]  }
  0x7c   : > { %3565 = vmatpush2.bf16.msra.mxu1 %v5157_v57  ;;  %3523 = vmatprep.subr.bf16.mxu0 %v5158_v58  ;;  %v5223_v42 = vld [vmem:[%s6149_s24 + $0x604] ss:$16 sps:$4 sm:$0xff]   ;;  %v5221_v45 = vld [vmem:[%s6149_s24 + $0x600] ss:$16 sps:$4 sm:$0xff]  }
  0x7d   : > { %3566 = vmatprep.subr.bf16.mxu1 %v5160_v59  ;;  %v5226_v46 = vld [vmem:[%s6149_s24 + $0x5e4] ss:$16 sps:$4 sm:$0xff]   ;;  %v5224_v48 = vld [vmem:[%s6149_s24 + $0x5e0] ss:$16 sps:$4 sm:$0xff]  }
  0x7e   : > { %v5229_v47 = vld [vmem:[%s6149_s24 + $0x7e4] ss:$16 sps:$4 sm:$0xff]   ;;  %v5227_v49 = vld [vmem:[%s6149_s24 + $0x7e0] ss:$16 sps:$4 sm:$0xff]  }
  0x7f   : > { %3524 = vmatpush2.bf16.msra.mxu0 %v5162_v60  ;;  %v5232_v50 = vld [vmem:[%s6149_s24 + $0x5c4] ss:$16 sps:$4 sm:$0xff]   ;;  %v5230_v52 = vld [vmem:[%s6149_s24 + $0x5c0] ss:$16 sps:$4 sm:$0xff]  }
  0x80   : > { %3567 = vmatpush2.bf16.msra.mxu1 %v5163_v61  ;;  %3525 = vmatprep.subr.bf16.mxu0 %v5164_v62  ;;  %v5235_v51 = vld [vmem:[%s6149_s24 + $0x7c4] ss:$16 sps:$4 sm:$0xff]   ;;  %v5233_v54 = vld [vmem:[%s6149_s24 + $0x7c0] ss:$16 sps:$4 sm:$0xff]  }
  0x81   : > { %3568 = vmatprep.subr.bf16.mxu1 %v5166_v63  ;;  %v5238_v56 = vld [vmem:[%s6149_s24 + $0x5a4] ss:$16 sps:$4 sm:$0xff]   ;;  %v5236_v58 = vld [vmem:[%s6149_s24 + $0x5a0] ss:$16 sps:$4 sm:$0xff]  }
  0x82   : > { %v5241_v57 = vld [vmem:[%s6149_s24 + $0x7a4] ss:$16 sps:$4 sm:$0xff]   ;;  %v5239_v59 = vld [vmem:[%s6149_s24 + $0x7a0] ss:$16 sps:$4 sm:$0xff]  }
  0x83   : > { %3526 = vmatpush2.bf16.msra.mxu0 %v5168_v0  ;;  %v5244_v60 = vld [vmem:[%s6149_s24 + $0x584] ss:$16 sps:$4 sm:$0xff]   ;;  %v5242_v62 = vld [vmem:[%s6149_s24 + $0x580] ss:$16 sps:$4 sm:$0xff]  }
  0x84   : > { %3569 = vmatpush2.bf16.msra.mxu1 %v5169_v1  ;;  %3527 = vmatprep.subr.bf16.mxu0 %v5170_v2  ;;  %v5247_v61 = vld [vmem:[%s6149_s24 + $0x784] ss:$16 sps:$4 sm:$0xff]   ;;  %v5245_v63 = vld [vmem:[%s6149_s24 + $0x780] ss:$16 sps:$4 sm:$0xff]  }
  0x85   : > { %3570 = vmatprep.subr.bf16.mxu1 %v5172_v3  ;;  %v5250_v0 = vld [vmem:[%s6149_s24 + $0x564] ss:$16 sps:$4 sm:$0xff]   ;;  %v5248_v2 = vld [vmem:[%s6149_s24 + $0x560] ss:$16 sps:$4 sm:$0xff]  }
  0x86   : > { %v5253_v1 = vld [vmem:[%s6149_s24 + $0x764] ss:$16 sps:$4 sm:$0xff]   ;;  %v5251_v3 = vld [vmem:[%s6149_s24 + $0x760] ss:$16 sps:$4 sm:$0xff]  }
  0x87   : > { %3528 = vmatpush2.bf16.msra.mxu0 %v5174_v4  ;;  %v5256_v4 = vld [vmem:[%s6149_s24 + $0x544] ss:$16 sps:$4 sm:$0xff]  }
  0x88   : > { %3571 = vmatpush2.bf16.msra.mxu1 %v5175_v5  ;;  %3583 = vmatprep.subr.bf16.mxu0 %v5178_v6  ;;  %v5259_v5 = vld [vmem:[%s6149_s24 + $0x744] ss:$16 sps:$4 sm:$0xff]   ;;  %v5254_v6 = vld [vmem:[%s6149_s24 + $0x540] ss:$16 sps:$4 sm:$0xff]  }
  0x89   : > { %3626 = vmatprep.subr.bf16.mxu1 %v5181_v7  ;;  %v5257_v7 = vld [vmem:[%s6149_s24 + $0x740] ss:$16 sps:$4 sm:$0xff]  }
  0x8a   : > { %3530 = vmatmul.mubr.bf16.vlgmr.msra.gmra.mxu0 %v6249_v8 }
  0x8b   : > { %3573 = vmatmul.mubr.bf16.vlgmr.msra.gmra.mxu1 %v6251_v9  ;;  %3584 = vmatpush1.bf16.msra.mxu0 %v5176_v10  ;;  %v5262_v10 = vld [vmem:[%s6149_s24 + $0x524] ss:$16 sps:$4 sm:$0xff]  }
  0x8c   : > { %3627 = vmatpush1.bf16.msra.mxu1 %v5179_v11  ;;  %3585 = vmatprep.subr.bf16.mxu0 %v5184_v12  ;;  %v5265_v11 = vld [vmem:[%s6149_s24 + $0x724] ss:$16 sps:$4 sm:$0xff]   ;;  %v5260_v12 = vld [vmem:[%s6149_s24 + $0x520] ss:$16 sps:$4 sm:$0xff]  }
  0x8d   : > { %3628 = vmatprep.subr.bf16.mxu1 %v5187_v13  ;;  %3615 = vmatprep.mubr.bf16.mxu0 %v6304_v41  ;;  %v5263_v13 = vld [vmem:[%s6149_s24 + $0x720] ss:$16 sps:$4 sm:$0xff]  }
  0x8e   : > { %3658 = vmatprep.mubr.bf16.mxu1 %v6309_v43 }
  0x8f   : > { %3586 = vmatpush1.bf16.msra.mxu0 %v5182_v14  ;;  %v5268_v14 = vld [vmem:[%s6149_s24 + $0x504] ss:$16 sps:$4 sm:$0xff]  }
  0x90   : > { %3629 = vmatpush1.bf16.msra.mxu1 %v5185_v15  ;;  %3587 = vmatprep.subr.bf16.mxu0 %v5190_v16  ;;  %v5271_v15 = vld [vmem:[%s6149_s24 + $0x704] ss:$16 sps:$4 sm:$0xff]   ;;  %v5266_v16 = vld [vmem:[%s6149_s24 + $0x500] ss:$16 sps:$4 sm:$0xff]  }
  0x91   : > { %3630 = vmatprep.subr.bf16.mxu1 %v5193_v17  ;;  %v5269_v17 = vld [vmem:[%s6149_s24 + $0x700] ss:$16 sps:$4 sm:$0xff]  }
  0x93   : > { %3588 = vmatpush1.bf16.msra.mxu0 %v5188_v18  ;;  %v5274_v18 = vld [vmem:[%s6149_s24 + $0x8e4] ss:$16 sps:$4 sm:$0xff]  }
  0x94   : > { %3631 = vmatpush1.bf16.msra.mxu1 %v5191_v19  ;;  %3589 = vmatprep.subr.bf16.mxu0 %v5196_v20  ;;  %v5277_v19 = vld [vmem:[%s6149_s24 + $0xae4] ss:$16 sps:$4 sm:$0xff]   ;;  %v6351_v20 = vcombine.low %v6284_v36, %v6289_v37  ;;  %v5284_v36 = vld [vmem:[%s6149_s24 + $0x8a0] ss:$16 sps:$4 sm:$0xff]  }
  0x95   : > { %3632 = vmatprep.subr.bf16.mxu1 %v5199_v21  ;;  %v6355_v21 = vcombine.low %v6294_v38, %v6299_v39  ;;  %v5287_v37 = vld [vmem:[%s6149_s24 + $0xaa0] ss:$16 sps:$4 sm:$0xff]   ;;  %v5292_v38 = vld [vmem:[%s6149_s24 + $0x884] ss:$16 sps:$4 sm:$0xff]  }
  0x96   : > { %v5295_v39 = vld [vmem:[%s6149_s24 + $0xa84] ss:$16 sps:$4 sm:$0xff]  }
  0x97   : > { %3590 = vmatpush1.bf16.msra.mxu0 %v5194_v22  ;;  %v5272_v22 = vld [vmem:[%s6149_s24 + $0x8e0] ss:$16 sps:$4 sm:$0xff]  }
  0x98   : > { %3633 = vmatpush1.bf16.msra.mxu1 %v5197_v23  ;;  %3591 = vmatprep.subr.bf16.mxu0 %v5202_v24  ;;  %v5275_v23 = vld [vmem:[%s6149_s24 + $0xae0] ss:$16 sps:$4 sm:$0xff]   ;;  %v5280_v24 = vld [vmem:[%s6149_s24 + $0x8c4] ss:$16 sps:$4 sm:$0xff]  }
  0x99   : > { %3634 = vmatprep.subr.bf16.mxu1 %v5205_v25  ;;  %v5283_v25 = vld [vmem:[%s6149_s24 + $0xac4] ss:$16 sps:$4 sm:$0xff]  }
  0x9b   : > { %3592 = vmatpush1.bf16.msra.mxu0 %v5200_v26  ;;  %v5278_v26 = vld [vmem:[%s6149_s24 + $0x8c0] ss:$16 sps:$4 sm:$0xff]  }
  0x9c   : > { %3635 = vmatpush1.bf16.msra.mxu1 %v5203_v27  ;;  %3593 = vmatprep.subr.bf16.mxu0 %v5208_v28  ;;  %v5281_v27 = vld [vmem:[%s6149_s24 + $0xac0] ss:$16 sps:$4 sm:$0xff]  }
  0x9d   : > { %3636 = vmatprep.subr.bf16.mxu1 %v5211_v29  ;;  %v6366_v28 = vld [vmem:[%s6917_s0 + $0x20] sm:$0xff] }
  0x9e   : > { %v6373_v29 = vld [vmem:[%s6917_s0 + $0x60] sm:$0xff] }
  0x9f   : > { %3594 = vmatpush1.bf16.msra.mxu0 %v5206_v30  ;;  %v6378_v30 = vld [vmem:[%s6917_s0 + $0x28] sm:$0xff] }
  0xa0   : > { %3637 = vmatpush1.bf16.msra.mxu1 %v5209_v31  ;;  %3595 = vmatprep.subr.bf16.mxu0 %v5214_v32  ;;  %v6383_v31 = vld [vmem:[%s6917_s0 + $0x68] sm:$0xff]  ;;  %v5286_v32 = vld [vmem:[%s6149_s24 + $0x8a4] ss:$16 sps:$4 sm:$0xff]  }
  0xa1   : > { %3638 = vmatprep.subr.bf16.mxu1 %v5217_v33  ;;  %v6388_v33 = vcombine.high %v6366_v28, %v6373_v29 }
  0xa3   : > { %3596 = vmatpush1.bf16.msra.mxu0 %v5212_v34  ;;  %v5289_v34 = vld [vmem:[%s6149_s24 + $0xaa4] ss:$16 sps:$4 sm:$0xff]  }
  0xa4   : > { %3639 = vmatpush1.bf16.msra.mxu1 %v5215_v35  ;;  %3597 = vmatprep.subr.bf16.mxu0 %v5220_v40  ;;  %v6393_v35 = vcombine.high %v6378_v30, %v6383_v31  ;;  %v5290_v40 = vld [vmem:[%s6149_s24 + $0x880] ss:$16 sps:$4 sm:$0xff]  }
  0xa5   : > { %3640 = vmatprep.subr.bf16.mxu1 %v5223_v42  ;;  %v5293_v42 = vld [vmem:[%s6149_s24 + $0xa80] ss:$16 sps:$4 sm:$0xff]  }
  0xa7   : > { %3598 = vmatpush1.bf16.msra.mxu0 %v5218_v44  ;;  %v5298_v44 = vld [vmem:[%s6149_s24 + $0x864] ss:$16 sps:$4 sm:$0xff]  }
  0xa8   : > { %3641 = vmatpush1.bf16.msra.mxu1 %v5221_v45  ;;  %3599 = vmatprep.subr.bf16.mxu0 %v5226_v46  ;;  %v5301_v45 = vld [vmem:[%s6149_s24 + $0xa64] ss:$16 sps:$4 sm:$0xff]   ;;  %v5296_v46 = vld [vmem:[%s6149_s24 + $0x860] ss:$16 sps:$4 sm:$0xff]  }
  0xa9   : > { %3642 = vmatprep.subr.bf16.mxu1 %v5229_v47  ;;  %v5299_v47 = vld [vmem:[%s6149_s24 + $0xa60] ss:$16 sps:$4 sm:$0xff]  }
  0xab   : > { %3600 = vmatpush2.bf16.msra.mxu0 %v5224_v48  ;;  %v5304_v48 = vld [vmem:[%s6149_s24 + $0x844] ss:$16 sps:$4 sm:$0xff]  }
  0xac   : > { %3643 = vmatpush2.bf16.msra.mxu1 %v5227_v49  ;;  %3601 = vmatprep.subr.bf16.mxu0 %v5232_v50  ;;  %v5307_v49 = vld [vmem:[%s6149_s24 + $0xa44] ss:$16 sps:$4 sm:$0xff]   ;;  %v5302_v50 = vld [vmem:[%s6149_s24 + $0x840] ss:$16 sps:$4 sm:$0xff]  }
  0xad   : > { %3644 = vmatprep.subr.bf16.mxu1 %v5235_v51  ;;  %v5305_v51 = vld [vmem:[%s6149_s24 + $0xa40] ss:$16 sps:$4 sm:$0xff]  }
  0xaf   : > { %3602 = vmatpush2.bf16.msra.mxu0 %v5230_v52  ;;  %v5310_v52 = vld [vmem:[%s6149_s24 + $0x824] ss:$16 sps:$4 sm:$0xff]  }
  0xb0   : > { %3645 = vmatpush2.bf16.msra.mxu1 %v5233_v54  ;;  %3603 = vmatprep.subr.bf16.mxu0 %v5238_v56  ;;  %v5313_v54 = vld [vmem:[%s6149_s24 + $0xa24] ss:$16 sps:$4 sm:$0xff]   ;;  %v5308_v56 = vld [vmem:[%s6149_s24 + $0x820] ss:$16 sps:$4 sm:$0xff]  }
  0xb1   : > { %3646 = vmatprep.subr.bf16.mxu1 %v5241_v57  ;;  %v5311_v57 = vld [vmem:[%s6149_s24 + $0xa20] ss:$16 sps:$4 sm:$0xff]  }
  0xb3   : > { %3604 = vmatpush2.bf16.msra.mxu0 %v5236_v58  ;;  %v5316_v58 = vld [vmem:[%s6149_s24 + $0x804] ss:$16 sps:$4 sm:$0xff]  }
  0xb4   : > { %3647 = vmatpush2.bf16.msra.mxu1 %v5239_v59  ;;  %3605 = vmatprep.subr.bf16.mxu0 %v5244_v60  ;;  %v5319_v59 = vld [vmem:[%s6149_s24 + $0xa04] ss:$16 sps:$4 sm:$0xff]   ;;  %v5314_v60 = vld [vmem:[%s6149_s24 + $0x800] ss:$16 sps:$4 sm:$0xff]  }
  0xb5   : > { %3648 = vmatprep.subr.bf16.mxu1 %v5247_v61  ;;  %v5317_v61 = vld [vmem:[%s6149_s24 + $0xa00] ss:$16 sps:$4 sm:$0xff]  }
  0xb7   : > { %3606 = vmatpush2.bf16.msra.mxu0 %v5242_v62  ;;  %v5322_v62 = vld [vmem:[%s6149_s24 + $0x9e4] ss:$16 sps:$4 sm:$0xff]  }
  0xb8   : > { %3649 = vmatpush2.bf16.msra.mxu1 %v5245_v63  ;;  %3607 = vmatprep.subr.bf16.mxu0 %v5250_v0  ;;  %v5325_v63 = vld [vmem:[%s6149_s24 + $0xbe4] ss:$16 sps:$4 sm:$0xff]   ;;  %v5320_v0 = vld [vmem:[%s6149_s24 + $0x9e0] ss:$16 sps:$4 sm:$0xff]  }
  0xb9   : > { %3650 = vmatprep.subr.bf16.mxu1 %v5253_v1  ;;  %v5323_v1 = vld [vmem:[%s6149_s24 + $0xbe0] ss:$16 sps:$4 sm:$0xff]  }
  0xbb   : > { %3608 = vmatpush2.bf16.msra.mxu0 %v5248_v2  ;;  %v5328_v2 = vld [vmem:[%s6149_s24 + $0x9c4] ss:$16 sps:$4 sm:$0xff]  }
  0xbc   : > { %3651 = vmatpush2.bf16.msra.mxu1 %v5251_v3  ;;  %3609 = vmatprep.subr.bf16.mxu0 %v5256_v4  ;;  %v5331_v3 = vld [vmem:[%s6149_s24 + $0xbc4] ss:$16 sps:$4 sm:$0xff]   ;;  %v5326_v4 = vld [vmem:[%s6149_s24 + $0x9c0] ss:$16 sps:$4 sm:$0xff]  }
  0xbd   : > { %3652 = vmatprep.subr.bf16.mxu1 %v5259_v5  ;;  %v5329_v5 = vld [vmem:[%s6149_s24 + $0xbc0] ss:$16 sps:$4 sm:$0xff]  }
  0xbf   : > { %3610 = vmatpush2.bf16.msra.mxu0 %v5254_v6  ;;  %v5334_v6 = vld [vmem:[%s6149_s24 + $0x9a4] ss:$16 sps:$4 sm:$0xff]  }
  0xc0   : > { %3653 = vmatpush2.bf16.msra.mxu1 %v5257_v7  ;;  %3611 = vmatprep.subr.bf16.mxu0 %v5262_v10  ;;  %v5337_v7 = vld [vmem:[%s6149_s24 + $0xba4] ss:$16 sps:$4 sm:$0xff]   ;;  %v5332_v10 = vld [vmem:[%s6149_s24 + $0x9a0] ss:$16 sps:$4 sm:$0xff]  }
  0xc1   : > { %3654 = vmatprep.subr.bf16.mxu1 %v5265_v11  ;;  %v5335_v11 = vld [vmem:[%s6149_s24 + $0xba0] ss:$16 sps:$4 sm:$0xff]  }
  0xc3   : > { %3612 = vmatpush2.bf16.msra.mxu0 %v5260_v12  ;;  %v5340_v12 = vld [vmem:[%s6149_s24 + $0x984] ss:$16 sps:$4 sm:$0xff]  }
  0xc4   : > { %3655 = vmatpush2.bf16.msra.mxu1 %v5263_v13  ;;  %3613 = vmatprep.subr.bf16.mxu0 %v5268_v14  ;;  %v5343_v13 = vld [vmem:[%s6149_s24 + $0xb84] ss:$16 sps:$4 sm:$0xff]   ;;  %v5338_v14 = vld [vmem:[%s6149_s24 + $0x980] ss:$16 sps:$4 sm:$0xff]  }
  0xc5   : > { %3656 = vmatprep.subr.bf16.mxu1 %v5271_v15  ;;  %v5341_v15 = vld [vmem:[%s6149_s24 + $0xb80] ss:$16 sps:$4 sm:$0xff]  }
  0xc7   : > { %3614 = vmatpush2.bf16.msra.mxu0 %v5266_v16  ;;  %v5346_v16 = vld [vmem:[%s6149_s24 + $0x964] ss:$16 sps:$4 sm:$0xff]  }
  0xc8   : > { %3657 = vmatpush2.bf16.msra.mxu1 %v5269_v17  ;;  %3669 = vmatprep.subr.bf16.mxu0 %v5274_v18  ;;  %v5349_v17 = vld [vmem:[%s6149_s24 + $0xb64] ss:$16 sps:$4 sm:$0xff]   ;;  %v5344_v18 = vld [vmem:[%s6149_s24 + $0x960] ss:$16 sps:$4 sm:$0xff]  }
  0xc9   : > { %3712 = vmatprep.subr.bf16.mxu1 %v5277_v19  ;;  %v5347_v19 = vld [vmem:[%s6149_s24 + $0xb60] ss:$16 sps:$4 sm:$0xff]  }
  0xca   : > { %3616 = vmatmul.mubr.bf16.vlgmr.msra.gmra.mxu0 %v6351_v20 }
  0xcb   : > { %3659 = vmatmul.mubr.bf16.vlgmr.msra.gmra.mxu1 %v6355_v21  ;;  %3670 = vmatpush1.bf16.msra.mxu0 %v5272_v22  ;;  %v5352_v22 = vld [vmem:[%s6149_s24 + $0x944] ss:$16 sps:$4 sm:$0xff]  }
  0xcc   : > { %3713 = vmatpush1.bf16.msra.mxu1 %v5275_v23  ;;  %3671 = vmatprep.subr.bf16.mxu0 %v5280_v24  ;;  %v5355_v23 = vld [vmem:[%s6149_s24 + $0xb44] ss:$16 sps:$4 sm:$0xff]   ;;  %v5350_v24 = vld [vmem:[%s6149_s24 + $0x940] ss:$16 sps:$4 sm:$0xff]  }
  0xcd   : > { %3714 = vmatprep.subr.bf16.mxu1 %v5283_v25  ;;  %3701 = vmatprep.mubr.bf16.mxu0 %v6388_v33  ;;  %v5353_v25 = vld [vmem:[%s6149_s24 + $0xb40] ss:$16 sps:$4 sm:$0xff]  }
  0xce   : > { %3744 = vmatprep.mubr.bf16.mxu1 %v6393_v35 }
  0xcf   : > { %3672 = vmatpush1.bf16.msra.mxu0 %v5278_v26  ;;  %v5358_v26 = vld [vmem:[%s6149_s24 + $0x924] ss:$16 sps:$4 sm:$0xff]  }
  0xd0   : > { %3715 = vmatpush1.bf16.msra.mxu1 %v5281_v27  ;;  %3673 = vmatprep.subr.bf16.mxu0 %v5286_v32  ;;  %v5361_v27 = vld [vmem:[%s6149_s24 + $0xb24] ss:$16 sps:$4 sm:$0xff]   ;;  %v5356_v32 = vld [vmem:[%s6149_s24 + $0x920] ss:$16 sps:$4 sm:$0xff]  }
  0xd1   : > { %3716 = vmatprep.subr.bf16.mxu1 %v5289_v34  ;;  %v5359_v34 = vld [vmem:[%s6149_s24 + $0xb20] ss:$16 sps:$4 sm:$0xff]  }
  0xd3   : > { %3674 = vmatpush1.bf16.msra.mxu0 %v5284_v36  ;;  %v5364_v36 = vld [vmem:[%s6149_s24 + $0x904] ss:$16 sps:$4 sm:$0xff]  }
  0xd4   : > { %3717 = vmatpush1.bf16.msra.mxu1 %v5287_v37  ;;  %3675 = vmatprep.subr.bf16.mxu0 %v5292_v38  ;;  %v5367_v37 = vld [vmem:[%s6149_s24 + $0xb04] ss:$16 sps:$4 sm:$0xff]   ;;  %v5362_v38 = vld [vmem:[%s6149_s24 + $0x900] ss:$16 sps:$4 sm:$0xff]  }
  0xd5   : > { %3718 = vmatprep.subr.bf16.mxu1 %v5295_v39  ;;  %v5365_v39 = vld [vmem:[%s6149_s24 + $0xb00] ss:$16 sps:$4 sm:$0xff]  }
  0xd7   : > { %3676 = vmatpush1.bf16.msra.mxu0 %v5290_v40  ;;  %v5370_v40 = vld [vmem:[%s6149_s24 + $0xce4] ss:$16 sps:$4 sm:$0xff]  }
  0xd8   : > { %3719 = vmatpush1.bf16.msra.mxu1 %v5293_v42  ;;  %3677 = vmatprep.subr.bf16.mxu0 %v5298_v44  ;;  %v5373_v42 = vld [vmem:[%s6149_s24 + $0xee4] ss:$16 sps:$4 sm:$0xff]   ;;  %v5368_v44 = vld [vmem:[%s6149_s24 + $0xce0] ss:$16 sps:$4 sm:$0xff]  }
  0xd9   : > { %3720 = vmatprep.subr.bf16.mxu1 %v5301_v45  ;;  %v5371_v45 = vld [vmem:[%s6149_s24 + $0xee0] ss:$16 sps:$4 sm:$0xff]  }
  0xdb   : > { %3678 = vmatpush1.bf16.msra.mxu0 %v5296_v46  ;;  %v6458_v46 = vld [vmem:[%s6917_s0 + $0x30] sm:$0xff] }
  0xdc   : > { %3721 = vmatpush1.bf16.msra.mxu1 %v5299_v47  ;;  %3679 = vmatprep.subr.bf16.mxu0 %v5304_v48  ;;  %v6463_v47 = vld [vmem:[%s6917_s0 + $0x70] sm:$0xff]  ;;  %v6467_v48 = vcombine.low %v6366_v28, %v6373_v29 }
  0xdd   : > { %3722 = vmatprep.subr.bf16.mxu1 %v5307_v49  ;;  %v6471_v49 = vcombine.low %v6378_v30, %v6383_v31  ;;  %v5376_v28 = vld [vmem:[%s6149_s24 + $0xcc4] ss:$16 sps:$4 sm:$0xff]   ;;  %v6487_v30 = vcombine.high %v6458_v46, %v6463_v47 }
  0xde   : > { %v5379_v29 = vld [vmem:[%s6149_s24 + $0xec4] ss:$16 sps:$4 sm:$0xff]  }
  0xdf   : > { %3680 = vmatpush1.bf16.msra.mxu0 %v5302_v50  ;;  %v6476_v50 = vld [vmem:[%s6917_s0 + $0x38] sm:$0xff] }
  0xe0   : > { %3723 = vmatpush1.bf16.msra.mxu1 %v5305_v51  ;;  %3681 = vmatprep.subr.bf16.mxu0 %v5310_v52  ;;  %v6481_v51 = vld [vmem:[%s6917_s0 + $0x78] sm:$0xff]  ;;  %v5374_v52 = vld [vmem:[%s6149_s24 + $0xcc0] ss:$16 sps:$4 sm:$0xff]  }
  0xe1   : > { %3724 = vmatprep.subr.bf16.mxu1 %v5313_v54  ;;  %v6491_v31 = vcombine.high %v6476_v50, %v6481_v51  ;;  %v5377_v54 = vld [vmem:[%s6149_s24 + $0xec0] ss:$16 sps:$4 sm:$0xff]  }
  0xe3   : > { %3682 = vmatpush1.bf16.msra.mxu0 %v5308_v56  ;;  %v5382_v56 = vld [vmem:[%s6149_s24 + $0xca4] ss:$16 sps:$4 sm:$0xff]  }
  0xe4   : > { %3725 = vmatpush1.bf16.msra.mxu1 %v5311_v57  ;;  %3683 = vmatprep.subr.bf16.mxu0 %v5316_v58  ;;  %v5385_v57 = vld [vmem:[%s6149_s24 + $0xea4] ss:$16 sps:$4 sm:$0xff]   ;;  %v5380_v58 = vld [vmem:[%s6149_s24 + $0xca0] ss:$16 sps:$4 sm:$0xff]  }
  0xe5   : > { %3726 = vmatprep.subr.bf16.mxu1 %v5319_v59  ;;  %v5383_v59 = vld [vmem:[%s6149_s24 + $0xea0] ss:$16 sps:$4 sm:$0xff]  }
  0xe7   : > { %3684 = vmatpush1.bf16.msra.mxu0 %v5314_v60  ;;  %v5388_v60 = vld [vmem:[%s6149_s24 + $0xc84] ss:$16 sps:$4 sm:$0xff]  }
  0xe8   : > { %3727 = vmatpush1.bf16.msra.mxu1 %v5317_v61  ;;  %3685 = vmatprep.subr.bf16.mxu0 %v5322_v62  ;;  %v5391_v61 = vld [vmem:[%s6149_s24 + $0xe84] ss:$16 sps:$4 sm:$0xff]   ;;  %v5386_v62 = vld [vmem:[%s6149_s24 + $0xc80] ss:$16 sps:$4 sm:$0xff]  }
  0xe9   : > { %3728 = vmatprep.subr.bf16.mxu1 %v5325_v63  ;;  %v5389_v63 = vld [vmem:[%s6149_s24 + $0xe80] ss:$16 sps:$4 sm:$0xff]  }
  0xeb   : > { %3686 = vmatpush2.bf16.msra.mxu0 %v5320_v0  ;;  %v5394_v0 = vld [vmem:[%s6149_s24 + $0xc64] ss:$16 sps:$4 sm:$0xff]  }
  0xec   : > { %3729 = vmatpush2.bf16.msra.mxu1 %v5323_v1  ;;  %3687 = vmatprep.subr.bf16.mxu0 %v5328_v2  ;;  %v5397_v1 = vld [vmem:[%s6149_s24 + $0xe64] ss:$16 sps:$4 sm:$0xff]   ;;  %v5392_v2 = vld [vmem:[%s6149_s24 + $0xc60] ss:$16 sps:$4 sm:$0xff]  }
  0xed   : > { %3730 = vmatprep.subr.bf16.mxu1 %v5331_v3  ;;  %v5395_v3 = vld [vmem:[%s6149_s24 + $0xe60] ss:$16 sps:$4 sm:$0xff]  }
  0xef   : > { %3688 = vmatpush2.bf16.msra.mxu0 %v5326_v4  ;;  %v5400_v4 = vld [vmem:[%s6149_s24 + $0xc44] ss:$16 sps:$4 sm:$0xff]  }
  0xf0   : > { %3731 = vmatpush2.bf16.msra.mxu1 %v5329_v5  ;;  %3689 = vmatprep.subr.bf16.mxu0 %v5334_v6  ;;  %v5403_v5 = vld [vmem:[%s6149_s24 + $0xe44] ss:$16 sps:$4 sm:$0xff]   ;;  %v5398_v6 = vld [vmem:[%s6149_s24 + $0xc40] ss:$16 sps:$4 sm:$0xff]  }
  0xf1   : > { %3732 = vmatprep.subr.bf16.mxu1 %v5337_v7  ;;  %v5401_v7 = vld [vmem:[%s6149_s24 + $0xe40] ss:$16 sps:$4 sm:$0xff]  }
  0xf3   : > { %3690 = vmatpush2.bf16.msra.mxu0 %v5332_v10  ;;  %v5406_v10 = vld [vmem:[%s6149_s24 + $0xc24] ss:$16 sps:$4 sm:$0xff]  }
  0xf4   : > { %3733 = vmatpush2.bf16.msra.mxu1 %v5335_v11  ;;  %3691 = vmatprep.subr.bf16.mxu0 %v5340_v12  ;;  %v5409_v11 = vld [vmem:[%s6149_s24 + $0xe24] ss:$16 sps:$4 sm:$0xff]   ;;  %v5404_v12 = vld [vmem:[%s6149_s24 + $0xc20] ss:$16 sps:$4 sm:$0xff]  }
  0xf5   : > { %3734 = vmatprep.subr.bf16.mxu1 %v5343_v13  ;;  %v5407_v13 = vld [vmem:[%s6149_s24 + $0xe20] ss:$16 sps:$4 sm:$0xff]  }
  0xf7   : > { %3692 = vmatpush2.bf16.msra.mxu0 %v5338_v14  ;;  %v5412_v14 = vld [vmem:[%s6149_s24 + $0xc04] ss:$16 sps:$4 sm:$0xff]  }
  0xf8   : > { %3735 = vmatpush2.bf16.msra.mxu1 %v5341_v15  ;;  %3693 = vmatprep.subr.bf16.mxu0 %v5346_v16  ;;  %v5415_v15 = vld [vmem:[%s6149_s24 + $0xe04] ss:$16 sps:$4 sm:$0xff]   ;;  %v5410_v16 = vld [vmem:[%s6149_s24 + $0xc00] ss:$16 sps:$4 sm:$0xff]  }
  0xf9   : > { %3736 = vmatprep.subr.bf16.mxu1 %v5349_v17  ;;  %v5413_v17 = vld [vmem:[%s6149_s24 + $0xe00] ss:$16 sps:$4 sm:$0xff]  }
  0xfb   : > { %3694 = vmatpush2.bf16.msra.mxu0 %v5344_v18  ;;  %v5418_v18 = vld [vmem:[%s6149_s24 + $0xde4] ss:$16 sps:$4 sm:$0xff]  }
  0xfc   : > { %3737 = vmatpush2.bf16.msra.mxu1 %v5347_v19  ;;  %3695 = vmatprep.subr.bf16.mxu0 %v5352_v22  ;;  %v5421_v19 = vld [vmem:[%s6149_s24 + $0xfe4] ss:$16 sps:$4 sm:$0xff]   ;;  %v5416_v22 = vld [vmem:[%s6149_s24 + $0xde0] ss:$16 sps:$4 sm:$0xff]  }
  0xfd   : > { %3738 = vmatprep.subr.bf16.mxu1 %v5355_v23  ;;  %v5419_v23 = vld [vmem:[%s6149_s24 + $0xfe0] ss:$16 sps:$4 sm:$0xff]  }
  0xff   : > { %3696 = vmatpush2.bf16.msra.mxu0 %v5350_v24  ;;  %v5424_v24 = vld [vmem:[%s6149_s24 + $0xdc4] ss:$16 sps:$4 sm:$0xff]  }
 0x100   : > { %3739 = vmatpush2.bf16.msra.mxu1 %v5353_v25  ;;  %3697 = vmatprep.subr.bf16.mxu0 %v5358_v26  ;;  %v5427_v25 = vld [vmem:[%s6149_s24 + $0xfc4] ss:$16 sps:$4 sm:$0xff]   ;;  %v5422_v26 = vld [vmem:[%s6149_s24 + $0xdc0] ss:$16 sps:$4 sm:$0xff]  }
 0x101   : > { %3740 = vmatprep.subr.bf16.mxu1 %v5361_v27  ;;  %v5425_v27 = vld [vmem:[%s6149_s24 + $0xfc0] ss:$16 sps:$4 sm:$0xff]  }
 0x103   : > { %3698 = vmatpush2.bf16.msra.mxu0 %v5356_v32  ;;  %v5430_v32 = vld [vmem:[%s6149_s24 + $0xda4] ss:$16 sps:$4 sm:$0xff]  }
 0x104   : > { %3741 = vmatpush2.bf16.msra.mxu1 %v5359_v34  ;;  %3699 = vmatprep.subr.bf16.mxu0 %v5364_v36  ;;  %v5433_v34 = vld [vmem:[%s6149_s24 + $0xfa4] ss:$16 sps:$4 sm:$0xff]   ;;  %v5428_v36 = vld [vmem:[%s6149_s24 + $0xda0] ss:$16 sps:$4 sm:$0xff]  }
 0x105   : > { %3742 = vmatprep.subr.bf16.mxu1 %v5367_v37  ;;  %v5431_v37 = vld [vmem:[%s6149_s24 + $0xfa0] ss:$16 sps:$4 sm:$0xff]  }
 0x107   : > { %3700 = vmatpush2.bf16.msra.mxu0 %v5362_v38  ;;  %v5436_v38 = vld [vmem:[%s6149_s24 + $0xd84] ss:$16 sps:$4 sm:$0xff]  }
 0x108   : > { %3743 = vmatpush2.bf16.msra.mxu1 %v5365_v39  ;;  %3755 = vmatprep.subr.bf16.mxu0 %v5370_v40  ;;  %v5439_v39 = vld [vmem:[%s6149_s24 + $0xf84] ss:$16 sps:$4 sm:$0xff]   ;;  %v5434_v40 = vld [vmem:[%s6149_s24 + $0xd80] ss:$16 sps:$4 sm:$0xff]  }
 0x109   : > { %3798 = vmatprep.subr.bf16.mxu1 %v5373_v42  ;;  %v5437_v42 = vld [vmem:[%s6149_s24 + $0xf80] ss:$16 sps:$4 sm:$0xff]  }
 0x10a   : > { %3702 = vmatmul.mubr.bf16.vlgmr.msra.gmra.mxu0 %v6467_v48 }
 0x10b   : > { %3745 = vmatmul.mubr.bf16.vlgmr.msra.gmra.mxu1 %v6471_v49  ;;  %3756 = vmatpush1.bf16.msra.mxu0 %v5368_v44  ;;  %v5442_v44 = vld [vmem:[%s6149_s24 + $0xd64] ss:$16 sps:$4 sm:$0xff]  }
 0x10c   : > { %3799 = vmatpush1.bf16.msra.mxu1 %v5371_v45  ;;  %3757 = vmatprep.subr.bf16.mxu0 %v5376_v28  ;;  %v5445_v45 = vld [vmem:[%s6149_s24 + $0xf64] ss:$16 sps:$4 sm:$0xff]   ;;  %v5440_v28 = vld [vmem:[%s6149_s24 + $0xd60] ss:$16 sps:$4 sm:$0xff]  }
 0x10d   : > { %3800 = vmatprep.subr.bf16.mxu1 %v5379_v29  ;;  %3787 = vmatprep.mubr.bf16.mxu0 %v6487_v30  ;;  %v5443_v29 = vld [vmem:[%s6149_s24 + $0xf60] ss:$16 sps:$4 sm:$0xff]  }
 0x10e   : > { %3830 = vmatprep.mubr.bf16.mxu1 %v6491_v31 }
 0x10f   : > { %3758 = vmatpush1.bf16.msra.mxu0 %v5374_v52  ;;  %v5448_v52 = vld [vmem:[%s6149_s24 + $0xd44] ss:$16 sps:$4 sm:$0xff]  }
 0x110   : > { %3801 = vmatpush1.bf16.msra.mxu1 %v5377_v54  ;;  %3759 = vmatprep.subr.bf16.mxu0 %v5382_v56  ;;  %v5451_v54 = vld [vmem:[%s6149_s24 + $0xf44] ss:$16 sps:$4 sm:$0xff]   ;;  %v5446_v56 = vld [vmem:[%s6149_s24 + $0xd40] ss:$16 sps:$4 sm:$0xff]  }
 0x111   : > { %3802 = vmatprep.subr.bf16.mxu1 %v5385_v57  ;;  %v5449_v57 = vld [vmem:[%s6149_s24 + $0xf40] ss:$16 sps:$4 sm:$0xff]  }
 0x113   : > { %3760 = vmatpush1.bf16.msra.mxu0 %v5380_v58  ;;  %v5454_v58 = vld [vmem:[%s6149_s24 + $0xd24] ss:$16 sps:$4 sm:$0xff]  }
 0x114   : > { %3803 = vmatpush1.bf16.msra.mxu1 %v5383_v59  ;;  %3761 = vmatprep.subr.bf16.mxu0 %v5388_v60  ;;  %v5457_v59 = vld [vmem:[%s6149_s24 + $0xf24] ss:$16 sps:$4 sm:$0xff]   ;;  %v5452_v60 = vld [vmem:[%s6149_s24 + $0xd20] ss:$16 sps:$4 sm:$0xff]  }
 0x115   : > { %3804 = vmatprep.subr.bf16.mxu1 %v5391_v61  ;;  %v5455_v61 = vld [vmem:[%s6149_s24 + $0xf20] ss:$16 sps:$4 sm:$0xff]  }
 0x117   : > { %3762 = vmatpush1.bf16.msra.mxu0 %v5386_v62  ;;  %v5460_v62 = vld [vmem:[%s6149_s24 + $0xd04] ss:$16 sps:$4 sm:$0xff]  }
 0x118   : > { %3805 = vmatpush1.bf16.msra.mxu1 %v5389_v63  ;;  %3763 = vmatprep.subr.bf16.mxu0 %v5394_v0  ;;  %v5463_v63 = vld [vmem:[%s6149_s24 + $0xf04] ss:$16 sps:$4 sm:$0xff]   ;;  %v5458_v0 = vld [vmem:[%s6149_s24 + $0xd00] ss:$16 sps:$4 sm:$0xff]  }
 0x119   : > { %3806 = vmatprep.subr.bf16.mxu1 %v5397_v1  ;;  %v5461_v1 = vld [vmem:[%s6149_s24 + $0xf00] ss:$16 sps:$4 sm:$0xff]  }
 0x11b   : > { %3764 = vmatpush1.bf16.msra.mxu0 %v5392_v2  ;;  %v5466_v2 = vld [vmem:[%s6149_s24 + $0xec] ss:$16 sps:$4 sm:$0xff]  }
 0x11c   : > { %3807 = vmatpush1.bf16.msra.mxu1 %v5395_v3  ;;  %3765 = vmatprep.subr.bf16.mxu0 %v5400_v4  ;;  %v5469_v3 = vld [vmem:[%s6149_s24 + $0x2ec] ss:$16 sps:$4 sm:$0xff]   ;;  %v6559_v4 = vcombine.low %v6458_v46, %v6463_v47  ;;  %v5470_v46 = vld [vmem:[%s6149_s24 + $0xc8] ss:$16 sps:$4 sm:$0xff]  }
 0x11d   : > { %3808 = vmatprep.subr.bf16.mxu1 %v5403_v5  ;;  %v6563_v5 = vcombine.low %v6476_v50, %v6481_v51  ;;  %v5473_v47 = vld [vmem:[%s6149_s24 + $0x2c8] ss:$16 sps:$4 sm:$0xff]   ;;  %v5478_v50 = vld [vmem:[%s6149_s24 + $0xac] ss:$16 sps:$4 sm:$0xff]  }
 0x11e   : > { %v5481_v51 = vld [vmem:[%s6149_s24 + $0x2ac] ss:$16 sps:$4 sm:$0xff]  }
 0x11f   : > { %3766 = vmatpush1.bf16.msra.mxu0 %v5398_v6  ;;  %v5464_v6 = vld [vmem:[%s6149_s24 + $0xe8] ss:$16 sps:$4 sm:$0xff]  }
 0x120   : > { %3809 = vmatpush1.bf16.msra.mxu1 %v5401_v7  ;;  %3767 = vmatprep.subr.bf16.mxu0 %v5406_v10  ;;  %v5467_v7 = vld [vmem:[%s6149_s24 + $0x2e8] ss:$16 sps:$4 sm:$0xff]   ;;  %v5472_v10 = vld [vmem:[%s6149_s24 + $0xcc] ss:$16 sps:$4 sm:$0xff]  }
 0x121   : > { %3810 = vmatprep.subr.bf16.mxu1 %v5409_v11  ;;  %v5475_v11 = vld [vmem:[%s6149_s24 + $0x2cc] ss:$16 sps:$4 sm:$0xff]  }
 0x123   : > { %3768 = vmatpush1.bf16.msra.mxu0 %v5404_v12  ;;  %v5476_v12 = vld [vmem:[%s6149_s24 + $0xa8] ss:$16 sps:$4 sm:$0xff]  }
 0x124   : > { %3811 = vmatpush1.bf16.msra.mxu1 %v5407_v13  ;;  %3769 = vmatprep.subr.bf16.mxu0 %v5412_v14  ;;  %v5479_v13 = vld [vmem:[%s6149_s24 + $0x2a8] ss:$16 sps:$4 sm:$0xff]   ;;  %v5484_v14 = vld [vmem:[%s6149_s24 + $0x8c] ss:$16 sps:$4 sm:$0xff]  }
 0x125   : > { %3812 = vmatprep.subr.bf16.mxu1 %v5415_v15  ;;  %v5487_v15 = vld [vmem:[%s6149_s24 + $0x28c] ss:$16 sps:$4 sm:$0xff]  }
 0x127   : > { %3770 = vmatpush1.bf16.msra.mxu0 %v5410_v16  ;;  %v5482_v16 = vld [vmem:[%s6149_s24 + $0x88] ss:$16 sps:$4 sm:$0xff]  }
 0x128   : > { %3813 = vmatpush1.bf16.msra.mxu1 %v5413_v17  ;;  %3771 = vmatprep.subr.bf16.mxu0 %v5418_v18  ;;  %v5485_v17 = vld [vmem:[%s6149_s24 + $0x288] ss:$16 sps:$4 sm:$0xff]  }
 0x129   : > { %3814 = vmatprep.subr.bf16.mxu1 %v5421_v19  ;;  %v5488_v18 = vld [vmem:[%s6149_s24 + $0x68] ss:$16 sps:$4 sm:$0xff]  }
 0x12a   : > { %v5491_v19 = vld [vmem:[%s6149_s24 + $0x268] ss:$16 sps:$4 sm:$0xff]  }
 0x12b   : > { %3772 = vmatpush2.bf16.msra.mxu0 %v5416_v22  ;;  %v5496_v22 = vld [vmem:[%s6149_s24 + $0x4c] ss:$16 sps:$4 sm:$0xff]  }
 0x12c   : > { %3815 = vmatpush2.bf16.msra.mxu1 %v5419_v23  ;;  %3773 = vmatprep.subr.bf16.mxu0 %v5424_v24  ;;  %v5499_v23 = vld [vmem:[%s6149_s24 + $0x24c] ss:$16 sps:$4 sm:$0xff]   ;;  %v5494_v24 = vld [vmem:[%s6149_s24 + $0x48] ss:$16 sps:$4 sm:$0xff]  }
 0x12d   : > { %3816 = vmatprep.subr.bf16.mxu1 %v5427_v25  ;;  %v5497_v25 = vld [vmem:[%s6149_s24 + $0x248] ss:$16 sps:$4 sm:$0xff]  }
 0x12f   : > { %3774 = vmatpush2.bf16.msra.mxu0 %v5422_v26  ;;  %v5502_v26 = vld [vmem:[%s6149_s24 + $0x2c] ss:$16 sps:$4 sm:$0xff]  }
 0x130   : > { %3817 = vmatpush2.bf16.msra.mxu1 %v5425_v27  ;;  %3775 = vmatprep.subr.bf16.mxu0 %v5430_v32  ;;  %v5505_v27 = vld [vmem:[%s6149_s24 + $0x22c] ss:$16 sps:$4 sm:$0xff]   ;;  %v5500_v32 = vld [vmem:[%s6149_s24 + $0x28] ss:$16 sps:$4 sm:$0xff]  }
 0x131   : > { %3818 = vmatprep.subr.bf16.mxu1 %v5433_v34  ;;  %v5503_v34 = vld [vmem:[%s6149_s24 + $0x228] ss:$16 sps:$4 sm:$0xff]  }
 0x133   : > { %3776 = vmatpush2.bf16.msra.mxu0 %v5428_v36  ;;  %v5508_v36 = vld [vmem:[%s6149_s24 + $0xc] ss:$16 sps:$4 sm:$0xff]  }
 0x134   : > { %3819 = vmatpush2.bf16.msra.mxu1 %v5431_v37  ;;  %3777 = vmatprep.subr.bf16.mxu0 %v5436_v38  ;;  %v5511_v37 = vld [vmem:[%s6149_s24 + $0x20c] ss:$16 sps:$4 sm:$0xff]   ;;  %v5506_v38 = vld [vmem:[%s6149_s24 + $0x8] ss:$16 sps:$4 sm:$0xff]  }
 0x135   : > { %3820 = vmatprep.subr.bf16.mxu1 %v5439_v39  ;;  %v5509_v39 = vld [vmem:[%s6149_s24 + $0x208] ss:$16 sps:$4 sm:$0xff]  }
 0x137   : > { %3778 = vmatpush2.bf16.msra.mxu0 %v5434_v40  ;;  %v5514_v40 = vld [vmem:[%s6149_s24 + $0x1ec] ss:$16 sps:$4 sm:$0xff]  }
 0x138   : > { %3821 = vmatpush2.bf16.msra.mxu1 %v5437_v42  ;;  %3779 = vmatprep.subr.bf16.mxu0 %v5442_v44  ;;  %v5517_v42 = vld [vmem:[%s6149_s24 + $0x3ec] ss:$16 sps:$4 sm:$0xff]   ;;  %v5512_v44 = vld [vmem:[%s6149_s24 + $0x1e8] ss:$16 sps:$4 sm:$0xff]  }
 0x139   : > { %3822 = vmatprep.subr.bf16.mxu1 %v5445_v45  ;;  %v5515_v45 = vld [vmem:[%s6149_s24 + $0x3e8] ss:$16 sps:$4 sm:$0xff]  }
 0x13b   : > { %3780 = vmatpush2.bf16.msra.mxu0 %v5440_v28  ;;  %v5520_v28 = vld [vmem:[%s6149_s24 + $0x1cc] ss:$16 sps:$4 sm:$0xff]  }
 0x13c   : > { %3823 = vmatpush2.bf16.msra.mxu1 %v5443_v29  ;;  %3781 = vmatprep.subr.bf16.mxu0 %v5448_v52  ;;  %v5523_v29 = vld [vmem:[%s6149_s24 + $0x3cc] ss:$16 sps:$4 sm:$0xff]   ;;  %v5518_v52 = vld [vmem:[%s6149_s24 + $0x1c8] ss:$16 sps:$4 sm:$0xff]  }
 0x13d   : > { %3824 = vmatprep.subr.bf16.mxu1 %v5451_v54  ;;  %v5521_v54 = vld [vmem:[%s6149_s24 + $0x3c8] ss:$16 sps:$4 sm:$0xff]  }
 0x13f   : > { %3782 = vmatpush2.bf16.msra.mxu0 %v5446_v56  ;;  %v5526_v56 = vld [vmem:[%s6149_s24 + $0x1ac] ss:$16 sps:$4 sm:$0xff]  }
 0x140   : > { %3825 = vmatpush2.bf16.msra.mxu1 %v5449_v57  ;;  %3783 = vmatprep.subr.bf16.mxu0 %v5454_v58  ;;  %v5529_v57 = vld [vmem:[%s6149_s24 + $0x3ac] ss:$16 sps:$4 sm:$0xff]   ;;  %v5524_v58 = vld [vmem:[%s6149_s24 + $0x1a8] ss:$16 sps:$4 sm:$0xff]  }
 0x141   : > { %3826 = vmatprep.subr.bf16.mxu1 %v5457_v59  ;;  %v5527_v59 = vld [vmem:[%s6149_s24 + $0x3a8] ss:$16 sps:$4 sm:$0xff]  }
 0x143   : > { %3784 = vmatpush2.bf16.msra.mxu0 %v5452_v60  ;;  %v5532_v60 = vld [vmem:[%s6149_s24 + $0x18c] ss:$16 sps:$4 sm:$0xff]  }
 0x144   : > { %3827 = vmatpush2.bf16.msra.mxu1 %v5455_v61  ;;  %3785 = vmatprep.subr.bf16.mxu0 %v5460_v62  ;;  %v5535_v61 = vld [vmem:[%s6149_s24 + $0x38c] ss:$16 sps:$4 sm:$0xff]   ;;  %v5530_v62 = vld [vmem:[%s6149_s24 + $0x188] ss:$16 sps:$4 sm:$0xff]  }
 0x145   : > { %3828 = vmatprep.subr.bf16.mxu1 %v5463_v63  ;;  %v5533_v63 = vld [vmem:[%s6149_s24 + $0x388] ss:$16 sps:$4 sm:$0xff]  }
 0x147   : > { %3786 = vmatpush2.bf16.msra.mxu0 %v5458_v0  ;;  %v5538_v0 = vld [vmem:[%s6149_s24 + $0x16c] ss:$16 sps:$4 sm:$0xff]  }
 0x148   : > { %3829 = vmatpush2.bf16.msra.mxu1 %v5461_v1  ;;  %3841 = vmatprep.subr.bf16.mxu0 %v5466_v2  ;;  %v5541_v1 = vld [vmem:[%s6149_s24 + $0x36c] ss:$16 sps:$4 sm:$0xff]   ;;  %v5536_v2 = vld [vmem:[%s6149_s24 + $0x168] ss:$16 sps:$4 sm:$0xff]  }
 0x149   : > { %3884 = vmatprep.subr.bf16.mxu1 %v5469_v3  ;;  %v5539_v3 = vld [vmem:[%s6149_s24 + $0x368] ss:$16 sps:$4 sm:$0xff]  }
 0x14a   : > { %3788 = vmatmul.mubr.bf16.vlgmr.msra.gmra.mxu0 %v6559_v4 }
 0x14b   : > { %3831 = vmatmul.mubr.bf16.vlgmr.msra.gmra.mxu1 %v6563_v5  ;;  %3842 = vmatpush1.bf16.msra.mxu0 %v5464_v6  ;;  %v5544_v6 = vld [vmem:[%s6149_s24 + $0x14c] ss:$16 sps:$4 sm:$0xff]  }
 0x14c   : > { %3885 = vmatpush1.bf16.msra.mxu1 %v5467_v7  ;;  %3843 = vmatprep.subr.bf16.mxu0 %v5472_v10  ;;  %v5547_v7 = vld [vmem:[%s6149_s24 + $0x34c] ss:$16 sps:$4 sm:$0xff]   ;;  %v5542_v10 = vld [vmem:[%s6149_s24 + $0x148] ss:$16 sps:$4 sm:$0xff]  }
 0x14d   : > { %3886 = vmatprep.subr.bf16.mxu1 %v5475_v11  ;;  %3873 = vmatprep.mubr.bf16.mxu0 %v6226_v53  ;;  %v5490_v53 = vld [vmem:[%s6149_s24 + $0x6c] ss:$16 sps:$4 sm:$0xff]   ;;  %v5545_v11 = vld [vmem:[%s6149_s24 + $0x348] ss:$16 sps:$4 sm:$0xff]  }
 0x14e   : > { %3916 = vmatprep.mubr.bf16.mxu1 %v6229_v55  ;;  %v5493_v55 = vld [vmem:[%s6149_s24 + $0x26c] ss:$16 sps:$4 sm:$0xff]  }
 0x14f   : > { %3844 = vmatpush1.bf16.msra.mxu0 %v5470_v46  ;;  %v5550_v46 = vld [vmem:[%s6149_s24 + $0x12c] ss:$16 sps:$4 sm:$0xff]  }
 0x150   : > { %3887 = vmatpush1.bf16.msra.mxu1 %v5473_v47  ;;  %3845 = vmatprep.subr.bf16.mxu0 %v5478_v50  ;;  %v5553_v47 = vld [vmem:[%s6149_s24 + $0x32c] ss:$16 sps:$4 sm:$0xff]   ;;  %v5548_v50 = vld [vmem:[%s6149_s24 + $0x128] ss:$16 sps:$4 sm:$0xff]  }
 0x151   : > { %3888 = vmatprep.subr.bf16.mxu1 %v5481_v51  ;;  %v5551_v51 = vld [vmem:[%s6149_s24 + $0x328] ss:$16 sps:$4 sm:$0xff]  }
 0x153   : > { %3846 = vmatpush1.bf16.msra.mxu0 %v5476_v12  ;;  %v5556_v12 = vld [vmem:[%s6149_s24 + $0x10c] ss:$16 sps:$4 sm:$0xff]  }
 0x154   : > { %3889 = vmatpush1.bf16.msra.mxu1 %v5479_v13  ;;  %3847 = vmatprep.subr.bf16.mxu0 %v5484_v14  ;;  %v5559_v13 = vld [vmem:[%s6149_s24 + $0x30c] ss:$16 sps:$4 sm:$0xff]   ;;  %v5554_v14 = vld [vmem:[%s6149_s24 + $0x108] ss:$16 sps:$4 sm:$0xff]  }
 0x155   : > { %3890 = vmatprep.subr.bf16.mxu1 %v5487_v15  ;;  %v5557_v15 = vld [vmem:[%s6149_s24 + $0x308] ss:$16 sps:$4 sm:$0xff]  }
 0x157   : > { %3848 = vmatpush1.bf16.msra.mxu0 %v5482_v16  ;;  %v5562_v16 = vld [vmem:[%s6149_s24 + $0x4ec] ss:$16 sps:$4 sm:$0xff]  }
 0x158   : > { %3891 = vmatpush1.bf16.msra.mxu1 %v5485_v17  ;;  %3849 = vmatprep.subr.bf16.mxu0 %v5490_v53  ;;  %v5565_v17 = vld [vmem:[%s6149_s24 + $0x6ec] ss:$16 sps:$4 sm:$0xff]   ;;  %v5560_v53 = vld [vmem:[%s6149_s24 + $0x4e8] ss:$16 sps:$4 sm:$0xff]  }
 0x159   : > { %3892 = vmatprep.subr.bf16.mxu1 %v5493_v55  ;;  %v5563_v55 = vld [vmem:[%s6149_s24 + $0x6e8] ss:$16 sps:$4 sm:$0xff]  }
 0x15b   : > { %3850 = vmatpush1.bf16.msra.mxu0 %v5488_v18  ;;  %v5568_v18 = vld [vmem:[%s6149_s24 + $0x4cc] ss:$16 sps:$4 sm:$0xff]  }
 0x15c   : > { %3893 = vmatpush1.bf16.msra.mxu1 %v5491_v19  ;;  %3851 = vmatprep.subr.bf16.mxu0 %v5496_v22  ;;  %v5571_v19 = vld [vmem:[%s6149_s24 + $0x6cc] ss:$16 sps:$4 sm:$0xff]   ;;  %v5566_v22 = vld [vmem:[%s6149_s24 + $0x4c8] ss:$16 sps:$4 sm:$0xff]  }
 0x15d   : > { %3894 = vmatprep.subr.bf16.mxu1 %v5499_v23  ;;  %v5569_v23 = vld [vmem:[%s6149_s24 + $0x6c8] ss:$16 sps:$4 sm:$0xff]  }
 0x15f   : > { %3852 = vmatpush1.bf16.msra.mxu0 %v5494_v24  ;;  %v5574_v24 = vld [vmem:[%s6149_s24 + $0x4ac] ss:$16 sps:$4 sm:$0xff]  }
 0x160   : > { %3895 = vmatpush1.bf16.msra.mxu1 %v5497_v25  ;;  %3853 = vmatprep.subr.bf16.mxu0 %v5502_v26  ;;  %v5577_v25 = vld [vmem:[%s6149_s24 + $0x6ac] ss:$16 sps:$4 sm:$0xff]   ;;  %v5572_v26 = vld [vmem:[%s6149_s24 + $0x4a8] ss:$16 sps:$4 sm:$0xff]  }
 0x161   : > { %3896 = vmatprep.subr.bf16.mxu1 %v5505_v27  ;;  %v5583_v27 = vld [vmem:[%s6149_s24 + $0x68c] ss:$16 sps:$4 sm:$0xff]  }
 0x163   : > { %3854 = vmatpush1.bf16.msra.mxu0 %v5500_v32  ;;  %v5578_v32 = vld [vmem:[%s6149_s24 + $0x488] ss:$16 sps:$4 sm:$0xff]  }
 0x164   : > { %3897 = vmatpush1.bf16.msra.mxu1 %v5503_v34  ;;  %3855 = vmatprep.subr.bf16.mxu0 %v5508_v36  ;;  %v5589_v34 = vld [vmem:[%s6149_s24 + $0x66c] ss:$16 sps:$4 sm:$0xff]   ;;  %v5584_v36 = vld [vmem:[%s6149_s24 + $0x468] ss:$16 sps:$4 sm:$0xff]  }
 0x165   : > { %3898 = vmatprep.subr.bf16.mxu1 %v5511_v37  ;;  %v5587_v37 = vld [vmem:[%s6149_s24 + $0x668] ss:$16 sps:$4 sm:$0xff]  }
 0x167   : > { %3856 = vmatpush1.bf16.msra.mxu0 %v5506_v38  ;;  %v5592_v38 = vld [vmem:[%s6149_s24 + $0x44c] ss:$16 sps:$4 sm:$0xff]  }
 0x168   : > { %3899 = vmatpush1.bf16.msra.mxu1 %v5509_v39  ;;  %3857 = vmatprep.subr.bf16.mxu0 %v5514_v40  ;;  %v5595_v39 = vld [vmem:[%s6149_s24 + $0x64c] ss:$16 sps:$4 sm:$0xff]   ;;  %v5590_v40 = vld [vmem:[%s6149_s24 + $0x448] ss:$16 sps:$4 sm:$0xff]  }
 0x169   : > { %3900 = vmatprep.subr.bf16.mxu1 %v5517_v42  ;;  %v5593_v42 = vld [vmem:[%s6149_s24 + $0x648] ss:$16 sps:$4 sm:$0xff]  }
 0x16b   : > { %3858 = vmatpush2.bf16.msra.mxu0 %v5512_v44  ;;  %v5598_v44 = vld [vmem:[%s6149_s24 + $0x42c] ss:$16 sps:$4 sm:$0xff]  }
 0x16c   : > { %3901 = vmatpush2.bf16.msra.mxu1 %v5515_v45  ;;  %3859 = vmatprep.subr.bf16.mxu0 %v5520_v28  ;;  %v5601_v45 = vld [vmem:[%s6149_s24 + $0x62c] ss:$16 sps:$4 sm:$0xff]   ;;  %v5596_v28 = vld [vmem:[%s6149_s24 + $0x428] ss:$16 sps:$4 sm:$0xff]  }
 0x16d   : > { %3902 = vmatprep.subr.bf16.mxu1 %v5523_v29  ;;  %v5599_v29 = vld [vmem:[%s6149_s24 + $0x628] ss:$16 sps:$4 sm:$0xff]  }
 0x16f   : > { %3860 = vmatpush2.bf16.msra.mxu0 %v5518_v52  ;;  %v5604_v52 = vld [vmem:[%s6149_s24 + $0x40c] ss:$16 sps:$4 sm:$0xff]  }
 0x170   : > { %3903 = vmatpush2.bf16.msra.mxu1 %v5521_v54  ;;  %3861 = vmatprep.subr.bf16.mxu0 %v5526_v56  ;;  %v5607_v54 = vld [vmem:[%s6149_s24 + $0x60c] ss:$16 sps:$4 sm:$0xff]   ;;  %v5602_v56 = vld [vmem:[%s6149_s24 + $0x408] ss:$16 sps:$4 sm:$0xff]  }
 0x171   : > { %3904 = vmatprep.subr.bf16.mxu1 %v5529_v57  ;;  %v5605_v57 = vld [vmem:[%s6149_s24 + $0x608] ss:$16 sps:$4 sm:$0xff]  }
 0x173   : > { %3862 = vmatpush2.bf16.msra.mxu0 %v5524_v58  ;;  %v5610_v58 = vld [vmem:[%s6149_s24 + $0x5ec] ss:$16 sps:$4 sm:$0xff]  }
 0x174   : > { %3905 = vmatpush2.bf16.msra.mxu1 %v5527_v59  ;;  %3863 = vmatprep.subr.bf16.mxu0 %v5532_v60  ;;  %v5613_v59 = vld [vmem:[%s6149_s24 + $0x7ec] ss:$16 sps:$4 sm:$0xff]   ;;  %v5608_v60 = vld [vmem:[%s6149_s24 + $0x5e8] ss:$16 sps:$4 sm:$0xff]  }
 0x175   : > { %3906 = vmatprep.subr.bf16.mxu1 %v5535_v61  ;;  %v5611_v61 = vld [vmem:[%s6149_s24 + $0x7e8] ss:$16 sps:$4 sm:$0xff]  }
 0x177   : > { %3864 = vmatpush2.bf16.msra.mxu0 %v5530_v62  ;;  %v5616_v62 = vld [vmem:[%s6149_s24 + $0x5cc] ss:$16 sps:$4 sm:$0xff]  }
 0x178   : > { %3907 = vmatpush2.bf16.msra.mxu1 %v5533_v63  ;;  %3865 = vmatprep.subr.bf16.mxu0 %v5538_v0  ;;  %v5619_v63 = vld [vmem:[%s6149_s24 + $0x7cc] ss:$16 sps:$4 sm:$0xff]   ;;  %v5614_v0 = vld [vmem:[%s6149_s24 + $0x5c8] ss:$16 sps:$4 sm:$0xff]  }
 0x179   : > { %3908 = vmatprep.subr.bf16.mxu1 %v5541_v1  ;;  %v5617_v1 = vld [vmem:[%s6149_s24 + $0x7c8] ss:$16 sps:$4 sm:$0xff]  }
 0x17b   : > { %3866 = vmatpush2.bf16.msra.mxu0 %v5536_v2  ;;  %v5622_v2 = vld [vmem:[%s6149_s24 + $0x5ac] ss:$16 sps:$4 sm:$0xff]  }
 0x17c   : > { %3909 = vmatpush2.bf16.msra.mxu1 %v5539_v3  ;;  %3867 = vmatprep.subr.bf16.mxu0 %v5544_v6  ;;  %v5625_v3 = vld [vmem:[%s6149_s24 + $0x7ac] ss:$16 sps:$4 sm:$0xff]   ;;  %v5620_v6 = vld [vmem:[%s6149_s24 + $0x5a8] ss:$16 sps:$4 sm:$0xff]  }
 0x17d   : > { %3910 = vmatprep.subr.bf16.mxu1 %v5547_v7  ;;  %v5623_v7 = vld [vmem:[%s6149_s24 + $0x7a8] ss:$16 sps:$4 sm:$0xff]  }
 0x17f   : > { %3868 = vmatpush2.bf16.msra.mxu0 %v5542_v10  ;;  %v5628_v10 = vld [vmem:[%s6149_s24 + $0x58c] ss:$16 sps:$4 sm:$0xff]  }
 0x180   : > { %3911 = vmatpush2.bf16.msra.mxu1 %v5545_v11  ;;  %3869 = vmatprep.subr.bf16.mxu0 %v5550_v46  ;;  %v5631_v11 = vld [vmem:[%s6149_s24 + $0x78c] ss:$16 sps:$4 sm:$0xff]   ;;  %v5626_v46 = vld [vmem:[%s6149_s24 + $0x588] ss:$16 sps:$4 sm:$0xff]  }
 0x181   : > { %3912 = vmatprep.subr.bf16.mxu1 %v5553_v47  ;;  %v5629_v47 = vld [vmem:[%s6149_s24 + $0x788] ss:$16 sps:$4 sm:$0xff]  }
 0x183   : > { %3870 = vmatpush2.bf16.msra.mxu0 %v5548_v50  ;;  %v5634_v50 = vld [vmem:[%s6149_s24 + $0x56c] ss:$16 sps:$4 sm:$0xff]  }
 0x184   : > { %3913 = vmatpush2.bf16.msra.mxu1 %v5551_v51  ;;  %3871 = vmatprep.subr.bf16.mxu0 %v5556_v12  ;;  %v5637_v51 = vld [vmem:[%s6149_s24 + $0x76c] ss:$16 sps:$4 sm:$0xff]   ;;  %v5632_v12 = vld [vmem:[%s6149_s24 + $0x568] ss:$16 sps:$4 sm:$0xff]  }
 0x185   : > { %3914 = vmatprep.subr.bf16.mxu1 %v5559_v13  ;;  %v5635_v13 = vld [vmem:[%s6149_s24 + $0x768] ss:$16 sps:$4 sm:$0xff]  }
 0x187   : > { %3872 = vmatpush2.bf16.msra.mxu0 %v5554_v14  ;;  %v5640_v14 = vld [vmem:[%s6149_s24 + $0x54c] ss:$16 sps:$4 sm:$0xff]  }
 0x188   : > { %3915 = vmatpush2.bf16.msra.mxu1 %v5557_v15  ;;  %3927 = vmatprep.subr.bf16.mxu0 %v5562_v16  ;;  %v5643_v15 = vld [vmem:[%s6149_s24 + $0x74c] ss:$16 sps:$4 sm:$0xff]   ;;  %v5638_v16 = vld [vmem:[%s6149_s24 + $0x548] ss:$16 sps:$4 sm:$0xff]  }
 0x189   : > { %3970 = vmatprep.subr.bf16.mxu1 %v5565_v17  ;;  %v5641_v17 = vld [vmem:[%s6149_s24 + $0x748] ss:$16 sps:$4 sm:$0xff]  }
 0x18a   : > { %3874 = vmatmul.mubr.bf16.vlgmr.msra.gmra.mxu0 %v6249_v8  ;;  %v5575_v8 = vld [vmem:[%s6149_s24 + $0x6a8] ss:$16 sps:$4 sm:$0xff]  }
 0x18b   : > { %3917 = vmatmul.mubr.bf16.vlgmr.msra.gmra.mxu1 %v6251_v9  ;;  %3928 = vmatpush1.bf16.msra.mxu0 %v5560_v53  ;;  %v5580_v9 = vld [vmem:[%s6149_s24 + $0x48c] ss:$16 sps:$4 sm:$0xff]  }
 0x18c   : > { %3971 = vmatpush1.bf16.msra.mxu1 %v5563_v55  ;;  %3929 = vmatprep.subr.bf16.mxu0 %v5568_v18  ;;  %v5646_v53 = vld [vmem:[%s6149_s24 + $0x52c] ss:$16 sps:$4 sm:$0xff]   ;;  %v5644_v18 = vld [vmem:[%s6149_s24 + $0x528] ss:$16 sps:$4 sm:$0xff]  }
 0x18d   : > { %3972 = vmatprep.subr.bf16.mxu1 %v5571_v19  ;;  %3959 = vmatprep.mubr.bf16.mxu0 %v6304_v41  ;;  %v5581_v41 = vld [vmem:[%s6149_s24 + $0x688] ss:$16 sps:$4 sm:$0xff]   ;;  %v5649_v55 = vld [vmem:[%s6149_s24 + $0x72c] ss:$16 sps:$4 sm:$0xff]  }
 0x18e   : > { %4002 = vmatprep.mubr.bf16.mxu1 %v6309_v43  ;;  %v5586_v43 = vld [vmem:[%s6149_s24 + $0x46c] ss:$16 sps:$4 sm:$0xff]   ;;  %v5647_v19 = vld [vmem:[%s6149_s24 + $0x728] ss:$16 sps:$4 sm:$0xff]  }
 0x18f   : > { %3930 = vmatpush1.bf16.msra.mxu0 %v5566_v22  ;;  %v5652_v22 = vld [vmem:[%s6149_s24 + $0x50c] ss:$16 sps:$4 sm:$0xff]  }
 0x190   : > { %3973 = vmatpush1.bf16.msra.mxu1 %v5569_v23  ;;  %3931 = vmatprep.subr.bf16.mxu0 %v5574_v24  ;;  %v5655_v23 = vld [vmem:[%s6149_s24 + $0x70c] ss:$16 sps:$4 sm:$0xff]   ;;  %v5650_v24 = vld [vmem:[%s6149_s24 + $0x508] ss:$16 sps:$4 sm:$0xff]  }
 0x191   : > { %3974 = vmatprep.subr.bf16.mxu1 %v5577_v25  ;;  %v5653_v25 = vld [vmem:[%s6149_s24 + $0x708] ss:$16 sps:$4 sm:$0xff]  }
 0x193   : > { %3932 = vmatpush1.bf16.msra.mxu0 %v5572_v26  ;;  %v5658_v26 = vld [vmem:[%s6149_s24 + $0x8ec] ss:$16 sps:$4 sm:$0xff]  }
 0x194   : > { %3975 = vmatpush1.bf16.msra.mxu1 %v5575_v8  ;;  %3933 = vmatprep.subr.bf16.mxu0 %v5580_v9  ;;  %v5661_v8 = vld [vmem:[%s6149_s24 + $0xaec] ss:$16 sps:$4 sm:$0xff]   ;;  %v5656_v9 = vld [vmem:[%s6149_s24 + $0x8e8] ss:$16 sps:$4 sm:$0xff]  }
 0x195   : > { %3976 = vmatprep.subr.bf16.mxu1 %v5583_v27  ;;  %v5659_v27 = vld [vmem:[%s6149_s24 + $0xae8] ss:$16 sps:$4 sm:$0xff]  }
 0x197   : > { %3934 = vmatpush1.bf16.msra.mxu0 %v5578_v32  ;;  %v5664_v32 = vld [vmem:[%s6149_s24 + $0x8cc] ss:$16 sps:$4 sm:$0xff]  }
 0x198   : > { %3977 = vmatpush1.bf16.msra.mxu1 %v5581_v41  ;;  %3935 = vmatprep.subr.bf16.mxu0 %v5586_v43  ;;  %v5667_v41 = vld [vmem:[%s6149_s24 + $0xacc] ss:$16 sps:$4 sm:$0xff]   ;;  %v5662_v43 = vld [vmem:[%s6149_s24 + $0x8c8] ss:$16 sps:$4 sm:$0xff]  }
 0x199   : > { %3978 = vmatprep.subr.bf16.mxu1 %v5589_v34  ;;  %v5665_v34 = vld [vmem:[%s6149_s24 + $0xac8] ss:$16 sps:$4 sm:$0xff]  }
 0x19b   : > { %3936 = vmatpush1.bf16.msra.mxu0 %v5584_v36  ;;  %v5670_v36 = vld [vmem:[%s6149_s24 + $0x8ac] ss:$16 sps:$4 sm:$0xff]  }
 0x19c   : > { %3979 = vmatpush1.bf16.msra.mxu1 %v5587_v37  ;;  %3937 = vmatprep.subr.bf16.mxu0 %v5592_v38  ;;  %v5673_v37 = vld [vmem:[%s6149_s24 + $0xaac] ss:$16 sps:$4 sm:$0xff]  }
 0x19d   : > { %3980 = vmatprep.subr.bf16.mxu1 %v5595_v39  ;;  %v5676_v38 = vld [vmem:[%s6149_s24 + $0x88c] ss:$16 sps:$4 sm:$0xff]  }
 0x19e   : > { %v5679_v39 = vld [vmem:[%s6149_s24 + $0xa8c] ss:$16 sps:$4 sm:$0xff]  }
 0x19f   : > { %3938 = vmatpush1.bf16.msra.mxu0 %v5590_v40  ;;  %v5674_v40 = vld [vmem:[%s6149_s24 + $0x888] ss:$16 sps:$4 sm:$0xff]  }
 0x1a0   : > { %3981 = vmatpush1.bf16.msra.mxu1 %v5593_v42  ;;  %3939 = vmatprep.subr.bf16.mxu0 %v5598_v44  ;;  %v5685_v42 = vld [vmem:[%s6149_s24 + $0xa6c] ss:$16 sps:$4 sm:$0xff]   ;;  %v5680_v44 = vld [vmem:[%s6149_s24 + $0x868] ss:$16 sps:$4 sm:$0xff]  }
 0x1a1   : > { %3982 = vmatprep.subr.bf16.mxu1 %v5601_v45  ;;  %v5683_v45 = vld [vmem:[%s6149_s24 + $0xa68] ss:$16 sps:$4 sm:$0xff]  }
 0x1a3   : > { %3940 = vmatpush1.bf16.msra.mxu0 %v5596_v28  ;;  %v5688_v28 = vld [vmem:[%s6149_s24 + $0x84c] ss:$16 sps:$4 sm:$0xff]  }
 0x1a4   : > { %3983 = vmatpush1.bf16.msra.mxu1 %v5599_v29  ;;  %3941 = vmatprep.subr.bf16.mxu0 %v5604_v52  ;;  %v5691_v29 = vld [vmem:[%s6149_s24 + $0xa4c] ss:$16 sps:$4 sm:$0xff]   ;;  %v5686_v52 = vld [vmem:[%s6149_s24 + $0x848] ss:$16 sps:$4 sm:$0xff]  }
 0x1a5   : > { %3984 = vmatprep.subr.bf16.mxu1 %v5607_v54  ;;  %v5689_v54 = vld [vmem:[%s6149_s24 + $0xa48] ss:$16 sps:$4 sm:$0xff]  }
 0x1a7   : > { %3942 = vmatpush1.bf16.msra.mxu0 %v5602_v56  ;;  %v5694_v56 = vld [vmem:[%s6149_s24 + $0x82c] ss:$16 sps:$4 sm:$0xff]  }
 0x1a8   : > { %3985 = vmatpush1.bf16.msra.mxu1 %v5605_v57  ;;  %3943 = vmatprep.subr.bf16.mxu0 %v5610_v58  ;;  %v5697_v57 = vld [vmem:[%s6149_s24 + $0xa2c] ss:$16 sps:$4 sm:$0xff]   ;;  %v6729_v58 = vpop.f32.mrf.mxu0 }
 0x1a9   : > { %3986 = vmatprep.subr.bf16.mxu1 %v5613_v59  ;;  %v5692_v59 = vld [vmem:[%s6149_s24 + $0x828] ss:$16 sps:$4 sm:$0xff]  }
 0x1ab   : > { %3944 = vmatpush2.bf16.msra.mxu0 %v5608_v60  ;;  %v5695_v60 = vld [vmem:[%s6149_s24 + $0xa28] ss:$16 sps:$4 sm:$0xff]  }
 0x1ac   : > { %3987 = vmatpush2.bf16.msra.mxu1 %v5611_v61  ;;  %3945 = vmatprep.subr.bf16.mxu0 %v5616_v62  ;;  %v6733_v61 = vpop.f32.mrf.mxu1  ;;  %v5700_v62 = vld [vmem:[%s6149_s24 + $0x80c] ss:$16 sps:$4 sm:$0xff]  }
 0x1ad   : > { %3988 = vmatprep.subr.bf16.mxu1 %v5619_v63  ;;  %v5703_v63 = vld [vmem:[%s6149_s24 + $0xa0c] ss:$16 sps:$4 sm:$0xff]  }
 0x1af   : > { %3946 = vmatpush2.bf16.msra.mxu0 %v5614_v0  ;;  %v6737_v0 = vpop.f32.mrf.mxu0 }
 0x1b0   : > { %3989 = vmatpush2.bf16.msra.mxu1 %v5617_v1  ;;  %3947 = vmatprep.subr.bf16.mxu0 %v5622_v2  ;;  %v5698_v1 = vld [vmem:[%s6149_s24 + $0x808] ss:$16 sps:$4 sm:$0xff]  }
 0x1b1   : > { %3990 = vmatprep.subr.bf16.mxu1 %v5625_v3  ;;  %v5701_v2 = vld [vmem:[%s6149_s24 + $0xa08] ss:$16 sps:$4 sm:$0xff]   ;;  %v6741_v3 = vpop.f32.mrf.mxu1 }
 0x1b3   : > { %3948 = vmatpush2.bf16.msra.mxu0 %v5620_v6  ;;  %v5706_v6 = vld [vmem:[%s6149_s24 + $0x9ec] ss:$16 sps:$4 sm:$0xff]  }
 0x1b4   : > { %3991 = vmatpush2.bf16.msra.mxu1 %v5623_v7  ;;  %3949 = vmatprep.subr.bf16.mxu0 %v5628_v10  ;;  %v5709_v7 = vld [vmem:[%s6149_s24 + $0xbec] ss:$16 sps:$4 sm:$0xff]   ;;  %v6745_v10 = vpop.f32.mrf.mxu0 }
 0x1b5   : > { %3992 = vmatprep.subr.bf16.mxu1 %v5631_v11  ;;  %v5704_v11 = vld [vmem:[%s6149_s24 + $0x9e8] ss:$16 sps:$4 sm:$0xff]  }
 0x1b7   : > { %3950 = vmatpush2.bf16.msra.mxu0 %v5626_v46  ;;  %v5707_v46 = vld [vmem:[%s6149_s24 + $0xbe8] ss:$16 sps:$4 sm:$0xff]  }
 0x1b8   : > { %3993 = vmatpush2.bf16.msra.mxu1 %v5629_v47  ;;  %3951 = vmatprep.subr.bf16.mxu0 %v5634_v50  ;;  %v6749_v47 = vpop.f32.mrf.mxu1  ;;  %v5712_v50 = vld [vmem:[%s6149_s24 + $0x9cc] ss:$16 sps:$4 sm:$0xff]  }
 0x1b9   : > { %3994 = vmatprep.subr.bf16.mxu1 %v5637_v51  ;;  %v5715_v51 = vld [vmem:[%s6149_s24 + $0xbcc] ss:$16 sps:$4 sm:$0xff]  }
 0x1bb   : > { %3952 = vmatpush2.bf16.msra.mxu0 %v5632_v12  ;;  %v6753_v12 = vpop.f32.mrf.mxu0 }
 0x1bc   : > { %3995 = vmatpush2.bf16.msra.mxu1 %v5635_v13  ;;  %3953 = vmatprep.subr.bf16.mxu0 %v5640_v14  ;;  %v5710_v13 = vld [vmem:[%s6149_s24 + $0x9c8] ss:$16 sps:$4 sm:$0xff]  }
 0x1bd   : > { %3996 = vmatprep.subr.bf16.mxu1 %v5643_v15  ;;  %v5713_v14 = vld [vmem:[%s6149_s24 + $0xbc8] ss:$16 sps:$4 sm:$0xff]   ;;  %v6757_v15 = vpop.f32.mrf.mxu1 }
 0x1bf   : > { %3954 = vmatpush2.bf16.msra.mxu0 %v5638_v16  ;;  %v5718_v16 = vld [vmem:[%s6149_s24 + $0x9ac] ss:$16 sps:$4 sm:$0xff]  }
 0x1c0   : > { %3997 = vmatpush2.bf16.msra.mxu1 %v5641_v17  ;;  %3955 = vmatprep.subr.bf16.mxu0 %v5646_v53  ;;  %v5721_v17 = vld [vmem:[%s6149_s24 + $0xbac] ss:$16 sps:$4 sm:$0xff]   ;;  %v3617_v53 = vpop.f32.mrf.mxu0 }
 0x1c1   : > { %3998 = vmatprep.subr.bf16.mxu1 %v5649_v55  ;;  %v3660_v55 = vpop.f32.mrf.mxu1 }
 0x1c3   : > { %3956 = vmatpush2.bf16.msra.mxu0 %v5644_v18  ;;  %v5716_v18 = vld [vmem:[%s6149_s24 + $0x9a8] ss:$16 sps:$4 sm:$0xff]  }
 0x1c4   : > { %3999 = vmatpush2.bf16.msra.mxu1 %v5647_v19  ;;  %3957 = vmatprep.subr.bf16.mxu0 %v5652_v22  ;;  %v5719_v19 = vld [vmem:[%s6149_s24 + $0xba8] ss:$16 sps:$4 sm:$0xff]   ;;  %v5724_v22 = vld [vmem:[%s6149_s24 + $0x98c] ss:$16 sps:$4 sm:$0xff]  }
 0x1c5   : > { %4000 = vmatprep.subr.bf16.mxu1 %v5655_v23  ;;  %v5727_v23 = vld [vmem:[%s6149_s24 + $0xb8c] ss:$16 sps:$4 sm:$0xff]  }
 0x1c7   : > { %3958 = vmatpush2.bf16.msra.mxu0 %v5650_v24  ;;  %v3619_v24 = vpop.f32.mrf.mxu0 }
 0x1c8   : > { %4001 = vmatpush2.bf16.msra.mxu1 %v5653_v25  ;;  %4013 = vmatprep.subr.bf16.mxu0 %v5658_v26  ;;  %v3662_v25 = vpop.f32.mrf.mxu1  ;;  %v5722_v26 = vld [vmem:[%s6149_s24 + $0x988] ss:$16 sps:$4 sm:$0xff]  }
 0x1c9   : > { %4056 = vmatprep.subr.bf16.mxu1 %v5661_v8  ;;  %v5725_v8 = vld [vmem:[%s6149_s24 + $0xb88] ss:$16 sps:$4 sm:$0xff]  }
 0x1ca   : > { %3960 = vmatmul.mubr.bf16.vlgmr.msra.gmra.mxu0 %v6351_v20  ;;  %v5668_v20 = vld [vmem:[%s6149_s24 + $0x8a8] ss:$16 sps:$4 sm:$0xff]  }
 0x1cb   : > { %4003 = vmatmul.mubr.bf16.vlgmr.msra.gmra.mxu1 %v6355_v21  ;;  %4014 = vmatpush1.bf16.msra.mxu0 %v5656_v9  ;;  %v5671_v21 = vld [vmem:[%s6149_s24 + $0xaa8] ss:$16 sps:$4 sm:$0xff]   ;;  %v5730_v9 = vld [vmem:[%s6149_s24 + $0x96c] ss:$16 sps:$4 sm:$0xff]  }
 0x1cc   : > { %4057 = vmatpush1.bf16.msra.mxu1 %v5659_v27  ;;  %4015 = vmatprep.subr.bf16.mxu0 %v5664_v32  ;;  %v5733_v27 = vld [vmem:[%s6149_s24 + $0xb6c] ss:$16 sps:$4 sm:$0xff]   ;;  %v3621_v32 = vpop.f32.mrf.mxu0 }
 0x1cd   : > { %4058 = vmatprep.subr.bf16.mxu1 %v5667_v41  ;;  %4045 = vmatprep.mubr.bf16.mxu0 %v6388_v33  ;;  %v5677_v33 = vld [vmem:[%s6149_s24 + $0xa88] ss:$16 sps:$4 sm:$0xff]   ;;  %v3664_v41 = vpop.f32.mrf.mxu1 }
 0x1ce   : > { %4088 = vmatprep.mubr.bf16.mxu1 %v6393_v35  ;;  %v5682_v35 = vld [vmem:[%s6149_s24 + $0x86c] ss:$16 sps:$4 sm:$0xff]  }
 0x1cf   : > { %4016 = vmatpush1.bf16.msra.mxu0 %v5662_v43  ;;  %v5728_v43 = vld [vmem:[%s6149_s24 + $0x968] ss:$16 sps:$4 sm:$0xff]  }
 0x1d0   : > { %4059 = vmatpush1.bf16.msra.mxu1 %v5665_v34  ;;  %4017 = vmatprep.subr.bf16.mxu0 %v5670_v36  ;;  %v5731_v34 = vld [vmem:[%s6149_s24 + $0xb68] ss:$16 sps:$4 sm:$0xff]   ;;  %v5736_v36 = vld [vmem:[%s6149_s24 + $0x94c] ss:$16 sps:$4 sm:$0xff]  }
 0x1d1   : > { %4060 = vmatprep.subr.bf16.mxu1 %v5673_v37  ;;  %v5739_v37 = vld [vmem:[%s6149_s24 + $0xb4c] ss:$16 sps:$4 sm:$0xff]  }
 0x1d3   : > { %4018 = vmatpush1.bf16.msra.mxu0 %v5668_v20  ;;  %v3623_v20 = vpop.f32.mrf.mxu0 }
 0x1d4   : > { %4061 = vmatpush1.bf16.msra.mxu1 %v5671_v21  ;;  %4019 = vmatprep.subr.bf16.mxu0 %v5676_v38  ;;  %v3666_v21 = vpop.f32.mrf.mxu1 }
 0x1d5   : > { %4062 = vmatprep.subr.bf16.mxu1 %v5679_v39  ;;  %v3703_v38 = vpop.f32.mrf.mxu0  ;;  %v5734_v39 = vld [vmem:[%s6149_s24 + $0x948] ss:$16 sps:$4 sm:$0xff]  }
 0x1d7   : > { %4020 = vmatpush1.bf16.msra.mxu0 %v5674_v40  ;;  %v5737_v40 = vld [vmem:[%s6149_s24 + $0xb48] ss:$16 sps:$4 sm:$0xff]  }
 0x1d8   : > { %4063 = vmatpush1.bf16.msra.mxu1 %v5677_v33  ;;  %4021 = vmatprep.subr.bf16.mxu0 %v5682_v35  ;;  %v3746_v33 = vpop.f32.mrf.mxu1  ;;  %v5742_v35 = vld [vmem:[%s6149_s24 + $0x92c] ss:$16 sps:$4 sm:$0xff]  }
 0x1d9   : > { %4064 = vmatprep.subr.bf16.mxu1 %v5685_v42  ;;  %v5745_v42 = vld [vmem:[%s6149_s24 + $0xb2c] ss:$16 sps:$4 sm:$0xff]  }
 0x1db   : > { %4022 = vmatpush1.bf16.msra.mxu0 %v5680_v44  ;;  %v3575_v44 = vadd.f32 %v6733_v61, %v6729_v58  ;;  %v3579_v58 = vadd.f32 %v6749_v47, %v6745_v10  ;;  %v5754_v10 = vld [vmem:[%s6149_s24 + $0xcec] ss:$16 sps:$4 sm:$0xff]  }
 0x1dc   : > { %4065 = vmatpush1.bf16.msra.mxu1 %v5683_v45  ;;  %4023 = vmatprep.subr.bf16.mxu0 %v5688_v28  ;;  %v3577_v45 = vadd.f32 %v6741_v3, %v6737_v0  ;;  %v5749_v3 = vld [vmem:[%s6149_s24 + $0xb08] ss:$16 sps:$4 sm:$0xff]  }
 0x1dd   : > { %4066 = vmatprep.subr.bf16.mxu1 %v5691_v29  ;;  %v3618_v28 = vadd.f32 %v3617_v53, %v3575_v44  ;;  %v3705_v29 = vpop.f32.mrf.mxu0  ;;  %v3622_v0 = vadd.f32 %v3621_v32, %v3579_v58 }
 0x1de   : > { %v3620_v61 = vadd.f32 %v3619_v24, %v3577_v45 }
 0x1df   : > { %4024 = vmatpush1.bf16.msra.mxu0 %v5686_v52  ;;  %v5740_v52 = vld [vmem:[%s6149_s24 + $0x928] ss:$16 sps:$4 sm:$0xff]  }
 0x1e0   : > { %4067 = vmatpush1.bf16.msra.mxu1 %v5689_v54  ;;  %4025 = vmatprep.subr.bf16.mxu0 %v5694_v56  ;;  %v5743_v54 = vld [vmem:[%s6149_s24 + $0xb28] ss:$16 sps:$4 sm:$0xff]   ;;  %v4187_v56 = vlaneseq  ;;  %v3663_v47 = vadd.f32 %v3662_v25, %v3620_v61 }
 0x1e1   : > { %4068 = vmatprep.subr.bf16.mxu1 %v5697_v57  ;;  %v3748_v57 = vpop.f32.mrf.mxu1  ;;  %v6806_v25 = vld [vmem:[%s277_s21] sm:$0xf] }
 0x1e3   : > { %4026 = vmatpush1.bf16.msra.mxu0 %v5692_v59  ;;  %v5748_v59 = vld [vmem:[%s6149_s24 + $0x90c] ss:$16 sps:$4 sm:$0xff]  }
 0x1e4   : > { %4069 = vmatpush1.bf16.msra.mxu1 %v5695_v60  ;;  %4027 = vmatprep.subr.bf16.mxu0 %v5700_v62  ;;  %v5751_v60 = vld [vmem:[%s6149_s24 + $0xb0c] ss:$16 sps:$4 sm:$0xff]   ;;  %v3581_v62 = vadd.f32 %v6757_v15, %v6753_v12  ;;  %v3665_v12 = vadd.f32 %v3664_v41, %v3622_v0  ;;  %v6797_v15 = vld [vmem:[%s6159_s25] sm:$0xf] }
 0x1e5   : > { %4070 = vmatprep.subr.bf16.mxu1 %v5703_v63  ;;  %v3661_v63 = vadd.f32 %v3660_v55, %v3618_v28 }
 0x1e7   : > { %4028 = vmatpush1.bf16.msra.mxu0 %v5698_v1  ;;  %v3707_v1 = vpop.f32.mrf.mxu0 }
 0x1e8   : > { %4071 = vmatpush1.bf16.msra.mxu1 %v5701_v2  ;;  %4029 = vmatprep.subr.bf16.mxu0 %v5706_v6  ;;  %v5746_v2 = vld [vmem:[%s6149_s24 + $0x908] ss:$16 sps:$4 sm:$0xff]   ;;  %v6791_v6 = vshrl.u32 %v4187_v56, 7  ;;  %v3708_v24 = vadd.f32 %v3707_v1, %v3665_v12 }
 0x1e9   : > { %4072 = vmatprep.subr.bf16.mxu1 %v5709_v7  ;;  %v3624_v7 = vadd.f32 %v3623_v20, %v3581_v62  ;;  %v5770_v1 = vld [vmem:[%s6149_s24 + $0xc88] ss:$16 sps:$4 sm:$0xff]  }
 0x1ea   : > { %v5776_v12 = vld [vmem:[%s6149_s24 + $0xc68] ss:$16 sps:$4 sm:$0xff]  }
 0x1eb   : > { %4030 = vmatpush2.bf16.msra.mxu0 %v5704_v11  ;;  %v3750_v11 = vpop.f32.mrf.mxu1  ;;  %v3667_v53 = vadd.f32 %v3666_v21, %v3624_v7  ;;  %v5781_v7 = vld [vmem:[%s6149_s24 + $0xe6c] ss:$16 sps:$4 sm:$0xff]  }
 0x1ec   : > { %4073 = vmatpush2.bf16.msra.mxu1 %v5707_v46  ;;  %4031 = vmatprep.subr.bf16.mxu0 %v5712_v50  ;;  %v5757_v46 = vld [vmem:[%s6149_s24 + $0xeec] ss:$16 sps:$4 sm:$0xff]   ;;  %v3704_v50 = vadd.f32 %v3703_v38, %v3661_v63 }
 0x1ed   : > { %4074 = vmatprep.subr.bf16.mxu1 %v5715_v51  ;;  %v5752_v51 = vld [vmem:[%s6149_s24 + $0xce8] ss:$16 sps:$4 sm:$0xff]   ;;  %v3752_v55 = vpop.f32.mrf.mxu1  ;;  %v5769_v38 = vld [vmem:[%s6149_s24 + $0xeac] ss:$16 sps:$4 sm:$0xff]  }
 0x1ef   : > { %4032 = vmatpush2.bf16.msra.mxu0 %v5710_v13  ;;  %v3706_v13 = vadd.f32 %v3705_v29, %v3663_v47 }
 0x1f0   : > { %4075 = vmatpush2.bf16.msra.mxu1 %v5713_v14  ;;  %4033 = vmatprep.subr.bf16.mxu0 %v5718_v16  ;;  %v3709_v14 = vpop.f32.mrf.mxu0  ;;  %v4189_v16 = vsub.s32 0, %v6791_v6 }
 0x1f1   : > { %4076 = vmatprep.subr.bf16.mxu1 %v5721_v17  ;;  %v5755_v17 = vld [vmem:[%s6149_s24 + $0xee8] ss:$16 sps:$4 sm:$0xff]  }
 0x1f2   : > { %v4190_v41 = vrot.slane %v6797_v15, %v4189_v16 }
 0x1f3   : > { %4034 = vmatpush2.bf16.msra.mxu0 %v5716_v18  ;;  %v4193_v18 = vsub.s32 1, %v6791_v6 }
 0x1f4   : > { %4077 = vmatpush2.bf16.msra.mxu1 %v5719_v19  ;;  %4035 = vmatprep.subr.bf16.mxu0 %v5724_v22  ;;  %v5760_v19 = vld [vmem:[%s6149_s24 + $0xccc] ss:$16 sps:$4 sm:$0xff]  }
 0x1f5   : > { %4078 = vmatprep.subr.bf16.mxu1 %v5727_v23  ;;  %v5763_v22 = vld [vmem:[%s6149_s24 + $0xecc] ss:$16 sps:$4 sm:$0xff]   ;;  %v3747_v23 = vadd.f32 %v3746_v33, %v3704_v50  ;;  %v4194_v21 = vrot.slane %v6797_v15, %v4193_v18 }
 0x1f7   : > { %4036 = vmatpush2.bf16.msra.mxu0 %v5722_v26  ;;  %v3710_v26 = vadd.f32 %v3709_v14, %v3667_v53  ;;  %v5784_v14 = vld [vmem:[%s6149_s24 + $0xc4c] ss:$16 sps:$4 sm:$0xff]  }
 0x1f8   : > { %4079 = vmatpush2.bf16.msra.mxu1 %v5725_v8  ;;  %4037 = vmatprep.subr.bf16.mxu0 %v5730_v9 }
 0x1f9   : > { %4080 = vmatprep.subr.bf16.mxu1 %v5733_v27  ;;  %v3749_v27 = vadd.f32 %v3748_v57, %v3706_v13  ;;  %v3753_v33 = vadd.f32 %v3752_v55, %v3710_v26  ;;  %v5779_v13 = vld [vmem:[%s6149_s24 + $0xe68] ss:$16 sps:$4 sm:$0xff]  }
 0x1fa   : > { %v5791_v26 = vld [vmem:[%s6149_s24 + $0xe28] ss:$16 sps:$4 sm:$0xff]  }
 0x1fb   : > { %4038 = vmatpush2.bf16.msra.mxu0 %v5728_v43  ;;  %v5758_v43 = vld [vmem:[%s6149_s24 + $0xcc8] ss:$16 sps:$4 sm:$0xff]  }
 0x1fc   : > { %4081 = vmatpush2.bf16.msra.mxu1 %v5731_v34  ;;  %4039 = vmatprep.subr.bf16.mxu0 %v5736_v36  ;;  %v5761_v34 = vld [vmem:[%s6149_s24 + $0xec8] ss:$16 sps:$4 sm:$0xff]   ;;  %v4220_v36 = vrot.slane %v6806_v25, %v4189_v16  ;;  %v5787_v16 = vld [vmem:[%s6149_s24 + $0xe4c] ss:$16 sps:$4 sm:$0xff]  }
 0x1fd   : > { %4082 = vmatprep.subr.bf16.mxu1 %v5739_v37 }
 0x1ff   : > { %4040 = vmatpush2.bf16.msra.mxu0 %v5734_v39 }
 0x200   : > { %4083 = vmatpush2.bf16.msra.mxu1 %v5737_v40  ;;  %4041 = vmatprep.subr.bf16.mxu0 %v5742_v35  ;;  %v4224_v35 = vrot.slane %v6806_v25, %v4193_v18  ;;  %v5782_v18 = vld [vmem:[%s6149_s24 + $0xc48] ss:$16 sps:$4 sm:$0xff]  }
 0x201   : > { %4084 = vmatprep.subr.bf16.mxu1 %v5745_v42 }
 0x203   : > { %4042 = vmatpush2.bf16.msra.mxu0 %v5740_v52  ;;  %v5764_v52 = vld [vmem:[%s6149_s24 + $0xca8] ss:$16 sps:$4 sm:$0xff]  }
 0x204   : > { %4085 = vmatpush2.bf16.msra.mxu1 %v5743_v54  ;;  %4043 = vmatprep.subr.bf16.mxu0 %v5748_v59  ;;  %v5767_v54 = vld [vmem:[%s6149_s24 + $0xea8] ss:$16 sps:$4 sm:$0xff]  }
 0x205   : > { %4086 = vmatprep.subr.bf16.mxu1 %v5751_v60 }
 0x207   : > { %4044 = vmatpush2.bf16.msra.mxu0 %v5746_v2  ;;  %v5773_v2 = vld [vmem:[%s6149_s24 + $0xe88] ss:$16 sps:$4 sm:$0xff]  }
 0x208   : > { %4087 = vmatpush2.bf16.msra.mxu1 %v5749_v3  ;;  %4099 = vmatprep.subr.bf16.mxu0 %v5754_v10  ;;  %v5778_v3 = vld [vmem:[%s6149_s24 + $0xc6c] ss:$16 sps:$4 sm:$0xff]  }
 0x209   : > { %4142 = vmatprep.subr.bf16.mxu1 %v5757_v46 }
 0x20a   : > { %v3789_v8 = vpop.f32.mrf.mxu0  ;;  %4046 = vmatmul.mubr.bf16.vlgmr.msra.gmra.mxu0 %v6467_v48  ;;  %v5766_v48 = vld [vmem:[%s6149_s24 + $0xcac] ss:$16 sps:$4 sm:$0xff]  }
 0x20b   : > { %v3832_v9 = vpop.f32.mrf.mxu1  ;;  %4089 = vmatmul.mubr.bf16.vlgmr.msra.gmra.mxu1 %v6471_v49  ;;  %v3790_v32 = vadd.f32 %v3789_v8, %v3747_v23  ;;  %4100 = vmatpush1.bf16.msra.mxu0 %v5752_v51  ;;  %v3751_v49 = vadd.f32 %v3750_v11, %v3708_v24  ;;  %v5793_v23 = vld [vmem:[%s6149_s24 + $0xe2c] ss:$16 sps:$4 sm:$0xff]   ;;  %v5788_v24 = vld [vmem:[%s6149_s24 + $0xc28] ss:$16 sps:$4 sm:$0xff]  }
 0x20c   : > { %4143 = vmatpush1.bf16.msra.mxu1 %v5755_v17  ;;  %v3791_v37 = vpop.f32.mrf.mxu0  ;;  %4101 = vmatprep.subr.bf16.mxu0 %v5760_v19  ;;  %v5785_v19 = vld [vmem:[%s6149_s24 + $0xe48] ss:$16 sps:$4 sm:$0xff]   ;;  %v5796_v8 = vld [vmem:[%s6149_s24 + $0xc0c] ss:$16 sps:$4 sm:$0xff]  }
 0x20d   : > { %v3834_v20 = vpop.f32.mrf.mxu1  ;;  %4144 = vmatprep.subr.bf16.mxu1 %v5763_v22  ;;  %v3833_v39 = vadd.f32 %v3832_v9, %v3790_v32  ;;  %v3792_v40 = vadd.f32 %v3791_v37, %v3749_v27  ;;  %4131 = vmatprep.mubr.bf16.mxu0 %v6487_v30  ;;  %v5772_v30 = vld [vmem:[%s6149_s24 + $0xc8c] ss:$16 sps:$4 sm:$0xff]   ;;  %v5794_v27 = vld [vmem:[%s6149_s24 + $0xc08] ss:$16 sps:$4 sm:$0xff]  }
 0x20e   : > { %4174 = vmatprep.mubr.bf16.mxu1 %v6491_v31  ;;  %v3793_v42 = vpop.f32.mrf.mxu0  ;;  %v5775_v31 = vld [vmem:[%s6149_s24 + $0xe8c] ss:$16 sps:$4 sm:$0xff]   ;;  %v5797_v32 = vld [vmem:[%s6149_s24 + $0xe08] ss:$16 sps:$4 sm:$0xff]  }
 0x20f   : > { %v3836_v44 = vpop.f32.mrf.mxu1  ;;  %v4207_v45 = vmul.f32 %v4190_v41, %v3833_v39  ;;  %v3835_v28 = vadd.f32 %v3834_v20, %v3792_v40  ;;  %v3794_v29 = vadd.f32 %v3793_v42, %v3751_v49  ;;  %4102 = vmatpush1.bf16.msra.mxu0 %v5758_v43  ;;  %v5790_v22 = vld [vmem:[%s6149_s24 + $0xc2c] ss:$16 sps:$4 sm:$0xff]   ;;  %v5812_v39 = vld [vmem:[%s6149_s24 + $0xda8] ss:$16 sps:$4 sm:$0xff]  }
 0x210   : > { %4145 = vmatpush1.bf16.msra.mxu1 %v5761_v34  ;;  %v3795_v56 = vpop.f32.mrf.mxu0  ;;  %4103 = vmatprep.subr.bf16.mxu0 %v5766_v48  ;;  %v5799_v9 = vld [vmem:[%s6149_s24 + $0xe0c] ss:$16 sps:$4 sm:$0xff]   ;;  %v5800_v34 = vld [vmem:[%s6149_s24 + $0xde8] ss:$16 sps:$4 sm:$0xff]  }
 0x211   : > { %4146 = vmatprep.subr.bf16.mxu1 %v5769_v38  ;;  %v4237_v57 = vadd.f32 %v4220_v36, %v4207_v45  ;;  %v4208_v59 = vmul.f32 %v4194_v21, %v3835_v28  ;;  %v3837_v60 = vadd.f32 %v3836_v44, %v3794_v29  ;;  %v3796_v58 = vadd.f32 %v3795_v56, %v3753_v33  ;;  %v3838_v61 = vpop.f32.mrf.mxu1  ;;  %v5805_v43 = vld [vmem:[%s6149_s24 + $0xfec] ss:$16 sps:$4 sm:$0xff]   ;;  %v5809_v48 = vld [vmem:[%s6149_s24 + $0xfc8] ss:$16 sps:$4 sm:$0xff]  }
 0x212   : > { %v5808_v37 = vld [vmem:[%s6149_s24 + $0xdcc] ss:$16 sps:$4 sm:$0xff]   ;;  %v5815_v40 = vld [vmem:[%s6149_s24 + $0xfa8] ss:$16 sps:$4 sm:$0xff]  }
 0x213   : > { %v4238_v62 = vadd.f32 %v4224_v35, %v4208_v59  ;;  %v4211_v63 = vmul.f32 %v4190_v41, %v3837_v60  ;;  %v3839_v0 = vadd.f32 %v3838_v61, %v3796_v58  ;;  %4104 = vmatpush1.bf16.msra.mxu0 %v5764_v52  ;;  %v4245_v11 = vmax.f32 %v4237_v57, 0.0  ;;  %v5802_v41 = vld [vmem:[%s6149_s24 + $0xdec] ss:$16 sps:$4 sm:$0xff]   ;;  %v5818_v42 = vld [vmem:[%s6149_s24 + $0xd88] ss:$16 sps:$4 sm:$0xff]  }
 0x214   : > { %4147 = vmatpush1.bf16.msra.mxu1 %v5767_v54  ;;  %4105 = vmatprep.subr.bf16.mxu0 %v5772_v30  ;;  %v5811_v20 = vld [vmem:[%s6149_s24 + $0xfcc] ss:$16 sps:$4 sm:$0xff]   ;;  %v5821_v44 = vld [vmem:[%s6149_s24 + $0xf88] ss:$16 sps:$4 sm:$0xff]  }
 0x215   : > { %4148 = vmatprep.subr.bf16.mxu1 %v5775_v31  ;;  %v4246_v10 = vmax.f32 %v4238_v62, 0.0  ;;  %v4241_v46 = vadd.f32 %v4220_v36, %v4211_v63  ;;  %v4212_v47 = vmul.f32 %v4194_v21, %v3839_v0  ;;  %v5803_v36 = vld [vmem:[%s6149_s24 + $0xfe8] ss:$16 sps:$4 sm:$0xff]   ;;  %v5814_v38 = vld [vmem:[%s6149_s24 + $0xdac] ss:$16 sps:$4 sm:$0xff]  }
 0x216   : > { %v5806_v21 = vld [vmem:[%s6149_s24 + $0xdc8] ss:$16 sps:$4 sm:$0xff]   ;;  %v5817_v49 = vld [vmem:[%s6149_s24 + $0xfac] ss:$16 sps:$4 sm:$0xff]  }
 0x217   : > { %v5007_v50 = vpack.c.bf16 %v4246_v10, %v4245_v11  ;;  %v4242_v51 = vadd.f32 %v4224_v35, %v4212_v47  ;;  %4106 = vmatpush1.bf16.msra.mxu0 %v5770_v1  ;;  %v4249_v17 = vmax.f32 %v4241_v46, 0.0  ;;  %v5820_v33 = vld [vmem:[%s6149_s24 + $0xd8c] ss:$16 sps:$4 sm:$0xff]   ;;  %v5824_v29 = vld [vmem:[%s6149_s24 + $0xd68] ss:$16 sps:$4 sm:$0xff]  }
 0x218   : > { %4149 = vmatpush1.bf16.msra.mxu1 %v5773_v2  ;;  %4107 = vmatprep.subr.bf16.mxu0 %v5778_v3  ;;  %v5823_v35 = vld [vmem:[%s6149_s24 + $0xf8c] ss:$16 sps:$4 sm:$0xff]   ;;  %v5827_v52 = vld [vmem:[%s6149_s24 + $0xf68] ss:$16 sps:$4 sm:$0xff]  }
 0x219   : > { %4150 = vmatprep.subr.bf16.mxu1 %v5781_v7  ;;  %4277 = vst [vmem:[%s6833_s29] sm:$0xff] %v5007_v50  ;;  %v4250_v53 = vmax.f32 %v4242_v51, 0.0  ;;  %v5826_v45 = vld [vmem:[%s6149_s24 + $0xd6c] ss:$16 sps:$4 sm:$0xff]   ;;  %v5830_v30 = vld [vmem:[%s6149_s24 + $0xd48] ss:$16 sps:$4 sm:$0xff]  }
 0x21a   : > { %v5829_v28 = vld [vmem:[%s6149_s24 + $0xf6c] ss:$16 sps:$4 sm:$0xff]   ;;  %v5833_v31 = vld [vmem:[%s6149_s24 + $0xf48] ss:$16 sps:$4 sm:$0xff]  }
 0x21b   : > { %v5009_v55 = vpack.c.bf16 %v4250_v53, %v4249_v17  ;;  %4108 = vmatpush1.bf16.msra.mxu0 %v5776_v12  ;;  %v5832_v54 = vld [vmem:[%s6149_s24 + $0xd4c] ss:$16 sps:$4 sm:$0xff]   ;;  %v5836_v60 = vld [vmem:[%s6149_s24 + $0xd28] ss:$16 sps:$4 sm:$0xff]  }
 0x21c   : > { %4151 = vmatpush1.bf16.msra.mxu1 %v5779_v13  ;;  %4109 = vmatprep.subr.bf16.mxu0 %v5784_v14  ;;  %v5835_v56 = vld [vmem:[%s6149_s24 + $0xf4c] ss:$16 sps:$4 sm:$0xff]   ;;  %v5839_v58 = vld [vmem:[%s6149_s24 + $0xf28] ss:$16 sps:$4 sm:$0xff]  }
 0x21d   : > { %4152 = vmatprep.subr.bf16.mxu1 %v5787_v16  ;;  %4279 = vst [vmem:[%s6833_s29 + $0x10] sm:$0xff] %v5009_v55  ;;  %v5838_v57 = vld [vmem:[%s6149_s24 + $0xd2c] ss:$16 sps:$4 sm:$0xff]   ;;  %v5842_v63 = vld [vmem:[%s6149_s24 + $0xd08] ss:$16 sps:$4 sm:$0xff]  }
 0x21e   : > { %v5841_v59 = vld [vmem:[%s6149_s24 + $0xf2c] ss:$16 sps:$4 sm:$0xff]   ;;  %v5845_v0 = vld [vmem:[%s6149_s24 + $0xf08] ss:$16 sps:$4 sm:$0xff]  }
 0x21f   : > { %4110 = vmatpush1.bf16.msra.mxu0 %v5782_v18  ;;  %v5844_v61 = vld [vmem:[%s6149_s24 + $0xd0c] ss:$16 sps:$4 sm:$0xff]  }
 0x220   : > { %4153 = vmatpush1.bf16.msra.mxu1 %v5785_v19  ;;  %4111 = vmatprep.subr.bf16.mxu0 %v5790_v22  ;;  %v5847_v62 = vld [vmem:[%s6149_s24 + $0xf0c] ss:$16 sps:$4 sm:$0xff]   ;;  %s5011_s24 = sshll.u32 (%p6073_p9), %s5978_s18, 4 }
 0x221   : > { %4154 = vmatprep.subr.bf16.mxu1 %v5793_v23  ;;  %s4293_s10 = scalar_lea.vmem (%p6073_p9), %s6921_s4, %s5011_s24 }
 0x223   : > { %4112 = vmatpush1.bf16.msra.mxu0 %v5788_v24 }
 0x224   : > { %4155 = vmatpush1.bf16.msra.mxu1 %v5791_v26  ;;  %4113 = vmatprep.subr.bf16.mxu0 %v5796_v8 }
 0x225   : > { %4156 = vmatprep.subr.bf16.mxu1 %v5799_v9 }
 0x227   : > { %4114 = vmatpush1.bf16.msra.mxu0 %v5794_v27 }
 0x228   : > { %4157 = vmatpush1.bf16.msra.mxu1 %v5797_v32  ;;  %4115 = vmatprep.subr.bf16.mxu0 %v5802_v41 }
 0x229   : > { %4158 = vmatprep.subr.bf16.mxu1 %v5805_v43 }
 0x22b   : > { %4116 = vmatpush2.bf16.msra.mxu0 %v5800_v34 }
 0x22c   : > { %4159 = vmatpush2.bf16.msra.mxu1 %v5803_v36  ;;  %4117 = vmatprep.subr.bf16.mxu0 %v5808_v37 }
 0x22d   : > { %4160 = vmatprep.subr.bf16.mxu1 %v5811_v20 }
 0x22f   : > { %4118 = vmatpush2.bf16.msra.mxu0 %v5806_v21  ;;  %v4197_v21 = vsub.s32 2, %v6791_v6 }
 0x230   : > { %4161 = vmatpush2.bf16.msra.mxu1 %v5809_v48  ;;  %4119 = vmatprep.subr.bf16.mxu0 %v5814_v38 }
 0x231   : > { %4162 = vmatprep.subr.bf16.mxu1 %v5817_v49 }
 0x233   : > { %4120 = vmatpush2.bf16.msra.mxu0 %v5812_v39 }
 0x234   : > { %4163 = vmatpush2.bf16.msra.mxu1 %v5815_v40  ;;  %4121 = vmatprep.subr.bf16.mxu0 %v5820_v33  ;;  %v4201_v33 = vsub.s32 3, %v6791_v6 }
 0x235   : > { %4164 = vmatprep.subr.bf16.mxu1 %v5823_v35 }
 0x237   : > { %4122 = vmatpush2.bf16.msra.mxu0 %v5818_v42 }
 0x238   : > { %4165 = vmatpush2.bf16.msra.mxu1 %v5821_v44  ;;  %4123 = vmatprep.subr.bf16.mxu0 %v5826_v45 }
 0x239   : > { %4166 = vmatprep.subr.bf16.mxu1 %v5829_v28 }
 0x23b   : > { %4124 = vmatpush2.bf16.msra.mxu0 %v5824_v29  ;;  %v4198_v29 = vrot.slane %v6797_v15, %v4197_v21 }
 0x23c   : > { %4167 = vmatpush2.bf16.msra.mxu1 %v5827_v52  ;;  %4125 = vmatprep.subr.bf16.mxu0 %v5832_v54  ;;  %v4228_v52 = vrot.slane %v6806_v25, %v4197_v21 }
 0x23d   : > { %4168 = vmatprep.subr.bf16.mxu1 %v5835_v56 }
 0x23f   : > { %4126 = vmatpush2.bf16.msra.mxu0 %v5830_v30 }
 0x240   : > { %4169 = vmatpush2.bf16.msra.mxu1 %v5833_v31  ;;  %4127 = vmatprep.subr.bf16.mxu0 %v5838_v57 }
 0x241   : > { %4170 = vmatprep.subr.bf16.mxu1 %v5841_v59  ;;  %v4202_v59 = vrot.slane %v6797_v15, %v4201_v33 }
 0x243   : > { %4128 = vmatpush2.bf16.msra.mxu0 %v5836_v60  ;;  %v4232_v60 = vrot.slane %v6806_v25, %v4201_v33 }
 0x244   : > { %4171 = vmatpush2.bf16.msra.mxu1 %v5839_v58  ;;  %4129 = vmatprep.subr.bf16.mxu0 %v5844_v61 }
 0x245   : > { %4172 = vmatprep.subr.bf16.mxu1 %v5847_v62 }
 0x247   : > { %4130 = vmatpush2.bf16.msra.mxu0 %v5842_v63 }
 0x248   : > { %4173 = vmatpush2.bf16.msra.mxu1 %v5845_v0 }
 0x24a   : > { %4132 = vmatmul.mubr.bf16.vlgmr.msra.gmra.mxu0 %v6559_v4  ;;  %v3875_v1 = vpop.f32.mrf.mxu0 }
 0x24b   : > { %4175 = vmatmul.mubr.bf16.vlgmr.msra.gmra.mxu1 %v6563_v5  ;;  %v3918_v2 = vpop.f32.mrf.mxu1 }
 0x24c   : > { %v3877_v3 = vpop.f32.mrf.mxu0  ;;  %v3919_v18 = vadd.f32 %v3918_v2, %v3875_v1 }
 0x24d   : > { %v3920_v7 = vpop.f32.mrf.mxu1 }
 0x24e   : > { %v3879_v11 = vpop.f32.mrf.mxu0  ;;  %v3921_v5 = vadd.f32 %v3920_v7, %v3877_v3 }
 0x24f   : > { %v3922_v10 = vpop.f32.mrf.mxu1 }
 0x250   : > { %v3881_v46 = vpop.f32.mrf.mxu0  ;;  %v3923_v24 = vadd.f32 %v3922_v10, %v3879_v11 }
 0x251   : > { %v3924_v47 = vpop.f32.mrf.mxu1 }
 0x252   : > { %v3925_v8 = vadd.f32 %v3924_v47, %v3881_v46 }
 0x28a   : > { %v3961_v50 = vpop.f32.mrf.mxu0 }
 0x28b   : > { %v4004_v51 = vpop.f32.mrf.mxu1  ;;  %v3962_v19 = vadd.f32 %v3961_v50, %v3919_v18  ;;  %v4310_v18 = vld [vmem:[%s6833_s29 + $0x10] sm:$0xff] (%p6073_p9) }
 0x28c   : > { %v3963_v12 = vpop.f32.mrf.mxu0  ;;  %4311 = vst [vmem:[%s4293_s10 + $0x40] sm:$0xff] (%p6073_p9), %v4310_v18 }
 0x28d   : > { %v4006_v13 = vpop.f32.mrf.mxu1  ;;  %v3964_v26 = vadd.f32 %v3963_v12, %v3921_v5  ;;  %v4005_v9 = vadd.f32 %v4004_v51, %v3962_v19 }
 0x28e   : > { %v3965_v14 = vpop.f32.mrf.mxu0 }
 0x28f   : > { %v4008_v16 = vpop.f32.mrf.mxu1  ;;  %v3966_v27 = vadd.f32 %v3965_v14, %v3923_v24  ;;  %v4007_v43 = vadd.f32 %v4006_v13, %v3964_v26 }
 0x290   : > { %v3967_v17 = vpop.f32.mrf.mxu0 }
 0x291   : > { %v4010_v53 = vpop.f32.mrf.mxu1  ;;  %v3968_v34 = vadd.f32 %v3967_v17, %v3925_v8  ;;  %v4009_v37 = vadd.f32 %v4008_v16, %v3966_v27 }
 0x293   : > { %v4011_v49 = vadd.f32 %v4010_v53, %v3968_v34 }
 0x2ca   : > { %v4047_v55 = vpop.f32.mrf.mxu0 }
 0x2cb   : > { %v4090_v4 = vpop.f32.mrf.mxu1  ;;  %v4048_v36 = vadd.f32 %v4047_v55, %v4005_v9  ;;  %v4306_v55 = vld [vmem:[%s6833_s29] sm:$0xff] (%p6073_p9) }
 0x2cc   : > { %v4049_v22 = vpop.f32.mrf.mxu0  ;;  %4307 = vst [vmem:[%s4293_s10] sm:$0xff] (%p6073_p9), %v4306_v55 }
 0x2cd   : > { %v4092_v23 = vpop.f32.mrf.mxu1  ;;  %v4050_v20 = vadd.f32 %v4049_v22, %v4007_v43  ;;  %v4091_v39 = vadd.f32 %v4090_v4, %v4048_v36 }
 0x2ce   : > { %v4051_v32 = vpop.f32.mrf.mxu0 }
 0x2cf   : > { %v4094_v41 = vpop.f32.mrf.mxu1  ;;  %v4052_v40 = vadd.f32 %v4051_v32, %v4009_v37  ;;  %v4093_v44 = vadd.f32 %v4092_v23, %v4050_v20 }
 0x2d0   : > { %v4053_v48 = vpop.f32.mrf.mxu0 }
 0x2d1   : > { %v4096_v38 = vpop.f32.mrf.mxu1  ;;  %v4054_v45 = vadd.f32 %v4053_v48, %v4011_v49  ;;  %v4095_v30 = vadd.f32 %v4094_v41, %v4052_v40 }
 0x2d3   : > { %v4097_v61 = vadd.f32 %v4096_v38, %v4054_v45 }
 0x30a   : > { %v4133_v35 = vpop.f32.mrf.mxu0 }
 0x30b   : > { %v4176_v42 = vpop.f32.mrf.mxu1  ;;  %v4134_v28 = vadd.f32 %v4133_v35, %v4091_v39 }
 0x30c   : > { %v4135_v54 = vpop.f32.mrf.mxu0 }
 0x30d   : > { %v4178_v56 = vpop.f32.mrf.mxu1  ;;  %v4177_v31 = vadd.f32 %v4176_v42, %v4134_v28  ;;  %v4136_v57 = vadd.f32 %v4135_v54, %v4093_v44 }
 0x30e   : > { %v4137_v58 = vpop.f32.mrf.mxu0 }
 0x30f   : > { %v4180_v6 = vpop.f32.mrf.mxu1  ;;  %v4209_v62 = vmul.f32 %v4198_v29, %v4177_v31  ;;  %v4179_v63 = vadd.f32 %v4178_v56, %v4136_v57  ;;  %v4138_v0 = vadd.f32 %v4137_v58, %v4095_v30 }
 0x310   : > { %v4139_v1 = vpop.f32.mrf.mxu0 }
 0x311   : > { %v4239_v2 = vadd.f32 %v4228_v52, %v4209_v62  ;;  %v4210_v3 = vmul.f32 %v4202_v59, %v4179_v63  ;;  %v4181_v7 = vadd.f32 %v4180_v6, %v4138_v0  ;;  %v4140_v11 = vadd.f32 %v4139_v1, %v4097_v61  ;;  %v4182_v10 = vpop.f32.mrf.mxu1 }
 0x313   : > { %v4240_v46 = vadd.f32 %v4232_v60, %v4210_v3  ;;  %v4213_v47 = vmul.f32 %v4198_v29, %v4181_v7  ;;  %v4183_v50 = vadd.f32 %v4182_v10, %v4140_v11  ;;  %v4247_v15 = vmax.f32 %v4239_v2, 0.0 }
 0x315   : > { %v4248_v51 = vmax.f32 %v4240_v46, 0.0  ;;  %v4243_v25 = vadd.f32 %v4228_v52, %v4213_v47  ;;  %v4214_v12 = vmul.f32 %v4202_v59, %v4183_v50 }
 0x317   : > { %v5008_v13 = vpack.c.bf16 %v4248_v51, %v4247_v15  ;;  %v4244_v14 = vadd.f32 %v4232_v60, %v4214_v12  ;;  %v4251_v16 = vmax.f32 %v4243_v25, 0.0 }
 0x319   : > { %4278 = vst [vmem:[%s6833_s29 + $0x8] sm:$0xff] %v5008_v13  ;;  %v4252_v17 = vmax.f32 %v4244_v14, 0.0  ;;  %4287 = sbr.rel (!%p6073_p9) target bundleno = 806 (0x326), region = 52 }
 0x31b   : > { %v5010_v53 = vpack.c.bf16 %v4252_v17, %v4251_v16 }
 0x31d   : > { %4280 = vst [vmem:[%s6833_s29 + $0x18] sm:$0xff] %v5010_v53 }
 0x320   : > { %v4308_v4 = vld [vmem:[%s6833_s29 + $0x8] sm:$0xff] }
 0x321   : > { %4309 = vst [vmem:[%s4293_s10 + $0x8] sm:$0xff] %v4308_v4 }
 0x324   : > { %v4312_v5 = vld [vmem:[%s6833_s29 + $0x18] sm:$0xff] }
 0x325   : > { %4313 = vst [vmem:[%s4293_s10 + $0x48] sm:$0xff] %v4312_v5 }
 0x326 PF: > { %s20_s20 = sadd.s32 1, %s5986_s20   ;;  %s6931_s28 = sld [smem:[#allocation10_spill]] }
 0x327   : > { %p17_p8 = scmp.ge.s32.totalorder %s20_s20, 6   ;;  %s6932_s15 = smov %s5970_s16 }
 0x328   : > { %s6933_s16 = smov %s5974_s17  ;;  %s6934_s17 = smov %s6071_s27 }
 0x329   : > { %s6935_s18 = smov %s5982_s19  ;;  %19 = sbr.rel (!%p17_p8) target bundleno = 8 (0x8), region = 126 }
 0x32c   : > { %s6936_s19 = smov %s6931_s28 }
 0x32e   :  { %4329 = vsyncpa [#allocation3], 1 }
 0x32f   :  { %4331 = vsyncpa [#allocation3 + $0x1], 1 }
 0x330   :  { %4332 = vsyncpa [#allocation5], 1 }
 0x331   :  { %4334 = vsyncpa [#allocation5 + $0x1], 1 }

// kernel: mlp_binaryconnect_forward.7
= control target key start
LH: loop header
LB: loop body
LE: loop exit
PB: predicated region body
PF: predicated region fallthrough
CT: control target
= control target key end

     0   :  { %s2409_s1 = inlined_call_operand.vmem [shape: bf16[2048,128], index: 1, kind: input, shape index: {}]   ;;  %s2410_s0 = inlined_call_operand.vmem [shape: bf16[16,2048], index: 0, kind: input, shape index: {}]   ;;  %s2411_s2 = inlined_call_operand.vmem [shape: f32[1,128], index: 2, kind: input, shape index: {}]   ;;  %s2412_s3 = inlined_call_operand.vmem [shape: f32[1,128], index: 3, kind: input, shape index: {}]   ;;  %s2413_s4 = inlined_call_operand.vmem [shape: f32[16,128], index: 4, kind: output, shape index: {}]  }
   0x1   :  { %v1812_v0 = vld [vmem:[%s2409_s1 + $0x78] sm:$0xff]   ;;  %v1816_v4 = vld [vmem:[%s2409_s1 + $0x70] sm:$0xff]   ;;  %v1820_v8 = vld [vmem:[%s2409_s1 + $0x68] sm:$0xff]  }
   0x2   :  { %v1813_v1 = vld [vmem:[%s2409_s1 + $0xf8] sm:$0xff]   ;;  %1636 = vmatprep.subr.bf16.mxu0 %v1812_v0  ;;  %v1817_v5 = vld [vmem:[%s2409_s1 + $0xf0] sm:$0xff]   ;;  %v1821_v9 = vld [vmem:[%s2409_s1 + $0xe8] sm:$0xff]  }
   0x3   :  { %v1814_v2 = vld [vmem:[%s2409_s1 + $0x38] sm:$0xff]   ;;  %1658 = vmatprep.subr.bf16.mxu1 %v1813_v1  ;;  %v1818_v6 = vld [vmem:[%s2409_s1 + $0x30] sm:$0xff]   ;;  %v1822_v10 = vld [vmem:[%s2409_s1 + $0x28] sm:$0xff]  }
   0x4   :  { %v1815_v3 = vld [vmem:[%s2409_s1 + $0xb8] sm:$0xff]   ;;  %1637 = vmatpush3.bf16.msra.mxu0 %v1814_v2  ;;  %v1819_v7 = vld [vmem:[%s2409_s1 + $0xb0] sm:$0xff]   ;;  %v1823_v11 = vld [vmem:[%s2409_s1 + $0xa8] sm:$0xff]  }
   0x5   :  { %1659 = vmatpush3.bf16.msra.mxu1 %v1815_v3  ;;  %1638 = vmatprep.subr.bf16.mxu0 %v1816_v4  ;;  %v1824_v12 = vld [vmem:[%s2409_s1 + $0x60] sm:$0xff]   ;;  %v1828_v16 = vld [vmem:[%s2409_s1 + $0x58] sm:$0xff]   ;;  %v1832_v20 = vld [vmem:[%s2409_s1 + $0x50] sm:$0xff]  }
   0x6   :  { %1660 = vmatprep.subr.bf16.mxu1 %v1817_v5  ;;  %v1825_v13 = vld [vmem:[%s2409_s1 + $0xe0] sm:$0xff]   ;;  %v1829_v17 = vld [vmem:[%s2409_s1 + $0xd8] sm:$0xff]   ;;  %v1833_v21 = vld [vmem:[%s2409_s1 + $0xd0] sm:$0xff]  }
   0x7   :  { %v1826_v14 = vld [vmem:[%s2409_s1 + $0x20] sm:$0xff]   ;;  %v1830_v18 = vld [vmem:[%s2409_s1 + $0x18] sm:$0xff]   ;;  %v1834_v22 = vld [vmem:[%s2409_s1 + $0x10] sm:$0xff]  }
   0x8   :  { %1639 = vmatpush3.bf16.msra.mxu0 %v1818_v6  ;;  %v1827_v15 = vld [vmem:[%s2409_s1 + $0xa0] sm:$0xff]   ;;  %v1831_v19 = vld [vmem:[%s2409_s1 + $0x98] sm:$0xff]   ;;  %v1835_v23 = vld [vmem:[%s2409_s1 + $0x90] sm:$0xff]  }
   0x9   :  { %1661 = vmatpush3.bf16.msra.mxu1 %v1819_v7  ;;  %1640 = vmatprep.subr.bf16.mxu0 %v1820_v8  ;;  %v1836_v24 = vld [vmem:[%s2409_s1 + $0x48] sm:$0xff]   ;;  %v1840_v28 = vld [vmem:[%s2409_s1 + $0x40] sm:$0xff]   ;;  %v1844_v40 = vld [vmem:[%s2409_s1 + $0x178] sm:$0xff]  }
   0xa   :  { %1662 = vmatprep.subr.bf16.mxu1 %v1821_v9  ;;  %v1837_v25 = vld [vmem:[%s2409_s1 + $0xc8] sm:$0xff]   ;;  %v1841_v29 = vld [vmem:[%s2409_s1 + $0xc0] sm:$0xff]   ;;  %v1845_v41 = vld [vmem:[%s2409_s1 + $0x1f8] sm:$0xff]  }
   0xb   :  { %v1838_v26 = vld [vmem:[%s2409_s1 + $0x8] sm:$0xff]   ;;  %v1842_v30 = vld [vmem:[%s2409_s1] sm:$0xff]   ;;  %v1846_v42 = vld [vmem:[%s2409_s1 + $0x138] sm:$0xff]  }
   0xc   :  { %1641 = vmatpush3.bf16.msra.mxu0 %v1822_v10  ;;  %v1839_v27 = vld [vmem:[%s2409_s1 + $0x88] sm:$0xff]   ;;  %v1843_v31 = vld [vmem:[%s2409_s1 + $0x80] sm:$0xff]   ;;  %v1847_v43 = vld [vmem:[%s2409_s1 + $0x1b8] sm:$0xff]  }
   0xd   :  { %1663 = vmatpush3.bf16.msra.mxu1 %v1823_v11  ;;  %1642 = vmatprep.subr.bf16.mxu0 %v1824_v12  ;;  %v18_v32 = vld [vmem:[%s2410_s0] sm:$0xff]  ;;  %v19_v34 = vld [vmem:[%s2410_s0 + $0x8] sm:$0xff]  ;;  %v1848_v44 = vld [vmem:[%s2409_s1 + $0x170] sm:$0xff]  }
   0xe   :  { %1664 = vmatprep.subr.bf16.mxu1 %v1825_v13  ;;  %v26_v33 = vld [vmem:[%s2410_s0 + $0x40] sm:$0xff]  ;;  %v27_v37 = vld [vmem:[%s2410_s0 + $0x48] sm:$0xff]  ;;  %v1849_v45 = vld [vmem:[%s2409_s1 + $0x1f0] sm:$0xff]  }
   0xf   :  { %v1490_v35 = vcombine.low %v18_v32, %v26_v33  ;;  %v1491_v36 = vcombine.high %v18_v32, %v26_v33  ;;  %v1492_v38 = vcombine.low %v19_v34, %v27_v37  ;;  %v1493_v39 = vcombine.high %v19_v34, %v27_v37  ;;  %v1850_v46 = vld [vmem:[%s2409_s1 + $0x130] sm:$0xff]   ;;  %v1852_v48 = vld [vmem:[%s2409_s1 + $0x168] sm:$0xff]   ;;  %v1856_v52 = vld [vmem:[%s2409_s1 + $0x160] sm:$0xff]  }
  0x10   :  { %1643 = vmatpush3.bf16.msra.mxu0 %v1826_v14  ;;  %v1851_v47 = vld [vmem:[%s2409_s1 + $0x1b0] sm:$0xff]   ;;  %v1853_v49 = vld [vmem:[%s2409_s1 + $0x1e8] sm:$0xff]   ;;  %v1857_v53 = vld [vmem:[%s2409_s1 + $0x1e0] sm:$0xff]  }
  0x11   :  { %1665 = vmatpush3.bf16.msra.mxu1 %v1827_v15  ;;  %1644 = vmatprep.subr.bf16.mxu0 %v1828_v16  ;;  %v1854_v50 = vld [vmem:[%s2409_s1 + $0x128] sm:$0xff]   ;;  %v1858_v54 = vld [vmem:[%s2409_s1 + $0x120] sm:$0xff]   ;;  %v1860_v56 = vld [vmem:[%s2409_s1 + $0x158] sm:$0xff]  }
  0x12   :  { %1666 = vmatprep.subr.bf16.mxu1 %v1829_v17  ;;  %1170 = vmatprep.mubr.bf16.mxu0 %v1491_v36  ;;  %v1855_v51 = vld [vmem:[%s2409_s1 + $0x1a8] sm:$0xff]   ;;  %v1859_v55 = vld [vmem:[%s2409_s1 + $0x1a0] sm:$0xff]   ;;  %v1861_v57 = vld [vmem:[%s2409_s1 + $0x1d8] sm:$0xff]  }
  0x13   :  { %1211 = vmatprep.mubr.bf16.mxu1 %v1493_v39  ;;  %v1862_v58 = vld [vmem:[%s2409_s1 + $0x118] sm:$0xff]   ;;  %v1864_v60 = vld [vmem:[%s2409_s1 + $0x150] sm:$0xff]   ;;  %v1868_v0 = vld [vmem:[%s2409_s1 + $0x148] sm:$0xff]  }
  0x14   :  { %1645 = vmatpush3.bf16.msra.mxu0 %v1830_v18  ;;  %v1863_v59 = vld [vmem:[%s2409_s1 + $0x198] sm:$0xff]   ;;  %v1865_v61 = vld [vmem:[%s2409_s1 + $0x1d0] sm:$0xff]   ;;  %v1869_v1 = vld [vmem:[%s2409_s1 + $0x1c8] sm:$0xff]  }
  0x15   :  { %1667 = vmatpush3.bf16.msra.mxu1 %v1831_v19  ;;  %1646 = vmatprep.subr.bf16.mxu0 %v1832_v20  ;;  %v1866_v62 = vld [vmem:[%s2409_s1 + $0x110] sm:$0xff]   ;;  %v1870_v2 = vld [vmem:[%s2409_s1 + $0x108] sm:$0xff]   ;;  %v1872_v4 = vld [vmem:[%s2409_s1 + $0x140] sm:$0xff]  }
  0x16   :  { %1668 = vmatprep.subr.bf16.mxu1 %v1833_v21  ;;  %v1867_v63 = vld [vmem:[%s2409_s1 + $0x190] sm:$0xff]   ;;  %v1871_v3 = vld [vmem:[%s2409_s1 + $0x188] sm:$0xff]   ;;  %v1873_v5 = vld [vmem:[%s2409_s1 + $0x1c0] sm:$0xff]  }
  0x17   :  { %v1874_v6 = vld [vmem:[%s2409_s1 + $0x100] sm:$0xff]   ;;  %v20_v8 = vld [vmem:[%s2410_s0 + $0x10] sm:$0xff]  ;;  %v21_v12 = vld [vmem:[%s2410_s0 + $0x18] sm:$0xff] }
  0x18   :  { %1647 = vmatpush3.bf16.msra.mxu0 %v1834_v22  ;;  %v1875_v7 = vld [vmem:[%s2409_s1 + $0x180] sm:$0xff]   ;;  %v28_v9 = vld [vmem:[%s2410_s0 + $0x50] sm:$0xff]  ;;  %v29_v13 = vld [vmem:[%s2410_s0 + $0x58] sm:$0xff] }
  0x19   :  { %1669 = vmatpush3.bf16.msra.mxu1 %v1835_v23  ;;  %1648 = vmatprep.subr.bf16.mxu0 %v1836_v24  ;;  %v1494_v10 = vcombine.low %v20_v8, %v28_v9  ;;  %v1495_v11 = vcombine.high %v20_v8, %v28_v9  ;;  %v1496_v14 = vcombine.low %v21_v12, %v29_v13  ;;  %v1876_v16 = vld [vmem:[%s2409_s1 + $0x278] sm:$0xff]   ;;  %v1880_v20 = vld [vmem:[%s2409_s1 + $0x270] sm:$0xff]   ;;  %v1884_v24 = vld [vmem:[%s2409_s1 + $0x268] sm:$0xff]  }
  0x1a   :  { %1670 = vmatprep.subr.bf16.mxu1 %v1837_v25  ;;  %v1497_v15 = vcombine.high %v21_v12, %v29_v13  ;;  %v1877_v17 = vld [vmem:[%s2409_s1 + $0x2f8] sm:$0xff]   ;;  %v1881_v21 = vld [vmem:[%s2409_s1 + $0x2f0] sm:$0xff]   ;;  %v1885_v25 = vld [vmem:[%s2409_s1 + $0x2e8] sm:$0xff]  }
  0x1b   :  { %v1878_v18 = vld [vmem:[%s2409_s1 + $0x238] sm:$0xff]   ;;  %v1882_v22 = vld [vmem:[%s2409_s1 + $0x230] sm:$0xff]  }
  0x1c   :  { %1649 = vmatpush3.bf16.msra.mxu0 %v1838_v26  ;;  %v1879_v19 = vld [vmem:[%s2409_s1 + $0x2b8] sm:$0xff]   ;;  %v1883_v23 = vld [vmem:[%s2409_s1 + $0x2b0] sm:$0xff]   ;;  %v1886_v26 = vld [vmem:[%s2409_s1 + $0x228] sm:$0xff]  }
  0x1d   :  { %1671 = vmatpush3.bf16.msra.mxu1 %v1839_v27  ;;  %1650 = vmatprep.subr.bf16.mxu0 %v1840_v28  ;;  %v1887_v27 = vld [vmem:[%s2409_s1 + $0x2a8] sm:$0xff]   ;;  %v1888_v28 = vld [vmem:[%s2409_s1 + $0x260] sm:$0xff]   ;;  %v1892_v32 = vld [vmem:[%s2409_s1 + $0x258] sm:$0xff]  }
  0x1e   :  { %1672 = vmatprep.subr.bf16.mxu1 %v1841_v29  ;;  %v1889_v29 = vld [vmem:[%s2409_s1 + $0x2e0] sm:$0xff]   ;;  %v1893_v33 = vld [vmem:[%s2409_s1 + $0x2d8] sm:$0xff]   ;;  %v1896_v36 = vld [vmem:[%s2409_s1 + $0x250] sm:$0xff]  }
  0x1f   :  { %v1894_v34 = vld [vmem:[%s2409_s1 + $0x218] sm:$0xff]   ;;  %v1897_v37 = vld [vmem:[%s2409_s1 + $0x2d0] sm:$0xff]  }
  0x20   :  { %1651 = vmatpush3.bf16.msra.mxu0 %v1842_v30  ;;  %v1890_v30 = vld [vmem:[%s2409_s1 + $0x220] sm:$0xff]   ;;  %v1899_v39 = vld [vmem:[%s2409_s1 + $0x290] sm:$0xff]   ;;  %v1924_v8 = vld [vmem:[%s2409_s1 + $0x358] sm:$0xff]  }
  0x21   :  { %1673 = vmatpush3.bf16.msra.mxu1 %v1843_v31  ;;  %1680 = vmatprep.subr.bf16.mxu0 %v1844_v40  ;;  %v1891_v31 = vld [vmem:[%s2409_s1 + $0x2a0] sm:$0xff]   ;;  %v1900_v40 = vld [vmem:[%s2409_s1 + $0x248] sm:$0xff]   ;;  %v1925_v9 = vld [vmem:[%s2409_s1 + $0x3d8] sm:$0xff]  }
  0x22   :  { %1702 = vmatprep.subr.bf16.mxu1 %v1845_v41  ;;  %v1901_v41 = vld [vmem:[%s2409_s1 + $0x2c8] sm:$0xff]   ;;  %v1928_v12 = vld [vmem:[%s2409_s1 + $0x350] sm:$0xff]  }
  0x23   :  { %1171 = vmatmul.mubr.bf16.vlgmr.msra.gmra.mxu0 %v1490_v35  ;;  %v1895_v35 = vld [vmem:[%s2409_s1 + $0x298] sm:$0xff]   ;;  %v1929_v13 = vld [vmem:[%s2409_s1 + $0x3d0] sm:$0xff]  }
  0x24   :  { %1212 = vmatmul.mubr.bf16.vlgmr.msra.gmra.mxu1 %v1492_v38  ;;  %1681 = vmatpush3.bf16.msra.mxu0 %v1846_v42  ;;  %v1898_v38 = vld [vmem:[%s2409_s1 + $0x210] sm:$0xff]   ;;  %v1902_v42 = vld [vmem:[%s2409_s1 + $0x208] sm:$0xff]  }
  0x25   :  { %1703 = vmatpush3.bf16.msra.mxu1 %v1847_v43  ;;  %1682 = vmatprep.subr.bf16.mxu0 %v1848_v44  ;;  %v1903_v43 = vld [vmem:[%s2409_s1 + $0x288] sm:$0xff]   ;;  %v1904_v44 = vld [vmem:[%s2409_s1 + $0x240] sm:$0xff]  }
  0x26   :  { %1704 = vmatprep.subr.bf16.mxu1 %v1849_v45  ;;  %1252 = vmatprep.mubr.bf16.mxu0 %v1495_v11  ;;  %v1905_v45 = vld [vmem:[%s2409_s1 + $0x2c0] sm:$0xff]   ;;  %v1927_v11 = vld [vmem:[%s2409_s1 + $0x398] sm:$0xff]  }
  0x27   :  { %1293 = vmatprep.mubr.bf16.mxu1 %v1497_v15  ;;  %v1931_v15 = vld [vmem:[%s2409_s1 + $0x390] sm:$0xff]  }
  0x28   :  { %1683 = vmatpush3.bf16.msra.mxu0 %v1850_v46  ;;  %v1906_v46 = vld [vmem:[%s2409_s1 + $0x200] sm:$0xff]  }
  0x29   :  { %1705 = vmatpush3.bf16.msra.mxu1 %v1851_v47  ;;  %1684 = vmatprep.subr.bf16.mxu0 %v1852_v48  ;;  %v1907_v47 = vld [vmem:[%s2409_s1 + $0x280] sm:$0xff]  }
  0x2a   :  { %1706 = vmatprep.subr.bf16.mxu1 %v1853_v49  ;;  %v22_v48 = vld [vmem:[%s2410_s0 + $0x20] sm:$0xff] }
  0x2b   :  { %v30_v49 = vld [vmem:[%s2410_s0 + $0x60] sm:$0xff] }
  0x2c   :  { %1685 = vmatpush3.bf16.msra.mxu0 %v1854_v50  ;;  %v23_v50 = vld [vmem:[%s2410_s0 + $0x28] sm:$0xff] }
  0x2d   :  { %1707 = vmatpush3.bf16.msra.mxu1 %v1855_v51  ;;  %1686 = vmatprep.subr.bf16.mxu0 %v1856_v52  ;;  %v31_v51 = vld [vmem:[%s2410_s0 + $0x68] sm:$0xff]  ;;  %v1498_v52 = vcombine.low %v22_v48, %v30_v49 }
  0x2e   :  { %1708 = vmatprep.subr.bf16.mxu1 %v1857_v53  ;;  %v1499_v53 = vcombine.high %v22_v48, %v30_v49 }
  0x30   :  { %1687 = vmatpush3.bf16.msra.mxu0 %v1858_v54  ;;  %v1500_v54 = vcombine.low %v23_v50, %v31_v51 }
  0x31   :  { %1709 = vmatpush3.bf16.msra.mxu1 %v1859_v55  ;;  %1688 = vmatprep.subr.bf16.mxu0 %v1860_v56  ;;  %v1501_v55 = vcombine.high %v23_v50, %v31_v51  ;;  %v1908_v56 = vld [vmem:[%s2409_s1 + $0x378] sm:$0xff]  }
  0x32   :  { %1710 = vmatprep.subr.bf16.mxu1 %v1861_v57  ;;  %v1909_v57 = vld [vmem:[%s2409_s1 + $0x3f8] sm:$0xff]  }
  0x34   :  { %1689 = vmatpush3.bf16.msra.mxu0 %v1862_v58  ;;  %v1910_v58 = vld [vmem:[%s2409_s1 + $0x338] sm:$0xff]  }
  0x35   :  { %1711 = vmatpush3.bf16.msra.mxu1 %v1863_v59  ;;  %1690 = vmatprep.subr.bf16.mxu0 %v1864_v60  ;;  %v1911_v59 = vld [vmem:[%s2409_s1 + $0x3b8] sm:$0xff]   ;;  %v1912_v60 = vld [vmem:[%s2409_s1 + $0x370] sm:$0xff]  }
  0x36   :  { %1712 = vmatprep.subr.bf16.mxu1 %v1865_v61  ;;  %v1913_v61 = vld [vmem:[%s2409_s1 + $0x3f0] sm:$0xff]  }
  0x38   :  { %1691 = vmatpush3.bf16.msra.mxu0 %v1866_v62  ;;  %v1914_v62 = vld [vmem:[%s2409_s1 + $0x330] sm:$0xff]  }
  0x39   :  { %1713 = vmatpush3.bf16.msra.mxu1 %v1867_v63  ;;  %1692 = vmatprep.subr.bf16.mxu0 %v1868_v0  ;;  %v1915_v63 = vld [vmem:[%s2409_s1 + $0x3b0] sm:$0xff]   ;;  %v1916_v0 = vld [vmem:[%s2409_s1 + $0x368] sm:$0xff]  }
  0x3a   :  { %1714 = vmatprep.subr.bf16.mxu1 %v1869_v1  ;;  %v1917_v1 = vld [vmem:[%s2409_s1 + $0x3e8] sm:$0xff]  }
  0x3c   :  { %1693 = vmatpush3.bf16.msra.mxu0 %v1870_v2  ;;  %v1918_v2 = vld [vmem:[%s2409_s1 + $0x328] sm:$0xff]  }
  0x3d   :  { %1715 = vmatpush3.bf16.msra.mxu1 %v1871_v3  ;;  %1694 = vmatprep.subr.bf16.mxu0 %v1872_v4  ;;  %v1919_v3 = vld [vmem:[%s2409_s1 + $0x3a8] sm:$0xff]   ;;  %v1920_v4 = vld [vmem:[%s2409_s1 + $0x360] sm:$0xff]  }
  0x3e   :  { %1716 = vmatprep.subr.bf16.mxu1 %v1873_v5  ;;  %v1921_v5 = vld [vmem:[%s2409_s1 + $0x3e0] sm:$0xff]  }
  0x40   :  { %1695 = vmatpush3.bf16.msra.mxu0 %v1874_v6  ;;  %v1922_v6 = vld [vmem:[%s2409_s1 + $0x320] sm:$0xff]  }
  0x41   :  { %1717 = vmatpush3.bf16.msra.mxu1 %v1875_v7  ;;  %1724 = vmatprep.subr.bf16.mxu0 %v1876_v16  ;;  %v1923_v7 = vld [vmem:[%s2409_s1 + $0x3a0] sm:$0xff]   ;;  %v1932_v16 = vld [vmem:[%s2409_s1 + $0x348] sm:$0xff]  }
  0x42   :  { %1746 = vmatprep.subr.bf16.mxu1 %v1877_v17  ;;  %v1933_v17 = vld [vmem:[%s2409_s1 + $0x3c8] sm:$0xff]  }
  0x43   :  { %1253 = vmatmul.mubr.bf16.vlgmr.msra.gmra.mxu0 %v1494_v10  ;;  %v1926_v10 = vld [vmem:[%s2409_s1 + $0x318] sm:$0xff]  }
  0x44   :  { %1294 = vmatmul.mubr.bf16.vlgmr.msra.gmra.mxu1 %v1496_v14  ;;  %1725 = vmatpush3.bf16.msra.mxu0 %v1878_v18  ;;  %v1930_v14 = vld [vmem:[%s2409_s1 + $0x310] sm:$0xff]   ;;  %v1934_v18 = vld [vmem:[%s2409_s1 + $0x308] sm:$0xff]  }
  0x45   :  { %1747 = vmatpush3.bf16.msra.mxu1 %v1879_v19  ;;  %1726 = vmatprep.subr.bf16.mxu0 %v1880_v20  ;;  %v1935_v19 = vld [vmem:[%s2409_s1 + $0x388] sm:$0xff]   ;;  %v1936_v20 = vld [vmem:[%s2409_s1 + $0x340] sm:$0xff]  }
  0x46   :  { %1748 = vmatprep.subr.bf16.mxu1 %v1881_v21  ;;  %1334 = vmatprep.mubr.bf16.mxu0 %v1499_v53  ;;  %v1937_v21 = vld [vmem:[%s2409_s1 + $0x3c0] sm:$0xff]  }
  0x47   :  { %1375 = vmatprep.mubr.bf16.mxu1 %v1501_v55 }
  0x48   :  { %1727 = vmatpush3.bf16.msra.mxu0 %v1882_v22  ;;  %v1938_v22 = vld [vmem:[%s2409_s1 + $0x300] sm:$0xff]  }
  0x49   :  { %1749 = vmatpush3.bf16.msra.mxu1 %v1883_v23  ;;  %1728 = vmatprep.subr.bf16.mxu0 %v1884_v24  ;;  %v1939_v23 = vld [vmem:[%s2409_s1 + $0x380] sm:$0xff]   ;;  %v24_v24 = vld [vmem:[%s2410_s0 + $0x30] sm:$0xff] }
  0x4a   :  { %1750 = vmatprep.subr.bf16.mxu1 %v1885_v25  ;;  %v32_v25 = vld [vmem:[%s2410_s0 + $0x70] sm:$0xff] }
  0x4c   :  { %1729 = vmatpush3.bf16.msra.mxu0 %v1886_v26  ;;  %v25_v26 = vld [vmem:[%s2410_s0 + $0x38] sm:$0xff] }
  0x4d   :  { %1751 = vmatpush3.bf16.msra.mxu1 %v1887_v27  ;;  %1730 = vmatprep.subr.bf16.mxu0 %v1888_v28  ;;  %v1502_v27 = vcombine.low %v24_v24, %v32_v25  ;;  %v1503_v28 = vcombine.high %v24_v24, %v32_v25 }
  0x4e   :  { %1752 = vmatprep.subr.bf16.mxu1 %v1889_v29  ;;  %v33_v29 = vld [vmem:[%s2410_s0 + $0x78] sm:$0xff] }
  0x50   :  { %1731 = vmatpush3.bf16.msra.mxu0 %v1890_v30  ;;  %v1504_v30 = vcombine.low %v25_v26, %v33_v29 }
  0x51   :  { %1753 = vmatpush3.bf16.msra.mxu1 %v1891_v31  ;;  %1732 = vmatprep.subr.bf16.mxu0 %v1892_v32  ;;  %v1505_v31 = vcombine.high %v25_v26, %v33_v29 }
  0x52   :  { %1754 = vmatprep.subr.bf16.mxu1 %v1893_v33 }
  0x54   :  { %1733 = vmatpush3.bf16.msra.mxu0 %v1894_v34 }
  0x55   :  { %1755 = vmatpush3.bf16.msra.mxu1 %v1895_v35  ;;  %1734 = vmatprep.subr.bf16.mxu0 %v1896_v36 }
  0x56   :  { %1756 = vmatprep.subr.bf16.mxu1 %v1897_v37 }
  0x58   :  { %1735 = vmatpush3.bf16.msra.mxu0 %v1898_v38 }
  0x59   :  { %1757 = vmatpush3.bf16.msra.mxu1 %v1899_v39  ;;  %1736 = vmatprep.subr.bf16.mxu0 %v1900_v40 }
  0x5a   :  { %1758 = vmatprep.subr.bf16.mxu1 %v1901_v41 }
  0x5c   :  { %1737 = vmatpush3.bf16.msra.mxu0 %v1902_v42 }
  0x5d   :  { %1759 = vmatpush3.bf16.msra.mxu1 %v1903_v43  ;;  %1738 = vmatprep.subr.bf16.mxu0 %v1904_v44 }
  0x5e   :  { %1760 = vmatprep.subr.bf16.mxu1 %v1905_v45 }
  0x60   :  { %1739 = vmatpush3.bf16.msra.mxu0 %v1906_v46 }
  0x61   :  { %1761 = vmatpush3.bf16.msra.mxu1 %v1907_v47  ;;  %1768 = vmatprep.subr.bf16.mxu0 %v1908_v56 }
  0x62   :  { %1790 = vmatprep.subr.bf16.mxu1 %v1909_v57 }
  0x63   :  { %1335 = vmatmul.mubr.bf16.vlgmr.msra.gmra.mxu0 %v1498_v52 }
  0x64   :  { %1376 = vmatmul.mubr.bf16.vlgmr.msra.gmra.mxu1 %v1500_v54  ;;  %1769 = vmatpush3.bf16.msra.mxu0 %v1910_v58 }
  0x65   :  { %1791 = vmatpush3.bf16.msra.mxu1 %v1911_v59  ;;  %1770 = vmatprep.subr.bf16.mxu0 %v1912_v60 }
  0x66   :  { %1792 = vmatprep.subr.bf16.mxu1 %v1913_v61  ;;  %1416 = vmatprep.mubr.bf16.mxu0 %v1503_v28  ;;  %v1635_v28 = vld [vmem:[%s2412_s3] ss:$0 sm:$0xff] }
  0x67   :  { %1457 = vmatprep.mubr.bf16.mxu1 %v1505_v31 }
  0x68   :  { %1771 = vmatpush3.bf16.msra.mxu0 %v1914_v62 }
  0x69   :  { %1793 = vmatpush3.bf16.msra.mxu1 %v1915_v63  ;;  %1772 = vmatprep.subr.bf16.mxu0 %v1916_v0 }
  0x6a   :  { %1794 = vmatprep.subr.bf16.mxu1 %v1917_v1 }
  0x6c   :  { %1773 = vmatpush3.bf16.msra.mxu0 %v1918_v2 }
  0x6d   :  { %1795 = vmatpush3.bf16.msra.mxu1 %v1919_v3  ;;  %1774 = vmatprep.subr.bf16.mxu0 %v1920_v4 }
  0x6e   :  { %1796 = vmatprep.subr.bf16.mxu1 %v1921_v5 }
  0x70   :  { %1775 = vmatpush3.bf16.msra.mxu0 %v1922_v6 }
  0x71   :  { %1797 = vmatpush3.bf16.msra.mxu1 %v1923_v7  ;;  %1776 = vmatprep.subr.bf16.mxu0 %v1924_v8 }
  0x72   :  { %1798 = vmatprep.subr.bf16.mxu1 %v1925_v9 }
  0x74   :  { %1777 = vmatpush3.bf16.msra.mxu0 %v1926_v10 }
  0x75   :  { %1799 = vmatpush3.bf16.msra.mxu1 %v1927_v11  ;;  %1778 = vmatprep.subr.bf16.mxu0 %v1928_v12 }
  0x76   :  { %1800 = vmatprep.subr.bf16.mxu1 %v1929_v13 }
  0x78   :  { %1779 = vmatpush3.bf16.msra.mxu0 %v1930_v14 }
  0x79   :  { %1801 = vmatpush3.bf16.msra.mxu1 %v1931_v15  ;;  %1780 = vmatprep.subr.bf16.mxu0 %v1932_v16 }
  0x7a   :  { %1802 = vmatprep.subr.bf16.mxu1 %v1933_v17 }
  0x7c   :  { %1781 = vmatpush3.bf16.msra.mxu0 %v1934_v18 }
  0x7d   :  { %1803 = vmatpush3.bf16.msra.mxu1 %v1935_v19  ;;  %1782 = vmatprep.subr.bf16.mxu0 %v1936_v20 }
  0x7e   :  { %1804 = vmatprep.subr.bf16.mxu1 %v1937_v21 }
  0x80   :  { %1783 = vmatpush3.bf16.msra.mxu0 %v1938_v22  ;;  %v1634_v22 = vld [vmem:[%s2411_s2] ss:$0 sm:$0xff] }
  0x81   :  { %1805 = vmatpush3.bf16.msra.mxu1 %v1939_v23 }
  0x83   :  { %1417 = vmatmul.mubr.bf16.vlgmr.msra.gmra.mxu0 %v1502_v27 }
  0x84   :  { %1458 = vmatmul.mubr.bf16.vlgmr.msra.gmra.mxu1 %v1504_v30 }
  0xe3   :  { %v1652_v32 = vpop.f32.mrf.mxu0 }
  0xe4   :  { %v1674_v33 = vpop.f32.mrf.mxu1 }
  0xe5   :  { %v1653_v34 = vpop.f32.mrf.mxu0 }
  0xe6   :  { %v1675_v35 = vpop.f32.mrf.mxu1  ;;  %v1654_v49 = vadd.f32 %v1653_v34, %v1652_v32 }
  0xe7   :  { %v1655_v36 = vpop.f32.mrf.mxu0  ;;  %v1676_v50 = vadd.f32 %v1675_v35, %v1674_v33 }
  0xe8   :  { %v1677_v37 = vpop.f32.mrf.mxu1 }
  0xe9   :  { %v1656_v38 = vpop.f32.mrf.mxu0  ;;  %v1214_v54 = vadd.f32 %v1676_v50, %v1654_v49 }
  0xea   :  { %v1678_v40 = vpop.f32.mrf.mxu1  ;;  %v1657_v55 = vadd.f32 %v1656_v38, %v1655_v36 }
  0xeb   :  { %v1679_v56 = vadd.f32 %v1678_v40, %v1677_v37 }
  0xed   :  { %v1217_v62 = vadd.f32 %v1679_v56, %v1657_v55 }
 0x103   :  { %v1696_v39 = vpop.f32.mrf.mxu0 }
 0x104   :  { %v1718_v41 = vpop.f32.mrf.mxu1 }
 0x105   :  { %v1697_v42 = vpop.f32.mrf.mxu0 }
 0x106   :  { %v1719_v43 = vpop.f32.mrf.mxu1  ;;  %v1698_v53 = vadd.f32 %v1697_v42, %v1696_v39 }
 0x107   :  { %v1699_v44 = vpop.f32.mrf.mxu0  ;;  %v1720_v60 = vadd.f32 %v1719_v43, %v1718_v41 }
 0x108   :  { %v1721_v45 = vpop.f32.mrf.mxu1  ;;  %v1255_v59 = vadd.f32 %v1698_v53, %v1214_v54 }
 0x109   :  { %v1700_v46 = vpop.f32.mrf.mxu0 }
 0x10a   :  { %v1722_v48 = vpop.f32.mrf.mxu1  ;;  %v1701_v61 = vadd.f32 %v1700_v46, %v1699_v44  ;;  %v1296_v2 = vadd.f32 %v1720_v60, %v1255_v59 }
 0x10b   :  { %v1723_v4 = vadd.f32 %v1722_v48, %v1721_v45 }
 0x10c   :  { %v1258_v3 = vadd.f32 %v1701_v61, %v1217_v62 }
 0x10e   :  { %v1299_v10 = vadd.f32 %v1723_v4, %v1258_v3 }
 0x123   :  { %v1740_v47 = vpop.f32.mrf.mxu0 }
 0x124   :  { %v1762_v51 = vpop.f32.mrf.mxu1 }
 0x125   :  { %v1741_v52 = vpop.f32.mrf.mxu0 }
 0x126   :  { %v1763_v57 = vpop.f32.mrf.mxu1  ;;  %v1742_v63 = vadd.f32 %v1741_v52, %v1740_v47 }
 0x127   :  { %v1743_v58 = vpop.f32.mrf.mxu0  ;;  %v1764_v6 = vadd.f32 %v1763_v57, %v1762_v51 }
 0x128   :  { %v1765_v0 = vpop.f32.mrf.mxu1  ;;  %v1337_v5 = vadd.f32 %v1742_v63, %v1296_v2 }
 0x129   :  { %v1744_v1 = vpop.f32.mrf.mxu0 }
 0x12a   :  { %v1745_v7 = vadd.f32 %v1744_v1, %v1743_v58  ;;  %v1766_v8 = vpop.f32.mrf.mxu1  ;;  %v1378_v13 = vadd.f32 %v1764_v6, %v1337_v5 }
 0x12b   :  { %v1767_v18 = vadd.f32 %v1766_v8, %v1765_v0 }
 0x12c   :  { %v1340_v14 = vadd.f32 %v1745_v7, %v1299_v10 }
 0x12e   :  { %v1381_v24 = vadd.f32 %v1767_v18, %v1340_v14 }
 0x143   :  { %v1784_v9 = vpop.f32.mrf.mxu0 }
 0x144   :  { %v1806_v11 = vpop.f32.mrf.mxu1 }
 0x145   :  { %v1785_v12 = vpop.f32.mrf.mxu0 }
 0x146   :  { %v1786_v15 = vadd.f32 %v1785_v12, %v1784_v9  ;;  %v1807_v16 = vpop.f32.mrf.mxu1 }
 0x147   :  { %v1787_v17 = vpop.f32.mrf.mxu0  ;;  %v1808_v20 = vadd.f32 %v1807_v16, %v1806_v11 }
 0x148   :  { %v1419_v19 = vadd.f32 %v1786_v15, %v1378_v13  ;;  %v1809_v21 = vpop.f32.mrf.mxu1 }
 0x149   :  { %v1788_v23 = vpop.f32.mrf.mxu0 }
 0x14a   :  { %v1460_v25 = vadd.f32 %v1808_v20, %v1419_v19  ;;  %v1789_v26 = vadd.f32 %v1788_v23, %v1787_v17  ;;  %v1810_v27 = vpop.f32.mrf.mxu1 }
 0x14b   :  { %v1811_v31 = vadd.f32 %v1810_v27, %v1809_v21 }
 0x14c   :  { %v1473_v29 = vmul.f32 %v1634_v22, %v1460_v25  ;;  %v1422_v30 = vadd.f32 %v1789_v26, %v1381_v24 }
 0x14e   :  { %v1482_v32 = vadd.f32 %v1635_v28, %v1473_v29  ;;  %v1463_v33 = vadd.f32 %v1811_v31, %v1422_v30 }
 0x150   :  { %1484 = vst [vmem:[%s2413_s4] sm:$0xff] %v1482_v32  ;;  %v1474_v34 = vmul.f32 %v1634_v22, %v1463_v33 }
 0x152   :  { %v1483_v35 = vadd.f32 %v1635_v28, %v1474_v34 }
 0x154   :  { %1485 = vst [vmem:[%s2413_s4 + $0x8] sm:$0xff] %v1483_v35 }

</bundles_post_ra>
